<compile_context>
chip_gen: v7x
topology: tpu7x:2x2x1
jax: 0.10.0
libtpu: 0.0.40
codegen_flags: <defaults>
</compile_context>

<pallas_src>
import functools
import math

import jax
import jax.numpy as jnp
from jax.experimental import pallas as pl
from jax.experimental.pallas import tpu as pltpu

LEAKY_SLOPE = 0.01   # nn.LeakyReLU default negative_slope
# TODO(synk): the reference `conv(...)` helper's activation slope is not shown;
# nn.LeakyReLU default (0.01) is used everywhere.
BN_EPS = 1e-5


def _round_up(x, m):
    return (x + m - 1) // m * m


_TILE_PLAN = None


def _tile_plan():
    """(TM, TN, TK) tile targets per TPU generation."""
    global _TILE_PLAN
    if _TILE_PLAN is None:
        try:
            kind = jax.devices()[0].device_kind.lower()
        except Exception:
            kind = ""
        if "v7" in kind:
            _TILE_PLAN = (256, 256, 256)   # 64 MiB VMEM/TC, 2 TCs, 256x256 MXU
        elif "v6" in kind:
            _TILE_PLAN = (512, 256, 256)   # 256x256 MXU, 128 MiB VMEM
        else:
            _TILE_PLAN = (512, 128, 128)   # v5e & default: 128x128 MXU, 16 MiB scoped
    return _TILE_PLAN


# ----------------------------------------------------------------------------
# Pallas kernels
# ----------------------------------------------------------------------------
def _mm_epilogue(acc, bias, resid, activate):
    y = acc + bias
    if resid is not None:
        y = y + resid
    if activate:
        y = jnp.where(y >= 0, y, LEAKY_SLOPE * y)
    return y


def _mm_bias_kernel(a_ref, b_ref, bias_ref, o_ref, acc_ref, *, activate):
    """out = act( A @ B + bias ), bias per output column."""
    k = pl.program_id(2)

    @pl.when(k == 0)
    def _():
        acc_ref[...] = jnp.zeros_like(acc_ref)

    acc_ref[...] += jnp.dot(a_ref[...], b_ref[...],
                            preferred_element_type=jnp.float32)

    @pl.when(k == pl.num_programs(2) - 1)
    def _():
        y = _mm_epilogue(acc_ref[...], bias_ref[...], None, activate)
        o_ref[...] = y.astype(o_ref.dtype)


def _mm_bias_res_kernel(a_ref, b_ref, bias_ref, r_ref, o_ref, acc_ref, *, activate):
    """out = act( A @ B + bias + residual ) — residual add fused in epilogue."""
    k = pl.program_id(2)

    @pl.when(k == 0)
    def _():
        acc_ref[...] = jnp.zeros_like(acc_ref)

    acc_ref[...] += jnp.dot(a_ref[...], b_ref[...],
                            preferred_element_type=jnp.float32)

    @pl.when(k == pl.num_programs(2) - 1)
    def _():
        y = _mm_epilogue(acc_ref[...], bias_ref[...], r_ref[...], activate)
        o_ref[...] = y.astype(o_ref.dtype)


def _head_fc_kernel(x_ref, fcw_ref, fcb_ref, sww_ref, swb_ref, o_ref):
    # x: (B, H*W, 512) -> GAP -> fc -> swarm linear, all fused (tiny shapes).
    feat = jnp.mean(x_ref[...], axis=1)
    feat = jnp.dot(feat, fcw_ref[...],
                   preferred_element_type=jnp.float32) + fcb_ref[...]
    o_ref[...] = jnp.dot(feat, sww_ref[...],
                         preferred_element_type=jnp.float32) + swb_ref[...]


def _head_nofc_kernel(x_ref, sww_ref, swb_ref, o_ref):
    feat = jnp.mean(x_ref[...], axis=1)
    o_ref[...] = jnp.dot(feat, sww_ref[...],
                         preferred_element_type=jnp.float32) + swb_ref[...]


# ----------------------------------------------------------------------------
# Matmul wrapper (tiled, bf16 operands, f32 accumulation, fused epilogue)
# ----------------------------------------------------------------------------
def matmul_bias_act(a, b_pad, bias, *, activate, residual=None):
    """out[:M, :cout] = act( a @ b_pad + bias [+ residual] ).

    a:      (M, K)   bf16 im2col patches
    b_pad:  (Kp, Np) bf16 weights, pre-padded to multiples of 128, BN folded in
    bias:   (cout,)  f32
    residual: (M, cout) f32 or None
    """
    M, K = a.shape
    Kp, Np = b_pad.shape
    cout = bias.shape[0]
    TMt, TNt, TKt = _tile_plan()

    Mp = _round_up(max(M, 16), 16)
    if Mp > TMt:
        Mp = _round_up(Mp, TMt)
        TM = TMt
    else:
        TM = Mp
    TK = TKt if Kp % TKt == 0 else 128
    TN = TNt if Np % TNt == 0 else 128

    a_p = jnp.pad(a, ((0, Mp - M), (0, Kp - K)))
    bias_p = jnp.pad(bias, (0, Np - cout)).reshape(1, Np)

    inputs = [a_p, b_pad, bias_p]
    in_specs = [
        pl.BlockSpec((TM, TK), lambda i, j, k: (i, k)),
        pl.BlockSpec((TK, TN), lambda i, j, k: (k, j)),
        pl.BlockSpec((1, TN), lambda i, j, k: (0, j)),
    ]
    if residual is not None:
        r_p = jnp.pad(residual.astype(jnp.float32),
                      ((0, Mp - M), (0, Np - cout)))
        inputs.append(r_p)
        in_specs.append(pl.BlockSpec((TM, TN), lambda i, j, k: (i, j)))
        kernel = functools.partial(_mm_bias_res_kernel, activate=activate)
    else:
        kernel = functools.partial(_mm_bias_kernel, activate=activate)

    grid = (Mp // TM, Np // TN, Kp // TK)
    out = pl.pallas_call(
        kernel,
        out_shape=jax.ShapeDtypeStruct((Mp, Np), jnp.float32),
        grid_spec=pltpu.PrefetchScalarGridSpec(
            num_scalar_prefetch=0,
            grid=grid,
            in_specs=in_specs,
            out_specs=pl.BlockSpec((TM, TN), lambda i, j, k: (i, j)),
            scratch_shapes=[pltpu.VMEM((TM, TN), jnp.float32)],
        ),
        compiler_params=pltpu.CompilerParams(
            dimension_semantics=("parallel", "parallel", "arbitrary")),
    )(*inputs)
    return out[:M, :cout]


# ----------------------------------------------------------------------------
# Conv / pool wrappers (glue = slicing; compute = Pallas kernels)
# ----------------------------------------------------------------------------
def im2col(x, kh, kw, stride, padding):
    # TODO(synk): the patch matrix is still materialized by XLA (in bf16); a
    # fully in-kernel tap-gathered A operand (direct conv) is left as future work.
    N, H, W, C = x.shape
    if padding:
        x = jnp.pad(x, ((0, 0), (padding, padding), (padding, padding), (0, 0)))
    OH = (H + 2 * padding - kh) // stride + 1
    OW = (W + 2 * padding - kw) // stride + 1
    if kh == 1 and kw == 1:
        patches = x[:, ::stride, ::stride, :]
        return patches.reshape(N * OH * OW, C), (N, OH, OW)
    cols = []
    for i in range(kh):
        for j in range(kw):
            cols.append(x[:, i:i + (OH - 1) * stride + 1:stride,
                          j:j + (OW - 1) * stride + 1:stride, :])
    patches = jnp.concatenate(cols, axis=-1)          # (N, OH, OW, kh*kw*C)
    return patches.reshape(N * OH * OW, kh * kw * C), (N, OH, OW)


def conv_bn_act(x, p, kh, kw, *, stride, padding, activate, residual=None):
    """Conv2d(bias=False) + BN(eval, folded) [+ residual add] [+ LeakyReLU]."""
    cout = p["bias"].shape[0]
    patches, (N, OH, OW) = im2col(x.astype(jnp.bfloat16), kh, kw, stride, padding)
    res = None if residual is None else residual.reshape(N * OH * OW, cout)
    out = matmul_bias_act(patches, p["wmat"], p["bias"],
                          activate=activate, residual=res)
    return out.reshape(N, OH, OW, cout)


def maxpool_3x3_s2_p1(x):
    # TODO(synk): tap max done with fused plain-JAX maximums (per perf review)
    # instead of a dedicated Pallas kernel, to avoid a 9x stacked HBM tensor.
    N, H, W, C = x.shape
    xp = jnp.pad(x, ((0, 0), (1, 1), (1, 1), (0, 0)),
                 constant_values=-jnp.inf)
    OH = (H + 2 - 3) // 2 + 1
    OW = (W + 2 - 3) // 2 + 1
    out = None
    for i in range(3):
        for j in range(3):
            tap = jax.lax.slice(
                xp, (0, i, j, 0),
                (N, i + 2 * (OH - 1) + 1, j + 2 * (OW - 1) + 1, C),
                (1, 2, 2, 1))
            out = tap if out is None else jnp.maximum(out, tap)
    return out


def swarm_head(x, params, *, fc_input, dim_output, num_components):
    """Fused GAP + (optional) fc + swarm linear, single Pallas kernel."""
    N, H, W, C = x.shape
    x3 = x.reshape(N, H * W, C)
    n_out = num_components * dim_output
    if fc_input != 0:
        return pl.pallas_call(
            _head_fc_kernel,
            out_shape=jax.ShapeDtypeStruct((N, n_out), jnp.float32),
        )(x3, params["fc_w"], params["fc_b"].reshape(1, -1),
          params["swarm_w"], params["swarm_b"].reshape(1, -1))
    return pl.pallas_call(
        _head_nofc_kernel,
        out_shape=jax.ShapeDtypeStruct((N, n_out), jnp.float32),
    )(x3, params["swarm_w"], params["swarm_b"].reshape(1, -1))


# ----------------------------------------------------------------------------
# Parameter construction (deterministic, synthetic; BN folded into weights)
# ----------------------------------------------------------------------------
class _KeyGen:
    def __init__(self, seed):
        self._key = jax.random.PRNGKey(seed)

    def __call__(self):
        self._key, sub = jax.random.split(self._key)
        return sub


def make_conv_params(kg, kh, kw, cin, cout):
    fan_in = kh * kw * cin
    w = jax.random.normal(kg(), (kh, kw, cin, cout), jnp.float32) * math.sqrt(2.0 / fan_in)
    gamma = jnp.ones((cout,), jnp.float32)
    beta = jnp.zeros((cout,), jnp.float32)
    # eval-mode BN with running_mean=0 / running_var=1 folded into weight + bias.
    scale = gamma / jnp.sqrt(1.0 + BN_EPS)
    wmat = w.reshape(kh * kw * cin, cout) * scale[None, :]
    Kp = _round_up(kh * kw * cin, 128)
    Np = _round_up(cout, 128)
    wmat = jnp.pad(wmat, ((0, Kp - kh * kw * cin), (0, Np - cout))).astype(jnp.bfloat16)
    bias = beta                                     # running_mean = 0
    return {"wmat": wmat, "bias": bias}


def make_basic_block_params(kg, cin, cout, stride):
    p = {"conv1": make_conv_params(kg, 3, 3, cin, cout),
         "conv2": make_conv_params(kg, 3, 3, cout, cout),
         "down": None}
    if stride != 1 or cin != cout:
        p["down"] = make_conv_params(kg, 1, 1, cin, cout)
    return p


def make_layer_params(kg, cin, cout, num_blocks, stride):
    blocks = [make_basic_block_params(kg, cin, cout, stride)]
    for _ in range(num_blocks - 1):
        blocks.append(make_basic_block_params(kg, cout, cout, 1))
    return blocks


def make_convswarm_params(kg, input_channel, fc_input, dim_output, num_components):
    num_layers = [3, 4, 6, 3]
    num_channels = [64, 128, 256, 512]
    params = {
        "stem": make_conv_params(kg, 7, 7, input_channel, 64),
        "layer1": make_layer_params(kg, 64, num_channels[0], num_layers[0], 1),
        "layer2": make_layer_params(kg, num_channels[0], num_channels[1], num_layers[1], 2),
        "layer3": make_layer_params(kg, num_channels[1], num_channels[2], num_layers[2], 2),
        "layer4": make_layer_params(kg, num_channels[2], num_channels[3], num_layers[3], 2),
    }
    if fc_input != 0:
        params["fc_w"] = jax.random.normal(kg(), (num_channels[3], fc_input),
                                           jnp.float32) * math.sqrt(1.0 / num_channels[3])
        params["fc_b"] = jnp.zeros((fc_input,), jnp.float32)
        swarm_in = fc_input
    else:
        swarm_in = num_channels[3]
    # TODO(synk): SwarmModule definition is not provided in the reference; assumed
    # to be Linear(swarm_in -> num_components*dim_output) reshaped to (B, M, dim_output).
    params["swarm_w"] = jax.random.normal(kg(), (swarm_in, num_components * dim_output),
                                          jnp.float32) * math.sqrt(1.0 / swarm_in)
    params["swarm_b"] = jnp.zeros((num_components * dim_output,), jnp.float32)
    return params


# ----------------------------------------------------------------------------
# Forward pass
# ----------------------------------------------------------------------------
def basic_block_fwd(x, p, stride):
    out = conv_bn_act(x, p["conv1"], 3, 3, stride=stride, padding=1, activate=True)
    if p["down"] is not None:
        identity = conv_bn_act(x, p["down"], 1, 1, stride=stride, padding=0,
                               activate=False)
    else:
        identity = x
    # conv2 (no post-BN activation) with the residual add + LeakyReLU fused
    # into the matmul epilogue: leaky(conv2(out) + identity).
    return conv_bn_act(out, p["conv2"], 3, 3, stride=1, padding=1,
                       activate=True, residual=identity)


def layer_fwd(x, blocks, stride):
    x = basic_block_fwd(x, blocks[0], stride)
    for b in blocks[1:]:
        x = basic_block_fwd(x, b, 1)
    return x


def convswarm_forward(params, x_nchw, *, fc_input, dim_output, num_components):
    x = jnp.transpose(x_nchw, (0, 2, 3, 1)).astype(jnp.float32)   # NCHW -> NHWC
    # stem
    x = conv_bn_act(x, params["stem"], 7, 7, stride=2, padding=3, activate=True)
    x = maxpool_3x3_s2_p1(x)
    # residual stages
    x = layer_fwd(x, params["layer1"], 1)
    x = layer_fwd(x, params["layer2"], 2)
    x = layer_fwd(x, params["layer3"], 2)
    x = layer_fwd(x, params["layer4"], 2)
    # fused GAP + fc + swarm head
    out = swarm_head(x, params, fc_input=fc_input,
                     dim_output=dim_output, num_components=num_components)
    B = x_nchw.shape[0]
    return out.reshape(B, num_components, dim_output)


if __name__ == "__main__":
    INPUT_CHANNEL = 3
    FC_INPUT = 32
    DIM_OUTPUT = 2
    NUM_COMPONENTS = 5

    kg = _KeyGen(0)
    params = make_convswarm_params(kg, INPUT_CHANNEL, FC_INPUT, DIM_OUTPUT, NUM_COMPONENTS)

    x = jax.random.normal(jax.random.PRNGKey(0), (2, INPUT_CHANNEL, 32, 32), jnp.float32)

    fwd = jax.jit(functools.partial(convswarm_forward,
                                    fc_input=FC_INPUT,
                                    dim_output=DIM_OUTPUT,
                                    num_components=NUM_COMPONENTS))
    y = fwd(params, x)
    jax.block_until_ready(y)
    assert y.shape == (2, NUM_COMPONENTS, DIM_OUTPUT)
    assert bool(jnp.all(jnp.isfinite(y)))
    print("KERNEL_OK")
</pallas_src>

<mosaic_0001>
module attributes {stable_mosaic.version = 11 : i64} {
  func.func @_mm_bias_kernel(%arg0: i32, %arg1: i32, %arg2: i32, %arg3: memref<512x128xbf16, #tpu.memory_space<vmem>>, %arg4: memref<128x128xbf16, #tpu.memory_space<vmem>>, %arg5: memref<1x128xf32, #tpu.memory_space<vmem>>, %arg6: memref<512x128xf32, #tpu.memory_space<vmem>>, %arg7: memref<512x128xf32, #tpu.memory_space<vmem>>) attributes {dimension_semantics = [#tpu.dimension_semantics<parallel>, #tpu.dimension_semantics<parallel>, #tpu.dimension_semantics<arbitrary>], iteration_bounds = array<i64: 1, 1, 2>, scalar_prefetch = 0 : i64, scratch_operands = 1 : i64, tpu.core_type = #tpu.core_type<tc>, window_params = [{transform_indices = @transform_0, window_bounds = array<i64: 512, 128>}, {transform_indices = @transform_1, window_bounds = array<i64: 128, 128>}, {transform_indices = @transform_2, window_bounds = array<i64: 1, 128>}, {transform_indices = @transform_3, window_bounds = array<i64: 512, 128>}]} {
    %c0_i32 = arith.constant 0 : i32
    %0 = arith.cmpi eq, %arg2, %c0_i32 : i32
    %1 = arith.extui %0 : i1 to i32
    %c0_i32_0 = arith.constant 0 : i32
    %2 = arith.cmpi ne, %1, %c0_i32_0 : i32
    scf.if %2 {
      %cst_9 = arith.constant 0.000000e+00 : f32
      %12 = vector.broadcast %cst_9 : f32 to vector<512x128xf32>
      %c0_10 = arith.constant 0 : index
      %c0_11 = arith.constant 0 : index
      %13 = vector.load %arg7[%c0_10, %c0_11] : memref<512x128xf32, #tpu.memory_space<vmem>>, vector<512x128xf32>
      tpu.vector_store %arg7[%c0_10, %c0_11], %12 {strides = array<i32>} : memref<512x128xf32, #tpu.memory_space<vmem>>, vector<512x128xf32>,
    } else {
    }
    %c0 = arith.constant 0 : index
    %c0_1 = arith.constant 0 : index
    %3 = vector.load %arg7[%c0, %c0_1] : memref<512x128xf32, #tpu.memory_space<vmem>>, vector<512x128xf32>
    %c0_2 = arith.constant 0 : index
    %c0_3 = arith.constant 0 : index
    %4 = vector.load %arg3[%c0_2, %c0_3] : memref<512x128xbf16, #tpu.memory_space<vmem>>, vector<512x128xbf16>
    %c0_4 = arith.constant 0 : index
    %c0_5 = arith.constant 0 : index
    %5 = vector.load %arg4[%c0_4, %c0_5] : memref<128x128xbf16, #tpu.memory_space<vmem>>, vector<128x128xbf16>
    %cst = arith.constant dense<0.000000e+00> : vector<512x128xf32>
    %6 = tpu.matmul %4, %5, %cst {dimension_numbers = #tpu.dot_dimension_numbers<[1], [0], [0], [1], [0, 0, 1, 1], [], []>} : vector<512x128xbf16>, vector<128x128xbf16>, vector<512x128xf32> -> vector<512x128xf32>
    %7 = arith.addf %3, %6 : vector<512x128xf32>
    %c0_6 = arith.constant 0 : index
    %c0_7 = arith.constant 0 : index
    %8 = vector.load %arg7[%c0_6, %c0_7] : memref<512x128xf32, #tpu.memory_space<vmem>>, vector<512x128xf32>
    tpu.vector_store %arg7[%c0_6, %c0_7], %7 {strides = array<i32>} : memref<512x128xf32, #tpu.memory_space<vmem>>, vector<512x128xf32>,
    %c1_i32 = arith.constant 1 : i32
    %9 = arith.cmpi eq, %arg2, %c1_i32 : i32
    %10 = arith.extui %9 : i1 to i32
    %c0_i32_8 = arith.constant 0 : i32
    %11 = arith.cmpi ne, %10, %c0_i32_8 : i32
    scf.if %11 {
      %c0_9 = arith.constant 0 : index
      %c0_10 = arith.constant 0 : index
      %12 = vector.load %arg7[%c0_9, %c0_10] : memref<512x128xf32, #tpu.memory_space<vmem>>, vector<512x128xf32>
      %c0_11 = arith.constant 0 : index
      %c0_12 = arith.constant 0 : index
      %13 = vector.load %arg5[%c0_11, %c0_12] : memref<1x128xf32, #tpu.memory_space<vmem>>, vector<1x128xf32>
      %14 = vector.broadcast %13 : vector<1x128xf32> to vector<512x128xf32>
      %15 = arith.addf %12, %14 : vector<512x128xf32>
      %cst_13 = arith.constant 0.000000e+00 : f32
      %16 = vector.broadcast %cst_13 : f32 to vector<512x128xf32>
      %17 = arith.cmpf oge, %15, %16 : vector<512x128xf32>
      %cst_14 = arith.constant 0.00999999977 : f32
      %18 = vector.broadcast %cst_14 : f32 to vector<512x128xf32>
      %19 = arith.mulf %18, %15 : vector<512x128xf32>
      %20 = arith.select %17, %15, %19 : vector<512x128xi1>, vector<512x128xf32>
      %c0_15 = arith.constant 0 : index
      %c0_16 = arith.constant 0 : index
      %21 = vector.load %arg6[%c0_15, %c0_16] : memref<512x128xf32, #tpu.memory_space<vmem>>, vector<512x128xf32>
      tpu.vector_store %arg6[%c0_15, %c0_16], %20 {strides = array<i32>} : memref<512x128xf32, #tpu.memory_space<vmem>>, vector<512x128xf32>,
    } else {
    }
    return
  }
  func.func @transform_0(%arg0: i32, %arg1: i32, %arg2: i32) -> (i32, i32) {
    %c0_i32 = arith.constant 0 : i32
    return %arg0, %arg2 : i32, i32
  }
  func.func @transform_1(%arg0: i32, %arg1: i32, %arg2: i32) -> (i32, i32) {
    %c0_i32 = arith.constant 0 : i32
    return %arg2, %arg1 : i32, i32
  }
  func.func @transform_2(%arg0: i32, %arg1: i32, %arg2: i32) -> (i32, i32) {
    %c0_i32 = arith.constant 0 : i32
    %c0_i32_0 = arith.constant 0 : i32
    return %c0_i32, %arg1 : i32, i32
  }
  func.func @transform_3(%arg0: i32, %arg1: i32, %arg2: i32) -> (i32, i32) {
    %c0_i32 = arith.constant 0 : i32
    return %arg0, %arg1 : i32, i32
  }
}

module attributes {stable_mosaic.version = 11 : i64} {
  func.func @_mm_bias_kernel(%arg0: i32, %arg1: i32, %arg2: i32, %arg3: memref<128x128xbf16, #tpu.memory_space<vmem>>, %arg4: memref<128x128xbf16, #tpu.memory_space<vmem>>, %arg5: memref<1x128xf32, #tpu.memory_space<vmem>>, %arg6: memref<128x128xf32, #tpu.memory_space<vmem>>, %arg7: memref<128x128xf32, #tpu.memory_space<vmem>>) attributes {dimension_semantics = [#tpu.dimension_semantics<parallel>, #tpu.dimension_semantics<parallel>, #tpu.dimension_semantics<arbitrary>], iteration_bounds = array<i64: 1, 1, 5>, scalar_prefetch = 0 : i64, scratch_operands = 1 : i64, tpu.core_type = #tpu.core_type<tc>, window_params = [{transform_indices = @transform_0, window_bounds = array<i64: 128, 128>}, {transform_indices = @transform_1, window_bounds = array<i64: 128, 128>}, {transform_indices = @transform_2, window_bounds = array<i64: 1, 128>}, {transform_indices = @transform_3, window_bounds = array<i64: 128, 128>}]} {
    %c0_i32 = arith.constant 0 : i32
    %0 = arith.cmpi eq, %arg2, %c0_i32 : i32
    %1 = arith.extui %0 : i1 to i32
    %c0_i32_0 = arith.constant 0 : i32
    %2 = arith.cmpi ne, %1, %c0_i32_0 : i32
    scf.if %2 {
      %cst_9 = arith.constant 0.000000e+00 : f32
      %12 = vector.broadcast %cst_9 : f32 to vector<128x128xf32>
      %c0_10 = arith.constant 0 : index
      %c0_11 = arith.constant 0 : index
      %13 = vector.load %arg7[%c0_10, %c0_11] : memref<128x128xf32, #tpu.memory_space<vmem>>, vector<128x128xf32>
      tpu.vector_store %arg7[%c0_10, %c0_11], %12 {strides = array<i32>} : memref<128x128xf32, #tpu.memory_space<vmem>>, vector<128x128xf32>,
    } else {
    }
    %c0 = arith.constant 0 : index
    %c0_1 = arith.constant 0 : index
    %3 = vector.load %arg7[%c0, %c0_1] : memref<128x128xf32, #tpu.memory_space<vmem>>, vector<128x128xf32>
    %c0_2 = arith.constant 0 : index
    %c0_3 = arith.constant 0 : index
    %4 = vector.load %arg3[%c0_2, %c0_3] : memref<128x128xbf16, #tpu.memory_space<vmem>>, vector<128x128xbf16>
    %c0_4 = arith.constant 0 : index
    %c0_5 = arith.constant 0 : index
    %5 = vector.load %arg4[%c0_4, %c0_5] : memref<128x128xbf16, #tpu.memory_space<vmem>>, vector<128x128xbf16>
    %cst = arith.constant dense<0.000000e+00> : vector<128x128xf32>
    %6 = tpu.matmul %4, %5, %cst {dimension_numbers = #tpu.dot_dimension_numbers<[1], [0], [0], [1], [0, 0, 1, 1], [], []>} : vector<128x128xbf16>, vector<128x128xbf16>, vector<128x128xf32> -> vector<128x128xf32>
    %7 = arith.addf %3, %6 : vector<128x128xf32>
    %c0_6 = arith.constant 0 : index
    %c0_7 = arith.constant 0 : index
    %8 = vector.load %arg7[%c0_6, %c0_7] : memref<128x128xf32, #tpu.memory_space<vmem>>, vector<128x128xf32>
    tpu.vector_store %arg7[%c0_6, %c0_7], %7 {strides = array<i32>} : memref<128x128xf32, #tpu.memory_space<vmem>>, vector<128x128xf32>,
    %c4_i32 = arith.constant 4 : i32
    %9 = arith.cmpi eq, %arg2, %c4_i32 : i32
    %10 = arith.extui %9 : i1 to i32
    %c0_i32_8 = arith.constant 0 : i32
    %11 = arith.cmpi ne, %10, %c0_i32_8 : i32
    scf.if %11 {
      %c0_9 = arith.constant 0 : index
      %c0_10 = arith.constant 0 : index
      %12 = vector.load %arg7[%c0_9, %c0_10] : memref<128x128xf32, #tpu.memory_space<vmem>>, vector<128x128xf32>
      %c0_11 = arith.constant 0 : index
      %c0_12 = arith.constant 0 : index
      %13 = vector.load %arg5[%c0_11, %c0_12] : memref<1x128xf32, #tpu.memory_space<vmem>>, vector<1x128xf32>
      %14 = vector.broadcast %13 : vector<1x128xf32> to vector<128x128xf32>
      %15 = arith.addf %12, %14 : vector<128x128xf32>
      %cst_13 = arith.constant 0.000000e+00 : f32
      %16 = vector.broadcast %cst_13 : f32 to vector<128x128xf32>
      %17 = arith.cmpf oge, %15, %16 : vector<128x128xf32>
      %cst_14 = arith.constant 0.00999999977 : f32
      %18 = vector.broadcast %cst_14 : f32 to vector<128x128xf32>
      %19 = arith.mulf %18, %15 : vector<128x128xf32>
      %20 = arith.select %17, %15, %19 : vector<128x128xi1>, vector<128x128xf32>
      %c0_15 = arith.constant 0 : index
      %c0_16 = arith.constant 0 : index
      %21 = vector.load %arg6[%c0_15, %c0_16] : memref<128x128xf32, #tpu.memory_space<vmem>>, vector<128x128xf32>
      tpu.vector_store %arg6[%c0_15, %c0_16], %20 {strides = array<i32>} : memref<128x128xf32, #tpu.memory_space<vmem>>, vector<128x128xf32>,
    } else {
    }
    return
  }
  func.func @transform_0(%arg0: i32, %arg1: i32, %arg2: i32) -> (i32, i32) {
    %c0_i32 = arith.constant 0 : i32
    return %arg0, %arg2 : i32, i32
  }
  func.func @transform_1(%arg0: i32, %arg1: i32, %arg2: i32) -> (i32, i32) {
    %c0_i32 = arith.constant 0 : i32
    return %arg2, %arg1 : i32, i32
  }
  func.func @transform_2(%arg0: i32, %arg1: i32, %arg2: i32) -> (i32, i32) {
    %c0_i32 = arith.constant 0 : i32
    %c0_i32_0 = arith.constant 0 : i32
    return %c0_i32, %arg1 : i32, i32
  }
  func.func @transform_3(%arg0: i32, %arg1: i32, %arg2: i32) -> (i32, i32) {
    %c0_i32 = arith.constant 0 : i32
    return %arg0, %arg1 : i32, i32
  }
}

module attributes {stable_mosaic.version = 11 : i64} {
  func.func @_mm_bias_res_kernel(%arg0: i32, %arg1: i32, %arg2: i32, %arg3: memref<128x128xbf16, #tpu.memory_space<vmem>>, %arg4: memref<128x128xbf16, #tpu.memory_space<vmem>>, %arg5: memref<1x128xf32, #tpu.memory_space<vmem>>, %arg6: memref<128x128xf32, #tpu.memory_space<vmem>>, %arg7: memref<128x128xf32, #tpu.memory_space<vmem>>, %arg8: memref<128x128xf32, #tpu.memory_space<vmem>>) attributes {dimension_semantics = [#tpu.dimension_semantics<parallel>, #tpu.dimension_semantics<parallel>, #tpu.dimension_semantics<arbitrary>], iteration_bounds = array<i64: 1, 1, 5>, scalar_prefetch = 0 : i64, scratch_operands = 1 : i64, tpu.core_type = #tpu.core_type<tc>, window_params = [{transform_indices = @transform_0, window_bounds = array<i64: 128, 128>}, {transform_indices = @transform_1, window_bounds = array<i64: 128, 128>}, {transform_indices = @transform_2, window_bounds = array<i64: 1, 128>}, {transform_indices = @transform_3, window_bounds = array<i64: 128, 128>}, {transform_indices = @transform_4, window_bounds = array<i64: 128, 128>}]} {
    %c0_i32 = arith.constant 0 : i32
    %0 = arith.cmpi eq, %arg2, %c0_i32 : i32
    %1 = arith.extui %0 : i1 to i32
    %c0_i32_0 = arith.constant 0 : i32
    %2 = arith.cmpi ne, %1, %c0_i32_0 : i32
    scf.if %2 {
      %cst_9 = arith.constant 0.000000e+00 : f32
      %12 = vector.broadcast %cst_9 : f32 to vector<128x128xf32>
      %c0_10 = arith.constant 0 : index
      %c0_11 = arith.constant 0 : index
      %13 = vector.load %arg8[%c0_10, %c0_11] : memref<128x128xf32, #tpu.memory_space<vmem>>, vector<128x128xf32>
      tpu.vector_store %arg8[%c0_10, %c0_11], %12 {strides = array<i32>} : memref<128x128xf32, #tpu.memory_space<vmem>>, vector<128x128xf32>,
    } else {
    }
    %c0 = arith.constant 0 : index
    %c0_1 = arith.constant 0 : index
    %3 = vector.load %arg8[%c0, %c0_1] : memref<128x128xf32, #tpu.memory_space<vmem>>, vector<128x128xf32>
    %c0_2 = arith.constant 0 : index
    %c0_3 = arith.constant 0 : index
    %4 = vector.load %arg3[%c0_2, %c0_3] : memref<128x128xbf16, #tpu.memory_space<vmem>>, vector<128x128xbf16>
    %c0_4 = arith.constant 0 : index
    %c0_5 = arith.constant 0 : index
    %5 = vector.load %arg4[%c0_4, %c0_5] : memref<128x128xbf16, #tpu.memory_space<vmem>>, vector<128x128xbf16>
    %cst = arith.constant dense<0.000000e+00> : vector<128x128xf32>
    %6 = tpu.matmul %4, %5, %cst {dimension_numbers = #tpu.dot_dimension_numbers<[1], [0], [0], [1], [0, 0, 1, 1], [], []>} : vector<128x128xbf16>, vector<128x128xbf16>, vector<128x128xf32> -> vector<128x128xf32>
    %7 = arith.addf %3, %6 : vector<128x128xf32>
    %c0_6 = arith.constant 0 : index
    %c0_7 = arith.constant 0 : index
    %8 = vector.load %arg8[%c0_6, %c0_7] : memref<128x128xf32, #tpu.memory_space<vmem>>, vector<128x128xf32>
    tpu.vector_store %arg8[%c0_6, %c0_7], %7 {strides = array<i32>} : memref<128x128xf32, #tpu.memory_space<vmem>>, vector<128x128xf32>,
    %c4_i32 = arith.constant 4 : i32
    %9 = arith.cmpi eq, %arg2, %c4_i32 : i32
    %10 = arith.extui %9 : i1 to i32
    %c0_i32_8 = arith.constant 0 : i32
    %11 = arith.cmpi ne, %10, %c0_i32_8 : i32
    scf.if %11 {
      %c0_9 = arith.constant 0 : index
      %c0_10 = arith.constant 0 : index
      %12 = vector.load %arg8[%c0_9, %c0_10] : memref<128x128xf32, #tpu.memory_space<vmem>>, vector<128x128xf32>
      %c0_11 = arith.constant 0 : index
      %c0_12 = arith.constant 0 : index
      %13 = vector.load %arg5[%c0_11, %c0_12] : memref<1x128xf32, #tpu.memory_space<vmem>>, vector<1x128xf32>
      %c0_13 = arith.constant 0 : index
      %c0_14 = arith.constant 0 : index
      %14 = vector.load %arg6[%c0_13, %c0_14] : memref<128x128xf32, #tpu.memory_space<vmem>>, vector<128x128xf32>
      %15 = vector.broadcast %13 : vector<1x128xf32> to vector<128x128xf32>
      %16 = arith.addf %12, %15 : vector<128x128xf32>
      %17 = arith.addf %16, %14 : vector<128x128xf32>
      %cst_15 = arith.constant 0.000000e+00 : f32
      %18 = vector.broadcast %cst_15 : f32 to vector<128x128xf32>
      %19 = arith.cmpf oge, %17, %18 : vector<128x128xf32>
      %cst_16 = arith.constant 0.00999999977 : f32
      %20 = vector.broadcast %cst_16 : f32 to vector<128x128xf32>
      %21 = arith.mulf %20, %17 : vector<128x128xf32>
      %22 = arith.select %19, %17, %21 : vector<128x128xi1>, vector<128x128xf32>
      %c0_17 = arith.constant 0 : index
      %c0_18 = arith.constant 0 : index
      %23 = vector.load %arg7[%c0_17, %c0_18] : memref<128x128xf32, #tpu.memory_space<vmem>>, vector<128x128xf32>
      tpu.vector_store %arg7[%c0_17, %c0_18], %22 {strides = array<i32>} : memref<128x128xf32, #tpu.memory_space<vmem>>, vector<128x128xf32>,
    } else {
    }
    return
  }
  func.func @transform_0(%arg0: i32, %arg1: i32, %arg2: i32) -> (i32, i32) {
    %c0_i32 = arith.constant 0 : i32
    return %arg0, %arg2 : i32, i32
  }
  func.func @transform_1(%arg0: i32, %arg1: i32, %arg2: i32) -> (i32, i32) {
    %c0_i32 = arith.constant 0 : i32
    return %arg2, %arg1 : i32, i32
  }
  func.func @transform_2(%arg0: i32, %arg1: i32, %arg2: i32) -> (i32, i32) {
    %c0_i32 = arith.constant 0 : i32
    %c0_i32_0 = arith.constant 0 : i32
    return %c0_i32, %arg1 : i32, i32
  }
  func.func @transform_3(%arg0: i32, %arg1: i32, %arg2: i32) -> (i32, i32) {
    %c0_i32 = arith.constant 0 : i32
    return %arg0, %arg1 : i32, i32
  }
  func.func @transform_4(%arg0: i32, %arg1: i32, %arg2: i32) -> (i32, i32) {
    %c0_i32 = arith.constant 0 : i32
    return %arg0, %arg1 : i32, i32
  }
}

module attributes {stable_mosaic.version = 11 : i64} {
  func.func @_mm_bias_kernel(%arg0: i32, %arg1: i32, %arg2: i32, %arg3: memref<32x128xbf16, #tpu.memory_space<vmem>>, %arg4: memref<128x128xbf16, #tpu.memory_space<vmem>>, %arg5: memref<1x128xf32, #tpu.memory_space<vmem>>, %arg6: memref<32x128xf32, #tpu.memory_space<vmem>>, %arg7: memref<32x128xf32, #tpu.memory_space<vmem>>) attributes {dimension_semantics = [#tpu.dimension_semantics<parallel>, #tpu.dimension_semantics<parallel>, #tpu.dimension_semantics<arbitrary>], iteration_bounds = array<i64: 1, 1, 5>, scalar_prefetch = 0 : i64, scratch_operands = 1 : i64, tpu.core_type = #tpu.core_type<tc>, window_params = [{transform_indices = @transform_0, window_bounds = array<i64: 32, 128>}, {transform_indices = @transform_1, window_bounds = array<i64: 128, 128>}, {transform_indices = @transform_2, window_bounds = array<i64: 1, 128>}, {transform_indices = @transform_3, window_bounds = array<i64: 32, 128>}]} {
    %c0_i32 = arith.constant 0 : i32
    %0 = arith.cmpi eq, %arg2, %c0_i32 : i32
    %1 = arith.extui %0 : i1 to i32
    %c0_i32_0 = arith.constant 0 : i32
    %2 = arith.cmpi ne, %1, %c0_i32_0 : i32
    scf.if %2 {
      %cst_9 = arith.constant 0.000000e+00 : f32
      %12 = vector.broadcast %cst_9 : f32 to vector<32x128xf32>
      %c0_10 = arith.constant 0 : index
      %c0_11 = arith.constant 0 : index
      %13 = vector.load %arg7[%c0_10, %c0_11] : memref<32x128xf32, #tpu.memory_space<vmem>>, vector<32x128xf32>
      tpu.vector_store %arg7[%c0_10, %c0_11], %12 {strides = array<i32>} : memref<32x128xf32, #tpu.memory_space<vmem>>, vector<32x128xf32>,
    } else {
    }
    %c0 = arith.constant 0 : index
    %c0_1 = arith.constant 0 : index
    %3 = vector.load %arg7[%c0, %c0_1] : memref<32x128xf32, #tpu.memory_space<vmem>>, vector<32x128xf32>
    %c0_2 = arith.constant 0 : index
    %c0_3 = arith.constant 0 : index
    %4 = vector.load %arg3[%c0_2, %c0_3] : memref<32x128xbf16, #tpu.memory_space<vmem>>, vector<32x128xbf16>
    %c0_4 = arith.constant 0 : index
    %c0_5 = arith.constant 0 : index
    %5 = vector.load %arg4[%c0_4, %c0_5] : memref<128x128xbf16, #tpu.memory_space<vmem>>, vector<128x128xbf16>
    %cst = arith.constant dense<0.000000e+00> : vector<32x128xf32>
    %6 = tpu.matmul %4, %5, %cst {dimension_numbers = #tpu.dot_dimension_numbers<[1], [0], [0], [1], [0, 0, 1, 1], [], []>} : vector<32x128xbf16>, vector<128x128xbf16>, vector<32x128xf32> -> vector<32x128xf32>
    %7 = arith.addf %3, %6 : vector<32x128xf32>
    %c0_6 = arith.constant 0 : index
    %c0_7 = arith.constant 0 : index
    %8 = vector.load %arg7[%c0_6, %c0_7] : memref<32x128xf32, #tpu.memory_space<vmem>>, vector<32x128xf32>
    tpu.vector_store %arg7[%c0_6, %c0_7], %7 {strides = array<i32>} : memref<32x128xf32, #tpu.memory_space<vmem>>, vector<32x128xf32>,
    %c4_i32 = arith.constant 4 : i32
    %9 = arith.cmpi eq, %arg2, %c4_i32 : i32
    %10 = arith.extui %9 : i1 to i32
    %c0_i32_8 = arith.constant 0 : i32
    %11 = arith.cmpi ne, %10, %c0_i32_8 : i32
    scf.if %11 {
      %c0_9 = arith.constant 0 : index
      %c0_10 = arith.constant 0 : index
      %12 = vector.load %arg7[%c0_9, %c0_10] : memref<32x128xf32, #tpu.memory_space<vmem>>, vector<32x128xf32>
      %c0_11 = arith.constant 0 : index
      %c0_12 = arith.constant 0 : index
      %13 = vector.load %arg5[%c0_11, %c0_12] : memref<1x128xf32, #tpu.memory_space<vmem>>, vector<1x128xf32>
      %14 = vector.broadcast %13 : vector<1x128xf32> to vector<32x128xf32>
      %15 = arith.addf %12, %14 : vector<32x128xf32>
      %cst_13 = arith.constant 0.000000e+00 : f32
      %16 = vector.broadcast %cst_13 : f32 to vector<32x128xf32>
      %17 = arith.cmpf oge, %15, %16 : vector<32x128xf32>
      %cst_14 = arith.constant 0.00999999977 : f32
      %18 = vector.broadcast %cst_14 : f32 to vector<32x128xf32>
      %19 = arith.mulf %18, %15 : vector<32x128xf32>
      %20 = arith.select %17, %15, %19 : vector<32x128xi1>, vector<32x128xf32>
      %c0_15 = arith.constant 0 : index
      %c0_16 = arith.constant 0 : index
      %21 = vector.load %arg6[%c0_15, %c0_16] : memref<32x128xf32, #tpu.memory_space<vmem>>, vector<32x128xf32>
      tpu.vector_store %arg6[%c0_15, %c0_16], %20 {strides = array<i32>} : memref<32x128xf32, #tpu.memory_space<vmem>>, vector<32x128xf32>,
    } else {
    }
    return
  }
  func.func @transform_0(%arg0: i32, %arg1: i32, %arg2: i32) -> (i32, i32) {
    %c0_i32 = arith.constant 0 : i32
    return %arg0, %arg2 : i32, i32
  }
  func.func @transform_1(%arg0: i32, %arg1: i32, %arg2: i32) -> (i32, i32) {
    %c0_i32 = arith.constant 0 : i32
    return %arg2, %arg1 : i32, i32
  }
  func.func @transform_2(%arg0: i32, %arg1: i32, %arg2: i32) -> (i32, i32) {
    %c0_i32 = arith.constant 0 : i32
    %c0_i32_0 = arith.constant 0 : i32
    return %c0_i32, %arg1 : i32, i32
  }
  func.func @transform_3(%arg0: i32, %arg1: i32, %arg2: i32) -> (i32, i32) {
    %c0_i32 = arith.constant 0 : i32
    return %arg0, %arg1 : i32, i32
  }
}

module attributes {stable_mosaic.version = 11 : i64} {
  func.func @_mm_bias_res_kernel(%arg0: i32, %arg1: i32, %arg2: i32, %arg3: memref<32x128xbf16, #tpu.memory_space<vmem>>, %arg4: memref<128x128xbf16, #tpu.memory_space<vmem>>, %arg5: memref<1x128xf32, #tpu.memory_space<vmem>>, %arg6: memref<32x128xf32, #tpu.memory_space<vmem>>, %arg7: memref<32x128xf32, #tpu.memory_space<vmem>>, %arg8: memref<32x128xf32, #tpu.memory_space<vmem>>) attributes {dimension_semantics = [#tpu.dimension_semantics<parallel>, #tpu.dimension_semantics<parallel>, #tpu.dimension_semantics<arbitrary>], iteration_bounds = array<i64: 1, 1, 9>, scalar_prefetch = 0 : i64, scratch_operands = 1 : i64, tpu.core_type = #tpu.core_type<tc>, window_params = [{transform_indices = @transform_0, window_bounds = array<i64: 32, 128>}, {transform_indices = @transform_1, window_bounds = array<i64: 128, 128>}, {transform_indices = @transform_2, window_bounds = array<i64: 1, 128>}, {transform_indices = @transform_3, window_bounds = array<i64: 32, 128>}, {transform_indices = @transform_4, window_bounds = array<i64: 32, 128>}]} {
    %c0_i32 = arith.constant 0 : i32
    %0 = arith.cmpi eq, %arg2, %c0_i32 : i32
    %1 = arith.extui %0 : i1 to i32
    %c0_i32_0 = arith.constant 0 : i32
    %2 = arith.cmpi ne, %1, %c0_i32_0 : i32
    scf.if %2 {
      %cst_9 = arith.constant 0.000000e+00 : f32
      %12 = vector.broadcast %cst_9 : f32 to vector<32x128xf32>
      %c0_10 = arith.constant 0 : index
      %c0_11 = arith.constant 0 : index
      %13 = vector.load %arg8[%c0_10, %c0_11] : memref<32x128xf32, #tpu.memory_space<vmem>>, vector<32x128xf32>
      tpu.vector_store %arg8[%c0_10, %c0_11], %12 {strides = array<i32>} : memref<32x128xf32, #tpu.memory_space<vmem>>, vector<32x128xf32>,
    } else {
    }
    %c0 = arith.constant 0 : index
    %c0_1 = arith.constant 0 : index
    %3 = vector.load %arg8[%c0, %c0_1] : memref<32x128xf32, #tpu.memory_space<vmem>>, vector<32x128xf32>
    %c0_2 = arith.constant 0 : index
    %c0_3 = arith.constant 0 : index
    %4 = vector.load %arg3[%c0_2, %c0_3] : memref<32x128xbf16, #tpu.memory_space<vmem>>, vector<32x128xbf16>
    %c0_4 = arith.constant 0 : index
    %c0_5 = arith.constant 0 : index
    %5 = vector.load %arg4[%c0_4, %c0_5] : memref<128x128xbf16, #tpu.memory_space<vmem>>, vector<128x128xbf16>
    %cst = arith.constant dense<0.000000e+00> : vector<32x128xf32>
    %6 = tpu.matmul %4, %5, %cst {dimension_numbers = #tpu.dot_dimension_numbers<[1], [0], [0], [1], [0, 0, 1, 1], [], []>} : vector<32x128xbf16>, vector<128x128xbf16>, vector<32x128xf32> -> vector<32x128xf32>
    %7 = arith.addf %3, %6 : vector<32x128xf32>
    %c0_6 = arith.constant 0 : index
    %c0_7 = arith.constant 0 : index
    %8 = vector.load %arg8[%c0_6, %c0_7] : memref<32x128xf32, #tpu.memory_space<vmem>>, vector<32x128xf32>
    tpu.vector_store %arg8[%c0_6, %c0_7], %7 {strides = array<i32>} : memref<32x128xf32, #tpu.memory_space<vmem>>, vector<32x128xf32>,
    %c8_i32 = arith.constant 8 : i32
    %9 = arith.cmpi eq, %arg2, %c8_i32 : i32
    %10 = arith.extui %9 : i1 to i32
    %c0_i32_8 = arith.constant 0 : i32
    %11 = arith.cmpi ne, %10, %c0_i32_8 : i32
    scf.if %11 {
      %c0_9 = arith.constant 0 : index
      %c0_10 = arith.constant 0 : index
      %12 = vector.load %arg8[%c0_9, %c0_10] : memref<32x128xf32, #tpu.memory_space<vmem>>, vector<32x128xf32>
      %c0_11 = arith.constant 0 : index
      %c0_12 = arith.constant 0 : index
      %13 = vector.load %arg5[%c0_11, %c0_12] : memref<1x128xf32, #tpu.memory_space<vmem>>, vector<1x128xf32>
      %c0_13 = arith.constant 0 : index
      %c0_14 = arith.constant 0 : index
      %14 = vector.load %arg6[%c0_13, %c0_14] : memref<32x128xf32, #tpu.memory_space<vmem>>, vector<32x128xf32>
      %15 = vector.broadcast %13 : vector<1x128xf32> to vector<32x128xf32>
      %16 = arith.addf %12, %15 : vector<32x128xf32>
      %17 = arith.addf %16, %14 : vector<32x128xf32>
      %cst_15 = arith.constant 0.000000e+00 : f32
      %18 = vector.broadcast %cst_15 : f32 to vector<32x128xf32>
      %19 = arith.cmpf oge, %17, %18 : vector<32x128xf32>
      %cst_16 = arith.constant 0.00999999977 : f32
      %20 = vector.broadcast %cst_16 : f32 to vector<32x128xf32>
      %21 = arith.mulf %20, %17 : vector<32x128xf32>
      %22 = arith.select %19, %17, %21 : vector<32x128xi1>, vector<32x128xf32>
      %c0_17 = arith.constant 0 : index
      %c0_18 = arith.constant 0 : index
      %23 = vector.load %arg7[%c0_17, %c0_18] : memref<32x128xf32, #tpu.memory_space<vmem>>, vector<32x128xf32>
      tpu.vector_store %arg7[%c0_17, %c0_18], %22 {strides = array<i32>} : memref<32x128xf32, #tpu.memory_space<vmem>>, vector<32x128xf32>,
    } else {
    }
    return
  }
  func.func @transform_0(%arg0: i32, %arg1: i32, %arg2: i32) -> (i32, i32) {
    %c0_i32 = arith.constant 0 : i32
    return %arg0, %arg2 : i32, i32
  }
  func.func @transform_1(%arg0: i32, %arg1: i32, %arg2: i32) -> (i32, i32) {
    %c0_i32 = arith.constant 0 : i32
    return %arg2, %arg1 : i32, i32
  }
  func.func @transform_2(%arg0: i32, %arg1: i32, %arg2: i32) -> (i32, i32) {
    %c0_i32 = arith.constant 0 : i32
    %c0_i32_0 = arith.constant 0 : i32
    return %c0_i32, %arg1 : i32, i32
  }
  func.func @transform_3(%arg0: i32, %arg1: i32, %arg2: i32) -> (i32, i32) {
    %c0_i32 = arith.constant 0 : i32
    return %arg0, %arg1 : i32, i32
  }
  func.func @transform_4(%arg0: i32, %arg1: i32, %arg2: i32) -> (i32, i32) {
    %c0_i32 = arith.constant 0 : i32
    return %arg0, %arg1 : i32, i32
  }
}

module attributes {stable_mosaic.version = 11 : i64} {
  func.func @_mm_bias_kernel(%arg0: i32, %arg1: i32, %arg2: i32, %arg3: memref<32x128xbf16, #tpu.memory_space<vmem>>, %arg4: memref<128x128xbf16, #tpu.memory_space<vmem>>, %arg5: memref<1x128xf32, #tpu.memory_space<vmem>>, %arg6: memref<32x128xf32, #tpu.memory_space<vmem>>, %arg7: memref<32x128xf32, #tpu.memory_space<vmem>>) attributes {dimension_semantics = [#tpu.dimension_semantics<parallel>, #tpu.dimension_semantics<parallel>, #tpu.dimension_semantics<arbitrary>], iteration_bounds = array<i64: 1, 1, 1>, scalar_prefetch = 0 : i64, scratch_operands = 1 : i64, tpu.core_type = #tpu.core_type<tc>, window_params = [{transform_indices = @transform_0, window_bounds = array<i64: 32, 128>}, {transform_indices = @transform_1, window_bounds = array<i64: 128, 128>}, {transform_indices = @transform_2, window_bounds = array<i64: 1, 128>}, {transform_indices = @transform_3, window_bounds = array<i64: 32, 128>}]} {
    %c0_i32 = arith.constant 0 : i32
    %0 = arith.cmpi eq, %arg2, %c0_i32 : i32
    %1 = arith.extui %0 : i1 to i32
    %c0_i32_0 = arith.constant 0 : i32
    %2 = arith.cmpi ne, %1, %c0_i32_0 : i32
    scf.if %2 {
      %cst_10 = arith.constant 0.000000e+00 : f32
      %12 = vector.broadcast %cst_10 : f32 to vector<32x128xf32>
      %c0_11 = arith.constant 0 : index
      %c0_12 = arith.constant 0 : index
      %13 = vector.load %arg7[%c0_11, %c0_12] : memref<32x128xf32, #tpu.memory_space<vmem>>, vector<32x128xf32>
      tpu.vector_store %arg7[%c0_11, %c0_12], %12 {strides = array<i32>} : memref<32x128xf32, #tpu.memory_space<vmem>>, vector<32x128xf32>,
    } else {
    }
    %c0 = arith.constant 0 : index
    %c0_1 = arith.constant 0 : index
    %3 = vector.load %arg7[%c0, %c0_1] : memref<32x128xf32, #tpu.memory_space<vmem>>, vector<32x128xf32>
    %c0_2 = arith.constant 0 : index
    %c0_3 = arith.constant 0 : index
    %4 = vector.load %arg3[%c0_2, %c0_3] : memref<32x128xbf16, #tpu.memory_space<vmem>>, vector<32x128xbf16>
    %c0_4 = arith.constant 0 : index
    %c0_5 = arith.constant 0 : index
    %5 = vector.load %arg4[%c0_4, %c0_5] : memref<128x128xbf16, #tpu.memory_space<vmem>>, vector<128x128xbf16>
    %cst = arith.constant dense<0.000000e+00> : vector<32x128xf32>
    %6 = tpu.matmul %4, %5, %cst {dimension_numbers = #tpu.dot_dimension_numbers<[1], [0], [0], [1], [0, 0, 1, 1], [], []>} : vector<32x128xbf16>, vector<128x128xbf16>, vector<32x128xf32> -> vector<32x128xf32>
    %7 = arith.addf %3, %6 : vector<32x128xf32>
    %c0_6 = arith.constant 0 : index
    %c0_7 = arith.constant 0 : index
    %8 = vector.load %arg7[%c0_6, %c0_7] : memref<32x128xf32, #tpu.memory_space<vmem>>, vector<32x128xf32>
    tpu.vector_store %arg7[%c0_6, %c0_7], %7 {strides = array<i32>} : memref<32x128xf32, #tpu.memory_space<vmem>>, vector<32x128xf32>,
    %c0_i32_8 = arith.constant 0 : i32
    %9 = arith.cmpi eq, %arg2, %c0_i32_8 : i32
    %10 = arith.extui %9 : i1 to i32
    %c0_i32_9 = arith.constant 0 : i32
    %11 = arith.cmpi ne, %10, %c0_i32_9 : i32
    scf.if %11 {
      %c0_10 = arith.constant 0 : index
      %c0_11 = arith.constant 0 : index
      %12 = vector.load %arg7[%c0_10, %c0_11] : memref<32x128xf32, #tpu.memory_space<vmem>>, vector<32x128xf32>
      %c0_12 = arith.constant 0 : index
      %c0_13 = arith.constant 0 : index
      %13 = vector.load %arg5[%c0_12, %c0_13] : memref<1x128xf32, #tpu.memory_space<vmem>>, vector<1x128xf32>
      %14 = vector.broadcast %13 : vector<1x128xf32> to vector<32x128xf32>
      %15 = arith.addf %12, %14 : vector<32x128xf32>
      %c0_14 = arith.constant 0 : index
      %c0_15 = arith.constant 0 : index
      %16 = vector.load %arg6[%c0_14, %c0_15] : memref<32x128xf32, #tpu.memory_space<vmem>>, vector<32x128xf32>
      tpu.vector_store %arg6[%c0_14, %c0_15], %15 {strides = array<i32>} : memref<32x128xf32, #tpu.memory_space<vmem>>, vector<32x128xf32>,
    } else {
    }
    return
  }
  func.func @transform_0(%arg0: i32, %arg1: i32, %arg2: i32) -> (i32, i32) {
    %c0_i32 = arith.constant 0 : i32
    return %arg0, %arg2 : i32, i32
  }
  func.func @transform_1(%arg0: i32, %arg1: i32, %arg2: i32) -> (i32, i32) {
    %c0_i32 = arith.constant 0 : i32
    return %arg2, %arg1 : i32, i32
  }
  func.func @transform_2(%arg0: i32, %arg1: i32, %arg2: i32) -> (i32, i32) {
    %c0_i32 = arith.constant 0 : i32
    %c0_i32_0 = arith.constant 0 : i32
    return %c0_i32, %arg1 : i32, i32
  }
  func.func @transform_3(%arg0: i32, %arg1: i32, %arg2: i32) -> (i32, i32) {
    %c0_i32 = arith.constant 0 : i32
    return %arg0, %arg1 : i32, i32
  }
}

module attributes {stable_mosaic.version = 11 : i64} {
  func.func @_mm_bias_kernel(%arg0: i32, %arg1: i32, %arg2: i32, %arg3: memref<32x128xbf16, #tpu.memory_space<vmem>>, %arg4: memref<128x128xbf16, #tpu.memory_space<vmem>>, %arg5: memref<1x128xf32, #tpu.memory_space<vmem>>, %arg6: memref<32x128xf32, #tpu.memory_space<vmem>>, %arg7: memref<32x128xf32, #tpu.memory_space<vmem>>) attributes {dimension_semantics = [#tpu.dimension_semantics<parallel>, #tpu.dimension_semantics<parallel>, #tpu.dimension_semantics<arbitrary>], iteration_bounds = array<i64: 1, 1, 9>, scalar_prefetch = 0 : i64, scratch_operands = 1 : i64, tpu.core_type = #tpu.core_type<tc>, window_params = [{transform_indices = @transform_0, window_bounds = array<i64: 32, 128>}, {transform_indices = @transform_1, window_bounds = array<i64: 128, 128>}, {transform_indices = @transform_2, window_bounds = array<i64: 1, 128>}, {transform_indices = @transform_3, window_bounds = array<i64: 32, 128>}]} {
    %c0_i32 = arith.constant 0 : i32
    %0 = arith.cmpi eq, %arg2, %c0_i32 : i32
    %1 = arith.extui %0 : i1 to i32
    %c0_i32_0 = arith.constant 0 : i32
    %2 = arith.cmpi ne, %1, %c0_i32_0 : i32
    scf.if %2 {
      %cst_9 = arith.constant 0.000000e+00 : f32
      %12 = vector.broadcast %cst_9 : f32 to vector<32x128xf32>
      %c0_10 = arith.constant 0 : index
      %c0_11 = arith.constant 0 : index
      %13 = vector.load %arg7[%c0_10, %c0_11] : memref<32x128xf32, #tpu.memory_space<vmem>>, vector<32x128xf32>
      tpu.vector_store %arg7[%c0_10, %c0_11], %12 {strides = array<i32>} : memref<32x128xf32, #tpu.memory_space<vmem>>, vector<32x128xf32>,
    } else {
    }
    %c0 = arith.constant 0 : index
    %c0_1 = arith.constant 0 : index
    %3 = vector.load %arg7[%c0, %c0_1] : memref<32x128xf32, #tpu.memory_space<vmem>>, vector<32x128xf32>
    %c0_2 = arith.constant 0 : index
    %c0_3 = arith.constant 0 : index
    %4 = vector.load %arg3[%c0_2, %c0_3] : memref<32x128xbf16, #tpu.memory_space<vmem>>, vector<32x128xbf16>
    %c0_4 = arith.constant 0 : index
    %c0_5 = arith.constant 0 : index
    %5 = vector.load %arg4[%c0_4, %c0_5] : memref<128x128xbf16, #tpu.memory_space<vmem>>, vector<128x128xbf16>
    %cst = arith.constant dense<0.000000e+00> : vector<32x128xf32>
    %6 = tpu.matmul %4, %5, %cst {dimension_numbers = #tpu.dot_dimension_numbers<[1], [0], [0], [1], [0, 0, 1, 1], [], []>} : vector<32x128xbf16>, vector<128x128xbf16>, vector<32x128xf32> -> vector<32x128xf32>
    %7 = arith.addf %3, %6 : vector<32x128xf32>
    %c0_6 = arith.constant 0 : index
    %c0_7 = arith.constant 0 : index
    %8 = vector.load %arg7[%c0_6, %c0_7] : memref<32x128xf32, #tpu.memory_space<vmem>>, vector<32x128xf32>
    tpu.vector_store %arg7[%c0_6, %c0_7], %7 {strides = array<i32>} : memref<32x128xf32, #tpu.memory_space<vmem>>, vector<32x128xf32>,
    %c8_i32 = arith.constant 8 : i32
    %9 = arith.cmpi eq, %arg2, %c8_i32 : i32
    %10 = arith.extui %9 : i1 to i32
    %c0_i32_8 = arith.constant 0 : i32
    %11 = arith.cmpi ne, %10, %c0_i32_8 : i32
    scf.if %11 {
      %c0_9 = arith.constant 0 : index
      %c0_10 = arith.constant 0 : index
      %12 = vector.load %arg7[%c0_9, %c0_10] : memref<32x128xf32, #tpu.memory_space<vmem>>, vector<32x128xf32>
      %c0_11 = arith.constant 0 : index
      %c0_12 = arith.constant 0 : index
      %13 = vector.load %arg5[%c0_11, %c0_12] : memref<1x128xf32, #tpu.memory_space<vmem>>, vector<1x128xf32>
      %14 = vector.broadcast %13 : vector<1x128xf32> to vector<32x128xf32>
      %15 = arith.addf %12, %14 : vector<32x128xf32>
      %cst_13 = arith.constant 0.000000e+00 : f32
      %16 = vector.broadcast %cst_13 : f32 to vector<32x128xf32>
      %17 = arith.cmpf oge, %15, %16 : vector<32x128xf32>
      %cst_14 = arith.constant 0.00999999977 : f32
      %18 = vector.broadcast %cst_14 : f32 to vector<32x128xf32>
      %19 = arith.mulf %18, %15 : vector<32x128xf32>
      %20 = arith.select %17, %15, %19 : vector<32x128xi1>, vector<32x128xf32>
      %c0_15 = arith.constant 0 : index
      %c0_16 = arith.constant 0 : index
      %21 = vector.load %arg6[%c0_15, %c0_16] : memref<32x128xf32, #tpu.memory_space<vmem>>, vector<32x128xf32>
      tpu.vector_store %arg6[%c0_15, %c0_16], %20 {strides = array<i32>} : memref<32x128xf32, #tpu.memory_space<vmem>>, vector<32x128xf32>,
    } else {
    }
    return
  }
  func.func @transform_0(%arg0: i32, %arg1: i32, %arg2: i32) -> (i32, i32) {
    %c0_i32 = arith.constant 0 : i32
    return %arg0, %arg2 : i32, i32
  }
  func.func @transform_1(%arg0: i32, %arg1: i32, %arg2: i32) -> (i32, i32) {
    %c0_i32 = arith.constant 0 : i32
    return %arg2, %arg1 : i32, i32
  }
  func.func @transform_2(%arg0: i32, %arg1: i32, %arg2: i32) -> (i32, i32) {
    %c0_i32 = arith.constant 0 : i32
    %c0_i32_0 = arith.constant 0 : i32
    return %c0_i32, %arg1 : i32, i32
  }
  func.func @transform_3(%arg0: i32, %arg1: i32, %arg2: i32) -> (i32, i32) {
    %c0_i32 = arith.constant 0 : i32
    return %arg0, %arg1 : i32, i32
  }
}

module attributes {stable_mosaic.version = 11 : i64} {
  func.func @_mm_bias_kernel(%arg0: i32, %arg1: i32, %arg2: i32, %arg3: memref<16x128xbf16, #tpu.memory_space<vmem>>, %arg4: memref<128x128xbf16, #tpu.memory_space<vmem>>, %arg5: memref<1x128xf32, #tpu.memory_space<vmem>>, %arg6: memref<16x128xf32, #tpu.memory_space<vmem>>, %arg7: memref<16x128xf32, #tpu.memory_space<vmem>>) attributes {dimension_semantics = [#tpu.dimension_semantics<parallel>, #tpu.dimension_semantics<parallel>, #tpu.dimension_semantics<arbitrary>], iteration_bounds = array<i64: 1, 2, 9>, scalar_prefetch = 0 : i64, scratch_operands = 1 : i64, tpu.core_type = #tpu.core_type<tc>, window_params = [{transform_indices = @transform_0, window_bounds = array<i64: 16, 128>}, {transform_indices = @transform_1, window_bounds = array<i64: 128, 128>}, {transform_indices = @transform_2, window_bounds = array<i64: 1, 128>}, {transform_indices = @transform_3, window_bounds = array<i64: 16, 128>}]} {
    %c0_i32 = arith.constant 0 : i32
    %0 = arith.cmpi eq, %arg2, %c0_i32 : i32
    %1 = arith.extui %0 : i1 to i32
    %c0_i32_0 = arith.constant 0 : i32
    %2 = arith.cmpi ne, %1, %c0_i32_0 : i32
    scf.if %2 {
      %cst_9 = arith.constant 0.000000e+00 : f32
      %12 = vector.broadcast %cst_9 : f32 to vector<16x128xf32>
      %c0_10 = arith.constant 0 : index
      %c0_11 = arith.constant 0 : index
      %13 = vector.load %arg7[%c0_10, %c0_11] : memref<16x128xf32, #tpu.memory_space<vmem>>, vector<16x128xf32>
      tpu.vector_store %arg7[%c0_10, %c0_11], %12 {strides = array<i32>} : memref<16x128xf32, #tpu.memory_space<vmem>>, vector<16x128xf32>,
    } else {
    }
    %c0 = arith.constant 0 : index
    %c0_1 = arith.constant 0 : index
    %3 = vector.load %arg7[%c0, %c0_1] : memref<16x128xf32, #tpu.memory_space<vmem>>, vector<16x128xf32>
    %c0_2 = arith.constant 0 : index
    %c0_3 = arith.constant 0 : index
    %4 = vector.load %arg3[%c0_2, %c0_3] : memref<16x128xbf16, #tpu.memory_space<vmem>>, vector<16x128xbf16>
    %c0_4 = arith.constant 0 : index
    %c0_5 = arith.constant 0 : index
    %5 = vector.load %arg4[%c0_4, %c0_5] : memref<128x128xbf16, #tpu.memory_space<vmem>>, vector<128x128xbf16>
    %cst = arith.constant dense<0.000000e+00> : vector<16x128xf32>
    %6 = tpu.matmul %4, %5, %cst {dimension_numbers = #tpu.dot_dimension_numbers<[1], [0], [0], [1], [0, 0, 1, 1], [], []>} : vector<16x128xbf16>, vector<128x128xbf16>, vector<16x128xf32> -> vector<16x128xf32>
    %7 = arith.addf %3, %6 : vector<16x128xf32>
    %c0_6 = arith.constant 0 : index
    %c0_7 = arith.constant 0 : index
    %8 = vector.load %arg7[%c0_6, %c0_7] : memref<16x128xf32, #tpu.memory_space<vmem>>, vector<16x128xf32>
    tpu.vector_store %arg7[%c0_6, %c0_7], %7 {strides = array<i32>} : memref<16x128xf32, #tpu.memory_space<vmem>>, vector<16x128xf32>,
    %c8_i32 = arith.constant 8 : i32
    %9 = arith.cmpi eq, %arg2, %c8_i32 : i32
    %10 = arith.extui %9 : i1 to i32
    %c0_i32_8 = arith.constant 0 : i32
    %11 = arith.cmpi ne, %10, %c0_i32_8 : i32
    scf.if %11 {
      %c0_9 = arith.constant 0 : index
      %c0_10 = arith.constant 0 : index
      %12 = vector.load %arg7[%c0_9, %c0_10] : memref<16x128xf32, #tpu.memory_space<vmem>>, vector<16x128xf32>
      %c0_11 = arith.constant 0 : index
      %c0_12 = arith.constant 0 : index
      %13 = vector.load %arg5[%c0_11, %c0_12] : memref<1x128xf32, #tpu.memory_space<vmem>>, vector<1x128xf32>
      %14 = vector.broadcast %13 : vector<1x128xf32> to vector<16x128xf32>
      %15 = arith.addf %12, %14 : vector<16x128xf32>
      %cst_13 = arith.constant 0.000000e+00 : f32
      %16 = vector.broadcast %cst_13 : f32 to vector<16x128xf32>
      %17 = arith.cmpf oge, %15, %16 : vector<16x128xf32>
      %cst_14 = arith.constant 0.00999999977 : f32
      %18 = vector.broadcast %cst_14 : f32 to vector<16x128xf32>
      %19 = arith.mulf %18, %15 : vector<16x128xf32>
      %20 = arith.select %17, %15, %19 : vector<16x128xi1>, vector<16x128xf32>
      %c0_15 = arith.constant 0 : index
      %c0_16 = arith.constant 0 : index
      %21 = vector.load %arg6[%c0_15, %c0_16] : memref<16x128xf32, #tpu.memory_space<vmem>>, vector<16x128xf32>
      tpu.vector_store %arg6[%c0_15, %c0_16], %20 {strides = array<i32>} : memref<16x128xf32, #tpu.memory_space<vmem>>, vector<16x128xf32>,
    } else {
    }
    return
  }
  func.func @transform_0(%arg0: i32, %arg1: i32, %arg2: i32) -> (i32, i32) {
    %c0_i32 = arith.constant 0 : i32
    return %arg0, %arg2 : i32, i32
  }
  func.func @transform_1(%arg0: i32, %arg1: i32, %arg2: i32) -> (i32, i32) {
    %c0_i32 = arith.constant 0 : i32
    return %arg2, %arg1 : i32, i32
  }
  func.func @transform_2(%arg0: i32, %arg1: i32, %arg2: i32) -> (i32, i32) {
    %c0_i32 = arith.constant 0 : i32
    %c0_i32_0 = arith.constant 0 : i32
    return %c0_i32, %arg1 : i32, i32
  }
  func.func @transform_3(%arg0: i32, %arg1: i32, %arg2: i32) -> (i32, i32) {
    %c0_i32 = arith.constant 0 : i32
    return %arg0, %arg1 : i32, i32
  }
}

module attributes {stable_mosaic.version = 11 : i64} {
  func.func @_mm_bias_kernel(%arg0: i32, %arg1: i32, %arg2: i32, %arg3: memref<16x128xbf16, #tpu.memory_space<vmem>>, %arg4: memref<128x128xbf16, #tpu.memory_space<vmem>>, %arg5: memref<1x128xf32, #tpu.memory_space<vmem>>, %arg6: memref<16x128xf32, #tpu.memory_space<vmem>>, %arg7: memref<16x128xf32, #tpu.memory_space<vmem>>) attributes {dimension_semantics = [#tpu.dimension_semantics<parallel>, #tpu.dimension_semantics<parallel>, #tpu.dimension_semantics<arbitrary>], iteration_bounds = array<i64: 1, 2, 1>, scalar_prefetch = 0 : i64, scratch_operands = 1 : i64, tpu.core_type = #tpu.core_type<tc>, window_params = [{transform_indices = @transform_0, window_bounds = array<i64: 16, 128>}, {transform_indices = @transform_1, window_bounds = array<i64: 128, 128>}, {transform_indices = @transform_2, window_bounds = array<i64: 1, 128>}, {transform_indices = @transform_3, window_bounds = array<i64: 16, 128>}]} {
    %c0_i32 = arith.constant 0 : i32
    %0 = arith.cmpi eq, %arg2, %c0_i32 : i32
    %1 = arith.extui %0 : i1 to i32
    %c0_i32_0 = arith.constant 0 : i32
    %2 = arith.cmpi ne, %1, %c0_i32_0 : i32
    scf.if %2 {
      %cst_10 = arith.constant 0.000000e+00 : f32
      %12 = vector.broadcast %cst_10 : f32 to vector<16x128xf32>
      %c0_11 = arith.constant 0 : index
      %c0_12 = arith.constant 0 : index
      %13 = vector.load %arg7[%c0_11, %c0_12] : memref<16x128xf32, #tpu.memory_space<vmem>>, vector<16x128xf32>
      tpu.vector_store %arg7[%c0_11, %c0_12], %12 {strides = array<i32>} : memref<16x128xf32, #tpu.memory_space<vmem>>, vector<16x128xf32>,
    } else {
    }
    %c0 = arith.constant 0 : index
    %c0_1 = arith.constant 0 : index
    %3 = vector.load %arg7[%c0, %c0_1] : memref<16x128xf32, #tpu.memory_space<vmem>>, vector<16x128xf32>
    %c0_2 = arith.constant 0 : index
    %c0_3 = arith.constant 0 : index
    %4 = vector.load %arg3[%c0_2, %c0_3] : memref<16x128xbf16, #tpu.memory_space<vmem>>, vector<16x128xbf16>
    %c0_4 = arith.constant 0 : index
    %c0_5 = arith.constant 0 : index
    %5 = vector.load %arg4[%c0_4, %c0_5] : memref<128x128xbf16, #tpu.memory_space<vmem>>, vector<128x128xbf16>
    %cst = arith.constant dense<0.000000e+00> : vector<16x128xf32>
    %6 = tpu.matmul %4, %5, %cst {dimension_numbers = #tpu.dot_dimension_numbers<[1], [0], [0], [1], [0, 0, 1, 1], [], []>} : vector<16x128xbf16>, vector<128x128xbf16>, vector<16x128xf32> -> vector<16x128xf32>
    %7 = arith.addf %3, %6 : vector<16x128xf32>
    %c0_6 = arith.constant 0 : index
    %c0_7 = arith.constant 0 : index
    %8 = vector.load %arg7[%c0_6, %c0_7] : memref<16x128xf32, #tpu.memory_space<vmem>>, vector<16x128xf32>
    tpu.vector_store %arg7[%c0_6, %c0_7], %7 {strides = array<i32>} : memref<16x128xf32, #tpu.memory_space<vmem>>, vector<16x128xf32>,
    %c0_i32_8 = arith.constant 0 : i32
    %9 = arith.cmpi eq, %arg2, %c0_i32_8 : i32
    %10 = arith.extui %9 : i1 to i32
    %c0_i32_9 = arith.constant 0 : i32
    %11 = arith.cmpi ne, %10, %c0_i32_9 : i32
    scf.if %11 {
      %c0_10 = arith.constant 0 : index
      %c0_11 = arith.constant 0 : index
      %12 = vector.load %arg7[%c0_10, %c0_11] : memref<16x128xf32, #tpu.memory_space<vmem>>, vector<16x128xf32>
      %c0_12 = arith.constant 0 : index
      %c0_13 = arith.constant 0 : index
      %13 = vector.load %arg5[%c0_12, %c0_13] : memref<1x128xf32, #tpu.memory_space<vmem>>, vector<1x128xf32>
      %14 = vector.broadcast %13 : vector<1x128xf32> to vector<16x128xf32>
      %15 = arith.addf %12, %14 : vector<16x128xf32>
      %c0_14 = arith.constant 0 : index
      %c0_15 = arith.constant 0 : index
      %16 = vector.load %arg6[%c0_14, %c0_15] : memref<16x128xf32, #tpu.memory_space<vmem>>, vector<16x128xf32>
      tpu.vector_store %arg6[%c0_14, %c0_15], %15 {strides = array<i32>} : memref<16x128xf32, #tpu.memory_space<vmem>>, vector<16x128xf32>,
    } else {
    }
    return
  }
  func.func @transform_0(%arg0: i32, %arg1: i32, %arg2: i32) -> (i32, i32) {
    %c0_i32 = arith.constant 0 : i32
    return %arg0, %arg2 : i32, i32
  }
  func.func @transform_1(%arg0: i32, %arg1: i32, %arg2: i32) -> (i32, i32) {
    %c0_i32 = arith.constant 0 : i32
    return %arg2, %arg1 : i32, i32
  }
  func.func @transform_2(%arg0: i32, %arg1: i32, %arg2: i32) -> (i32, i32) {
    %c0_i32 = arith.constant 0 : i32
    %c0_i32_0 = arith.constant 0 : i32
    return %c0_i32, %arg1 : i32, i32
  }
  func.func @transform_3(%arg0: i32, %arg1: i32, %arg2: i32) -> (i32, i32) {
    %c0_i32 = arith.constant 0 : i32
    return %arg0, %arg1 : i32, i32
  }
}

module attributes {stable_mosaic.version = 11 : i64} {
  func.func @_mm_bias_kernel(%arg0: i32, %arg1: i32, %arg2: i32, %arg3: memref<16x128xbf16, #tpu.memory_space<vmem>>, %arg4: memref<128x128xbf16, #tpu.memory_space<vmem>>, %arg5: memref<1x128xf32, #tpu.memory_space<vmem>>, %arg6: memref<16x128xf32, #tpu.memory_space<vmem>>, %arg7: memref<16x128xf32, #tpu.memory_space<vmem>>) attributes {dimension_semantics = [#tpu.dimension_semantics<parallel>, #tpu.dimension_semantics<parallel>, #tpu.dimension_semantics<arbitrary>], iteration_bounds = array<i64: 1, 2, 18>, scalar_prefetch = 0 : i64, scratch_operands = 1 : i64, tpu.core_type = #tpu.core_type<tc>, window_params = [{transform_indices = @transform_0, window_bounds = array<i64: 16, 128>}, {transform_indices = @transform_1, window_bounds = array<i64: 128, 128>}, {transform_indices = @transform_2, window_bounds = array<i64: 1, 128>}, {transform_indices = @transform_3, window_bounds = array<i64: 16, 128>}]} {
    %c0_i32 = arith.constant 0 : i32
    %0 = arith.cmpi eq, %arg2, %c0_i32 : i32
    %1 = arith.extui %0 : i1 to i32
    %c0_i32_0 = arith.constant 0 : i32
    %2 = arith.cmpi ne, %1, %c0_i32_0 : i32
    scf.if %2 {
      %cst_9 = arith.constant 0.000000e+00 : f32
      %12 = vector.broadcast %cst_9 : f32 to vector<16x128xf32>
      %c0_10 = arith.constant 0 : index
      %c0_11 = arith.constant 0 : index
      %13 = vector.load %arg7[%c0_10, %c0_11] : memref<16x128xf32, #tpu.memory_space<vmem>>, vector<16x128xf32>
      tpu.vector_store %arg7[%c0_10, %c0_11], %12 {strides = array<i32>} : memref<16x128xf32, #tpu.memory_space<vmem>>, vector<16x128xf32>,
    } else {
    }
    %c0 = arith.constant 0 : index
    %c0_1 = arith.constant 0 : index
    %3 = vector.load %arg7[%c0, %c0_1] : memref<16x128xf32, #tpu.memory_space<vmem>>, vector<16x128xf32>
    %c0_2 = arith.constant 0 : index
    %c0_3 = arith.constant 0 : index
    %4 = vector.load %arg3[%c0_2, %c0_3] : memref<16x128xbf16, #tpu.memory_space<vmem>>, vector<16x128xbf16>
    %c0_4 = arith.constant 0 : index
    %c0_5 = arith.constant 0 : index
    %5 = vector.load %arg4[%c0_4, %c0_5] : memref<128x128xbf16, #tpu.memory_space<vmem>>, vector<128x128xbf16>
    %cst = arith.constant dense<0.000000e+00> : vector<16x128xf32>
    %6 = tpu.matmul %4, %5, %cst {dimension_numbers = #tpu.dot_dimension_numbers<[1], [0], [0], [1], [0, 0, 1, 1], [], []>} : vector<16x128xbf16>, vector<128x128xbf16>, vector<16x128xf32> -> vector<16x128xf32>
    %7 = arith.addf %3, %6 : vector<16x128xf32>
    %c0_6 = arith.constant 0 : index
    %c0_7 = arith.constant 0 : index
    %8 = vector.load %arg7[%c0_6, %c0_7] : memref<16x128xf32, #tpu.memory_space<vmem>>, vector<16x128xf32>
    tpu.vector_store %arg7[%c0_6, %c0_7], %7 {strides = array<i32>} : memref<16x128xf32, #tpu.memory_space<vmem>>, vector<16x128xf32>,
    %c17_i32 = arith.constant 17 : i32
    %9 = arith.cmpi eq, %arg2, %c17_i32 : i32
    %10 = arith.extui %9 : i1 to i32
    %c0_i32_8 = arith.constant 0 : i32
    %11 = arith.cmpi ne, %10, %c0_i32_8 : i32
    scf.if %11 {
      %c0_9 = arith.constant 0 : index
      %c0_10 = arith.constant 0 : index
      %12 = vector.load %arg7[%c0_9, %c0_10] : memref<16x128xf32, #tpu.memory_space<vmem>>, vector<16x128xf32>
      %c0_11 = arith.constant 0 : index
      %c0_12 = arith.constant 0 : index
      %13 = vector.load %arg5[%c0_11, %c0_12] : memref<1x128xf32, #tpu.memory_space<vmem>>, vector<1x128xf32>
      %14 = vector.broadcast %13 : vector<1x128xf32> to vector<16x128xf32>
      %15 = arith.addf %12, %14 : vector<16x128xf32>
      %cst_13 = arith.constant 0.000000e+00 : f32
      %16 = vector.broadcast %cst_13 : f32 to vector<16x128xf32>
      %17 = arith.cmpf oge, %15, %16 : vector<16x128xf32>
      %cst_14 = arith.constant 0.00999999977 : f32
      %18 = vector.broadcast %cst_14 : f32 to vector<16x128xf32>
      %19 = arith.mulf %18, %15 : vector<16x128xf32>
      %20 = arith.select %17, %15, %19 : vector<16x128xi1>, vector<16x128xf32>
      %c0_15 = arith.constant 0 : index
      %c0_16 = arith.constant 0 : index
      %21 = vector.load %arg6[%c0_15, %c0_16] : memref<16x128xf32, #tpu.memory_space<vmem>>, vector<16x128xf32>
      tpu.vector_store %arg6[%c0_15, %c0_16], %20 {strides = array<i32>} : memref<16x128xf32, #tpu.memory_space<vmem>>, vector<16x128xf32>,
    } else {
    }
    return
  }
  func.func @transform_0(%arg0: i32, %arg1: i32, %arg2: i32) -> (i32, i32) {
    %c0_i32 = arith.constant 0 : i32
    return %arg0, %arg2 : i32, i32
  }
  func.func @transform_1(%arg0: i32, %arg1: i32, %arg2: i32) -> (i32, i32) {
    %c0_i32 = arith.constant 0 : i32
    return %arg2, %arg1 : i32, i32
  }
  func.func @transform_2(%arg0: i32, %arg1: i32, %arg2: i32) -> (i32, i32) {
    %c0_i32 = arith.constant 0 : i32
    %c0_i32_0 = arith.constant 0 : i32
    return %c0_i32, %arg1 : i32, i32
  }
  func.func @transform_3(%arg0: i32, %arg1: i32, %arg2: i32) -> (i32, i32) {
    %c0_i32 = arith.constant 0 : i32
    return %arg0, %arg1 : i32, i32
  }
}

module attributes {stable_mosaic.version = 11 : i64} {
  func.func @_mm_bias_res_kernel(%arg0: i32, %arg1: i32, %arg2: i32, %arg3: memref<16x128xbf16, #tpu.memory_space<vmem>>, %arg4: memref<128x128xbf16, #tpu.memory_space<vmem>>, %arg5: memref<1x128xf32, #tpu.memory_space<vmem>>, %arg6: memref<16x128xf32, #tpu.memory_space<vmem>>, %arg7: memref<16x128xf32, #tpu.memory_space<vmem>>, %arg8: memref<16x128xf32, #tpu.memory_space<vmem>>) attributes {dimension_semantics = [#tpu.dimension_semantics<parallel>, #tpu.dimension_semantics<parallel>, #tpu.dimension_semantics<arbitrary>], iteration_bounds = array<i64: 1, 2, 18>, scalar_prefetch = 0 : i64, scratch_operands = 1 : i64, tpu.core_type = #tpu.core_type<tc>, window_params = [{transform_indices = @transform_0, window_bounds = array<i64: 16, 128>}, {transform_indices = @transform_1, window_bounds = array<i64: 128, 128>}, {transform_indices = @transform_2, window_bounds = array<i64: 1, 128>}, {transform_indices = @transform_3, window_bounds = array<i64: 16, 128>}, {transform_indices = @transform_4, window_bounds = array<i64: 16, 128>}]} {
    %c0_i32 = arith.constant 0 : i32
    %0 = arith.cmpi eq, %arg2, %c0_i32 : i32
    %1 = arith.extui %0 : i1 to i32
    %c0_i32_0 = arith.constant 0 : i32
    %2 = arith.cmpi ne, %1, %c0_i32_0 : i32
    scf.if %2 {
      %cst_9 = arith.constant 0.000000e+00 : f32
      %12 = vector.broadcast %cst_9 : f32 to vector<16x128xf32>
      %c0_10 = arith.constant 0 : index
      %c0_11 = arith.constant 0 : index
      %13 = vector.load %arg8[%c0_10, %c0_11] : memref<16x128xf32, #tpu.memory_space<vmem>>, vector<16x128xf32>
      tpu.vector_store %arg8[%c0_10, %c0_11], %12 {strides = array<i32>} : memref<16x128xf32, #tpu.memory_space<vmem>>, vector<16x128xf32>,
    } else {
    }
    %c0 = arith.constant 0 : index
    %c0_1 = arith.constant 0 : index
    %3 = vector.load %arg8[%c0, %c0_1] : memref<16x128xf32, #tpu.memory_space<vmem>>, vector<16x128xf32>
    %c0_2 = arith.constant 0 : index
    %c0_3 = arith.constant 0 : index
    %4 = vector.load %arg3[%c0_2, %c0_3] : memref<16x128xbf16, #tpu.memory_space<vmem>>, vector<16x128xbf16>
    %c0_4 = arith.constant 0 : index
    %c0_5 = arith.constant 0 : index
    %5 = vector.load %arg4[%c0_4, %c0_5] : memref<128x128xbf16, #tpu.memory_space<vmem>>, vector<128x128xbf16>
    %cst = arith.constant dense<0.000000e+00> : vector<16x128xf32>
    %6 = tpu.matmul %4, %5, %cst {dimension_numbers = #tpu.dot_dimension_numbers<[1], [0], [0], [1], [0, 0, 1, 1], [], []>} : vector<16x128xbf16>, vector<128x128xbf16>, vector<16x128xf32> -> vector<16x128xf32>
    %7 = arith.addf %3, %6 : vector<16x128xf32>
    %c0_6 = arith.constant 0 : index
    %c0_7 = arith.constant 0 : index
    %8 = vector.load %arg8[%c0_6, %c0_7] : memref<16x128xf32, #tpu.memory_space<vmem>>, vector<16x128xf32>
    tpu.vector_store %arg8[%c0_6, %c0_7], %7 {strides = array<i32>} : memref<16x128xf32, #tpu.memory_space<vmem>>, vector<16x128xf32>,
    %c17_i32 = arith.constant 17 : i32
    %9 = arith.cmpi eq, %arg2, %c17_i32 : i32
    %10 = arith.extui %9 : i1 to i32
    %c0_i32_8 = arith.constant 0 : i32
    %11 = arith.cmpi ne, %10, %c0_i32_8 : i32
    scf.if %11 {
      %c0_9 = arith.constant 0 : index
      %c0_10 = arith.constant 0 : index
      %12 = vector.load %arg8[%c0_9, %c0_10] : memref<16x128xf32, #tpu.memory_space<vmem>>, vector<16x128xf32>
      %c0_11 = arith.constant 0 : index
      %c0_12 = arith.constant 0 : index
      %13 = vector.load %arg5[%c0_11, %c0_12] : memref<1x128xf32, #tpu.memory_space<vmem>>, vector<1x128xf32>
      %c0_13 = arith.constant 0 : index
      %c0_14 = arith.constant 0 : index
      %14 = vector.load %arg6[%c0_13, %c0_14] : memref<16x128xf32, #tpu.memory_space<vmem>>, vector<16x128xf32>
      %15 = vector.broadcast %13 : vector<1x128xf32> to vector<16x128xf32>
      %16 = arith.addf %12, %15 : vector<16x128xf32>
      %17 = arith.addf %16, %14 : vector<16x128xf32>
      %cst_15 = arith.constant 0.000000e+00 : f32
      %18 = vector.broadcast %cst_15 : f32 to vector<16x128xf32>
      %19 = arith.cmpf oge, %17, %18 : vector<16x128xf32>
      %cst_16 = arith.constant 0.00999999977 : f32
      %20 = vector.broadcast %cst_16 : f32 to vector<16x128xf32>
      %21 = arith.mulf %20, %17 : vector<16x128xf32>
      %22 = arith.select %19, %17, %21 : vector<16x128xi1>, vector<16x128xf32>
      %c0_17 = arith.constant 0 : index
      %c0_18 = arith.constant 0 : index
      %23 = vector.load %arg7[%c0_17, %c0_18] : memref<16x128xf32, #tpu.memory_space<vmem>>, vector<16x128xf32>
      tpu.vector_store %arg7[%c0_17, %c0_18], %22 {strides = array<i32>} : memref<16x128xf32, #tpu.memory_space<vmem>>, vector<16x128xf32>,
    } else {
    }
    return
  }
  func.func @transform_0(%arg0: i32, %arg1: i32, %arg2: i32) -> (i32, i32) {
    %c0_i32 = arith.constant 0 : i32
    return %arg0, %arg2 : i32, i32
  }
  func.func @transform_1(%arg0: i32, %arg1: i32, %arg2: i32) -> (i32, i32) {
    %c0_i32 = arith.constant 0 : i32
    return %arg2, %arg1 : i32, i32
  }
  func.func @transform_2(%arg0: i32, %arg1: i32, %arg2: i32) -> (i32, i32) {
    %c0_i32 = arith.constant 0 : i32
    %c0_i32_0 = arith.constant 0 : i32
    return %c0_i32, %arg1 : i32, i32
  }
  func.func @transform_3(%arg0: i32, %arg1: i32, %arg2: i32) -> (i32, i32) {
    %c0_i32 = arith.constant 0 : i32
    return %arg0, %arg1 : i32, i32
  }
  func.func @transform_4(%arg0: i32, %arg1: i32, %arg2: i32) -> (i32, i32) {
    %c0_i32 = arith.constant 0 : i32
    return %arg0, %arg1 : i32, i32
  }
}

module attributes {stable_mosaic.version = 11 : i64} {
  func.func @_mm_bias_kernel(%arg0: i32, %arg1: i32, %arg2: i32, %arg3: memref<16x128xbf16, #tpu.memory_space<vmem>>, %arg4: memref<128x128xbf16, #tpu.memory_space<vmem>>, %arg5: memref<1x128xf32, #tpu.memory_space<vmem>>, %arg6: memref<16x128xf32, #tpu.memory_space<vmem>>, %arg7: memref<16x128xf32, #tpu.memory_space<vmem>>) attributes {dimension_semantics = [#tpu.dimension_semantics<parallel>, #tpu.dimension_semantics<parallel>, #tpu.dimension_semantics<arbitrary>], iteration_bounds = array<i64: 1, 4, 18>, scalar_prefetch = 0 : i64, scratch_operands = 1 : i64, tpu.core_type = #tpu.core_type<tc>, window_params = [{transform_indices = @transform_0, window_bounds = array<i64: 16, 128>}, {transform_indices = @transform_1, window_bounds = array<i64: 128, 128>}, {transform_indices = @transform_2, window_bounds = array<i64: 1, 128>}, {transform_indices = @transform_3, window_bounds = array<i64: 16, 128>}]} {
    %c0_i32 = arith.constant 0 : i32
    %0 = arith.cmpi eq, %arg2, %c0_i32 : i32
    %1 = arith.extui %0 : i1 to i32
    %c0_i32_0 = arith.constant 0 : i32
    %2 = arith.cmpi ne, %1, %c0_i32_0 : i32
    scf.if %2 {
      %cst_9 = arith.constant 0.000000e+00 : f32
      %12 = vector.broadcast %cst_9 : f32 to vector<16x128xf32>
      %c0_10 = arith.constant 0 : index
      %c0_11 = arith.constant 0 : index
      %13 = vector.load %arg7[%c0_10, %c0_11] : memref<16x128xf32, #tpu.memory_space<vmem>>, vector<16x128xf32>
      tpu.vector_store %arg7[%c0_10, %c0_11], %12 {strides = array<i32>} : memref<16x128xf32, #tpu.memory_space<vmem>>, vector<16x128xf32>,
    } else {
    }
    %c0 = arith.constant 0 : index
    %c0_1 = arith.constant 0 : index
    %3 = vector.load %arg7[%c0, %c0_1] : memref<16x128xf32, #tpu.memory_space<vmem>>, vector<16x128xf32>
    %c0_2 = arith.constant 0 : index
    %c0_3 = arith.constant 0 : index
    %4 = vector.load %arg3[%c0_2, %c0_3] : memref<16x128xbf16, #tpu.memory_space<vmem>>, vector<16x128xbf16>
    %c0_4 = arith.constant 0 : index
    %c0_5 = arith.constant 0 : index
    %5 = vector.load %arg4[%c0_4, %c0_5] : memref<128x128xbf16, #tpu.memory_space<vmem>>, vector<128x128xbf16>
    %cst = arith.constant dense<0.000000e+00> : vector<16x128xf32>
    %6 = tpu.matmul %4, %5, %cst {dimension_numbers = #tpu.dot_dimension_numbers<[1], [0], [0], [1], [0, 0, 1, 1], [], []>} : vector<16x128xbf16>, vector<128x128xbf16>, vector<16x128xf32> -> vector<16x128xf32>
    %7 = arith.addf %3, %6 : vector<16x128xf32>
    %c0_6 = arith.constant 0 : index
    %c0_7 = arith.constant 0 : index
    %8 = vector.load %arg7[%c0_6, %c0_7] : memref<16x128xf32, #tpu.memory_space<vmem>>, vector<16x128xf32>
    tpu.vector_store %arg7[%c0_6, %c0_7], %7 {strides = array<i32>} : memref<16x128xf32, #tpu.memory_space<vmem>>, vector<16x128xf32>,
    %c17_i32 = arith.constant 17 : i32
    %9 = arith.cmpi eq, %arg2, %c17_i32 : i32
    %10 = arith.extui %9 : i1 to i32
    %c0_i32_8 = arith.constant 0 : i32
    %11 = arith.cmpi ne, %10, %c0_i32_8 : i32
    scf.if %11 {
      %c0_9 = arith.constant 0 : index
      %c0_10 = arith.constant 0 : index
      %12 = vector.load %arg7[%c0_9, %c0_10] : memref<16x128xf32, #tpu.memory_space<vmem>>, vector<16x128xf32>
      %c0_11 = arith.constant 0 : index
      %c0_12 = arith.constant 0 : index
      %13 = vector.load %arg5[%c0_11, %c0_12] : memref<1x128xf32, #tpu.memory_space<vmem>>, vector<1x128xf32>
      %14 = vector.broadcast %13 : vector<1x128xf32> to vector<16x128xf32>
      %15 = arith.addf %12, %14 : vector<16x128xf32>
      %cst_13 = arith.constant 0.000000e+00 : f32
      %16 = vector.broadcast %cst_13 : f32 to vector<16x128xf32>
      %17 = arith.cmpf oge, %15, %16 : vector<16x128xf32>
      %cst_14 = arith.constant 0.00999999977 : f32
      %18 = vector.broadcast %cst_14 : f32 to vector<16x128xf32>
      %19 = arith.mulf %18, %15 : vector<16x128xf32>
      %20 = arith.select %17, %15, %19 : vector<16x128xi1>, vector<16x128xf32>
      %c0_15 = arith.constant 0 : index
      %c0_16 = arith.constant 0 : index
      %21 = vector.load %arg6[%c0_15, %c0_16] : memref<16x128xf32, #tpu.memory_space<vmem>>, vector<16x128xf32>
      tpu.vector_store %arg6[%c0_15, %c0_16], %20 {strides = array<i32>} : memref<16x128xf32, #tpu.memory_space<vmem>>, vector<16x128xf32>,
    } else {
    }
    return
  }
  func.func @transform_0(%arg0: i32, %arg1: i32, %arg2: i32) -> (i32, i32) {
    %c0_i32 = arith.constant 0 : i32
    return %arg0, %arg2 : i32, i32
  }
  func.func @transform_1(%arg0: i32, %arg1: i32, %arg2: i32) -> (i32, i32) {
    %c0_i32 = arith.constant 0 : i32
    return %arg2, %arg1 : i32, i32
  }
  func.func @transform_2(%arg0: i32, %arg1: i32, %arg2: i32) -> (i32, i32) {
    %c0_i32 = arith.constant 0 : i32
    %c0_i32_0 = arith.constant 0 : i32
    return %c0_i32, %arg1 : i32, i32
  }
  func.func @transform_3(%arg0: i32, %arg1: i32, %arg2: i32) -> (i32, i32) {
    %c0_i32 = arith.constant 0 : i32
    return %arg0, %arg1 : i32, i32
  }
}

module attributes {stable_mosaic.version = 11 : i64} {
  func.func @_mm_bias_kernel(%arg0: i32, %arg1: i32, %arg2: i32, %arg3: memref<16x128xbf16, #tpu.memory_space<vmem>>, %arg4: memref<128x128xbf16, #tpu.memory_space<vmem>>, %arg5: memref<1x128xf32, #tpu.memory_space<vmem>>, %arg6: memref<16x128xf32, #tpu.memory_space<vmem>>, %arg7: memref<16x128xf32, #tpu.memory_space<vmem>>) attributes {dimension_semantics = [#tpu.dimension_semantics<parallel>, #tpu.dimension_semantics<parallel>, #tpu.dimension_semantics<arbitrary>], iteration_bounds = array<i64: 1, 4, 2>, scalar_prefetch = 0 : i64, scratch_operands = 1 : i64, tpu.core_type = #tpu.core_type<tc>, window_params = [{transform_indices = @transform_0, window_bounds = array<i64: 16, 128>}, {transform_indices = @transform_1, window_bounds = array<i64: 128, 128>}, {transform_indices = @transform_2, window_bounds = array<i64: 1, 128>}, {transform_indices = @transform_3, window_bounds = array<i64: 16, 128>}]} {
    %c0_i32 = arith.constant 0 : i32
    %0 = arith.cmpi eq, %arg2, %c0_i32 : i32
    %1 = arith.extui %0 : i1 to i32
    %c0_i32_0 = arith.constant 0 : i32
    %2 = arith.cmpi ne, %1, %c0_i32_0 : i32
    scf.if %2 {
      %cst_9 = arith.constant 0.000000e+00 : f32
      %12 = vector.broadcast %cst_9 : f32 to vector<16x128xf32>
      %c0_10 = arith.constant 0 : index
      %c0_11 = arith.constant 0 : index
      %13 = vector.load %arg7[%c0_10, %c0_11] : memref<16x128xf32, #tpu.memory_space<vmem>>, vector<16x128xf32>
      tpu.vector_store %arg7[%c0_10, %c0_11], %12 {strides = array<i32>} : memref<16x128xf32, #tpu.memory_space<vmem>>, vector<16x128xf32>,
    } else {
    }
    %c0 = arith.constant 0 : index
    %c0_1 = arith.constant 0 : index
    %3 = vector.load %arg7[%c0, %c0_1] : memref<16x128xf32, #tpu.memory_space<vmem>>, vector<16x128xf32>
    %c0_2 = arith.constant 0 : index
    %c0_3 = arith.constant 0 : index
    %4 = vector.load %arg3[%c0_2, %c0_3] : memref<16x128xbf16, #tpu.memory_space<vmem>>, vector<16x128xbf16>
    %c0_4 = arith.constant 0 : index
    %c0_5 = arith.constant 0 : index
    %5 = vector.load %arg4[%c0_4, %c0_5] : memref<128x128xbf16, #tpu.memory_space<vmem>>, vector<128x128xbf16>
    %cst = arith.constant dense<0.000000e+00> : vector<16x128xf32>
    %6 = tpu.matmul %4, %5, %cst {dimension_numbers = #tpu.dot_dimension_numbers<[1], [0], [0], [1], [0, 0, 1, 1], [], []>} : vector<16x128xbf16>, vector<128x128xbf16>, vector<16x128xf32> -> vector<16x128xf32>
    %7 = arith.addf %3, %6 : vector<16x128xf32>
    %c0_6 = arith.constant 0 : index
    %c0_7 = arith.constant 0 : index
    %8 = vector.load %arg7[%c0_6, %c0_7] : memref<16x128xf32, #tpu.memory_space<vmem>>, vector<16x128xf32>
    tpu.vector_store %arg7[%c0_6, %c0_7], %7 {strides = array<i32>} : memref<16x128xf32, #tpu.memory_space<vmem>>, vector<16x128xf32>,
    %c1_i32 = arith.constant 1 : i32
    %9 = arith.cmpi eq, %arg2, %c1_i32 : i32
    %10 = arith.extui %9 : i1 to i32
    %c0_i32_8 = arith.constant 0 : i32
    %11 = arith.cmpi ne, %10, %c0_i32_8 : i32
    scf.if %11 {
      %c0_9 = arith.constant 0 : index
      %c0_10 = arith.constant 0 : index
      %12 = vector.load %arg7[%c0_9, %c0_10] : memref<16x128xf32, #tpu.memory_space<vmem>>, vector<16x128xf32>
      %c0_11 = arith.constant 0 : index
      %c0_12 = arith.constant 0 : index
      %13 = vector.load %arg5[%c0_11, %c0_12] : memref<1x128xf32, #tpu.memory_space<vmem>>, vector<1x128xf32>
      %14 = vector.broadcast %13 : vector<1x128xf32> to vector<16x128xf32>
      %15 = arith.addf %12, %14 : vector<16x128xf32>
      %c0_13 = arith.constant 0 : index
      %c0_14 = arith.constant 0 : index
      %16 = vector.load %arg6[%c0_13, %c0_14] : memref<16x128xf32, #tpu.memory_space<vmem>>, vector<16x128xf32>
      tpu.vector_store %arg6[%c0_13, %c0_14], %15 {strides = array<i32>} : memref<16x128xf32, #tpu.memory_space<vmem>>, vector<16x128xf32>,
    } else {
    }
    return
  }
  func.func @transform_0(%arg0: i32, %arg1: i32, %arg2: i32) -> (i32, i32) {
    %c0_i32 = arith.constant 0 : i32
    return %arg0, %arg2 : i32, i32
  }
  func.func @transform_1(%arg0: i32, %arg1: i32, %arg2: i32) -> (i32, i32) {
    %c0_i32 = arith.constant 0 : i32
    return %arg2, %arg1 : i32, i32
  }
  func.func @transform_2(%arg0: i32, %arg1: i32, %arg2: i32) -> (i32, i32) {
    %c0_i32 = arith.constant 0 : i32
    %c0_i32_0 = arith.constant 0 : i32
    return %c0_i32, %arg1 : i32, i32
  }
  func.func @transform_3(%arg0: i32, %arg1: i32, %arg2: i32) -> (i32, i32) {
    %c0_i32 = arith.constant 0 : i32
    return %arg0, %arg1 : i32, i32
  }
}

module attributes {stable_mosaic.version = 11 : i64} {
  func.func @_mm_bias_kernel(%arg0: i32, %arg1: i32, %arg2: i32, %arg3: memref<16x128xbf16, #tpu.memory_space<vmem>>, %arg4: memref<128x128xbf16, #tpu.memory_space<vmem>>, %arg5: memref<1x128xf32, #tpu.memory_space<vmem>>, %arg6: memref<16x128xf32, #tpu.memory_space<vmem>>, %arg7: memref<16x128xf32, #tpu.memory_space<vmem>>) attributes {dimension_semantics = [#tpu.dimension_semantics<parallel>, #tpu.dimension_semantics<parallel>, #tpu.dimension_semantics<arbitrary>], iteration_bounds = array<i64: 1, 4, 36>, scalar_prefetch = 0 : i64, scratch_operands = 1 : i64, tpu.core_type = #tpu.core_type<tc>, window_params = [{transform_indices = @transform_0, window_bounds = array<i64: 16, 128>}, {transform_indices = @transform_1, window_bounds = array<i64: 128, 128>}, {transform_indices = @transform_2, window_bounds = array<i64: 1, 128>}, {transform_indices = @transform_3, window_bounds = array<i64: 16, 128>}]} {
    %c0_i32 = arith.constant 0 : i32
    %0 = arith.cmpi eq, %arg2, %c0_i32 : i32
    %1 = arith.extui %0 : i1 to i32
    %c0_i32_0 = arith.constant 0 : i32
    %2 = arith.cmpi ne, %1, %c0_i32_0 : i32
    scf.if %2 {
      %cst_9 = arith.constant 0.000000e+00 : f32
      %12 = vector.broadcast %cst_9 : f32 to vector<16x128xf32>
      %c0_10 = arith.constant 0 : index
      %c0_11 = arith.constant 0 : index
      %13 = vector.load %arg7[%c0_10, %c0_11] : memref<16x128xf32, #tpu.memory_space<vmem>>, vector<16x128xf32>
      tpu.vector_store %arg7[%c0_10, %c0_11], %12 {strides = array<i32>} : memref<16x128xf32, #tpu.memory_space<vmem>>, vector<16x128xf32>,
    } else {
    }
    %c0 = arith.constant 0 : index
    %c0_1 = arith.constant 0 : index
    %3 = vector.load %arg7[%c0, %c0_1] : memref<16x128xf32, #tpu.memory_space<vmem>>, vector<16x128xf32>
    %c0_2 = arith.constant 0 : index
    %c0_3 = arith.constant 0 : index
    %4 = vector.load %arg3[%c0_2, %c0_3] : memref<16x128xbf16, #tpu.memory_space<vmem>>, vector<16x128xbf16>
    %c0_4 = arith.constant 0 : index
    %c0_5 = arith.constant 0 : index
    %5 = vector.load %arg4[%c0_4, %c0_5] : memref<128x128xbf16, #tpu.memory_space<vmem>>, vector<128x128xbf16>
    %cst = arith.constant dense<0.000000e+00> : vector<16x128xf32>
    %6 = tpu.matmul %4, %5, %cst {dimension_numbers = #tpu.dot_dimension_numbers<[1], [0], [0], [1], [0, 0, 1, 1], [], []>} : vector<16x128xbf16>, vector<128x128xbf16>, vector<16x128xf32> -> vector<16x128xf32>
    %7 = arith.addf %3, %6 : vector<16x128xf32>
    %c0_6 = arith.constant 0 : index
    %c0_7 = arith.constant 0 : index
    %8 = vector.load %arg7[%c0_6, %c0_7] : memref<16x128xf32, #tpu.memory_space<vmem>>, vector<16x128xf32>
    tpu.vector_store %arg7[%c0_6, %c0_7], %7 {strides = array<i32>} : memref<16x128xf32, #tpu.memory_space<vmem>>, vector<16x128xf32>,
    %c35_i32 = arith.constant 35 : i32
    %9 = arith.cmpi eq, %arg2, %c35_i32 : i32
    %10 = arith.extui %9 : i1 to i32
    %c0_i32_8 = arith.constant 0 : i32
    %11 = arith.cmpi ne, %10, %c0_i32_8 : i32
    scf.if %11 {
      %c0_9 = arith.constant 0 : index
      %c0_10 = arith.constant 0 : index
      %12 = vector.load %arg7[%c0_9, %c0_10] : memref<16x128xf32, #tpu.memory_space<vmem>>, vector<16x128xf32>
      %c0_11 = arith.constant 0 : index
      %c0_12 = arith.constant 0 : index
      %13 = vector.load %arg5[%c0_11, %c0_12] : memref<1x128xf32, #tpu.memory_space<vmem>>, vector<1x128xf32>
      %14 = vector.broadcast %13 : vector<1x128xf32> to vector<16x128xf32>
      %15 = arith.addf %12, %14 : vector<16x128xf32>
      %cst_13 = arith.constant 0.000000e+00 : f32
      %16 = vector.broadcast %cst_13 : f32 to vector<16x128xf32>
      %17 = arith.cmpf oge, %15, %16 : vector<16x128xf32>
      %cst_14 = arith.constant 0.00999999977 : f32
      %18 = vector.broadcast %cst_14 : f32 to vector<16x128xf32>
      %19 = arith.mulf %18, %15 : vector<16x128xf32>
      %20 = arith.select %17, %15, %19 : vector<16x128xi1>, vector<16x128xf32>
      %c0_15 = arith.constant 0 : index
      %c0_16 = arith.constant 0 : index
      %21 = vector.load %arg6[%c0_15, %c0_16] : memref<16x128xf32, #tpu.memory_space<vmem>>, vector<16x128xf32>
      tpu.vector_store %arg6[%c0_15, %c0_16], %20 {strides = array<i32>} : memref<16x128xf32, #tpu.memory_space<vmem>>, vector<16x128xf32>,
    } else {
    }
    return
  }
  func.func @transform_0(%arg0: i32, %arg1: i32, %arg2: i32) -> (i32, i32) {
    %c0_i32 = arith.constant 0 : i32
    return %arg0, %arg2 : i32, i32
  }
  func.func @transform_1(%arg0: i32, %arg1: i32, %arg2: i32) -> (i32, i32) {
    %c0_i32 = arith.constant 0 : i32
    return %arg2, %arg1 : i32, i32
  }
  func.func @transform_2(%arg0: i32, %arg1: i32, %arg2: i32) -> (i32, i32) {
    %c0_i32 = arith.constant 0 : i32
    %c0_i32_0 = arith.constant 0 : i32
    return %c0_i32, %arg1 : i32, i32
  }
  func.func @transform_3(%arg0: i32, %arg1: i32, %arg2: i32) -> (i32, i32) {
    %c0_i32 = arith.constant 0 : i32
    return %arg0, %arg1 : i32, i32
  }
}

module attributes {stable_mosaic.version = 11 : i64} {
  func.func @_mm_bias_res_kernel(%arg0: i32, %arg1: i32, %arg2: i32, %arg3: memref<16x128xbf16, #tpu.memory_space<vmem>>, %arg4: memref<128x128xbf16, #tpu.memory_space<vmem>>, %arg5: memref<1x128xf32, #tpu.memory_space<vmem>>, %arg6: memref<16x128xf32, #tpu.memory_space<vmem>>, %arg7: memref<16x128xf32, #tpu.memory_space<vmem>>, %arg8: memref<16x128xf32, #tpu.memory_space<vmem>>) attributes {dimension_semantics = [#tpu.dimension_semantics<parallel>, #tpu.dimension_semantics<parallel>, #tpu.dimension_semantics<arbitrary>], iteration_bounds = array<i64: 1, 4, 36>, scalar_prefetch = 0 : i64, scratch_operands = 1 : i64, tpu.core_type = #tpu.core_type<tc>, window_params = [{transform_indices = @transform_0, window_bounds = array<i64: 16, 128>}, {transform_indices = @transform_1, window_bounds = array<i64: 128, 128>}, {transform_indices = @transform_2, window_bounds = array<i64: 1, 128>}, {transform_indices = @transform_3, window_bounds = array<i64: 16, 128>}, {transform_indices = @transform_4, window_bounds = array<i64: 16, 128>}]} {
    %c0_i32 = arith.constant 0 : i32
    %0 = arith.cmpi eq, %arg2, %c0_i32 : i32
    %1 = arith.extui %0 : i1 to i32
    %c0_i32_0 = arith.constant 0 : i32
    %2 = arith.cmpi ne, %1, %c0_i32_0 : i32
    scf.if %2 {
      %cst_9 = arith.constant 0.000000e+00 : f32
      %12 = vector.broadcast %cst_9 : f32 to vector<16x128xf32>
      %c0_10 = arith.constant 0 : index
      %c0_11 = arith.constant 0 : index
      %13 = vector.load %arg8[%c0_10, %c0_11] : memref<16x128xf32, #tpu.memory_space<vmem>>, vector<16x128xf32>
      tpu.vector_store %arg8[%c0_10, %c0_11], %12 {strides = array<i32>} : memref<16x128xf32, #tpu.memory_space<vmem>>, vector<16x128xf32>,
    } else {
    }
    %c0 = arith.constant 0 : index
    %c0_1 = arith.constant 0 : index
    %3 = vector.load %arg8[%c0, %c0_1] : memref<16x128xf32, #tpu.memory_space<vmem>>, vector<16x128xf32>
    %c0_2 = arith.constant 0 : index
    %c0_3 = arith.constant 0 : index
    %4 = vector.load %arg3[%c0_2, %c0_3] : memref<16x128xbf16, #tpu.memory_space<vmem>>, vector<16x128xbf16>
    %c0_4 = arith.constant 0 : index
    %c0_5 = arith.constant 0 : index
    %5 = vector.load %arg4[%c0_4, %c0_5] : memref<128x128xbf16, #tpu.memory_space<vmem>>, vector<128x128xbf16>
    %cst = arith.constant dense<0.000000e+00> : vector<16x128xf32>
    %6 = tpu.matmul %4, %5, %cst {dimension_numbers = #tpu.dot_dimension_numbers<[1], [0], [0], [1], [0, 0, 1, 1], [], []>} : vector<16x128xbf16>, vector<128x128xbf16>, vector<16x128xf32> -> vector<16x128xf32>
    %7 = arith.addf %3, %6 : vector<16x128xf32>
    %c0_6 = arith.constant 0 : index
    %c0_7 = arith.constant 0 : index
    %8 = vector.load %arg8[%c0_6, %c0_7] : memref<16x128xf32, #tpu.memory_space<vmem>>, vector<16x128xf32>
    tpu.vector_store %arg8[%c0_6, %c0_7], %7 {strides = array<i32>} : memref<16x128xf32, #tpu.memory_space<vmem>>, vector<16x128xf32>,
    %c35_i32 = arith.constant 35 : i32
    %9 = arith.cmpi eq, %arg2, %c35_i32 : i32
    %10 = arith.extui %9 : i1 to i32
    %c0_i32_8 = arith.constant 0 : i32
    %11 = arith.cmpi ne, %10, %c0_i32_8 : i32
    scf.if %11 {
      %c0_9 = arith.constant 0 : index
      %c0_10 = arith.constant 0 : index
      %12 = vector.load %arg8[%c0_9, %c0_10] : memref<16x128xf32, #tpu.memory_space<vmem>>, vector<16x128xf32>
      %c0_11 = arith.constant 0 : index
      %c0_12 = arith.constant 0 : index
      %13 = vector.load %arg5[%c0_11, %c0_12] : memref<1x128xf32, #tpu.memory_space<vmem>>, vector<1x128xf32>
      %c0_13 = arith.constant 0 : index
      %c0_14 = arith.constant 0 : index
      %14 = vector.load %arg6[%c0_13, %c0_14] : memref<16x128xf32, #tpu.memory_space<vmem>>, vector<16x128xf32>
      %15 = vector.broadcast %13 : vector<1x128xf32> to vector<16x128xf32>
      %16 = arith.addf %12, %15 : vector<16x128xf32>
      %17 = arith.addf %16, %14 : vector<16x128xf32>
      %cst_15 = arith.constant 0.000000e+00 : f32
      %18 = vector.broadcast %cst_15 : f32 to vector<16x128xf32>
      %19 = arith.cmpf oge, %17, %18 : vector<16x128xf32>
      %cst_16 = arith.constant 0.00999999977 : f32
      %20 = vector.broadcast %cst_16 : f32 to vector<16x128xf32>
      %21 = arith.mulf %20, %17 : vector<16x128xf32>
      %22 = arith.select %19, %17, %21 : vector<16x128xi1>, vector<16x128xf32>
      %c0_17 = arith.constant 0 : index
      %c0_18 = arith.constant 0 : index
      %23 = vector.load %arg7[%c0_17, %c0_18] : memref<16x128xf32, #tpu.memory_space<vmem>>, vector<16x128xf32>
      tpu.vector_store %arg7[%c0_17, %c0_18], %22 {strides = array<i32>} : memref<16x128xf32, #tpu.memory_space<vmem>>, vector<16x128xf32>,
    } else {
    }
    return
  }
  func.func @transform_0(%arg0: i32, %arg1: i32, %arg2: i32) -> (i32, i32) {
    %c0_i32 = arith.constant 0 : i32
    return %arg0, %arg2 : i32, i32
  }
  func.func @transform_1(%arg0: i32, %arg1: i32, %arg2: i32) -> (i32, i32) {
    %c0_i32 = arith.constant 0 : i32
    return %arg2, %arg1 : i32, i32
  }
  func.func @transform_2(%arg0: i32, %arg1: i32, %arg2: i32) -> (i32, i32) {
    %c0_i32 = arith.constant 0 : i32
    %c0_i32_0 = arith.constant 0 : i32
    return %c0_i32, %arg1 : i32, i32
  }
  func.func @transform_3(%arg0: i32, %arg1: i32, %arg2: i32) -> (i32, i32) {
    %c0_i32 = arith.constant 0 : i32
    return %arg0, %arg1 : i32, i32
  }
  func.func @transform_4(%arg0: i32, %arg1: i32, %arg2: i32) -> (i32, i32) {
    %c0_i32 = arith.constant 0 : i32
    return %arg0, %arg1 : i32, i32
  }
}

module attributes {stable_mosaic.version = 11 : i64} {
  func.func @_head_fc_kernel(%arg0: memref<2x1x512xf32, #tpu.memory_space<vmem>>, %arg1: memref<512x32xf32, #tpu.memory_space<vmem>>, %arg2: memref<1x32xf32, #tpu.memory_space<vmem>>, %arg3: memref<32x10xf32, #tpu.memory_space<vmem>>, %arg4: memref<1x10xf32, #tpu.memory_space<vmem>>, %arg5: memref<2x10xf32, #tpu.memory_space<vmem>>) attributes {dimension_semantics = [], scalar_prefetch = 0 : i64, scratch_operands = 0 : i64, tpu.core_type = #tpu.core_type<tc>} {
    %c0 = arith.constant 0 : index
    %c0_0 = arith.constant 0 : index
    %c0_1 = arith.constant 0 : index
    %0 = vector.load %arg0[%c0, %c0_0, %c0_1] : memref<2x1x512xf32, #tpu.memory_space<vmem>>, vector<2x1x512xf32>
    %cst = arith.constant dense<0.000000e+00> : vector<2x512xf32>
    %1 = vector.multi_reduction <add>, %0, %cst [1] : vector<2x1x512xf32> to vector<2x512xf32>
    %cst_2 = arith.constant 1.000000e+00 : f32
    %2 = vector.broadcast %cst_2 : f32 to vector<2x512xf32>
    %3 = arith.divf %1, %2 : vector<2x512xf32>
    %c0_3 = arith.constant 0 : index
    %c0_4 = arith.constant 0 : index
    %4 = vector.load %arg1[%c0_3, %c0_4] : memref<512x32xf32, #tpu.memory_space<vmem>>, vector<512x32xf32>
    %cst_5 = arith.constant dense<0.000000e+00> : vector<2x32xf32>
    %5 = tpu.matmul %3, %4, %cst_5 {dimension_numbers = #tpu.dot_dimension_numbers<[1], [0], [0], [1], [0, 0, 1, 1], [], []>} : vector<2x512xf32>, vector<512x32xf32>, vector<2x32xf32> -> vector<2x32xf32>
    %c0_6 = arith.constant 0 : index
    %c0_7 = arith.constant 0 : index
    %6 = vector.load %arg2[%c0_6, %c0_7] : memref<1x32xf32, #tpu.memory_space<vmem>>, vector<1x32xf32>
    %7 = vector.broadcast %6 : vector<1x32xf32> to vector<2x32xf32>
    %8 = arith.addf %5, %7 : vector<2x32xf32>
    %c0_8 = arith.constant 0 : index
    %c0_9 = arith.constant 0 : index
    %9 = vector.load %arg3[%c0_8, %c0_9] : memref<32x10xf32, #tpu.memory_space<vmem>>, vector<32x10xf32>
    %cst_10 = arith.constant dense<0.000000e+00> : vector<2x10xf32>
    %10 = tpu.matmul %8, %9, %cst_10 {dimension_numbers = #tpu.dot_dimension_numbers<[1], [0], [0], [1], [0, 0, 1, 1], [], []>} : vector<2x32xf32>, vector<32x10xf32>, vector<2x10xf32> -> vector<2x10xf32>
    %c0_11 = arith.constant 0 : index
    %c0_12 = arith.constant 0 : index
    %11 = vector.load %arg4[%c0_11, %c0_12] : memref<1x10xf32, #tpu.memory_space<vmem>>, vector<1x10xf32>
    %12 = vector.broadcast %11 : vector<1x10xf32> to vector<2x10xf32>
    %13 = arith.addf %10, %12 : vector<2x10xf32>
    %c0_13 = arith.constant 0 : index
    %c0_14 = arith.constant 0 : index
    %14 = vector.load %arg5[%c0_13, %c0_14] : memref<2x10xf32, #tpu.memory_space<vmem>>, vector<2x10xf32>
    tpu.vector_store %arg5[%c0_13, %c0_14], %13 {strides = array<i32>} : memref<2x10xf32, #tpu.memory_space<vmem>>, vector<2x10xf32>,
    return
  }
}

</mosaic_0001>

<bundles_post_ra>
// kernel: convswarm_forward.37
= control target key start
LH: loop header
LB: loop body
LE: loop exit
PB: predicated region body
PF: predicated region fallthrough
CT: control target
= control target key end

     0   :  { %s2255_s12 = smov 0   ;;  %s2257_s13 = smov 0   ;;  %s2823_s0 = inlined_call_operand.vmem [shape: bf16[512,256], index: 0, kind: input, shape index: {}]   ;;  %s2824_s1 = inlined_call_operand.vmem [shape: bf16[256,128], index: 1, kind: input, shape index: {}]   ;;  %s2825_s2 = inlined_call_operand.vmem [shape: f32[1,128], index: 2, kind: input, shape index: {}]   ;;  %s2826_s3 = inlined_call_operand.vmem [shape: f32[512,128], index: 3, kind: output, shape index: {}]  }
   0x1   :  { %s2259_s14 = smov 0   ;;  %s2261_s15 = smov 0  }
   0x2   :  { %s2263_s16 = smov 0  }
   0x3 LB: > { %s25_s17 = sadd.s32 1, %s2228_s15  ;;  %p48_p1 = scmp.ne.s32.totalorder %s2220_s13, %s2216_s12  ;;  %s2232_s16 = sphi %s2263_s16, %s13_s16   ;;  %s2228_s15 = sphi %s2261_s15, %s2830_s15   ;;  %s2224_s14 = sphi %s2259_s14, %s2829_s14   ;;  %s2220_s13 = sphi %s2257_s13, %s2828_s13   ;;  %s2216_s12 = sphi %s2255_s12, %s2827_s12  }
   0x4   : > { %p26_p0 = scmp.ge.s32.totalorder %s25_s17, 2  ;;  %p49_p2 = scmp.eq.s32.totalorder %s2232_s16, 0 }
   0x5   : > { %s41_s19 = sadd.s32 1, %s2220_s13  ;;  %p1923_p5 = scmp.ge.s32.totalorder %s2232_s16, 2 }
   0x6   : > { %s2832_s17 = smov (%p26_p0, %s25_s17), 0  ;;  %p50_p3 = por %p49_p2, %p48_p1 }
   0x7   : > { %s37_s18 = ssub.s32 %s2228_s15, %s2832_s17  ;;  %162 = sbr.rel (%p1923_p5) target bundleno = 60 (0x3c), region = 20 }
   0x8   : > { %p39_p4 = scmp.eq.s32.totalorder %s37_s18, 0 }
   0xa   : > { %s2290_s20 = scalar_select %p39_p4, %s2220_s13, %s41_s19  }
   0xe   : > { %165 = sbr.rel (!%p50_p3) target bundleno = 60 (0x3c), region = 24  ;;  %s167_s21 = sand.u32 (%p50_p3), 1, %s2220_s13  }
   0xf   : > { %s1925_s22 = sshll.u32 (%p50_p3), %s2228_s15, 2  ;;  %s1924_s23 = sshll.u32 (%p50_p3), %s167_s21, 8 }
  0x10   : > { %s2298_s26 = scalar_lea.vmem (%p50_p3), %s2823_s0, %s1925_s22  ;;  %s2302_s27 = scalar_lea.vmem (%p50_p3), [#allocation3], %s1924_s23 }
  0x11   : > { %v190_v0 = vld [vmem:[%s2298_s26] sm:$0xf] (%p50_p3)  ;;  %v192_v1 = vld [vmem:[%s2298_s26 + $0x8] sm:$0xf] (%p50_p3)  ;;  %v194_v2 = vld [vmem:[%s2298_s26 + $0x10] sm:$0xf] (%p50_p3) }
  0x12   : > { %191 = vst [vmem:[%s2302_s27] sm:$0xf] (%p50_p3), %v190_v0  ;;  %193 = vst [vmem:[%s2302_s27 + $0x4] sm:$0xf] (%p50_p3), %v192_v1  ;;  %v196_v3 = vld [vmem:[%s2298_s26 + $0x18] sm:$0xf] (%p50_p3) }
  0x13   : > { %v198_v4 = vld [vmem:[%s2298_s26 + $0x20] sm:$0xf] (%p50_p3)  ;;  %195 = vst [vmem:[%s2302_s27 + $0x8] sm:$0xf] (%p50_p3), %v194_v2  ;;  %197 = vst [vmem:[%s2302_s27 + $0xc] sm:$0xf] (%p50_p3), %v196_v3 }
  0x14   : > { %199 = vst [vmem:[%s2302_s27 + $0x10] sm:$0xf] (%p50_p3), %v198_v4  ;;  %v200_v5 = vld [vmem:[%s2298_s26 + $0x28] sm:$0xf] (%p50_p3)  ;;  %v202_v6 = vld [vmem:[%s2298_s26 + $0x30] sm:$0xf] (%p50_p3) }
  0x15   : > { %v204_v7 = vld [vmem:[%s2298_s26 + $0x38] sm:$0xf]  ;;  %201 = vst [vmem:[%s2302_s27 + $0x14] sm:$0xf] %v200_v5  ;;  %203 = vst [vmem:[%s2302_s27 + $0x18] sm:$0xf] %v202_v6 }
  0x16   : > { %205 = vst [vmem:[%s2302_s27 + $0x1c] sm:$0xf] %v204_v7  ;;  %v206_v8 = vld [vmem:[%s2298_s26 + $0x40] sm:$0xf]  ;;  %v208_v9 = vld [vmem:[%s2298_s26 + $0x48] sm:$0xf] }
  0x17   : > { %v210_v10 = vld [vmem:[%s2298_s26 + $0x50] sm:$0xf]  ;;  %207 = vst [vmem:[%s2302_s27 + $0x20] sm:$0xf] %v206_v8  ;;  %209 = vst [vmem:[%s2302_s27 + $0x24] sm:$0xf] %v208_v9 }
  0x18   : > { %211 = vst [vmem:[%s2302_s27 + $0x28] sm:$0xf] %v210_v10  ;;  %v212_v11 = vld [vmem:[%s2298_s26 + $0x58] sm:$0xf]  ;;  %v214_v12 = vld [vmem:[%s2298_s26 + $0x60] sm:$0xf] }
  0x19   : > { %v216_v13 = vld [vmem:[%s2298_s26 + $0x68] sm:$0xf]  ;;  %213 = vst [vmem:[%s2302_s27 + $0x2c] sm:$0xf] %v212_v11  ;;  %215 = vst [vmem:[%s2302_s27 + $0x30] sm:$0xf] %v214_v12 }
  0x1a   : > { %217 = vst [vmem:[%s2302_s27 + $0x34] sm:$0xf] %v216_v13  ;;  %v218_v14 = vld [vmem:[%s2298_s26 + $0x70] sm:$0xf]  ;;  %v220_v15 = vld [vmem:[%s2298_s26 + $0x78] sm:$0xf] }
  0x1b   : > { %v222_v16 = vld [vmem:[%s2298_s26 + $0x80] sm:$0xf]  ;;  %219 = vst [vmem:[%s2302_s27 + $0x38] sm:$0xf] %v218_v14  ;;  %221 = vst [vmem:[%s2302_s27 + $0x3c] sm:$0xf] %v220_v15 }
  0x1c   : > { %223 = vst [vmem:[%s2302_s27 + $0x40] sm:$0xf] %v222_v16  ;;  %v224_v17 = vld [vmem:[%s2298_s26 + $0x88] sm:$0xf]  ;;  %v226_v18 = vld [vmem:[%s2298_s26 + $0x90] sm:$0xf] }
  0x1d   : > { %v228_v19 = vld [vmem:[%s2298_s26 + $0x98] sm:$0xf]  ;;  %225 = vst [vmem:[%s2302_s27 + $0x44] sm:$0xf] %v224_v17  ;;  %227 = vst [vmem:[%s2302_s27 + $0x48] sm:$0xf] %v226_v18 }
  0x1e   : > { %229 = vst [vmem:[%s2302_s27 + $0x4c] sm:$0xf] %v228_v19  ;;  %v230_v20 = vld [vmem:[%s2298_s26 + $0xa0] sm:$0xf]  ;;  %v232_v21 = vld [vmem:[%s2298_s26 + $0xa8] sm:$0xf] }
  0x1f   : > { %v234_v22 = vld [vmem:[%s2298_s26 + $0xb0] sm:$0xf]  ;;  %231 = vst [vmem:[%s2302_s27 + $0x50] sm:$0xf] %v230_v20  ;;  %233 = vst [vmem:[%s2302_s27 + $0x54] sm:$0xf] %v232_v21 }
  0x20   : > { %235 = vst [vmem:[%s2302_s27 + $0x58] sm:$0xf] %v234_v22  ;;  %v236_v23 = vld [vmem:[%s2298_s26 + $0xb8] sm:$0xf]  ;;  %v238_v24 = vld [vmem:[%s2298_s26 + $0xc0] sm:$0xf] }
  0x21   : > { %v240_v25 = vld [vmem:[%s2298_s26 + $0xc8] sm:$0xf]  ;;  %237 = vst [vmem:[%s2302_s27 + $0x5c] sm:$0xf] %v236_v23  ;;  %239 = vst [vmem:[%s2302_s27 + $0x60] sm:$0xf] %v238_v24 }
  0x22   : > { %241 = vst [vmem:[%s2302_s27 + $0x64] sm:$0xf] %v240_v25  ;;  %v242_v26 = vld [vmem:[%s2298_s26 + $0xd0] sm:$0xf]  ;;  %v244_v27 = vld [vmem:[%s2298_s26 + $0xd8] sm:$0xf] }
  0x23   : > { %v246_v28 = vld [vmem:[%s2298_s26 + $0xe0] sm:$0xf]  ;;  %243 = vst [vmem:[%s2302_s27 + $0x68] sm:$0xf] %v242_v26  ;;  %245 = vst [vmem:[%s2302_s27 + $0x6c] sm:$0xf] %v244_v27 }
  0x24   : > { %247 = vst [vmem:[%s2302_s27 + $0x70] sm:$0xf] %v246_v28  ;;  %v248_v29 = vld [vmem:[%s2298_s26 + $0xe8] sm:$0xf]  ;;  %v250_v30 = vld [vmem:[%s2298_s26 + $0xf0] sm:$0xf] }
  0x25   : > { %v252_v31 = vld [vmem:[%s2298_s26 + $0xf8] sm:$0xf]  ;;  %249 = vst [vmem:[%s2302_s27 + $0x74] sm:$0xf] %v248_v29  ;;  %251 = vst [vmem:[%s2302_s27 + $0x78] sm:$0xf] %v250_v30 }
  0x26   : > { %253 = vst [vmem:[%s2302_s27 + $0x7c] sm:$0xf] %v252_v31  ;;  %v254_v32 = vld [vmem:[%s2298_s26 + $0x100] sm:$0xf]  ;;  %v256_v33 = vld [vmem:[%s2298_s26 + $0x108] sm:$0xf] }
  0x27   : > { %v258_v34 = vld [vmem:[%s2298_s26 + $0x110] sm:$0xf]  ;;  %255 = vst [vmem:[%s2302_s27 + $0x80] sm:$0xf] %v254_v32  ;;  %257 = vst [vmem:[%s2302_s27 + $0x84] sm:$0xf] %v256_v33 }
  0x28   : > { %259 = vst [vmem:[%s2302_s27 + $0x88] sm:$0xf] %v258_v34  ;;  %v260_v35 = vld [vmem:[%s2298_s26 + $0x118] sm:$0xf]  ;;  %v262_v36 = vld [vmem:[%s2298_s26 + $0x120] sm:$0xf] }
  0x29   : > { %v264_v37 = vld [vmem:[%s2298_s26 + $0x128] sm:$0xf]  ;;  %261 = vst [vmem:[%s2302_s27 + $0x8c] sm:$0xf] %v260_v35  ;;  %263 = vst [vmem:[%s2302_s27 + $0x90] sm:$0xf] %v262_v36 }
  0x2a   : > { %265 = vst [vmem:[%s2302_s27 + $0x94] sm:$0xf] %v264_v37  ;;  %v266_v38 = vld [vmem:[%s2298_s26 + $0x130] sm:$0xf]  ;;  %v268_v39 = vld [vmem:[%s2298_s26 + $0x138] sm:$0xf] }
  0x2b   : > { %v270_v40 = vld [vmem:[%s2298_s26 + $0x140] sm:$0xf]  ;;  %267 = vst [vmem:[%s2302_s27 + $0x98] sm:$0xf] %v266_v38  ;;  %269 = vst [vmem:[%s2302_s27 + $0x9c] sm:$0xf] %v268_v39 }
  0x2c   : > { %271 = vst [vmem:[%s2302_s27 + $0xa0] sm:$0xf] %v270_v40  ;;  %v272_v41 = vld [vmem:[%s2298_s26 + $0x148] sm:$0xf]  ;;  %v274_v42 = vld [vmem:[%s2298_s26 + $0x150] sm:$0xf] }
  0x2d   : > { %v276_v43 = vld [vmem:[%s2298_s26 + $0x158] sm:$0xf]  ;;  %273 = vst [vmem:[%s2302_s27 + $0xa4] sm:$0xf] %v272_v41  ;;  %275 = vst [vmem:[%s2302_s27 + $0xa8] sm:$0xf] %v274_v42 }
  0x2e   : > { %277 = vst [vmem:[%s2302_s27 + $0xac] sm:$0xf] %v276_v43  ;;  %v278_v44 = vld [vmem:[%s2298_s26 + $0x160] sm:$0xf]  ;;  %v280_v45 = vld [vmem:[%s2298_s26 + $0x168] sm:$0xf] }
  0x2f   : > { %v282_v46 = vld [vmem:[%s2298_s26 + $0x170] sm:$0xf]  ;;  %279 = vst [vmem:[%s2302_s27 + $0xb0] sm:$0xf] %v278_v44  ;;  %281 = vst [vmem:[%s2302_s27 + $0xb4] sm:$0xf] %v280_v45 }
  0x30   : > { %283 = vst [vmem:[%s2302_s27 + $0xb8] sm:$0xf] %v282_v46  ;;  %v284_v47 = vld [vmem:[%s2298_s26 + $0x178] sm:$0xf]  ;;  %v286_v48 = vld [vmem:[%s2298_s26 + $0x180] sm:$0xf] }
  0x31   : > { %v288_v49 = vld [vmem:[%s2298_s26 + $0x188] sm:$0xf]  ;;  %285 = vst [vmem:[%s2302_s27 + $0xbc] sm:$0xf] %v284_v47  ;;  %287 = vst [vmem:[%s2302_s27 + $0xc0] sm:$0xf] %v286_v48 }
  0x32   : > { %289 = vst [vmem:[%s2302_s27 + $0xc4] sm:$0xf] %v288_v49  ;;  %v290_v50 = vld [vmem:[%s2298_s26 + $0x190] sm:$0xf]  ;;  %v292_v51 = vld [vmem:[%s2298_s26 + $0x198] sm:$0xf] }
  0x33   : > { %v294_v52 = vld [vmem:[%s2298_s26 + $0x1a0] sm:$0xf]  ;;  %291 = vst [vmem:[%s2302_s27 + $0xc8] sm:$0xf] %v290_v50  ;;  %293 = vst [vmem:[%s2302_s27 + $0xcc] sm:$0xf] %v292_v51 }
  0x34   : > { %295 = vst [vmem:[%s2302_s27 + $0xd0] sm:$0xf] %v294_v52  ;;  %v296_v53 = vld [vmem:[%s2298_s26 + $0x1a8] sm:$0xf]  ;;  %v298_v54 = vld [vmem:[%s2298_s26 + $0x1b0] sm:$0xf] }
  0x35   : > { %v300_v55 = vld [vmem:[%s2298_s26 + $0x1b8] sm:$0xf]  ;;  %297 = vst [vmem:[%s2302_s27 + $0xd4] sm:$0xf] %v296_v53  ;;  %299 = vst [vmem:[%s2302_s27 + $0xd8] sm:$0xf] %v298_v54 }
  0x36   : > { %301 = vst [vmem:[%s2302_s27 + $0xdc] sm:$0xf] %v300_v55  ;;  %v302_v56 = vld [vmem:[%s2298_s26 + $0x1c0] sm:$0xf]  ;;  %v304_v57 = vld [vmem:[%s2298_s26 + $0x1c8] sm:$0xf] }
  0x37   : > { %v306_v58 = vld [vmem:[%s2298_s26 + $0x1d0] sm:$0xf]  ;;  %303 = vst [vmem:[%s2302_s27 + $0xe0] sm:$0xf] %v302_v56  ;;  %305 = vst [vmem:[%s2302_s27 + $0xe4] sm:$0xf] %v304_v57 }
  0x38   : > { %307 = vst [vmem:[%s2302_s27 + $0xe8] sm:$0xf] %v306_v58  ;;  %v308_v59 = vld [vmem:[%s2298_s26 + $0x1d8] sm:$0xf]  ;;  %v310_v60 = vld [vmem:[%s2298_s26 + $0x1e0] sm:$0xf] }
  0x39   : > { %v312_v61 = vld [vmem:[%s2298_s26 + $0x1e8] sm:$0xf]  ;;  %309 = vst [vmem:[%s2302_s27 + $0xec] sm:$0xf] %v308_v59  ;;  %311 = vst [vmem:[%s2302_s27 + $0xf0] sm:$0xf] %v310_v60 }
  0x3a   : > { %313 = vst [vmem:[%s2302_s27 + $0xf4] sm:$0xf] %v312_v61  ;;  %v314_v62 = vld [vmem:[%s2298_s26 + $0x1f0] sm:$0xf]  ;;  %v316_v63 = vld [vmem:[%s2298_s26 + $0x1f8] sm:$0xf] }
  0x3b   : > { %315 = vst [vmem:[%s2302_s27 + $0xf8] sm:$0xf] %v314_v62  ;;  %317 = vst [vmem:[%s2302_s27 + $0xfc] sm:$0xf] %v316_v63 }
  0x3c PF: > { %p1926_p6 = scmp.ge.s32.totalorder %s2232_s16, 1  ;;  %p479_p7 = scmp.lt.s32.totalorder %s2232_s16, 3 }
  0x3e   : > { %p480_p8 = pnand %p1926_p6, %p479_p7 }
  0x3f   : > { %s486_s28 = sand.u32 (!%p480_p8), 1, %s2216_s12   ;;  %s1928_s29 = sshll.u32 (!%p480_p8), %s2224_s14, 4 }
  0x40   : > { %483 = sbr.rel (%p480_p8) target bundleno = 467 (0x1d3), region = 69  ;;  %s1927_s30 = sshll.u32 (!%p480_p8), %s486_s28, 8 }
  0x41   : > { %p525_p9 = scmp.lt.s32.totalorder (!%p480_p8), %s1928_s29, 31  ;;  %s2439_s8 = scalar_lea.vmem (!%p480_p8), [#allocation3], %s1927_s30 }
  0x42   : > { %p1930_p10 = scmp.ne.s32.totalorder (!%p480_p8), %s2224_s14, 0 }
  0x47   : > { %s2834_s29 = smov (!%p525_p9, %s1928_s29), 31  ;;  %549 = sbr.rel (%p1930_p10) target bundleno = 105 (0x69), region = 77 }
  0x48   : > { %s1929_s4 = sshll.u32 %s2834_s29, 2  ;;  %v2234_v0 = vmov (!%p1930_p10), 0.0  }
  0x49   : > { %s2437_s7 = scalar_lea.vmem %s2824_s1, %s1929_s4  ;;  %550 = vst [vmem:[#allocation2] sm:$0xff] (!%p1930_p10), %v2234_v0  ;;  %551 = vst [vmem:[#allocation2 + $0x8] sm:$0xff] (!%p1930_p10), %v2234_v0 }
  0x4a   : > { %552 = vst [vmem:[#allocation2 + $0x10] sm:$0xff] (!%p1930_p10), %v2234_v0  ;;  %553 = vst [vmem:[#allocation2 + $0x18] sm:$0xff] (!%p1930_p10), %v2234_v0 }
  0x4b   : > { %554 = vst [vmem:[#allocation2 + $0x20] sm:$0xff] (!%p1930_p10), %v2234_v0  ;;  %555 = vst [vmem:[#allocation2 + $0x28] sm:$0xff] (!%p1930_p10), %v2234_v0 }
  0x4c   : > { %556 = vst [vmem:[#allocation2 + $0x30] sm:$0xff] (!%p1930_p10), %v2234_v0  ;;  %557 = vst [vmem:[#allocation2 + $0x38] sm:$0xff] (!%p1930_p10), %v2234_v0 }
  0x4d   : > { %558 = vst [vmem:[#allocation2 + $0x40] sm:$0xff] (!%p1930_p10), %v2234_v0  ;;  %559 = vst [vmem:[#allocation2 + $0x48] sm:$0xff] (!%p1930_p10), %v2234_v0 }
  0x4e   : > { %560 = vst [vmem:[#allocation2 + $0x50] sm:$0xff] %v2234_v0  ;;  %561 = vst [vmem:[#allocation2 + $0x58] sm:$0xff] %v2234_v0 }
  0x4f   : > { %562 = vst [vmem:[#allocation2 + $0x60] sm:$0xff] %v2234_v0  ;;  %563 = vst [vmem:[#allocation2 + $0x68] sm:$0xff] %v2234_v0 }
  0x50   : > { %564 = vst [vmem:[#allocation2 + $0x70] sm:$0xff] %v2234_v0  ;;  %565 = vst [vmem:[#allocation2 + $0x78] sm:$0xff] %v2234_v0 }
  0x51   : > { %566 = vst [vmem:[#allocation2 + $0x80] sm:$0xff] %v2234_v0  ;;  %567 = vst [vmem:[#allocation2 + $0x88] sm:$0xff] %v2234_v0 }
  0x52   : > { %568 = vst [vmem:[#allocation2 + $0x90] sm:$0xff] %v2234_v0  ;;  %569 = vst [vmem:[#allocation2 + $0x98] sm:$0xff] %v2234_v0 }
  0x53   : > { %570 = vst [vmem:[#allocation2 + $0xa0] sm:$0xff] %v2234_v0  ;;  %571 = vst [vmem:[#allocation2 + $0xa8] sm:$0xff] %v2234_v0 }
  0x54   : > { %572 = vst [vmem:[#allocation2 + $0xb0] sm:$0xff] %v2234_v0  ;;  %573 = vst [vmem:[#allocation2 + $0xb8] sm:$0xff] %v2234_v0 }
  0x55   : > { %574 = vst [vmem:[#allocation2 + $0xc0] sm:$0xff] %v2234_v0  ;;  %575 = vst [vmem:[#allocation2 + $0xc8] sm:$0xff] %v2234_v0 }
  0x56   : > { %576 = vst [vmem:[#allocation2 + $0xd0] sm:$0xff] %v2234_v0  ;;  %577 = vst [vmem:[#allocation2 + $0xd8] sm:$0xff] %v2234_v0 }
  0x57   : > { %578 = vst [vmem:[#allocation2 + $0xe0] sm:$0xff] %v2234_v0  ;;  %579 = vst [vmem:[#allocation2 + $0xe8] sm:$0xff] %v2234_v0 }
  0x58   : > { %580 = vst [vmem:[#allocation2 + $0xf0] sm:$0xff] %v2234_v0  ;;  %581 = vst [vmem:[#allocation2 + $0xf8] sm:$0xff] %v2234_v0 }
  0x59   : > { %582 = vst [vmem:[#allocation2 + $0x100] sm:$0xff] %v2234_v0  ;;  %583 = vst [vmem:[#allocation2 + $0x108] sm:$0xff] %v2234_v0 }
  0x5a   : > { %584 = vst [vmem:[#allocation2 + $0x110] sm:$0xff] %v2234_v0  ;;  %585 = vst [vmem:[#allocation2 + $0x118] sm:$0xff] %v2234_v0 }
  0x5b   : > { %586 = vst [vmem:[#allocation2 + $0x120] sm:$0xff] %v2234_v0  ;;  %587 = vst [vmem:[#allocation2 + $0x128] sm:$0xff] %v2234_v0 }
  0x5c   : > { %588 = vst [vmem:[#allocation2 + $0x130] sm:$0xff] %v2234_v0  ;;  %589 = vst [vmem:[#allocation2 + $0x138] sm:$0xff] %v2234_v0 }
  0x5d   : > { %590 = vst [vmem:[#allocation2 + $0x140] sm:$0xff] %v2234_v0  ;;  %591 = vst [vmem:[#allocation2 + $0x148] sm:$0xff] %v2234_v0 }
  0x5e   : > { %592 = vst [vmem:[#allocation2 + $0x150] sm:$0xff] %v2234_v0  ;;  %593 = vst [vmem:[#allocation2 + $0x158] sm:$0xff] %v2234_v0 }
  0x5f   : > { %594 = vst [vmem:[#allocation2 + $0x160] sm:$0xff] %v2234_v0  ;;  %595 = vst [vmem:[#allocation2 + $0x168] sm:$0xff] %v2234_v0 }
  0x60   : > { %596 = vst [vmem:[#allocation2 + $0x170] sm:$0xff] %v2234_v0  ;;  %597 = vst [vmem:[#allocation2 + $0x178] sm:$0xff] %v2234_v0 }
  0x61   : > { %598 = vst [vmem:[#allocation2 + $0x180] sm:$0xff] %v2234_v0  ;;  %599 = vst [vmem:[#allocation2 + $0x188] sm:$0xff] %v2234_v0 }
  0x62   : > { %600 = vst [vmem:[#allocation2 + $0x190] sm:$0xff] %v2234_v0  ;;  %601 = vst [vmem:[#allocation2 + $0x198] sm:$0xff] %v2234_v0 }
  0x63   : > { %602 = vst [vmem:[#allocation2 + $0x1a0] sm:$0xff] %v2234_v0  ;;  %603 = vst [vmem:[#allocation2 + $0x1a8] sm:$0xff] %v2234_v0 }
  0x64   : > { %604 = vst [vmem:[#allocation2 + $0x1b0] sm:$0xff] %v2234_v0  ;;  %605 = vst [vmem:[#allocation2 + $0x1b8] sm:$0xff] %v2234_v0 }
  0x65   : > { %606 = vst [vmem:[#allocation2 + $0x1c0] sm:$0xff] %v2234_v0  ;;  %607 = vst [vmem:[#allocation2 + $0x1c8] sm:$0xff] %v2234_v0 }
  0x66   : > { %608 = vst [vmem:[#allocation2 + $0x1d0] sm:$0xff] %v2234_v0  ;;  %609 = vst [vmem:[#allocation2 + $0x1d8] sm:$0xff] %v2234_v0 }
  0x67   : > { %610 = vst [vmem:[#allocation2 + $0x1e0] sm:$0xff] %v2234_v0  ;;  %611 = vst [vmem:[#allocation2 + $0x1e8] sm:$0xff] %v2234_v0 }
  0x68   : > { %612 = vst [vmem:[#allocation2 + $0x1f0] sm:$0xff] %v2234_v0  ;;  %613 = vst [vmem:[#allocation2 + $0x1f8] sm:$0xff] %v2234_v0 }
  0x69 PF: > { %v2154_v1 = vld [vmem:[%s2437_s7] sm:$0xff]   ;;  %v2155_v2 = vld [vmem:[%s2437_s7 + $0x8] sm:$0xff]   ;;  %v2156_v3 = vld [vmem:[%s2437_s7 + $0x10] sm:$0xff]   ;;  %p1971_p11 = scmp.ne.s32.totalorder %s2224_s14, 1 }
  0x6a   : > { %2017 = vmatprep.subr.bf16.mxu0 %v2154_v1  ;;  %2097 = vmatprep.subr.bf16.mxu1 %v2154_v1  ;;  %v2157_v4 = vld [vmem:[%s2437_s7 + $0x18] sm:$0xff]   ;;  %v2162_v5 = vld [vmem:[%s2439_s8] sm:$0xff]   ;;  %v2159_v8 = vld [vmem:[%s2437_s7 + $0x28] sm:$0xff]  }
  0x6b   : > { %2018 = vmatpush3.bf16.msra.mxu0 %v2154_v1  ;;  %2105 = vmatpush3.bf16.msra.mxu1 %v2154_v1  ;;  %v2163_v6 = vld [vmem:[%s2439_s8 + $0x80] sm:$0xff]   ;;  %v2160_v9 = vld [vmem:[%s2437_s7 + $0x30] sm:$0xff]   ;;  %v2161_v10 = vld [vmem:[%s2437_s7 + $0x38] sm:$0xff]  }
  0x6c   : > { %2019 = vmatprep.subr.bf16.mxu0 %v2155_v2  ;;  %2098 = vmatprep.subr.bf16.mxu1 %v2155_v2  ;;  %v2158_v7 = vld [vmem:[%s2437_s7 + $0x20] sm:$0xff]   ;;  %v2164_v11 = vld [vmem:[%s2439_s8 + $0x8] sm:$0xff]   ;;  %v2166_v13 = vld [vmem:[%s2439_s8 + $0x10] sm:$0xff]  }
  0x6d   : > { %2033 = vmatprep.mubr.bf16.mxu0 %v2162_v5  ;;  %2065 = vmatprep.mubr.bf16.mxu1 %v2163_v6  ;;  %v2165_v12 = vld [vmem:[%s2439_s8 + $0x88] sm:$0xff]   ;;  %v2167_v14 = vld [vmem:[%s2439_s8 + $0x90] sm:$0xff]   ;;  %v2168_v15 = vld [vmem:[%s2439_s8 + $0x18] sm:$0xff]  }
  0x6e   : > { %v2169_v16 = vld [vmem:[%s2439_s8 + $0x98] sm:$0xff]   ;;  %v2170_v17 = vld [vmem:[%s2439_s8 + $0x20] sm:$0xff]   ;;  %v2172_v19 = vld [vmem:[%s2439_s8 + $0x28] sm:$0xff]  }
  0x6f   : > { %2020 = vmatpush3.bf16.msra.mxu0 %v2155_v2  ;;  %2106 = vmatpush3.bf16.msra.mxu1 %v2155_v2  ;;  %v2171_v18 = vld [vmem:[%s2439_s8 + $0xa0] sm:$0xff]   ;;  %v2173_v20 = vld [vmem:[%s2439_s8 + $0xa8] sm:$0xff]   ;;  %v2174_v21 = vld [vmem:[%s2439_s8 + $0x30] sm:$0xff]  }
  0x70   : > { %2021 = vmatprep.subr.bf16.mxu0 %v2156_v3  ;;  %2099 = vmatprep.subr.bf16.mxu1 %v2156_v3  ;;  %v2175_v22 = vld [vmem:[%s2439_s8 + $0xb0] sm:$0xff]   ;;  %v2176_v23 = vld [vmem:[%s2439_s8 + $0x38] sm:$0xff]   ;;  %v2178_v25 = vld [vmem:[%s2439_s8 + $0x40] sm:$0xff]  }
  0x71   : > { %v2177_v24 = vld [vmem:[%s2439_s8 + $0xb8] sm:$0xff]   ;;  %v2179_v26 = vld [vmem:[%s2439_s8 + $0xc0] sm:$0xff]   ;;  %v2180_v27 = vld [vmem:[%s2439_s8 + $0x48] sm:$0xff]  }
  0x72   : > { %v2181_v28 = vld [vmem:[%s2439_s8 + $0xc8] sm:$0xff]   ;;  %v2182_v29 = vld [vmem:[%s2439_s8 + $0x50] sm:$0xff]   ;;  %v2184_v31 = vld [vmem:[%s2439_s8 + $0x58] sm:$0xff]  }
  0x73   : > { %2022 = vmatpush3.bf16.msra.mxu0 %v2156_v3  ;;  %2107 = vmatpush3.bf16.msra.mxu1 %v2156_v3  ;;  %v2183_v30 = vld [vmem:[%s2439_s8 + $0xd0] sm:$0xff]   ;;  %v2185_v32 = vld [vmem:[%s2439_s8 + $0xd8] sm:$0xff]   ;;  %v2186_v33 = vld [vmem:[%s2439_s8 + $0x60] sm:$0xff]  }
  0x74   : > { %2023 = vmatprep.subr.bf16.mxu0 %v2157_v4  ;;  %2100 = vmatprep.subr.bf16.mxu1 %v2157_v4  ;;  %v2187_v34 = vld [vmem:[%s2439_s8 + $0xe0] sm:$0xff]   ;;  %v2188_v35 = vld [vmem:[%s2439_s8 + $0x68] sm:$0xff]   ;;  %v2190_v37 = vld [vmem:[%s2439_s8 + $0x70] sm:$0xff]  }
  0x75   : > { %v2189_v36 = vld [vmem:[%s2439_s8 + $0xe8] sm:$0xff]   ;;  %v2191_v38 = vld [vmem:[%s2439_s8 + $0xf0] sm:$0xff]   ;;  %v2192_v39 = vld [vmem:[%s2439_s8 + $0x78] sm:$0xff]  }
  0x76   : > { %v2193_v40 = vld [vmem:[%s2439_s8 + $0xf8] sm:$0xff]   ;;  %v616_v41 = vld [vmem:[#allocation2 + $0x10] sm:$0xff]  ;;  %v614_v43 = vld [vmem:[#allocation2] sm:$0xff] }
  0x77   : > { %2024 = vmatpush3.bf16.msra.mxu0 %v2157_v4  ;;  %2108 = vmatpush3.bf16.msra.mxu1 %v2157_v4  ;;  %v648_v42 = vld [vmem:[#allocation2 + $0x110] sm:$0xff]  ;;  %v646_v44 = vld [vmem:[#allocation2 + $0x100] sm:$0xff]  ;;  %v617_v47 = vld [vmem:[#allocation2 + $0x18] sm:$0xff] }
  0x78   : > { %2025 = vmatprep.subr.bf16.mxu0 %v2158_v7  ;;  %2101 = vmatprep.subr.bf16.mxu1 %v2158_v7  ;;  %v649_v48 = vld [vmem:[#allocation2 + $0x118] sm:$0xff]  ;;  %v615_v53 = vld [vmem:[#allocation2 + $0x8] sm:$0xff]  ;;  %v620_v1 = vld [vmem:[#allocation2 + $0x30] sm:$0xff] }
  0x79   : > { %v647_v54 = vld [vmem:[#allocation2 + $0x108] sm:$0xff]  ;;  %v652_v2 = vld [vmem:[#allocation2 + $0x130] sm:$0xff]  ;;  %v618_v3 = vld [vmem:[#allocation2 + $0x20] sm:$0xff] }
  0x7a   : > { %v650_v4 = vld [vmem:[#allocation2 + $0x120] sm:$0xff] }
  0x7b   : > { %2026 = vmatpush3.bf16.msra.mxu0 %v2158_v7  ;;  %2109 = vmatpush3.bf16.msra.mxu1 %v2158_v7  ;;  %v621_v7 = vld [vmem:[#allocation2 + $0x38] sm:$0xff] }
  0x7c   : > { %2027 = vmatprep.subr.bf16.mxu0 %v2159_v8  ;;  %2102 = vmatprep.subr.bf16.mxu1 %v2159_v8 }
  0x7f   : > { %2028 = vmatpush3.bf16.msra.mxu0 %v2159_v8  ;;  %2110 = vmatpush3.bf16.msra.mxu1 %v2159_v8  ;;  %v653_v8 = vld [vmem:[#allocation2 + $0x138] sm:$0xff] }
  0x80   : > { %2029 = vmatprep.subr.bf16.mxu0 %v2160_v9  ;;  %2103 = vmatprep.subr.bf16.mxu1 %v2160_v9 }
  0x83   : > { %2030 = vmatpush3.bf16.msra.mxu0 %v2160_v9  ;;  %2111 = vmatpush3.bf16.msra.mxu1 %v2160_v9 }
  0x84   : > { %2031 = vmatprep.subr.bf16.mxu0 %v2161_v10  ;;  %2104 = vmatprep.subr.bf16.mxu1 %v2161_v10 }
  0x87   : > { %2032 = vmatpush3.bf16.msra.mxu0 %v2161_v10  ;;  %2112 = vmatpush3.bf16.msra.mxu1 %v2161_v10 }
  0x8a   : > { %2034 = vmatmul.mubr.bf16.vlgmr.msra.gmra.mrb[0].mxu0 %v2164_v11  ;;  %2066 = vmatmul.mubr.bf16.vlgmr.msra.gmra.mrb[0].mxu1 %v2165_v12 }
  0x8b   : > { %2037 = vmatprep.mubr.bf16.mxu0 %v2166_v13  ;;  %2069 = vmatprep.mubr.bf16.mxu1 %v2167_v14  ;;  %v619_v13 = vld [vmem:[#allocation2 + $0x28] sm:$0xff] }
  0x8c   : > { %v651_v14 = vld [vmem:[#allocation2 + $0x128] sm:$0xff] }
  0x92   : > { %2038 = vmatmul.mubr.bf16.gmra.mrb[4].mxu0 %v2168_v15  ;;  %2070 = vmatmul.mubr.bf16.gmra.mrb[4].mxu1 %v2169_v16 }
  0x93   : > { %2041 = vmatprep.mubr.bf16.mxu0 %v2170_v17  ;;  %2073 = vmatprep.mubr.bf16.mxu1 %v2171_v18 }
  0x9a   : > { %2042 = vmatmul.mubr.bf16.gmra.mrb[8].mxu0 %v2172_v19  ;;  %2074 = vmatmul.mubr.bf16.gmra.mrb[8].mxu1 %v2173_v20 }
  0x9b   : > { %2045 = vmatprep.mubr.bf16.mxu0 %v2174_v21  ;;  %2077 = vmatprep.mubr.bf16.mxu1 %v2175_v22 }
  0xa2   : > { %2046 = vmatmul.mubr.bf16.gmra.mrb[12].mxu0 %v2176_v23  ;;  %2078 = vmatmul.mubr.bf16.gmra.mrb[12].mxu1 %v2177_v24 }
  0xa3   : > { %2049 = vmatprep.mubr.bf16.mxu0 %v2178_v25  ;;  %2081 = vmatprep.mubr.bf16.mxu1 %v2179_v26  ;;  %v624_v25 = vld [vmem:[#allocation2 + $0x50] sm:$0xff] }
  0xa4   : > { %v656_v26 = vld [vmem:[#allocation2 + $0x150] sm:$0xff] }
  0xaa   : > { %2050 = vmatmul.mubr.bf16.gmra.mrb[16].mxu0 %v2180_v27  ;;  %2082 = vmatmul.mubr.bf16.gmra.mrb[16].mxu1 %v2181_v28  ;;  %v622_v27 = vld [vmem:[#allocation2 + $0x40] sm:$0xff] }
  0xab   : > { %2053 = vmatprep.mubr.bf16.mxu0 %v2182_v29  ;;  %2085 = vmatprep.mubr.bf16.mxu1 %v2183_v30  ;;  %v654_v28 = vld [vmem:[#allocation2 + $0x140] sm:$0xff] }
  0xb2   : > { %2054 = vmatmul.mubr.bf16.gmra.mrb[20].mxu0 %v2184_v31  ;;  %2086 = vmatmul.mubr.bf16.gmra.mrb[20].mxu1 %v2185_v32  ;;  %v625_v31 = vld [vmem:[#allocation2 + $0x58] sm:$0xff] }
  0xb3   : > { %2057 = vmatprep.mubr.bf16.mxu0 %v2186_v33  ;;  %2089 = vmatprep.mubr.bf16.mxu1 %v2187_v34  ;;  %v657_v32 = vld [vmem:[#allocation2 + $0x158] sm:$0xff] }
  0xba   : > { %2058 = vmatmul.mubr.bf16.gmra.mrb[24].mxu0 %v2188_v35  ;;  %2090 = vmatmul.mubr.bf16.gmra.mrb[24].mxu1 %v2189_v36 }
  0xbb   : > { %2061 = vmatprep.mubr.bf16.mxu0 %v2190_v37  ;;  %2093 = vmatprep.mubr.bf16.mxu1 %v2191_v38  ;;  %v623_v37 = vld [vmem:[#allocation2 + $0x48] sm:$0xff] }
  0xbc   : > { %v655_v38 = vld [vmem:[#allocation2 + $0x148] sm:$0xff] }
  0xc2   : > { %2062 = vmatmul.mubr.bf16.gmra.mrb[28].mxu0 %v2192_v39  ;;  %2094 = vmatmul.mubr.bf16.gmra.mrb[28].mxu1 %v2193_v40 }
 0x15d   : > { %v2035_v45 = vpop.f32.mrb[0].mxu0  ;;  %v2067_v46 = vpop.f32.mrb[0].mxu1 }
 0x15e   : > { %v1289_v49 = vadd.f32 %v2035_v45, %v616_v41  ;;  %v1321_v50 = vadd.f32 %v2067_v46, %v648_v42  ;;  %v1032_v51 = vpop.f32.mrb[1].mxu0  ;;  %v1160_v52 = vpop.f32.mrb[1].mxu1 }
 0x15f   : > { %v1287_v55 = vadd.f32 %v1032_v51, %v614_v43  ;;  %v1319_v56 = vadd.f32 %v1160_v52, %v646_v44  ;;  %v2036_v57 = vpop.f32.mrb[2].mxu0  ;;  %v2068_v58 = vpop.f32.mrb[2].mxu1  ;;  %v626_v51 = vld [vmem:[#allocation2 + $0x60] sm:$0xff] }
 0x160   : > { %1353 = vst [vmem:[#allocation2 + $0x10] sm:$0xff] %v1289_v49  ;;  %1385 = vst [vmem:[#allocation2 + $0x110] sm:$0xff] %v1321_v50  ;;  %v1290_v59 = vadd.f32 %v2036_v57, %v617_v47  ;;  %v1322_v60 = vadd.f32 %v2068_v58, %v649_v48  ;;  %v1035_v61 = vpop.f32.mrb[3].mxu0  ;;  %v1163_v62 = vpop.f32.mrb[3].mxu1  ;;  %v628_v49 = vld [vmem:[#allocation2 + $0x70] sm:$0xff]  ;;  %v658_v52 = vld [vmem:[#allocation2 + $0x160] sm:$0xff] }
 0x161   : > { %1351 = vst [vmem:[#allocation2] sm:$0xff] %v1287_v55  ;;  %1383 = vst [vmem:[#allocation2 + $0x100] sm:$0xff] %v1319_v56  ;;  %v1288_v63 = vadd.f32 %v1035_v61, %v615_v53  ;;  %v1320_v0 = vadd.f32 %v1163_v62, %v647_v54  ;;  %v660_v50 = vld [vmem:[#allocation2 + $0x170] sm:$0xff]  ;;  %v629_v55 = vld [vmem:[#allocation2 + $0x78] sm:$0xff] }
 0x162   : > { %1354 = vst [vmem:[#allocation2 + $0x18] sm:$0xff] %v1290_v59  ;;  %1386 = vst [vmem:[#allocation2 + $0x118] sm:$0xff] %v1322_v60  ;;  %v661_v56 = vld [vmem:[#allocation2 + $0x178] sm:$0xff]  ;;  %v627_v61 = vld [vmem:[#allocation2 + $0x68] sm:$0xff] }
 0x163   : > { %1352 = vst [vmem:[#allocation2 + $0x8] sm:$0xff] %v1288_v63  ;;  %1384 = vst [vmem:[#allocation2 + $0x108] sm:$0xff] %v1320_v0  ;;  %v659_v62 = vld [vmem:[#allocation2 + $0x168] sm:$0xff] }
 0x165   : > { %v2039_v5 = vpop.f32.mrb[4].mxu0  ;;  %v2071_v6 = vpop.f32.mrb[4].mxu1 }
 0x166   : > { %v1293_v9 = vadd.f32 %v2039_v5, %v620_v1  ;;  %v1325_v10 = vadd.f32 %v2071_v6, %v652_v2  ;;  %v1048_v11 = vpop.f32.mrb[5].mxu0  ;;  %v1176_v12 = vpop.f32.mrb[5].mxu1 }
 0x167   : > { %v1291_v15 = vadd.f32 %v1048_v11, %v618_v3  ;;  %v1323_v16 = vadd.f32 %v1176_v12, %v650_v4  ;;  %v2040_v17 = vpop.f32.mrb[6].mxu0  ;;  %v2072_v18 = vpop.f32.mrb[6].mxu1  ;;  %v630_v11 = vld [vmem:[#allocation2 + $0x80] sm:$0xff] }
 0x168   : > { %1357 = vst [vmem:[#allocation2 + $0x30] sm:$0xff] %v1293_v9  ;;  %1389 = vst [vmem:[#allocation2 + $0x130] sm:$0xff] %v1325_v10  ;;  %v1294_v19 = vadd.f32 %v2040_v17, %v621_v7  ;;  %v1326_v20 = vadd.f32 %v2072_v18, %v653_v8  ;;  %v1051_v21 = vpop.f32.mrb[7].mxu0  ;;  %v1179_v22 = vpop.f32.mrb[7].mxu1  ;;  %v632_v9 = vld [vmem:[#allocation2 + $0x90] sm:$0xff]  ;;  %v662_v12 = vld [vmem:[#allocation2 + $0x180] sm:$0xff] }
 0x169   : > { %1355 = vst [vmem:[#allocation2 + $0x20] sm:$0xff] %v1291_v15  ;;  %1387 = vst [vmem:[#allocation2 + $0x120] sm:$0xff] %v1323_v16  ;;  %v1292_v23 = vadd.f32 %v1051_v21, %v619_v13  ;;  %v1324_v24 = vadd.f32 %v1179_v22, %v651_v14  ;;  %v664_v10 = vld [vmem:[#allocation2 + $0x190] sm:$0xff]  ;;  %v633_v15 = vld [vmem:[#allocation2 + $0x98] sm:$0xff] }
 0x16a   : > { %1358 = vst [vmem:[#allocation2 + $0x38] sm:$0xff] %v1294_v19  ;;  %1390 = vst [vmem:[#allocation2 + $0x138] sm:$0xff] %v1326_v20  ;;  %v665_v16 = vld [vmem:[#allocation2 + $0x198] sm:$0xff]  ;;  %v631_v21 = vld [vmem:[#allocation2 + $0x88] sm:$0xff] }
 0x16b   : > { %1356 = vst [vmem:[#allocation2 + $0x28] sm:$0xff] %v1292_v23  ;;  %1388 = vst [vmem:[#allocation2 + $0x128] sm:$0xff] %v1324_v24  ;;  %v663_v22 = vld [vmem:[#allocation2 + $0x188] sm:$0xff] }
 0x16d   : > { %v2043_v29 = vpop.f32.mrb[8].mxu0  ;;  %v2075_v30 = vpop.f32.mrb[8].mxu1 }
 0x16e   : > { %v1297_v33 = vadd.f32 %v2043_v29, %v624_v25  ;;  %v1329_v34 = vadd.f32 %v2075_v30, %v656_v26  ;;  %v1064_v35 = vpop.f32.mrb[9].mxu0  ;;  %v1192_v36 = vpop.f32.mrb[9].mxu1 }
 0x16f   : > { %v1295_v39 = vadd.f32 %v1064_v35, %v622_v27  ;;  %v1327_v40 = vadd.f32 %v1192_v36, %v654_v28  ;;  %v2044_v41 = vpop.f32.mrb[10].mxu0  ;;  %v2076_v42 = vpop.f32.mrb[10].mxu1  ;;  %v634_v35 = vld [vmem:[#allocation2 + $0xa0] sm:$0xff] }
 0x170   : > { %1361 = vst [vmem:[#allocation2 + $0x50] sm:$0xff] %v1297_v33  ;;  %1393 = vst [vmem:[#allocation2 + $0x150] sm:$0xff] %v1329_v34  ;;  %v1298_v43 = vadd.f32 %v2044_v41, %v625_v31  ;;  %v1330_v44 = vadd.f32 %v2076_v42, %v657_v32  ;;  %v1067_v45 = vpop.f32.mrb[11].mxu0  ;;  %v1195_v46 = vpop.f32.mrb[11].mxu1  ;;  %v636_v33 = vld [vmem:[#allocation2 + $0xb0] sm:$0xff]  ;;  %v666_v36 = vld [vmem:[#allocation2 + $0x1a0] sm:$0xff] }
 0x171   : > { %1359 = vst [vmem:[#allocation2 + $0x40] sm:$0xff] %v1295_v39  ;;  %1391 = vst [vmem:[#allocation2 + $0x140] sm:$0xff] %v1327_v40  ;;  %v1296_v47 = vadd.f32 %v1067_v45, %v623_v37  ;;  %v1328_v48 = vadd.f32 %v1195_v46, %v655_v38  ;;  %v668_v34 = vld [vmem:[#allocation2 + $0x1b0] sm:$0xff]  ;;  %v637_v39 = vld [vmem:[#allocation2 + $0xb8] sm:$0xff] }
 0x172   : > { %1362 = vst [vmem:[#allocation2 + $0x58] sm:$0xff] %v1298_v43  ;;  %1394 = vst [vmem:[#allocation2 + $0x158] sm:$0xff] %v1330_v44  ;;  %v669_v40 = vld [vmem:[#allocation2 + $0x1b8] sm:$0xff]  ;;  %v635_v45 = vld [vmem:[#allocation2 + $0xa8] sm:$0xff] }
 0x173   : > { %1360 = vst [vmem:[#allocation2 + $0x48] sm:$0xff] %v1296_v47  ;;  %1392 = vst [vmem:[#allocation2 + $0x148] sm:$0xff] %v1328_v48  ;;  %v667_v46 = vld [vmem:[#allocation2 + $0x1a8] sm:$0xff] }
 0x175   : > { %v2047_v53 = vpop.f32.mrb[12].mxu0  ;;  %v2079_v54 = vpop.f32.mrb[12].mxu1 }
 0x176   : > { %v1301_v57 = vadd.f32 %v2047_v53, %v628_v49  ;;  %v1333_v58 = vadd.f32 %v2079_v54, %v660_v50  ;;  %v1080_v59 = vpop.f32.mrb[13].mxu0  ;;  %v1208_v60 = vpop.f32.mrb[13].mxu1 }
 0x177   : > { %v1299_v63 = vadd.f32 %v1080_v59, %v626_v51  ;;  %v1331_v0 = vadd.f32 %v1208_v60, %v658_v52  ;;  %v2048_v1 = vpop.f32.mrb[14].mxu0  ;;  %v2080_v2 = vpop.f32.mrb[14].mxu1  ;;  %v638_v59 = vld [vmem:[#allocation2 + $0xc0] sm:$0xff] }
 0x178   : > { %1365 = vst [vmem:[#allocation2 + $0x70] sm:$0xff] %v1301_v57  ;;  %1397 = vst [vmem:[#allocation2 + $0x170] sm:$0xff] %v1333_v58  ;;  %v1302_v3 = vadd.f32 %v2048_v1, %v629_v55  ;;  %v1334_v4 = vadd.f32 %v2080_v2, %v661_v56  ;;  %v1083_v5 = vpop.f32.mrb[15].mxu0  ;;  %v1211_v6 = vpop.f32.mrb[15].mxu1  ;;  %v640_v57 = vld [vmem:[#allocation2 + $0xd0] sm:$0xff]  ;;  %v670_v60 = vld [vmem:[#allocation2 + $0x1c0] sm:$0xff] }
 0x179   : > { %1363 = vst [vmem:[#allocation2 + $0x60] sm:$0xff] %v1299_v63  ;;  %1395 = vst [vmem:[#allocation2 + $0x160] sm:$0xff] %v1331_v0  ;;  %v1300_v7 = vadd.f32 %v1083_v5, %v627_v61  ;;  %v1332_v8 = vadd.f32 %v1211_v6, %v659_v62  ;;  %v672_v58 = vld [vmem:[#allocation2 + $0x1d0] sm:$0xff]  ;;  %v641_v63 = vld [vmem:[#allocation2 + $0xd8] sm:$0xff] }
 0x17a   : > { %1366 = vst [vmem:[#allocation2 + $0x78] sm:$0xff] %v1302_v3  ;;  %1398 = vst [vmem:[#allocation2 + $0x178] sm:$0xff] %v1334_v4  ;;  %v673_v0 = vld [vmem:[#allocation2 + $0x1d8] sm:$0xff]  ;;  %v639_v5 = vld [vmem:[#allocation2 + $0xc8] sm:$0xff] }
 0x17b   : > { %1364 = vst [vmem:[#allocation2 + $0x68] sm:$0xff] %v1300_v7  ;;  %1396 = vst [vmem:[#allocation2 + $0x168] sm:$0xff] %v1332_v8  ;;  %v671_v6 = vld [vmem:[#allocation2 + $0x1c8] sm:$0xff] }
 0x17d   : > { %v2051_v13 = vpop.f32.mrb[16].mxu0  ;;  %v2083_v14 = vpop.f32.mrb[16].mxu1 }
 0x17e   : > { %v1305_v17 = vadd.f32 %v2051_v13, %v632_v9  ;;  %v1337_v18 = vadd.f32 %v2083_v14, %v664_v10  ;;  %v1096_v19 = vpop.f32.mrb[17].mxu0  ;;  %v1224_v20 = vpop.f32.mrb[17].mxu1 }
 0x17f   : > { %v1303_v23 = vadd.f32 %v1096_v19, %v630_v11  ;;  %v1335_v24 = vadd.f32 %v1224_v20, %v662_v12  ;;  %v2052_v25 = vpop.f32.mrb[18].mxu0  ;;  %v2084_v26 = vpop.f32.mrb[18].mxu1  ;;  %v642_v19 = vld [vmem:[#allocation2 + $0xe0] sm:$0xff] }
 0x180   : > { %1369 = vst [vmem:[#allocation2 + $0x90] sm:$0xff] %v1305_v17  ;;  %1401 = vst [vmem:[#allocation2 + $0x190] sm:$0xff] %v1337_v18  ;;  %v1306_v27 = vadd.f32 %v2052_v25, %v633_v15  ;;  %v1338_v28 = vadd.f32 %v2084_v26, %v665_v16  ;;  %v1099_v29 = vpop.f32.mrb[19].mxu0  ;;  %v1227_v30 = vpop.f32.mrb[19].mxu1  ;;  %v644_v17 = vld [vmem:[#allocation2 + $0xf0] sm:$0xff]  ;;  %v674_v20 = vld [vmem:[#allocation2 + $0x1e0] sm:$0xff] }
 0x181   : > { %1367 = vst [vmem:[#allocation2 + $0x80] sm:$0xff] %v1303_v23  ;;  %1399 = vst [vmem:[#allocation2 + $0x180] sm:$0xff] %v1335_v24  ;;  %v1304_v31 = vadd.f32 %v1099_v29, %v631_v21  ;;  %v1336_v32 = vadd.f32 %v1227_v30, %v663_v22  ;;  %v676_v18 = vld [vmem:[#allocation2 + $0x1f0] sm:$0xff]  ;;  %v645_v23 = vld [vmem:[#allocation2 + $0xf8] sm:$0xff] }
 0x182   : > { %1370 = vst [vmem:[#allocation2 + $0x98] sm:$0xff] %v1306_v27  ;;  %1402 = vst [vmem:[#allocation2 + $0x198] sm:$0xff] %v1338_v28  ;;  %v677_v24 = vld [vmem:[#allocation2 + $0x1f8] sm:$0xff]  ;;  %v643_v29 = vld [vmem:[#allocation2 + $0xe8] sm:$0xff] }
 0x183   : > { %1368 = vst [vmem:[#allocation2 + $0x88] sm:$0xff] %v1304_v31  ;;  %1400 = vst [vmem:[#allocation2 + $0x188] sm:$0xff] %v1336_v32  ;;  %v675_v30 = vld [vmem:[#allocation2 + $0x1e8] sm:$0xff] }
 0x185   : > { %v2055_v37 = vpop.f32.mrb[20].mxu0  ;;  %v2087_v38 = vpop.f32.mrb[20].mxu1 }
 0x186   : > { %v1309_v41 = vadd.f32 %v2055_v37, %v636_v33  ;;  %v1341_v42 = vadd.f32 %v2087_v38, %v668_v34  ;;  %v1112_v43 = vpop.f32.mrb[21].mxu0  ;;  %v1240_v44 = vpop.f32.mrb[21].mxu1 }
 0x187   : > { %v1307_v47 = vadd.f32 %v1112_v43, %v634_v35  ;;  %v1339_v48 = vadd.f32 %v1240_v44, %v666_v36  ;;  %v2056_v49 = vpop.f32.mrb[22].mxu0  ;;  %v2088_v50 = vpop.f32.mrb[22].mxu1  ;;  %v1420_v43 = vld [vmem:[#allocation2 + $0x8] sm:$0xff] (!%p1971_p11) }
 0x188   : > { %1373 = vst [vmem:[#allocation2 + $0xb0] sm:$0xff] %v1309_v41  ;;  %1405 = vst [vmem:[#allocation2 + $0x1b0] sm:$0xff] %v1341_v42  ;;  %v1310_v51 = vadd.f32 %v2056_v49, %v637_v39  ;;  %v1342_v52 = vadd.f32 %v2088_v50, %v669_v40  ;;  %v1115_v53 = vpop.f32.mrb[23].mxu0  ;;  %v1243_v54 = vpop.f32.mrb[23].mxu1  ;;  %v1419_v41 = vld [vmem:[#allocation2] sm:$0xff] (!%p1971_p11) }
 0x189   : > { %1371 = vst [vmem:[#allocation2 + $0xa0] sm:$0xff] %v1307_v47  ;;  %1403 = vst [vmem:[#allocation2 + $0x1a0] sm:$0xff] %v1339_v48  ;;  %v1308_v55 = vadd.f32 %v1115_v53, %v635_v45  ;;  %v1340_v56 = vadd.f32 %v1243_v54, %v667_v46  ;;  %v2550_v42 = vld [vmem:[%s2825_s2] ss:$0 sm:$0xff] (!%p1971_p11)  ;;  %v1421_v46 = vld [vmem:[#allocation2 + $0x10] sm:$0xff] (!%p1971_p11) }
 0x18a   : > { %1374 = vst [vmem:[#allocation2 + $0xb8] sm:$0xff] %v1310_v51  ;;  %1406 = vst [vmem:[#allocation2 + $0x1b8] sm:$0xff] %v1342_v52  ;;  %v1490_v44 = vadd.f32 (!%p1971_p11), %v2550_v42, %v1419_v41  ;;  %v1491_v45 = vadd.f32 (!%p1971_p11), %v2550_v42, %v1420_v43  ;;  %v1422_v47 = vld [vmem:[#allocation2 + $0x18] sm:$0xff] (!%p1971_p11)  ;;  %v1423_v48 = vld [vmem:[#allocation2 + $0x20] sm:$0xff] (!%p1971_p11)  ;;  %v1492_v49 = vadd.f32 (!%p1971_p11), %v2550_v42, %v1421_v46 }
 0x18b   : > { %1372 = vst [vmem:[#allocation2 + $0xa8] sm:$0xff] %v1308_v55  ;;  %1404 = vst [vmem:[#allocation2 + $0x1a8] sm:$0xff] %v1340_v56  ;;  %v1493_v50 = vadd.f32 (!%p1971_p11), %v2550_v42, %v1422_v47  ;;  %v1494_v51 = vadd.f32 (!%p1971_p11), %v2550_v42, %v1423_v48  ;;  %v1424_v52 = vld [vmem:[#allocation2 + $0x28] sm:$0xff] (!%p1971_p11)  ;;  %v1425_v53 = vld [vmem:[#allocation2 + $0x30] sm:$0xff] (!%p1971_p11) }
 0x18c   : > { %v1426_v54 = vld [vmem:[#allocation2 + $0x38] sm:$0xff] (!%p1971_p11)  ;;  %vm1554_vm0 = vcmp.ge.f32.partialorder (!%p1971_p11), %v1490_v44, 0.0  ;;  %v1618_v55 = vmul.f32 (!%p1971_p11), 0.01, %v1490_v44  ;;  %vm1555_vm1 = vcmp.ge.f32.partialorder (!%p1971_p11), %v1491_v45, 0.0  ;;  %vm1556_vm2 = vcmp.ge.f32.partialorder (!%p1971_p11), %v1492_v49, 0.0 }
 0x18d   : > { %v2059_v61 = vpop.f32.mrb[24].mxu0  ;;  %v2091_v62 = vpop.f32.mrb[24].mxu1  ;;  %v1619_v56 = vmul.f32 (!%p1971_p11), 0.01, %v1491_v45  ;;  %vm1557_vm3 = vcmp.ge.f32.partialorder (!%p1971_p11), %v1493_v50, 0.0  ;;  %vm1558_vm4 = vcmp.ge.f32.partialorder (!%p1971_p11), %v1494_v51, 0.0 }
 0x18e   : > { %v1313_v1 = vadd.f32 %v2059_v61, %v640_v57  ;;  %v1345_v2 = vadd.f32 %v2091_v62, %v672_v58  ;;  %v1128_v3 = vpop.f32.mrb[25].mxu0  ;;  %v1256_v4 = vpop.f32.mrb[25].mxu1  ;;  %v1620_v57 = vmul.f32 (!%p1971_p11), 0.01, %v1492_v49  ;;  %v1621_v58 = vmul.f32 (!%p1971_p11), 0.01, %v1493_v50 }
 0x18f   : > { %v1311_v7 = vadd.f32 %v1128_v3, %v638_v59  ;;  %v1343_v8 = vadd.f32 %v1256_v4, %v670_v60  ;;  %v2060_v9 = vpop.f32.mrb[26].mxu0  ;;  %v2092_v10 = vpop.f32.mrb[26].mxu1  ;;  %v1682_v59 = vsel (!%p1971_p11), %vm1554_vm0, %v1490_v44, %v1618_v55  ;;  %v1683_v60 = vsel (!%p1971_p11), %vm1555_vm1, %v1491_v45, %v1619_v56  ;;  %v1427_v62 = vld [vmem:[#allocation2 + $0x40] sm:$0xff] (!%p1971_p11)  ;;  %v1429_v4 = vld [vmem:[#allocation2 + $0x50] sm:$0xff] (!%p1971_p11) }
 0x190   : > { %1377 = vst [vmem:[#allocation2 + $0xd0] sm:$0xff] %v1313_v1  ;;  %1409 = vst [vmem:[#allocation2 + $0x1d0] sm:$0xff] %v1345_v2  ;;  %v1314_v11 = vadd.f32 %v2060_v9, %v641_v63  ;;  %v1346_v12 = vadd.f32 %v2092_v10, %v673_v0  ;;  %v1131_v13 = vpop.f32.mrb[27].mxu0  ;;  %v1259_v14 = vpop.f32.mrb[27].mxu1  ;;  %v1622_v61 = vmul.f32 (!%p1971_p11), 0.01, %v1494_v51  ;;  %v1684_v0 = vsel (!%p1971_p11), %vm1556_vm2, %v1492_v49, %v1620_v57 }
 0x191   : > { %1375 = vst [vmem:[#allocation2 + $0xc0] sm:$0xff] %v1311_v7  ;;  %1407 = vst [vmem:[#allocation2 + $0x1c0] sm:$0xff] %v1343_v8  ;;  %v1312_v15 = vadd.f32 %v1131_v13, %v639_v5  ;;  %v1344_v16 = vadd.f32 %v1259_v14, %v671_v6  ;;  %v1428_v63 = vld [vmem:[#allocation2 + $0x48] sm:$0xff] (!%p1971_p11)  ;;  %v1685_v1 = vsel (!%p1971_p11), %vm1557_vm3, %v1493_v50, %v1621_v58  ;;  %v1430_v5 = vld [vmem:[#allocation2 + $0x58] sm:$0xff] (!%p1971_p11) }
 0x192   : > { %1378 = vst [vmem:[#allocation2 + $0xd8] sm:$0xff] %v1314_v11  ;;  %1410 = vst [vmem:[#allocation2 + $0x1d8] sm:$0xff] %v1346_v12  ;;  %v1495_v2 = vadd.f32 (!%p1971_p11), %v2550_v42, %v1424_v52  ;;  %v1496_v3 = vadd.f32 (!%p1971_p11), %v2550_v42, %v1425_v53  ;;  %v1686_v6 = vsel (!%p1971_p11), %vm1558_vm4, %v1494_v51, %v1622_v61  ;;  %v1431_v10 = vld [vmem:[#allocation2 + $0x60] sm:$0xff] (!%p1971_p11)  ;;  %v1432_v11 = vld [vmem:[#allocation2 + $0x68] sm:$0xff] (!%p1971_p11) }
 0x193   : > { %1376 = vst [vmem:[#allocation2 + $0xc8] sm:$0xff] %v1312_v15  ;;  %1408 = vst [vmem:[#allocation2 + $0x1c8] sm:$0xff] %v1344_v16  ;;  %v1497_v7 = vadd.f32 (!%p1971_p11), %v2550_v42, %v1426_v54  ;;  %v1498_v8 = vadd.f32 (!%p1971_p11), %v2550_v42, %v1427_v62  ;;  %v1499_v9 = vadd.f32 (!%p1971_p11), %v2550_v42, %v1428_v63  ;;  %v1433_v12 = vld [vmem:[#allocation2 + $0x70] sm:$0xff] (!%p1971_p11)  ;;  %v1439_v45 = vld [vmem:[#allocation2 + $0xa0] sm:$0xff] (!%p1971_p11) }
 0x194   : > { %1746 = vst [vmem:[%s2826_s3] sm:$0xff] (!%p1971_p11), %v1682_v59  ;;  %1747 = vst [vmem:[%s2826_s3 + $0x8] sm:$0xff] (!%p1971_p11), %v1683_v60  ;;  %vm1559_vm5 = vcmp.ge.f32.partialorder (!%p1971_p11), %v1495_v2, 0.0  ;;  %v1623_v13 = vmul.f32 (!%p1971_p11), 0.01, %v1495_v2  ;;  %vm1560_vm6 = vcmp.ge.f32.partialorder (!%p1971_p11), %v1496_v3, 0.0  ;;  %v1440_v46 = vld [vmem:[#allocation2 + $0xa8] sm:$0xff] (!%p1971_p11)  ;;  %v1510_v63 = vadd.f32 (!%p1971_p11), %v2550_v42, %v1439_v45 }
 0x195   : > { %v2063_v21 = vpop.f32.mrb[28].mxu0  ;;  %v2095_v22 = vpop.f32.mrb[28].mxu1  ;;  %1418 = sbr.rel (%p1971_p11) target bundleno = 467 (0x1d3), region = 81  ;;  %1748 = vst [vmem:[%s2826_s3 + $0x10] sm:$0xff] (!%p1971_p11), %v1684_v0  ;;  %1749 = vst [vmem:[%s2826_s3 + $0x18] sm:$0xff] (!%p1971_p11), %v1685_v1  ;;  %vm1561_vm7 = vcmp.ge.f32.partialorder (!%p1971_p11), %v1497_v7, 0.0  ;;  %v1511_v0 = vadd.f32 (!%p1971_p11), %v2550_v42, %v1440_v46 }
 0x196   : > { %v1317_v25 = vadd.f32 %v2063_v21, %v644_v17  ;;  %v1349_v26 = vadd.f32 %v2095_v22, %v676_v18  ;;  %v1144_v27 = vpop.f32.mrb[29].mxu0  ;;  %v1272_v28 = vpop.f32.mrb[29].mxu1  ;;  %1750 = vst [vmem:[%s2826_s3 + $0x20] sm:$0xff] (!%p1971_p11), %v1686_v6  ;;  %v1624_v14 = vmul.f32 (!%p1971_p11), 0.01, %v1496_v3  ;;  %vm1562_vm8 = vcmp.ge.f32.partialorder (!%p1971_p11), %v1498_v8, 0.0 }
 0x197   : > { %v1315_v31 = vadd.f32 %v1144_v27, %v642_v19  ;;  %v1347_v32 = vadd.f32 %v1272_v28, %v674_v20  ;;  %v2064_v33 = vpop.f32.mrb[30].mxu0  ;;  %v2096_v34 = vpop.f32.mrb[30].mxu1  ;;  %v1625_v15 = vmul.f32 (!%p1971_p11), 0.01, %v1497_v7  ;;  %v1626_v16 = vmul.f32 (!%p1971_p11), 0.01, %v1498_v8 }
 0x198   : > { %1381 = vst [vmem:[#allocation2 + $0xf0] sm:$0xff] %v1317_v25  ;;  %1413 = vst [vmem:[#allocation2 + $0x1f0] sm:$0xff] %v1349_v26  ;;  %v1318_v35 = vadd.f32 %v2064_v33, %v645_v23  ;;  %v1350_v36 = vadd.f32 %v2096_v34, %v677_v24  ;;  %v1147_v37 = vpop.f32.mrb[31].mxu0  ;;  %v1275_v38 = vpop.f32.mrb[31].mxu1  ;;  %v1687_v17 = vsel (!%p1971_p11), %vm1559_vm5, %v1495_v2, %v1623_v13  ;;  %vm1563_vm9 = vcmp.ge.f32.partialorder (!%p1971_p11), %v1499_v9, 0.0  ;;  %v1434_v24 = vld [vmem:[#allocation2 + $0x78] sm:$0xff] (!%p1971_p11) }
 0x199   : > { %1379 = vst [vmem:[#allocation2 + $0xe0] sm:$0xff] %v1315_v31  ;;  %1411 = vst [vmem:[#allocation2 + $0x1e0] sm:$0xff] %v1347_v32  ;;  %v1316_v39 = vadd.f32 %v1147_v37, %v643_v29  ;;  %v1348_v40 = vadd.f32 %v1275_v38, %v675_v30  ;;  %v1688_v18 = vsel (!%p1971_p11), %vm1560_vm6, %v1496_v3, %v1624_v14  ;;  %v1627_v19 = vmul.f32 (!%p1971_p11), 0.01, %v1499_v9  ;;  %v1435_v25 = vld [vmem:[#allocation2 + $0x80] sm:$0xff] (!%p1971_p11)  ;;  %v1436_v30 = vld [vmem:[#allocation2 + $0x88] sm:$0xff] (!%p1971_p11) }
 0x19a   : > { %1382 = vst [vmem:[#allocation2 + $0xf8] sm:$0xff] %v1318_v35  ;;  %1414 = vst [vmem:[#allocation2 + $0x1f8] sm:$0xff] %v1350_v36  ;;  %v1689_v20 = vsel (!%p1971_p11), %vm1561_vm7, %v1497_v7, %v1625_v15  ;;  %v1690_v21 = vsel (!%p1971_p11), %vm1562_vm8, %v1498_v8, %v1626_v16  ;;  %v1500_v22 = vadd.f32 (!%p1971_p11), %v2550_v42, %v1429_v4  ;;  %v1437_v31 = vld [vmem:[#allocation2 + $0x90] sm:$0xff] (!%p1971_p11)  ;;  %v1438_v32 = vld [vmem:[#allocation2 + $0x98] sm:$0xff] (!%p1971_p11)  ;;  %vm1574_vm4 = vcmp.ge.f32.partialorder (!%p1971_p11), %v1510_v63, 0.0 }
 0x19b   : > { %1380 = vst [vmem:[#allocation2 + $0xe8] sm:$0xff] %v1316_v39  ;;  %1412 = vst [vmem:[#allocation2 + $0x1e8] sm:$0xff] %v1348_v40  ;;  %v1501_v23 = vadd.f32 (!%p1971_p11), %v2550_v42, %v1430_v5  ;;  %v1691_v26 = vsel (!%p1971_p11), %vm1563_vm9, %v1499_v9, %v1627_v19  ;;  %v1502_v27 = vadd.f32 (!%p1971_p11), %v2550_v42, %v1431_v10  ;;  %v1441_v51 = vld [vmem:[#allocation2 + $0xb0] sm:$0xff] (!%p1971_p11)  ;;  %v1442_v52 = vld [vmem:[#allocation2 + $0xb8] sm:$0xff] (!%p1971_p11)  ;;  %v1638_v10 = vmul.f32 (!%p1971_p11), 0.01, %v1510_v63 }
 0x19c   : > { %1751 = vst [vmem:[%s2826_s3 + $0x28] sm:$0xff] %v1687_v17  ;;  %1752 = vst [vmem:[%s2826_s3 + $0x30] sm:$0xff] %v1688_v18  ;;  %v1503_v28 = vadd.f32 %v2550_v42, %v1432_v11  ;;  %v1504_v29 = vadd.f32 %v2550_v42, %v1433_v12  ;;  %vm1564_vm10 = vcmp.ge.f32.partialorder %v1500_v22, 0.0  ;;  %v1628_v33 = vmul.f32 0.01, %v1500_v22  ;;  %v1443_v53 = vld [vmem:[#allocation2 + $0xc0] sm:$0xff] }
 0x19d   : > { %1753 = vst [vmem:[%s2826_s3 + $0x38] sm:$0xff] %v1689_v20  ;;  %1754 = vst [vmem:[%s2826_s3 + $0x40] sm:$0xff] %v1690_v21  ;;  %vm1565_vm11 = vcmp.ge.f32.partialorder %v1501_v23, 0.0  ;;  %v1629_v34 = vmul.f32 0.01, %v1501_v23  ;;  %vm1566_vm12 = vcmp.ge.f32.partialorder %v1502_v27, 0.0  ;;  %v1505_v43 = vadd.f32 %v2550_v42, %v1434_v24 }
 0x19e   : > { %1755 = vst [vmem:[%s2826_s3 + $0x48] sm:$0xff] %v1691_v26  ;;  %v1630_v35 = vmul.f32 0.01, %v1502_v27  ;;  %vm1567_vm13 = vcmp.ge.f32.partialorder %v1503_v28, 0.0  ;;  %v1631_v36 = vmul.f32 0.01, %v1503_v28  ;;  %v1692_v37 = vsel %vm1564_vm10, %v1500_v22, %v1628_v33 }
 0x19f   : > { %v1693_v38 = vsel %vm1565_vm11, %v1501_v23, %v1629_v34  ;;  %vm1568_vm14 = vcmp.ge.f32.partialorder %v1504_v29, 0.0  ;;  %v1632_v39 = vmul.f32 0.01, %v1504_v29  ;;  %1756 = vst [vmem:[%s2826_s3 + $0x50] sm:$0xff] %v1692_v37  ;;  %v1506_v44 = vadd.f32 %v2550_v42, %v1435_v25  ;;  %v1444_v1 = vld [vmem:[#allocation2 + $0xc8] sm:$0xff]  ;;  %v1445_v2 = vld [vmem:[#allocation2 + $0xd0] sm:$0xff] }
 0x1a0   : > { %1757 = vst [vmem:[%s2826_s3 + $0x58] sm:$0xff] %v1693_v38  ;;  %v1694_v40 = vsel %vm1566_vm12, %v1502_v27, %v1630_v35  ;;  %v1695_v41 = vsel %vm1567_vm13, %v1503_v28, %v1631_v36  ;;  %v1507_v48 = vadd.f32 %v2550_v42, %v1436_v30  ;;  %v1508_v49 = vadd.f32 %v2550_v42, %v1437_v31  ;;  %v1446_v7 = vld [vmem:[#allocation2 + $0xd8] sm:$0xff]  ;;  %v1447_v8 = vld [vmem:[#allocation2 + $0xe0] sm:$0xff]  ;;  %v1449_v21 = vld [vmem:[#allocation2 + $0xf0] sm:$0xff] }
 0x1a1   : > { %1758 = vst [vmem:[%s2826_s3 + $0x60] sm:$0xff] %v1694_v40  ;;  %1759 = vst [vmem:[%s2826_s3 + $0x68] sm:$0xff] %v1695_v41  ;;  %v1696_v47 = vsel %vm1568_vm14, %v1504_v29, %v1632_v39  ;;  %v1509_v50 = vadd.f32 %v2550_v42, %v1438_v32  ;;  %vm1569_vm15 = vcmp.ge.f32.partialorder %v1505_v43, 0.0  ;;  %v1633_v54 = vmul.f32 0.01, %v1505_v43  ;;  %v1450_v22 = vld [vmem:[#allocation2 + $0xf8] sm:$0xff] }
 0x1a2   : > { %1760 = vst [vmem:[%s2826_s3 + $0x70] sm:$0xff] %v1696_v47  ;;  %vm1570_vm0 = vcmp.ge.f32.partialorder %v1506_v44, 0.0  ;;  %v1634_v55 = vmul.f32 0.01, %v1506_v44  ;;  %vm1571_vm1 = vcmp.ge.f32.partialorder %v1507_v48, 0.0  ;;  %vm1572_vm2 = vcmp.ge.f32.partialorder %v1508_v49, 0.0 }
 0x1a3   : > { %v1635_v56 = vmul.f32 0.01, %v1507_v48  ;;  %v1636_v57 = vmul.f32 0.01, %v1508_v49  ;;  %v1697_v58 = vsel %vm1569_vm15, %v1505_v43, %v1633_v54  ;;  %vm1573_vm3 = vcmp.ge.f32.partialorder %v1509_v50, 0.0  ;;  %v1448_v9 = vld [vmem:[#allocation2 + $0xe8] sm:$0xff] }
 0x1a4   : > { %v1698_v59 = vsel %vm1570_vm0, %v1506_v44, %v1634_v55  ;;  %v1637_v60 = vmul.f32 0.01, %v1509_v50  ;;  %1761 = vst [vmem:[%s2826_s3 + $0x78] sm:$0xff] %v1697_v58  ;;  %v1512_v4 = vadd.f32 %v2550_v42, %v1441_v51  ;;  %v1513_v5 = vadd.f32 %v2550_v42, %v1442_v52  ;;  %v1451_v27 = vld [vmem:[#allocation2 + $0x100] sm:$0xff]  ;;  %v1452_v28 = vld [vmem:[#allocation2 + $0x108] sm:$0xff]  ;;  %v1453_v29 = vld [vmem:[#allocation2 + $0x110] sm:$0xff] }
 0x1a5   : > { %1762 = vst [vmem:[%s2826_s3 + $0x80] sm:$0xff] %v1698_v59  ;;  %v1699_v61 = vsel %vm1571_vm1, %v1507_v48, %v1635_v56  ;;  %v1700_v62 = vsel %vm1572_vm2, %v1508_v49, %v1636_v57  ;;  %v1514_v6 = vadd.f32 %v2550_v42, %v1443_v53  ;;  %vm1575_vm5 = vcmp.ge.f32.partialorder %v1511_v0, 0.0  ;;  %v1454_v41 = vld [vmem:[#allocation2 + $0x118] sm:$0xff]  ;;  %v1455_v43 = vld [vmem:[#allocation2 + $0x120] sm:$0xff]  ;;  %v1456_v48 = vld [vmem:[#allocation2 + $0x128] sm:$0xff] }
 0x1a6   : > { %1763 = vst [vmem:[%s2826_s3 + $0x88] sm:$0xff] %v1699_v61  ;;  %1764 = vst [vmem:[%s2826_s3 + $0x90] sm:$0xff] %v1700_v62  ;;  %v1701_v3 = vsel %vm1573_vm3, %v1509_v50, %v1637_v60  ;;  %v1639_v11 = vmul.f32 0.01, %v1511_v0  ;;  %vm1576_vm6 = vcmp.ge.f32.partialorder %v1512_v4, 0.0  ;;  %vm1577_vm7 = vcmp.ge.f32.partialorder %v1513_v5, 0.0 }
 0x1a7   : > { %1765 = vst [vmem:[%s2826_s3 + $0x98] sm:$0xff] %v1701_v3  ;;  %v1640_v12 = vmul.f32 0.01, %v1512_v4  ;;  %v1641_v13 = vmul.f32 0.01, %v1513_v5  ;;  %v1702_v14 = vsel %vm1574_vm4, %v1510_v63, %v1638_v10  ;;  %vm1578_vm8 = vcmp.ge.f32.partialorder %v1514_v6, 0.0 }
 0x1a8   : > { %v1703_v15 = vsel %vm1575_vm5, %v1511_v0, %v1639_v11  ;;  %v1642_v16 = vmul.f32 0.01, %v1514_v6  ;;  %1766 = vst [vmem:[%s2826_s3 + $0xa0] sm:$0xff] %v1702_v14  ;;  %v1515_v19 = vadd.f32 %v2550_v42, %v1444_v1  ;;  %v1516_v20 = vadd.f32 %v2550_v42, %v1445_v2  ;;  %v1457_v49 = vld [vmem:[#allocation2 + $0x130] sm:$0xff]  ;;  %v1458_v50 = vld [vmem:[#allocation2 + $0x138] sm:$0xff]  ;;  %v1459_v62 = vld [vmem:[#allocation2 + $0x140] sm:$0xff] }
 0x1a9   : > { %1767 = vst [vmem:[%s2826_s3 + $0xa8] sm:$0xff] %v1703_v15  ;;  %v1704_v17 = vsel %vm1576_vm6, %v1512_v4, %v1640_v12  ;;  %v1705_v18 = vsel %vm1577_vm7, %v1513_v5, %v1641_v13  ;;  %v1517_v24 = vadd.f32 %v2550_v42, %v1446_v7  ;;  %v1518_v25 = vadd.f32 %v2550_v42, %v1447_v8  ;;  %v1460_v63 = vld [vmem:[#allocation2 + $0x148] sm:$0xff]  ;;  %v1461_v4 = vld [vmem:[#allocation2 + $0x150] sm:$0xff]  ;;  %v1462_v5 = vld [vmem:[#allocation2 + $0x158] sm:$0xff] }
 0x1aa   : > { %1768 = vst [vmem:[%s2826_s3 + $0xb0] sm:$0xff] %v1704_v17  ;;  %1769 = vst [vmem:[%s2826_s3 + $0xb8] sm:$0xff] %v1705_v18  ;;  %v1706_v23 = vsel %vm1578_vm8, %v1514_v6, %v1642_v16  ;;  %v1519_v26 = vadd.f32 %v2550_v42, %v1448_v9  ;;  %vm1579_vm9 = vcmp.ge.f32.partialorder %v1515_v19, 0.0  ;;  %v1643_v30 = vmul.f32 0.01, %v1515_v19  ;;  %v1463_v6 = vld [vmem:[#allocation2 + $0x160] sm:$0xff] }
 0x1ab   : > { %1770 = vst [vmem:[%s2826_s3 + $0xc0] sm:$0xff] %v1706_v23  ;;  %vm1580_vm10 = vcmp.ge.f32.partialorder %v1516_v20, 0.0  ;;  %v1644_v31 = vmul.f32 0.01, %v1516_v20  ;;  %vm1581_vm11 = vcmp.ge.f32.partialorder %v1517_v24, 0.0  ;;  %vm1582_vm12 = vcmp.ge.f32.partialorder %v1518_v25, 0.0 }
 0x1ac   : > { %v1645_v32 = vmul.f32 0.01, %v1517_v24  ;;  %v1646_v33 = vmul.f32 0.01, %v1518_v25  ;;  %v1707_v34 = vsel %vm1579_vm9, %v1515_v19, %v1643_v30  ;;  %vm1583_vm13 = vcmp.ge.f32.partialorder %v1519_v26, 0.0  ;;  %v1464_v18 = vld [vmem:[#allocation2 + $0x168] sm:$0xff] }
 0x1ad   : > { %v1708_v35 = vsel %vm1580_vm10, %v1516_v20, %v1644_v31  ;;  %v1647_v36 = vmul.f32 0.01, %v1519_v26  ;;  %1771 = vst [vmem:[%s2826_s3 + $0xc8] sm:$0xff] %v1707_v34  ;;  %v1520_v39 = vadd.f32 %v2550_v42, %v1449_v21  ;;  %v1521_v40 = vadd.f32 %v2550_v42, %v1450_v22  ;;  %v1465_v19 = vld [vmem:[#allocation2 + $0x170] sm:$0xff] }
 0x1ae   : > { %1772 = vst [vmem:[%s2826_s3 + $0xd0] sm:$0xff] %v1708_v35  ;;  %v1709_v37 = vsel %vm1581_vm11, %v1517_v24, %v1645_v32  ;;  %v1710_v38 = vsel %vm1582_vm12, %v1518_v25, %v1646_v33  ;;  %v1522_v45 = vadd.f32 %v2550_v42, %v1451_v27  ;;  %v1523_v46 = vadd.f32 %v2550_v42, %v1452_v28  ;;  %v1466_v24 = vld [vmem:[#allocation2 + $0x178] sm:$0xff]  ;;  %v1467_v25 = vld [vmem:[#allocation2 + $0x180] sm:$0xff] }
 0x1af   : > { %1773 = vst [vmem:[%s2826_s3 + $0xd8] sm:$0xff] %v1709_v37  ;;  %1774 = vst [vmem:[%s2826_s3 + $0xe0] sm:$0xff] %v1710_v38  ;;  %v1711_v44 = vsel %vm1583_vm13, %v1519_v26, %v1647_v36  ;;  %v1524_v47 = vadd.f32 %v2550_v42, %v1453_v29  ;;  %vm1584_vm14 = vcmp.ge.f32.partialorder %v1520_v39, 0.0  ;;  %v1648_v51 = vmul.f32 0.01, %v1520_v39  ;;  %v1468_v26 = vld [vmem:[#allocation2 + $0x188] sm:$0xff] }
 0x1b0   : > { %1775 = vst [vmem:[%s2826_s3 + $0xe8] sm:$0xff] %v1711_v44  ;;  %vm1585_vm15 = vcmp.ge.f32.partialorder %v1521_v40, 0.0  ;;  %v1649_v52 = vmul.f32 0.01, %v1521_v40  ;;  %vm1586_vm0 = vcmp.ge.f32.partialorder %v1522_v45, 0.0  ;;  %vm1587_vm1 = vcmp.ge.f32.partialorder %v1523_v46, 0.0 }
 0x1b1   : > { %v1650_v53 = vmul.f32 0.01, %v1522_v45  ;;  %v1651_v54 = vmul.f32 0.01, %v1523_v46  ;;  %v1712_v55 = vsel %vm1584_vm14, %v1520_v39, %v1648_v51  ;;  %vm1588_vm2 = vcmp.ge.f32.partialorder %v1524_v47, 0.0  ;;  %v1469_v38 = vld [vmem:[#allocation2 + $0x190] sm:$0xff] }
 0x1b2   : > { %v1713_v56 = vsel %vm1585_vm15, %v1521_v40, %v1649_v52  ;;  %v1652_v57 = vmul.f32 0.01, %v1524_v47  ;;  %1776 = vst [vmem:[%s2826_s3 + $0xf0] sm:$0xff] %v1712_v55  ;;  %v1525_v60 = vadd.f32 %v2550_v42, %v1454_v41  ;;  %v1526_v61 = vadd.f32 %v2550_v42, %v1455_v43  ;;  %v1470_v39 = vld [vmem:[#allocation2 + $0x198] sm:$0xff] }
 0x1b3   : > { %1777 = vst [vmem:[%s2826_s3 + $0xf8] sm:$0xff] %v1713_v56  ;;  %v1714_v58 = vsel %vm1586_vm0, %v1522_v45, %v1650_v53  ;;  %v1715_v59 = vsel %vm1587_vm1, %v1523_v46, %v1651_v54  ;;  %v1527_v1 = vadd.f32 %v2550_v42, %v1456_v48  ;;  %v1528_v2 = vadd.f32 %v2550_v42, %v1457_v49  ;;  %v1471_v45 = vld [vmem:[#allocation2 + $0x1a0] sm:$0xff]  ;;  %v1472_v46 = vld [vmem:[#allocation2 + $0x1a8] sm:$0xff] }
 0x1b4   : > { %1778 = vst [vmem:[%s2826_s3 + $0x100] sm:$0xff] %v1714_v58  ;;  %1779 = vst [vmem:[%s2826_s3 + $0x108] sm:$0xff] %v1715_v59  ;;  %v1716_v0 = vsel %vm1588_vm2, %v1524_v47, %v1652_v57  ;;  %v1529_v3 = vadd.f32 %v2550_v42, %v1458_v50  ;;  %vm1589_vm3 = vcmp.ge.f32.partialorder %v1525_v60, 0.0  ;;  %v1653_v7 = vmul.f32 0.01, %v1525_v60  ;;  %v1473_v47 = vld [vmem:[#allocation2 + $0x1b0] sm:$0xff] }
 0x1b5   : > { %1780 = vst [vmem:[%s2826_s3 + $0x110] sm:$0xff] %v1716_v0  ;;  %vm1590_vm4 = vcmp.ge.f32.partialorder %v1526_v61, 0.0  ;;  %v1654_v8 = vmul.f32 0.01, %v1526_v61  ;;  %vm1591_vm5 = vcmp.ge.f32.partialorder %v1527_v1, 0.0  ;;  %vm1592_vm6 = vcmp.ge.f32.partialorder %v1528_v2, 0.0 }
 0x1b6   : > { %v1655_v9 = vmul.f32 0.01, %v1527_v1  ;;  %v1656_v10 = vmul.f32 0.01, %v1528_v2  ;;  %v1717_v11 = vsel %vm1589_vm3, %v1525_v60, %v1653_v7  ;;  %vm1593_vm7 = vcmp.ge.f32.partialorder %v1529_v3, 0.0  ;;  %v1474_v59 = vld [vmem:[#allocation2 + $0x1b8] sm:$0xff] }
 0x1b7   : > { %v1718_v12 = vsel %vm1590_vm4, %v1526_v61, %v1654_v8  ;;  %v1657_v13 = vmul.f32 0.01, %v1529_v3  ;;  %1781 = vst [vmem:[%s2826_s3 + $0x118] sm:$0xff] %v1717_v11  ;;  %v1530_v16 = vadd.f32 %v2550_v42, %v1459_v62  ;;  %v1531_v17 = vadd.f32 %v2550_v42, %v1460_v63  ;;  %v1475_v60 = vld [vmem:[#allocation2 + $0x1c0] sm:$0xff] }
 0x1b8   : > { %1782 = vst [vmem:[%s2826_s3 + $0x120] sm:$0xff] %v1718_v12  ;;  %v1719_v14 = vsel %vm1591_vm5, %v1527_v1, %v1655_v9  ;;  %v1720_v15 = vsel %vm1592_vm6, %v1528_v2, %v1656_v10  ;;  %v1532_v21 = vadd.f32 %v2550_v42, %v1461_v4  ;;  %v1533_v22 = vadd.f32 %v2550_v42, %v1462_v5  ;;  %v1476_v1 = vld [vmem:[#allocation2 + $0x1c8] sm:$0xff]  ;;  %v1477_v2 = vld [vmem:[#allocation2 + $0x1d0] sm:$0xff] }
 0x1b9   : > { %1783 = vst [vmem:[%s2826_s3 + $0x128] sm:$0xff] %v1719_v14  ;;  %1784 = vst [vmem:[%s2826_s3 + $0x130] sm:$0xff] %v1720_v15  ;;  %v1721_v20 = vsel %vm1593_vm7, %v1529_v3, %v1657_v13  ;;  %v1534_v23 = vadd.f32 %v2550_v42, %v1463_v6  ;;  %vm1594_vm8 = vcmp.ge.f32.partialorder %v1530_v16, 0.0  ;;  %v1658_v27 = vmul.f32 0.01, %v1530_v16  ;;  %v1478_v3 = vld [vmem:[#allocation2 + $0x1d8] sm:$0xff] }
 0x1ba   : > { %1785 = vst [vmem:[%s2826_s3 + $0x138] sm:$0xff] %v1721_v20  ;;  %vm1595_vm9 = vcmp.ge.f32.partialorder %v1531_v17, 0.0  ;;  %v1659_v28 = vmul.f32 0.01, %v1531_v17  ;;  %vm1596_vm10 = vcmp.ge.f32.partialorder %v1532_v21, 0.0  ;;  %vm1597_vm11 = vcmp.ge.f32.partialorder %v1533_v22, 0.0 }
 0x1bb   : > { %v1660_v29 = vmul.f32 0.01, %v1532_v21  ;;  %v1661_v30 = vmul.f32 0.01, %v1533_v22  ;;  %v1722_v31 = vsel %vm1594_vm8, %v1530_v16, %v1658_v27  ;;  %vm1598_vm12 = vcmp.ge.f32.partialorder %v1534_v23, 0.0  ;;  %v1479_v15 = vld [vmem:[#allocation2 + $0x1e0] sm:$0xff] }
 0x1bc   : > { %v1723_v32 = vsel %vm1595_vm9, %v1531_v17, %v1659_v28  ;;  %v1662_v33 = vmul.f32 0.01, %v1534_v23  ;;  %1786 = vst [vmem:[%s2826_s3 + $0x140] sm:$0xff] %v1722_v31  ;;  %v1535_v36 = vadd.f32 %v2550_v42, %v1464_v18  ;;  %v1536_v37 = vadd.f32 %v2550_v42, %v1465_v19  ;;  %v1480_v20 = vld [vmem:[#allocation2 + $0x1e8] sm:$0xff] }
 0x1bd   : > { %1787 = vst [vmem:[%s2826_s3 + $0x148] sm:$0xff] %v1723_v32  ;;  %v1724_v34 = vsel %vm1596_vm10, %v1532_v21, %v1660_v29  ;;  %v1725_v35 = vsel %vm1597_vm11, %v1533_v22, %v1661_v30  ;;  %v1537_v41 = vadd.f32 %v2550_v42, %v1466_v24  ;;  %v1538_v43 = vadd.f32 %v2550_v42, %v1467_v25  ;;  %v1481_v21 = vld [vmem:[#allocation2 + $0x1f0] sm:$0xff]  ;;  %v1482_v22 = vld [vmem:[#allocation2 + $0x1f8] sm:$0xff] }
 0x1be   : > { %1788 = vst [vmem:[%s2826_s3 + $0x150] sm:$0xff] %v1724_v34  ;;  %1789 = vst [vmem:[%s2826_s3 + $0x158] sm:$0xff] %v1725_v35  ;;  %v1726_v40 = vsel %vm1598_vm12, %v1534_v23, %v1662_v33  ;;  %v1539_v44 = vadd.f32 %v2550_v42, %v1468_v26  ;;  %vm1599_vm13 = vcmp.ge.f32.partialorder %v1535_v36, 0.0  ;;  %v1663_v48 = vmul.f32 0.01, %v1535_v36 }
 0x1bf   : > { %1790 = vst [vmem:[%s2826_s3 + $0x160] sm:$0xff] %v1726_v40  ;;  %vm1600_vm14 = vcmp.ge.f32.partialorder %v1536_v37, 0.0  ;;  %v1664_v49 = vmul.f32 0.01, %v1536_v37  ;;  %vm1601_vm15 = vcmp.ge.f32.partialorder %v1537_v41, 0.0  ;;  %vm1602_vm0 = vcmp.ge.f32.partialorder %v1538_v43, 0.0 }
 0x1c0   : > { %v1665_v50 = vmul.f32 0.01, %v1537_v41  ;;  %v1666_v51 = vmul.f32 0.01, %v1538_v43  ;;  %v1727_v52 = vsel %vm1599_vm13, %v1535_v36, %v1663_v48  ;;  %vm1603_vm1 = vcmp.ge.f32.partialorder %v1539_v44, 0.0 }
 0x1c1   : > { %v1728_v53 = vsel %vm1600_vm14, %v1536_v37, %v1664_v49  ;;  %v1667_v54 = vmul.f32 0.01, %v1539_v44  ;;  %1791 = vst [vmem:[%s2826_s3 + $0x168] sm:$0xff] %v1727_v52  ;;  %v1540_v57 = vadd.f32 %v2550_v42, %v1469_v38  ;;  %v1541_v58 = vadd.f32 %v2550_v42, %v1470_v39 }
 0x1c2   : > { %1792 = vst [vmem:[%s2826_s3 + $0x170] sm:$0xff] %v1728_v53  ;;  %v1729_v55 = vsel %vm1601_vm15, %v1537_v41, %v1665_v50  ;;  %v1730_v56 = vsel %vm1602_vm0, %v1538_v43, %v1666_v51  ;;  %v1542_v62 = vadd.f32 %v2550_v42, %v1471_v45  ;;  %v1543_v63 = vadd.f32 %v2550_v42, %v1472_v46 }
 0x1c3   : > { %1793 = vst [vmem:[%s2826_s3 + $0x178] sm:$0xff] %v1729_v55  ;;  %1794 = vst [vmem:[%s2826_s3 + $0x180] sm:$0xff] %v1730_v56  ;;  %v1731_v61 = vsel %vm1603_vm1, %v1539_v44, %v1667_v54  ;;  %v1544_v0 = vadd.f32 %v2550_v42, %v1473_v47  ;;  %vm1604_vm2 = vcmp.ge.f32.partialorder %v1540_v57, 0.0  ;;  %v1668_v4 = vmul.f32 0.01, %v1540_v57 }
 0x1c4   : > { %1795 = vst [vmem:[%s2826_s3 + $0x188] sm:$0xff] %v1731_v61  ;;  %vm1605_vm3 = vcmp.ge.f32.partialorder %v1541_v58, 0.0  ;;  %v1669_v5 = vmul.f32 0.01, %v1541_v58  ;;  %vm1606_vm4 = vcmp.ge.f32.partialorder %v1542_v62, 0.0  ;;  %vm1607_vm5 = vcmp.ge.f32.partialorder %v1543_v63, 0.0 }
 0x1c5   : > { %v1670_v6 = vmul.f32 0.01, %v1542_v62  ;;  %v1671_v7 = vmul.f32 0.01, %v1543_v63  ;;  %v1732_v8 = vsel %vm1604_vm2, %v1540_v57, %v1668_v4  ;;  %vm1608_vm6 = vcmp.ge.f32.partialorder %v1544_v0, 0.0 }
 0x1c6   : > { %v1733_v9 = vsel %vm1605_vm3, %v1541_v58, %v1669_v5  ;;  %v1672_v10 = vmul.f32 0.01, %v1544_v0  ;;  %1796 = vst [vmem:[%s2826_s3 + $0x190] sm:$0xff] %v1732_v8  ;;  %v1545_v13 = vadd.f32 %v2550_v42, %v1474_v59  ;;  %v1546_v14 = vadd.f32 %v2550_v42, %v1475_v60 }
 0x1c7   : > { %1797 = vst [vmem:[%s2826_s3 + $0x198] sm:$0xff] %v1733_v9  ;;  %v1734_v11 = vsel %vm1606_vm4, %v1542_v62, %v1670_v6  ;;  %v1735_v12 = vsel %vm1607_vm5, %v1543_v63, %v1671_v7  ;;  %v1547_v17 = vadd.f32 %v2550_v42, %v1476_v1  ;;  %v1548_v18 = vadd.f32 %v2550_v42, %v1477_v2 }
 0x1c8   : > { %1798 = vst [vmem:[%s2826_s3 + $0x1a0] sm:$0xff] %v1734_v11  ;;  %1799 = vst [vmem:[%s2826_s3 + $0x1a8] sm:$0xff] %v1735_v12  ;;  %v1736_v16 = vsel %vm1608_vm6, %v1544_v0, %v1672_v10  ;;  %v1549_v19 = vadd.f32 %v2550_v42, %v1478_v3  ;;  %vm1609_vm7 = vcmp.ge.f32.partialorder %v1545_v13, 0.0  ;;  %v1673_v23 = vmul.f32 0.01, %v1545_v13 }
 0x1c9   : > { %1800 = vst [vmem:[%s2826_s3 + $0x1b0] sm:$0xff] %v1736_v16  ;;  %vm1610_vm8 = vcmp.ge.f32.partialorder %v1546_v14, 0.0  ;;  %v1674_v24 = vmul.f32 0.01, %v1546_v14  ;;  %vm1611_vm9 = vcmp.ge.f32.partialorder %v1547_v17, 0.0  ;;  %vm1612_vm10 = vcmp.ge.f32.partialorder %v1548_v18, 0.0 }
 0x1ca   : > { %v1675_v25 = vmul.f32 0.01, %v1547_v17  ;;  %v1676_v26 = vmul.f32 0.01, %v1548_v18  ;;  %v1737_v27 = vsel %vm1609_vm7, %v1545_v13, %v1673_v23  ;;  %vm1613_vm11 = vcmp.ge.f32.partialorder %v1549_v19, 0.0 }
 0x1cb   : > { %v1738_v28 = vsel %vm1610_vm8, %v1546_v14, %v1674_v24  ;;  %v1677_v29 = vmul.f32 0.01, %v1549_v19  ;;  %1801 = vst [vmem:[%s2826_s3 + $0x1b8] sm:$0xff] %v1737_v27  ;;  %v1550_v32 = vadd.f32 %v2550_v42, %v1479_v15  ;;  %v1551_v33 = vadd.f32 %v2550_v42, %v1480_v20 }
 0x1cc   : > { %1802 = vst [vmem:[%s2826_s3 + $0x1c0] sm:$0xff] %v1738_v28  ;;  %v1739_v30 = vsel %vm1611_vm9, %v1547_v17, %v1675_v25  ;;  %v1740_v31 = vsel %vm1612_vm10, %v1548_v18, %v1676_v26  ;;  %v1552_v35 = vadd.f32 %v2550_v42, %v1481_v21  ;;  %v1553_v36 = vadd.f32 %v2550_v42, %v1482_v22 }
 0x1cd   : > { %1803 = vst [vmem:[%s2826_s3 + $0x1c8] sm:$0xff] %v1739_v30  ;;  %1804 = vst [vmem:[%s2826_s3 + $0x1d0] sm:$0xff] %v1740_v31  ;;  %v1741_v34 = vsel %vm1613_vm11, %v1549_v19, %v1677_v29  ;;  %vm1614_vm12 = vcmp.ge.f32.partialorder %v1550_v32, 0.0  ;;  %v1678_v37 = vmul.f32 0.01, %v1550_v32  ;;  %vm1615_vm13 = vcmp.ge.f32.partialorder %v1551_v33, 0.0 }
 0x1ce   : > { %1805 = vst [vmem:[%s2826_s3 + $0x1d8] sm:$0xff] %v1741_v34  ;;  %v1679_v38 = vmul.f32 0.01, %v1551_v33  ;;  %vm1616_vm14 = vcmp.ge.f32.partialorder %v1552_v35, 0.0  ;;  %v1680_v39 = vmul.f32 0.01, %v1552_v35 }
 0x1cf   : > { %vm1617_vm15 = vcmp.ge.f32.partialorder %v1553_v36, 0.0  ;;  %v1681_v40 = vmul.f32 0.01, %v1553_v36  ;;  %v1742_v41 = vsel %vm1614_vm12, %v1550_v32, %v1678_v37 }
 0x1d0   : > { %v1743_v43 = vsel %vm1615_vm13, %v1551_v33, %v1679_v38  ;;  %1806 = vst [vmem:[%s2826_s3 + $0x1e0] sm:$0xff] %v1742_v41  ;;  %v1744_v42 = vsel %vm1616_vm14, %v1552_v35, %v1680_v39 }
 0x1d1   : > { %1807 = vst [vmem:[%s2826_s3 + $0x1e8] sm:$0xff] %v1743_v43  ;;  %v1745_v44 = vsel %vm1617_vm15, %v1553_v36, %v1681_v40  ;;  %1808 = vst [vmem:[%s2826_s3 + $0x1f0] sm:$0xff] %v1744_v42 }
 0x1d2   : > { %1809 = vst [vmem:[%s2826_s3 + $0x1f8] sm:$0xff] %v1745_v44 }
 0x1d3 PF: > { %s13_s16 = sadd.s32 1, %s2232_s16   ;;  %s2827_s12 = smov %s2220_s13 }
 0x1d4   : > { %p10_p12 = scmp.ge.s32.totalorder %s13_s16, 4   ;;  %s2828_s13 = smov %s2290_s20 }
 0x1d5   : > { %s2829_s14 = smov %s2228_s15  ;;  %s2830_s15 = smov %s2832_s17 }
 0x1d6   :  { %12 = sbr.rel (!%p10_p12) target bundleno = 3 (0x3), region = 122 }

// kernel: convswarm_forward.38
= control target key start
LH: loop header
LB: loop body
LE: loop exit
PB: predicated region body
PF: predicated region fallthrough
CT: control target
= control target key end

     0   :  { %s1079_s12 = smov 0   ;;  %s1081_s13 = smov 0   ;;  %s1253_s0 = inlined_call_operand.vmem [shape: bf16[128,640], index: 0, kind: input, shape index: {}]   ;;  %s1254_s1 = inlined_call_operand.vmem [shape: bf16[640,128], index: 1, kind: input, shape index: {}]   ;;  %s1255_s2 = inlined_call_operand.vmem [shape: f32[1,128], index: 2, kind: input, shape index: {}]   ;;  %s1256_s3 = inlined_call_operand.vmem [shape: f32[128,128], index: 3, kind: output, shape index: {}]  }
   0x1   :  { %s1083_s14 = smov 0   ;;  %s1085_s15 = smov 0  }
   0x2   :  { %s1087_s16 = smov 0  }
   0x3 LB: > { %s25_s17 = sadd.s32 1, %s1052_s15  ;;  %p48_p1 = scmp.ne.s32.totalorder %s1044_s13, %s1040_s12  ;;  %s1056_s16 = sphi %s1087_s16, %s13_s16   ;;  %s1052_s15 = sphi %s1085_s15, %s1260_s15   ;;  %s1048_s14 = sphi %s1083_s14, %s1259_s14   ;;  %s1044_s13 = sphi %s1081_s13, %s1258_s13   ;;  %s1040_s12 = sphi %s1079_s12, %s1257_s12  }
   0x4   : > { %p26_p0 = scmp.ge.s32.totalorder %s25_s17, 5  ;;  %p49_p2 = scmp.eq.s32.totalorder %s1056_s16, 0 }
   0x5   : > { %s41_s19 = sadd.s32 1, %s1044_s13  ;;  %p867_p5 = scmp.ge.s32.totalorder %s1056_s16, 5 }
   0x6   : > { %s1262_s17 = smov (%p26_p0, %s25_s17), 0  ;;  %p50_p3 = por %p49_p2, %p48_p1 }
   0x7   : > { %s37_s18 = ssub.s32 %s1052_s15, %s1262_s17  ;;  %162 = sbr.rel (%p867_p5) target bundleno = 28 (0x1c), region = 20 }
   0x8   : > { %p39_p4 = scmp.eq.s32.totalorder %s37_s18, 0 }
   0xa   : > { %s1114_s20 = scalar_select %p39_p4, %s1044_s13, %s41_s19  }
   0xe   : > { %165 = sbr.rel (!%p50_p3) target bundleno = 28 (0x1c), region = 24  ;;  %s167_s21 = sand.u32 (%p50_p3), 1, %s1044_s13  }
   0xf   : > { %s869_s22 = sshll.u32 (%p50_p3), %s1052_s15, 2  ;;  %s868_s23 = sshll.u32 (%p50_p3), %s167_s21, 6 }
  0x10   : > { %s1122_s26 = scalar_lea.vmem (%p50_p3), %s1253_s0, %s869_s22  ;;  %s169_s27 = scalar_lea.vmem (%p50_p3), [#allocation3], %s868_s23 }
  0x11   : > { %v190_v0 = vld [vmem:[%s1122_s26] sm:$0xf] (%p50_p3)  ;;  %v192_v1 = vld [vmem:[%s1122_s26 + $0x14] sm:$0xf] (%p50_p3)  ;;  %v194_v2 = vld [vmem:[%s1122_s26 + $0x28] sm:$0xf] (%p50_p3) }
  0x12   : > { %191 = vst [vmem:[%s169_s27] sm:$0xf] (%p50_p3), %v190_v0  ;;  %193 = vst [vmem:[%s169_s27 + $0x4] sm:$0xf] (%p50_p3), %v192_v1  ;;  %v196_v3 = vld [vmem:[%s1122_s26 + $0x3c] sm:$0xf] (%p50_p3) }
  0x13   : > { %v198_v4 = vld [vmem:[%s1122_s26 + $0x50] sm:$0xf] (%p50_p3)  ;;  %195 = vst [vmem:[%s169_s27 + $0x8] sm:$0xf] (%p50_p3), %v194_v2  ;;  %197 = vst [vmem:[%s169_s27 + $0xc] sm:$0xf] (%p50_p3), %v196_v3 }
  0x14   : > { %199 = vst [vmem:[%s169_s27 + $0x10] sm:$0xf] (%p50_p3), %v198_v4  ;;  %v200_v5 = vld [vmem:[%s1122_s26 + $0x64] sm:$0xf] (%p50_p3)  ;;  %v202_v6 = vld [vmem:[%s1122_s26 + $0x78] sm:$0xf] (%p50_p3) }
  0x15   : > { %v204_v7 = vld [vmem:[%s1122_s26 + $0x8c] sm:$0xf]  ;;  %201 = vst [vmem:[%s169_s27 + $0x14] sm:$0xf] %v200_v5  ;;  %203 = vst [vmem:[%s169_s27 + $0x18] sm:$0xf] %v202_v6 }
  0x16   : > { %205 = vst [vmem:[%s169_s27 + $0x1c] sm:$0xf] %v204_v7  ;;  %v206_v8 = vld [vmem:[%s1122_s26 + $0xa0] sm:$0xf]  ;;  %v208_v9 = vld [vmem:[%s1122_s26 + $0xb4] sm:$0xf] }
  0x17   : > { %v210_v10 = vld [vmem:[%s1122_s26 + $0xc8] sm:$0xf]  ;;  %207 = vst [vmem:[%s169_s27 + $0x20] sm:$0xf] %v206_v8  ;;  %209 = vst [vmem:[%s169_s27 + $0x24] sm:$0xf] %v208_v9 }
  0x18   : > { %211 = vst [vmem:[%s169_s27 + $0x28] sm:$0xf] %v210_v10  ;;  %v212_v11 = vld [vmem:[%s1122_s26 + $0xdc] sm:$0xf]  ;;  %v214_v12 = vld [vmem:[%s1122_s26 + $0xf0] sm:$0xf] }
  0x19   : > { %v216_v13 = vld [vmem:[%s1122_s26 + $0x104] sm:$0xf]  ;;  %213 = vst [vmem:[%s169_s27 + $0x2c] sm:$0xf] %v212_v11  ;;  %215 = vst [vmem:[%s169_s27 + $0x30] sm:$0xf] %v214_v12 }
  0x1a   : > { %217 = vst [vmem:[%s169_s27 + $0x34] sm:$0xf] %v216_v13  ;;  %v218_v14 = vld [vmem:[%s1122_s26 + $0x118] sm:$0xf]  ;;  %v220_v15 = vld [vmem:[%s1122_s26 + $0x12c] sm:$0xf] }
  0x1b   : > { %219 = vst [vmem:[%s169_s27 + $0x38] sm:$0xf] %v218_v14  ;;  %221 = vst [vmem:[%s169_s27 + $0x3c] sm:$0xf] %v220_v15 }
  0x1c PF: > { %p870_p6 = scmp.ge.s32.totalorder %s1056_s16, 1  ;;  %p287_p7 = scmp.lt.s32.totalorder %s1056_s16, 6 }
  0x1e   : > { %p288_p8 = pnand %p870_p6, %p287_p7 }
  0x1f   : > { %s294_s28 = sand.u32 (!%p288_p8), 1, %s1040_s12   ;;  %s872_s29 = sshll.u32 (!%p288_p8), %s1048_s14, 4 }
  0x20   : > { %291 = sbr.rel (%p288_p8) target bundleno = 326 (0x146), region = 69  ;;  %s871_s30 = sshll.u32 (!%p288_p8), %s294_s28, 6 }
  0x21   : > { %p333_p9 = scmp.lt.s32.totalorder (!%p288_p8), %s872_s29, 79  ;;  %s1149_s8 = scalar_lea.vmem (!%p288_p8), [#allocation3], %s871_s30 }
  0x22   : > { %p874_p10 = scmp.ne.s32.totalorder (!%p288_p8), %s1048_s14, 0 }
  0x27   : > { %s1264_s29 = smov (!%p333_p9, %s872_s29), 79  ;;  %357 = sbr.rel (%p874_p10) target bundleno = 49 (0x31), region = 77 }
  0x28   : > { %s873_s4 = sshll.u32 %s1264_s29, 2  ;;  %v1058_v16 = vmov (!%p874_p10), 0.0  }
  0x29   : > { %s1147_s7 = scalar_lea.vmem %s1254_s1, %s873_s4  ;;  %358 = vst [vmem:[#allocation2] sm:$0xff] (!%p874_p10), %v1058_v16  ;;  %359 = vst [vmem:[#allocation2 + $0x8] sm:$0xff] (!%p874_p10), %v1058_v16 }
  0x2a   : > { %360 = vst [vmem:[#allocation2 + $0x10] sm:$0xff] (!%p874_p10), %v1058_v16  ;;  %361 = vst [vmem:[#allocation2 + $0x18] sm:$0xff] (!%p874_p10), %v1058_v16 }
  0x2b   : > { %362 = vst [vmem:[#allocation2 + $0x20] sm:$0xff] (!%p874_p10), %v1058_v16  ;;  %363 = vst [vmem:[#allocation2 + $0x28] sm:$0xff] (!%p874_p10), %v1058_v16 }
  0x2c   : > { %364 = vst [vmem:[#allocation2 + $0x30] sm:$0xff] (!%p874_p10), %v1058_v16  ;;  %365 = vst [vmem:[#allocation2 + $0x38] sm:$0xff] (!%p874_p10), %v1058_v16 }
  0x2d   : > { %366 = vst [vmem:[#allocation2 + $0x40] sm:$0xff] (!%p874_p10), %v1058_v16  ;;  %367 = vst [vmem:[#allocation2 + $0x48] sm:$0xff] (!%p874_p10), %v1058_v16 }
  0x2e   : > { %368 = vst [vmem:[#allocation2 + $0x50] sm:$0xff] %v1058_v16  ;;  %369 = vst [vmem:[#allocation2 + $0x58] sm:$0xff] %v1058_v16 }
  0x2f   : > { %370 = vst [vmem:[#allocation2 + $0x60] sm:$0xff] %v1058_v16  ;;  %371 = vst [vmem:[#allocation2 + $0x68] sm:$0xff] %v1058_v16 }
  0x30   : > { %372 = vst [vmem:[#allocation2 + $0x70] sm:$0xff] %v1058_v16  ;;  %373 = vst [vmem:[#allocation2 + $0x78] sm:$0xff] %v1058_v16 }
  0x31 PF: > { %v1002_v17 = vld [vmem:[%s1147_s7] sm:$0xff]   ;;  %v1003_v18 = vld [vmem:[%s1147_s7 + $0x8] sm:$0xff]   ;;  %v1004_v19 = vld [vmem:[%s1147_s7 + $0x10] sm:$0xff]   ;;  %p891_p11 = scmp.ne.s32.totalorder %s1048_s14, 4 }
  0x32   : > { %913 = vmatprep.subr.bf16.mxu0 %v1002_v17  ;;  %945 = vmatprep.subr.bf16.mxu1 %v1002_v17  ;;  %v1005_v20 = vld [vmem:[%s1147_s7 + $0x18] sm:$0xff]   ;;  %v1010_v21 = vld [vmem:[%s1149_s8] sm:$0xff]   ;;  %v1007_v24 = vld [vmem:[%s1147_s7 + $0x28] sm:$0xff]  }
  0x33   : > { %914 = vmatpush3.bf16.msra.mxu0 %v1002_v17  ;;  %953 = vmatpush3.bf16.msra.mxu1 %v1002_v17  ;;  %v1011_v22 = vld [vmem:[%s1149_s8 + $0x20] sm:$0xff]   ;;  %v1008_v25 = vld [vmem:[%s1147_s7 + $0x30] sm:$0xff]   ;;  %v1009_v26 = vld [vmem:[%s1147_s7 + $0x38] sm:$0xff]  }
  0x34   : > { %915 = vmatprep.subr.bf16.mxu0 %v1003_v18  ;;  %946 = vmatprep.subr.bf16.mxu1 %v1003_v18  ;;  %v1006_v23 = vld [vmem:[%s1147_s7 + $0x20] sm:$0xff]   ;;  %v1012_v27 = vld [vmem:[%s1149_s8 + $0x8] sm:$0xff]   ;;  %v1014_v29 = vld [vmem:[%s1149_s8 + $0x10] sm:$0xff]  }
  0x35   : > { %929 = vmatprep.mubr.bf16.mxu0 %v1010_v21  ;;  %937 = vmatprep.mubr.bf16.mxu1 %v1011_v22  ;;  %v1013_v28 = vld [vmem:[%s1149_s8 + $0x28] sm:$0xff]   ;;  %v1015_v30 = vld [vmem:[%s1149_s8 + $0x30] sm:$0xff]   ;;  %v1016_v31 = vld [vmem:[%s1149_s8 + $0x18] sm:$0xff]  }
  0x36   : > { %v1017_v32 = vld [vmem:[%s1149_s8 + $0x38] sm:$0xff]   ;;  %v376_v33 = vld [vmem:[#allocation2 + $0x10] sm:$0xff]  ;;  %v374_v35 = vld [vmem:[#allocation2] sm:$0xff] }
  0x37   : > { %916 = vmatpush3.bf16.msra.mxu0 %v1003_v18  ;;  %954 = vmatpush3.bf16.msra.mxu1 %v1003_v18  ;;  %v384_v34 = vld [vmem:[#allocation2 + $0x50] sm:$0xff]  ;;  %v382_v36 = vld [vmem:[#allocation2 + $0x40] sm:$0xff]  ;;  %v377_v39 = vld [vmem:[#allocation2 + $0x18] sm:$0xff] }
  0x38   : > { %917 = vmatprep.subr.bf16.mxu0 %v1004_v19  ;;  %947 = vmatprep.subr.bf16.mxu1 %v1004_v19  ;;  %v385_v40 = vld [vmem:[#allocation2 + $0x58] sm:$0xff]  ;;  %v375_v45 = vld [vmem:[#allocation2 + $0x8] sm:$0xff]  ;;  %v380_v57 = vld [vmem:[#allocation2 + $0x30] sm:$0xff] }
  0x39   : > { %v383_v46 = vld [vmem:[#allocation2 + $0x48] sm:$0xff]  ;;  %v388_v58 = vld [vmem:[#allocation2 + $0x70] sm:$0xff]  ;;  %v378_v59 = vld [vmem:[#allocation2 + $0x20] sm:$0xff] }
  0x3a   : > { %v386_v60 = vld [vmem:[#allocation2 + $0x60] sm:$0xff]  ;;  %v381_v63 = vld [vmem:[#allocation2 + $0x38] sm:$0xff]  ;;  %v379_v5 = vld [vmem:[#allocation2 + $0x28] sm:$0xff] }
  0x3b   : > { %918 = vmatpush3.bf16.msra.mxu0 %v1004_v19  ;;  %955 = vmatpush3.bf16.msra.mxu1 %v1004_v19  ;;  %v389_v0 = vld [vmem:[#allocation2 + $0x78] sm:$0xff]  ;;  %v387_v6 = vld [vmem:[#allocation2 + $0x68] sm:$0xff]  ;;  %v1172_v18 = vld [vmem:[%s1255_s2] ss:$0 sm:$0xff] (!%p891_p11) }
  0x3c   : > { %919 = vmatprep.subr.bf16.mxu0 %v1005_v20  ;;  %948 = vmatprep.subr.bf16.mxu1 %v1005_v20 }
  0x3f   : > { %920 = vmatpush3.bf16.msra.mxu0 %v1005_v20  ;;  %956 = vmatpush3.bf16.msra.mxu1 %v1005_v20 }
  0x40   : > { %921 = vmatprep.subr.bf16.mxu0 %v1006_v23  ;;  %949 = vmatprep.subr.bf16.mxu1 %v1006_v23 }
  0x43   : > { %922 = vmatpush3.bf16.msra.mxu0 %v1006_v23  ;;  %957 = vmatpush3.bf16.msra.mxu1 %v1006_v23 }
  0x44   : > { %923 = vmatprep.subr.bf16.mxu0 %v1007_v24  ;;  %950 = vmatprep.subr.bf16.mxu1 %v1007_v24 }
  0x47   : > { %924 = vmatpush3.bf16.msra.mxu0 %v1007_v24  ;;  %958 = vmatpush3.bf16.msra.mxu1 %v1007_v24 }
  0x48   : > { %925 = vmatprep.subr.bf16.mxu0 %v1008_v25  ;;  %951 = vmatprep.subr.bf16.mxu1 %v1008_v25 }
  0x4b   : > { %926 = vmatpush3.bf16.msra.mxu0 %v1008_v25  ;;  %959 = vmatpush3.bf16.msra.mxu1 %v1008_v25 }
  0x4c   : > { %927 = vmatprep.subr.bf16.mxu0 %v1009_v26  ;;  %952 = vmatprep.subr.bf16.mxu1 %v1009_v26 }
  0x4f   : > { %928 = vmatpush3.bf16.msra.mxu0 %v1009_v26  ;;  %960 = vmatpush3.bf16.msra.mxu1 %v1009_v26 }
  0x52   : > { %930 = vmatmul.mubr.bf16.vlgmr.msra.gmra.mrb[0].mxu0 %v1012_v27  ;;  %938 = vmatmul.mubr.bf16.vlgmr.msra.gmra.mrb[0].mxu1 %v1013_v28 }
  0x53   : > { %933 = vmatprep.mubr.bf16.mxu0 %v1014_v29  ;;  %941 = vmatprep.mubr.bf16.mxu1 %v1015_v30 }
  0x5a   : > { %934 = vmatmul.mubr.bf16.gmra.mrb[4].mxu0 %v1016_v31  ;;  %942 = vmatmul.mubr.bf16.gmra.mrb[4].mxu1 %v1017_v32 }
 0x125   : > { %v931_v37 = vpop.f32.mrb[0].mxu0  ;;  %v939_v38 = vpop.f32.mrb[0].mxu1 }
 0x126   : > { %v617_v41 = vadd.f32 %v931_v37, %v376_v33  ;;  %v625_v42 = vadd.f32 %v939_v38, %v384_v34  ;;  %v552_v43 = vpop.f32.mrb[1].mxu0  ;;  %v584_v44 = vpop.f32.mrb[1].mxu1 }
 0x127   : > { %v615_v47 = vadd.f32 %v552_v43, %v374_v35  ;;  %v623_v48 = vadd.f32 %v584_v44, %v382_v36  ;;  %v932_v49 = vpop.f32.mrb[2].mxu0  ;;  %v940_v50 = vpop.f32.mrb[2].mxu1 }
 0x128   : > { %633 = vst [vmem:[#allocation2 + $0x10] sm:$0xff] %v617_v41  ;;  %641 = vst [vmem:[#allocation2 + $0x50] sm:$0xff] %v625_v42  ;;  %v618_v51 = vadd.f32 %v932_v49, %v377_v39  ;;  %v626_v52 = vadd.f32 %v940_v50, %v385_v40  ;;  %v555_v53 = vpop.f32.mrb[3].mxu0  ;;  %v587_v54 = vpop.f32.mrb[3].mxu1 }
 0x129   : > { %631 = vst [vmem:[#allocation2] sm:$0xff] %v615_v47  ;;  %639 = vst [vmem:[#allocation2 + $0x40] sm:$0xff] %v623_v48  ;;  %v616_v55 = vadd.f32 %v555_v53, %v375_v45  ;;  %v624_v56 = vadd.f32 %v587_v54, %v383_v46 }
 0x12a   : > { %634 = vst [vmem:[#allocation2 + $0x18] sm:$0xff] %v618_v51  ;;  %642 = vst [vmem:[#allocation2 + $0x58] sm:$0xff] %v626_v52 }
 0x12b   : > { %632 = vst [vmem:[#allocation2 + $0x8] sm:$0xff] %v616_v55  ;;  %640 = vst [vmem:[#allocation2 + $0x48] sm:$0xff] %v624_v56 }
 0x12d   : > { %v935_v61 = vpop.f32.mrb[4].mxu0  ;;  %v943_v62 = vpop.f32.mrb[4].mxu1  ;;  %650 = sbr.rel (%p891_p11) target bundleno = 326 (0x146), region = 81 }
 0x12e   : > { %v621_v1 = vadd.f32 %v935_v61, %v380_v57  ;;  %v629_v2 = vadd.f32 %v943_v62, %v388_v58  ;;  %v568_v3 = vpop.f32.mrb[5].mxu0  ;;  %v600_v4 = vpop.f32.mrb[5].mxu1 }
 0x12f   : > { %v619_v7 = vadd.f32 %v568_v3, %v378_v59  ;;  %v627_v8 = vadd.f32 %v600_v4, %v386_v60  ;;  %v936_v9 = vpop.f32.mrb[6].mxu0  ;;  %v944_v10 = vpop.f32.mrb[6].mxu1  ;;  %v653_v22 = vld [vmem:[#allocation2 + $0x10] sm:$0xff] (!%p891_p11) }
 0x130   : > { %637 = vst [vmem:[#allocation2 + $0x30] sm:$0xff] %v621_v1  ;;  %645 = vst [vmem:[#allocation2 + $0x70] sm:$0xff] %v629_v2  ;;  %v622_v11 = vadd.f32 %v936_v9, %v381_v63  ;;  %v630_v12 = vadd.f32 %v944_v10, %v389_v0  ;;  %v571_v13 = vpop.f32.mrb[7].mxu0  ;;  %v603_v14 = vpop.f32.mrb[7].mxu1  ;;  %v651_v17 = vld [vmem:[#allocation2] sm:$0xff] (!%p891_p11)  ;;  %v676_v25 = vadd.f32 (!%p891_p11), %v1172_v18, %v653_v22  ;;  %v661_v44 = vld [vmem:[#allocation2 + $0x50] sm:$0xff] (!%p891_p11) }
 0x131   : > { %635 = vst [vmem:[#allocation2 + $0x20] sm:$0xff] %v619_v7  ;;  %643 = vst [vmem:[#allocation2 + $0x60] sm:$0xff] %v627_v8  ;;  %v620_v15 = vadd.f32 %v571_v13, %v379_v5  ;;  %v628_v16 = vadd.f32 %v603_v14, %v387_v6  ;;  %v674_v20 = vadd.f32 (!%p891_p11), %v1172_v18, %v651_v17  ;;  %v654_v23 = vld [vmem:[#allocation2 + $0x18] sm:$0xff] (!%p891_p11)  ;;  %v659_v38 = vld [vmem:[#allocation2 + $0x40] sm:$0xff] (!%p891_p11) }
 0x132   : > { %638 = vst [vmem:[#allocation2 + $0x38] sm:$0xff] %v622_v11  ;;  %646 = vst [vmem:[#allocation2 + $0x78] sm:$0xff] %v630_v12  ;;  %v652_v19 = vld [vmem:[#allocation2 + $0x8] sm:$0xff] (!%p891_p11)  ;;  %v677_v26 = vadd.f32 (!%p891_p11), %v1172_v18, %v654_v23  ;;  %vm692_vm2 = vcmp.ge.f32.partialorder (!%p891_p11), %v676_v25, 0.0  ;;  %v708_v33 = vmul.f32 (!%p891_p11), 0.01, %v676_v25  ;;  %v682_v48 = vadd.f32 (!%p891_p11), %v1172_v18, %v659_v38 }
 0x133   : > { %636 = vst [vmem:[#allocation2 + $0x28] sm:$0xff] %v620_v15  ;;  %644 = vst [vmem:[#allocation2 + $0x68] sm:$0xff] %v628_v16  ;;  %v675_v21 = vadd.f32 (!%p891_p11), %v1172_v18, %v652_v19  ;;  %vm690_vm0 = vcmp.ge.f32.partialorder (!%p891_p11), %v674_v20, 0.0  ;;  %v706_v31 = vmul.f32 (!%p891_p11), 0.01, %v674_v20  ;;  %v660_v39 = vld [vmem:[#allocation2 + $0x48] sm:$0xff] (!%p891_p11)  ;;  %v684_v62 = vadd.f32 (!%p891_p11), %v1172_v18, %v661_v44 }
 0x134   : > { %vm693_vm3 = vcmp.ge.f32.partialorder %v677_v26, 0.0  ;;  %v709_v34 = vmul.f32 0.01, %v677_v26  ;;  %v724_v40 = vsel %vm692_vm2, %v676_v25, %v708_v33  ;;  %v662_v45 = vld [vmem:[#allocation2 + $0x58] sm:$0xff]  ;;  %v683_v49 = vadd.f32 %v1172_v18, %v660_v39 }
 0x135   : > { %vm691_vm1 = vcmp.ge.f32.partialorder %v675_v21, 0.0  ;;  %v707_v32 = vmul.f32 0.01, %v675_v21  ;;  %v722_v35 = vsel %vm690_vm0, %v674_v20, %v706_v31  ;;  %740 = vst [vmem:[%s1256_s3 + $0x10] sm:$0xff] %v724_v40  ;;  %vm698_vm8 = vcmp.ge.f32.partialorder %v682_v48, 0.0 }
 0x136   : > { %738 = vst [vmem:[%s1256_s3] sm:$0xff] %v722_v35  ;;  %v725_v41 = vsel %vm693_vm3, %v677_v26, %v709_v34  ;;  %v714_v56 = vmul.f32 0.01, %v682_v48  ;;  %vm699_vm9 = vcmp.ge.f32.partialorder %v683_v49, 0.0  ;;  %v715_v59 = vmul.f32 0.01, %v683_v49 }
 0x137   : > { %v657_v29 = vld [vmem:[#allocation2 + $0x30] sm:$0xff]  ;;  %v723_v36 = vsel %vm691_vm1, %v675_v21, %v707_v32  ;;  %741 = vst [vmem:[%s1256_s3 + $0x18] sm:$0xff] %v725_v41  ;;  %v685_v63 = vadd.f32 %v1172_v18, %v662_v45  ;;  %vm700_vm10 = vcmp.ge.f32.partialorder %v684_v62, 0.0  ;;  %v716_v5 = vmul.f32 0.01, %v684_v62 }
 0x138   : > { %v655_v24 = vld [vmem:[#allocation2 + $0x20] sm:$0xff]  ;;  %739 = vst [vmem:[%s1256_s3 + $0x8] sm:$0xff] %v723_v36  ;;  %v680_v43 = vadd.f32 %v1172_v18, %v657_v29  ;;  %v665_v52 = vld [vmem:[#allocation2 + $0x70] sm:$0xff]  ;;  %v730_v61 = vsel %vm698_vm8, %v682_v48, %v714_v56  ;;  %v731_v0 = vsel %vm699_vm9, %v683_v49, %v715_v59 }
 0x139   : > { %v678_v27 = vadd.f32 %v1172_v18, %v655_v24  ;;  %v658_v30 = vld [vmem:[#allocation2 + $0x38] sm:$0xff]  ;;  %v663_v50 = vld [vmem:[#allocation2 + $0x60] sm:$0xff]  ;;  %746 = vst [vmem:[%s1256_s3 + $0x40] sm:$0xff] %v730_v61  ;;  %v688_v3 = vadd.f32 %v1172_v18, %v665_v52  ;;  %747 = vst [vmem:[%s1256_s3 + $0x48] sm:$0xff] %v731_v0  ;;  %vm701_vm11 = vcmp.ge.f32.partialorder %v685_v63, 0.0  ;;  %v732_v9 = vsel %vm700_vm10, %v684_v62, %v716_v5 }
 0x13a   : > { %v656_v28 = vld [vmem:[#allocation2 + $0x28] sm:$0xff]  ;;  %v681_v47 = vadd.f32 %v1172_v18, %v658_v30  ;;  %vm696_vm6 = vcmp.ge.f32.partialorder %v680_v43, 0.0  ;;  %v712_v54 = vmul.f32 0.01, %v680_v43  ;;  %v686_v1 = vadd.f32 %v1172_v18, %v663_v50  ;;  %v666_v4 = vld [vmem:[#allocation2 + $0x78] sm:$0xff]  ;;  %748 = vst [vmem:[%s1256_s3 + $0x50] sm:$0xff] %v732_v9 }
 0x13b   : > { %vm694_vm4 = vcmp.ge.f32.partialorder %v678_v27, 0.0  ;;  %v710_v37 = vmul.f32 0.01, %v678_v27  ;;  %v679_v42 = vadd.f32 %v1172_v18, %v656_v28  ;;  %v664_v51 = vld [vmem:[#allocation2 + $0x68] sm:$0xff]  ;;  %v717_v6 = vmul.f32 0.01, %v685_v63 }
 0x13c   : > { %vm697_vm7 = vcmp.ge.f32.partialorder %v681_v47, 0.0  ;;  %v713_v55 = vmul.f32 0.01, %v681_v47  ;;  %v728_v58 = vsel %vm696_vm6, %v680_v43, %v712_v54  ;;  %v687_v2 = vadd.f32 %v1172_v18, %v664_v51 }
 0x13d   : > { %v726_v46 = vsel %vm694_vm4, %v678_v27, %v710_v37  ;;  %vm695_vm5 = vcmp.ge.f32.partialorder %v679_v42, 0.0  ;;  %v711_v53 = vmul.f32 0.01, %v679_v42  ;;  %744 = vst [vmem:[%s1256_s3 + $0x30] sm:$0xff] %v728_v58  ;;  %vm702_vm12 = vcmp.ge.f32.partialorder %v686_v1, 0.0 }
 0x13e   : > { %742 = vst [vmem:[%s1256_s3 + $0x20] sm:$0xff] %v726_v46  ;;  %v729_v60 = vsel %vm697_vm7, %v681_v47, %v713_v55  ;;  %v718_v7 = vmul.f32 0.01, %v686_v1  ;;  %vm703_vm13 = vcmp.ge.f32.partialorder %v687_v2, 0.0  ;;  %v719_v8 = vmul.f32 0.01, %v687_v2 }
 0x13f   : > { %v727_v57 = vsel %vm695_vm5, %v679_v42, %v711_v53  ;;  %745 = vst [vmem:[%s1256_s3 + $0x38] sm:$0xff] %v729_v60  ;;  %v733_v10 = vsel %vm701_vm11, %v685_v63, %v717_v6  ;;  %vm704_vm14 = vcmp.ge.f32.partialorder %v688_v3, 0.0  ;;  %v720_v11 = vmul.f32 0.01, %v688_v3 }
 0x140   : > { %743 = vst [vmem:[%s1256_s3 + $0x28] sm:$0xff] %v727_v57  ;;  %749 = vst [vmem:[%s1256_s3 + $0x58] sm:$0xff] %v733_v10  ;;  %v734_v12 = vsel %vm702_vm12, %v686_v1, %v718_v7  ;;  %v735_v13 = vsel %vm703_vm13, %v687_v2, %v719_v8  ;;  %v689_v14 = vadd.f32 %v1172_v18, %v666_v4 }
 0x141   : > { %750 = vst [vmem:[%s1256_s3 + $0x60] sm:$0xff] %v734_v12  ;;  %751 = vst [vmem:[%s1256_s3 + $0x68] sm:$0xff] %v735_v13  ;;  %v736_v15 = vsel %vm704_vm14, %v688_v3, %v720_v11 }
 0x142   : > { %752 = vst [vmem:[%s1256_s3 + $0x70] sm:$0xff] %v736_v15  ;;  %vm705_vm15 = vcmp.ge.f32.partialorder %v689_v14, 0.0  ;;  %v721_v16 = vmul.f32 0.01, %v689_v14 }
 0x144   : > { %v737_v17 = vsel %vm705_vm15, %v689_v14, %v721_v16 }
 0x145   : > { %753 = vst [vmem:[%s1256_s3 + $0x78] sm:$0xff] %v737_v17 }
 0x146 PF: > { %s13_s16 = sadd.s32 1, %s1056_s16   ;;  %s1257_s12 = smov %s1044_s13 }
 0x147   : > { %p10_p12 = scmp.ge.s32.totalorder %s13_s16, 7   ;;  %s1258_s13 = smov %s1114_s20 }
 0x148   : > { %s1259_s14 = smov %s1052_s15  ;;  %s1260_s15 = smov %s1262_s17 }
 0x149   :  { %12 = sbr.rel (!%p10_p12) target bundleno = 3 (0x3), region = 122 }

// kernel: convswarm_forward.39
= control target key start
LH: loop header
LB: loop body
LE: loop exit
PB: predicated region body
PF: predicated region fallthrough
CT: control target
= control target key end

     0   :  { %s1195_s15 = smov 0   ;;  %s1197_s16 = smov 0   ;;  %s1417_s0 = inlined_call_operand.vmem [shape: bf16[128,640], index: 0, kind: input, shape index: {}]   ;;  %s1418_s1 = inlined_call_operand.vmem [shape: bf16[640,128], index: 1, kind: input, shape index: {}]   ;;  %s1419_s2 = inlined_call_operand.vmem [shape: f32[1,128], index: 2, kind: input, shape index: {}]   ;;  %s1420_s3 = inlined_call_operand.vmem [shape: f32[128,128], index: 3, kind: input, shape index: {}]   ;;  %s1421_s4 = inlined_call_operand.vmem [shape: f32[128,128], index: 4, kind: output, shape index: {}]  }
   0x1   :  { %s1199_s17 = smov 0   ;;  %s1201_s18 = smov 0  }
   0x2   :  { %s1203_s19 = smov 0  }
   0x3 LB: > { %s26_s20 = sadd.s32 1, %s1163_s18  ;;  %p49_p1 = scmp.ne.s32.totalorder %s1155_s16, %s1151_s15  ;;  %s1167_s19 = sphi %s1203_s19, %s14_s19   ;;  %s1163_s18 = sphi %s1201_s18, %s1425_s18   ;;  %s1159_s17 = sphi %s1199_s17, %s1424_s17   ;;  %s1155_s16 = sphi %s1197_s16, %s1423_s16   ;;  %s1151_s15 = sphi %s1195_s15, %s1422_s15  }
   0x4   : > { %p27_p0 = scmp.ge.s32.totalorder %s26_s20, 5  ;;  %p50_p2 = scmp.eq.s32.totalorder %s1167_s19, 0 }
   0x5   : > { %s42_s22 = sadd.s32 1, %s1155_s16  ;;  %p978_p5 = scmp.ge.s32.totalorder %s1167_s19, 5 }
   0x6   : > { %s1427_s20 = smov (%p27_p0, %s26_s20), 0  ;;  %p51_p3 = por %p50_p2, %p49_p1 }
   0x7   : > { %s38_s21 = ssub.s32 %s1163_s18, %s1427_s20  ;;  %203 = sbr.rel (%p978_p5) target bundleno = 28 (0x1c), region = 24 }
   0x8   : > { %p40_p4 = scmp.eq.s32.totalorder %s38_s21, 0 }
   0xa   : > { %s1230_s23 = scalar_select %p40_p4, %s1155_s16, %s42_s22  }
   0xe   : > { %206 = sbr.rel (!%p51_p3) target bundleno = 28 (0x1c), region = 28  ;;  %s208_s24 = sand.u32 (%p51_p3), 1, %s1155_s16  }
   0xf   : > { %s980_s25 = sshll.u32 (%p51_p3), %s1163_s18, 2  ;;  %s979_s26 = sshll.u32 (%p51_p3), %s208_s24, 6 }
  0x10   : > { %s1238_s29 = scalar_lea.vmem (%p51_p3), %s1417_s0, %s980_s25  ;;  %s210_s30 = scalar_lea.vmem (%p51_p3), [#allocation3], %s979_s26 }
  0x11   : > { %v231_v0 = vld [vmem:[%s1238_s29] sm:$0xf] (%p51_p3)  ;;  %v233_v1 = vld [vmem:[%s1238_s29 + $0x14] sm:$0xf] (%p51_p3)  ;;  %v235_v2 = vld [vmem:[%s1238_s29 + $0x28] sm:$0xf] (%p51_p3) }
  0x12   : > { %232 = vst [vmem:[%s210_s30] sm:$0xf] (%p51_p3), %v231_v0  ;;  %234 = vst [vmem:[%s210_s30 + $0x4] sm:$0xf] (%p51_p3), %v233_v1  ;;  %v237_v3 = vld [vmem:[%s1238_s29 + $0x3c] sm:$0xf] (%p51_p3) }
  0x13   : > { %v239_v4 = vld [vmem:[%s1238_s29 + $0x50] sm:$0xf] (%p51_p3)  ;;  %236 = vst [vmem:[%s210_s30 + $0x8] sm:$0xf] (%p51_p3), %v235_v2  ;;  %238 = vst [vmem:[%s210_s30 + $0xc] sm:$0xf] (%p51_p3), %v237_v3 }
  0x14   : > { %240 = vst [vmem:[%s210_s30 + $0x10] sm:$0xf] (%p51_p3), %v239_v4  ;;  %v241_v5 = vld [vmem:[%s1238_s29 + $0x64] sm:$0xf] (%p51_p3)  ;;  %v243_v6 = vld [vmem:[%s1238_s29 + $0x78] sm:$0xf] (%p51_p3) }
  0x15   : > { %v245_v7 = vld [vmem:[%s1238_s29 + $0x8c] sm:$0xf]  ;;  %242 = vst [vmem:[%s210_s30 + $0x14] sm:$0xf] %v241_v5  ;;  %244 = vst [vmem:[%s210_s30 + $0x18] sm:$0xf] %v243_v6 }
  0x16   : > { %246 = vst [vmem:[%s210_s30 + $0x1c] sm:$0xf] %v245_v7  ;;  %v247_v8 = vld [vmem:[%s1238_s29 + $0xa0] sm:$0xf]  ;;  %v249_v9 = vld [vmem:[%s1238_s29 + $0xb4] sm:$0xf] }
  0x17   : > { %v251_v10 = vld [vmem:[%s1238_s29 + $0xc8] sm:$0xf]  ;;  %248 = vst [vmem:[%s210_s30 + $0x20] sm:$0xf] %v247_v8  ;;  %250 = vst [vmem:[%s210_s30 + $0x24] sm:$0xf] %v249_v9 }
  0x18   : > { %252 = vst [vmem:[%s210_s30 + $0x28] sm:$0xf] %v251_v10  ;;  %v253_v11 = vld [vmem:[%s1238_s29 + $0xdc] sm:$0xf]  ;;  %v255_v12 = vld [vmem:[%s1238_s29 + $0xf0] sm:$0xf] }
  0x19   : > { %v257_v13 = vld [vmem:[%s1238_s29 + $0x104] sm:$0xf]  ;;  %254 = vst [vmem:[%s210_s30 + $0x2c] sm:$0xf] %v253_v11  ;;  %256 = vst [vmem:[%s210_s30 + $0x30] sm:$0xf] %v255_v12 }
  0x1a   : > { %258 = vst [vmem:[%s210_s30 + $0x34] sm:$0xf] %v257_v13  ;;  %v259_v14 = vld [vmem:[%s1238_s29 + $0x118] sm:$0xf]  ;;  %v261_v15 = vld [vmem:[%s1238_s29 + $0x12c] sm:$0xf] }
  0x1b   : > { %260 = vst [vmem:[%s210_s30 + $0x38] sm:$0xf] %v259_v14  ;;  %262 = vst [vmem:[%s210_s30 + $0x3c] sm:$0xf] %v261_v15 }
  0x1c PF: > { %p981_p6 = scmp.ge.s32.totalorder %s1167_s19, 1  ;;  %p328_p7 = scmp.lt.s32.totalorder %s1167_s19, 6 }
  0x1e   : > { %p329_p8 = pnand %p981_p6, %p328_p7 }
  0x1f   : > { %s335_s5 = sand.u32 (!%p329_p8), 1, %s1151_s15   ;;  %s983_s6 = sshll.u32 (!%p329_p8), %s1159_s17, 4 }
  0x20   : > { %332 = sbr.rel (%p329_p8) target bundleno = 330 (0x14a), region = 73  ;;  %s982_s7 = sshll.u32 (!%p329_p8), %s335_s5, 6 }
  0x21   : > { %p384_p9 = scmp.lt.s32.totalorder (!%p329_p8), %s983_s6, 79  ;;  %s1265_s12 = scalar_lea.vmem (!%p329_p8), [#allocation3], %s982_s7 }
  0x22   : > { %p985_p10 = scmp.ne.s32.totalorder (!%p329_p8), %s1159_s17, 0 }
  0x27   : > { %s1429_s6 = smov (!%p384_p9, %s983_s6), 79  ;;  %417 = sbr.rel (%p985_p10) target bundleno = 49 (0x31), region = 81 }
  0x28   : > { %s984_s8 = sshll.u32 %s1429_s6, 2  ;;  %v1169_v16 = vmov (!%p985_p10), 0.0  }
  0x29   : > { %s1263_s11 = scalar_lea.vmem %s1418_s1, %s984_s8  ;;  %418 = vst [vmem:[#allocation2] sm:$0xff] (!%p985_p10), %v1169_v16  ;;  %419 = vst [vmem:[#allocation2 + $0x8] sm:$0xff] (!%p985_p10), %v1169_v16 }
  0x2a   : > { %420 = vst [vmem:[#allocation2 + $0x10] sm:$0xff] (!%p985_p10), %v1169_v16  ;;  %421 = vst [vmem:[#allocation2 + $0x18] sm:$0xff] (!%p985_p10), %v1169_v16 }
  0x2b   : > { %422 = vst [vmem:[#allocation2 + $0x20] sm:$0xff] (!%p985_p10), %v1169_v16  ;;  %423 = vst [vmem:[#allocation2 + $0x28] sm:$0xff] (!%p985_p10), %v1169_v16 }
  0x2c   : > { %424 = vst [vmem:[#allocation2 + $0x30] sm:$0xff] (!%p985_p10), %v1169_v16  ;;  %425 = vst [vmem:[#allocation2 + $0x38] sm:$0xff] (!%p985_p10), %v1169_v16 }
  0x2d   : > { %426 = vst [vmem:[#allocation2 + $0x40] sm:$0xff] (!%p985_p10), %v1169_v16  ;;  %427 = vst [vmem:[#allocation2 + $0x48] sm:$0xff] (!%p985_p10), %v1169_v16 }
  0x2e   : > { %428 = vst [vmem:[#allocation2 + $0x50] sm:$0xff] %v1169_v16  ;;  %429 = vst [vmem:[#allocation2 + $0x58] sm:$0xff] %v1169_v16 }
  0x2f   : > { %430 = vst [vmem:[#allocation2 + $0x60] sm:$0xff] %v1169_v16  ;;  %431 = vst [vmem:[#allocation2 + $0x68] sm:$0xff] %v1169_v16 }
  0x30   : > { %432 = vst [vmem:[#allocation2 + $0x70] sm:$0xff] %v1169_v16  ;;  %433 = vst [vmem:[#allocation2 + $0x78] sm:$0xff] %v1169_v16 }
  0x31 PF: > { %v1113_v17 = vld [vmem:[%s1263_s11] sm:$0xff]   ;;  %v1114_v18 = vld [vmem:[%s1263_s11 + $0x8] sm:$0xff]   ;;  %v1115_v19 = vld [vmem:[%s1263_s11 + $0x10] sm:$0xff]   ;;  %p1002_p11 = scmp.ne.s32.totalorder %s1159_s17, 4 }
  0x32   : > { %1024 = vmatprep.subr.bf16.mxu0 %v1113_v17  ;;  %1056 = vmatprep.subr.bf16.mxu1 %v1113_v17  ;;  %v1116_v20 = vld [vmem:[%s1263_s11 + $0x18] sm:$0xff]   ;;  %v1121_v21 = vld [vmem:[%s1265_s12] sm:$0xff]   ;;  %v1118_v24 = vld [vmem:[%s1263_s11 + $0x28] sm:$0xff]  }
  0x33   : > { %1025 = vmatpush3.bf16.msra.mxu0 %v1113_v17  ;;  %1064 = vmatpush3.bf16.msra.mxu1 %v1113_v17  ;;  %v1122_v22 = vld [vmem:[%s1265_s12 + $0x20] sm:$0xff]   ;;  %v1119_v25 = vld [vmem:[%s1263_s11 + $0x30] sm:$0xff]   ;;  %v1120_v26 = vld [vmem:[%s1263_s11 + $0x38] sm:$0xff]  }
  0x34   : > { %1026 = vmatprep.subr.bf16.mxu0 %v1114_v18  ;;  %1057 = vmatprep.subr.bf16.mxu1 %v1114_v18  ;;  %v1117_v23 = vld [vmem:[%s1263_s11 + $0x20] sm:$0xff]   ;;  %v1123_v27 = vld [vmem:[%s1265_s12 + $0x8] sm:$0xff]   ;;  %v1125_v29 = vld [vmem:[%s1265_s12 + $0x10] sm:$0xff]  }
  0x35   : > { %1040 = vmatprep.mubr.bf16.mxu0 %v1121_v21  ;;  %1048 = vmatprep.mubr.bf16.mxu1 %v1122_v22  ;;  %v1124_v28 = vld [vmem:[%s1265_s12 + $0x28] sm:$0xff]   ;;  %v1126_v30 = vld [vmem:[%s1265_s12 + $0x30] sm:$0xff]   ;;  %v1127_v31 = vld [vmem:[%s1265_s12 + $0x18] sm:$0xff]  }
  0x36   : > { %v1128_v32 = vld [vmem:[%s1265_s12 + $0x38] sm:$0xff]   ;;  %v436_v33 = vld [vmem:[#allocation2 + $0x10] sm:$0xff]  ;;  %v434_v35 = vld [vmem:[#allocation2] sm:$0xff] }
  0x37   : > { %1027 = vmatpush3.bf16.msra.mxu0 %v1114_v18  ;;  %1065 = vmatpush3.bf16.msra.mxu1 %v1114_v18  ;;  %v444_v34 = vld [vmem:[#allocation2 + $0x50] sm:$0xff]  ;;  %v442_v36 = vld [vmem:[#allocation2 + $0x40] sm:$0xff]  ;;  %v437_v39 = vld [vmem:[#allocation2 + $0x18] sm:$0xff] }
  0x38   : > { %1028 = vmatprep.subr.bf16.mxu0 %v1115_v19  ;;  %1058 = vmatprep.subr.bf16.mxu1 %v1115_v19  ;;  %v445_v40 = vld [vmem:[#allocation2 + $0x58] sm:$0xff]  ;;  %v435_v45 = vld [vmem:[#allocation2 + $0x8] sm:$0xff]  ;;  %v440_v57 = vld [vmem:[#allocation2 + $0x30] sm:$0xff] }
  0x39   : > { %v443_v46 = vld [vmem:[#allocation2 + $0x48] sm:$0xff]  ;;  %v448_v58 = vld [vmem:[#allocation2 + $0x70] sm:$0xff]  ;;  %v438_v59 = vld [vmem:[#allocation2 + $0x20] sm:$0xff] }
  0x3a   : > { %v446_v60 = vld [vmem:[#allocation2 + $0x60] sm:$0xff]  ;;  %v441_v63 = vld [vmem:[#allocation2 + $0x38] sm:$0xff]  ;;  %v439_v5 = vld [vmem:[#allocation2 + $0x28] sm:$0xff] }
  0x3b   : > { %1029 = vmatpush3.bf16.msra.mxu0 %v1115_v19  ;;  %1066 = vmatpush3.bf16.msra.mxu1 %v1115_v19  ;;  %v449_v0 = vld [vmem:[#allocation2 + $0x78] sm:$0xff]  ;;  %v447_v6 = vld [vmem:[#allocation2 + $0x68] sm:$0xff]  ;;  %v1288_v18 = vld [vmem:[%s1419_s2] ss:$0 sm:$0xff] (!%p1002_p11) }
  0x3c   : > { %1030 = vmatprep.subr.bf16.mxu0 %v1116_v20  ;;  %1059 = vmatprep.subr.bf16.mxu1 %v1116_v20  ;;  %v728_v19 = vld [vmem:[%s1420_s3] sm:$0xff] (!%p1002_p11)  ;;  %v729_v22 = vld [vmem:[%s1420_s3 + $0x8] sm:$0xff] (!%p1002_p11) }
  0x3f   : > { %1031 = vmatpush3.bf16.msra.mxu0 %v1116_v20  ;;  %1067 = vmatpush3.bf16.msra.mxu1 %v1116_v20 }
  0x40   : > { %1032 = vmatprep.subr.bf16.mxu0 %v1117_v23  ;;  %1060 = vmatprep.subr.bf16.mxu1 %v1117_v23 }
  0x43   : > { %1033 = vmatpush3.bf16.msra.mxu0 %v1117_v23  ;;  %1068 = vmatpush3.bf16.msra.mxu1 %v1117_v23 }
  0x44   : > { %1034 = vmatprep.subr.bf16.mxu0 %v1118_v24  ;;  %1061 = vmatprep.subr.bf16.mxu1 %v1118_v24 }
  0x47   : > { %1035 = vmatpush3.bf16.msra.mxu0 %v1118_v24  ;;  %1069 = vmatpush3.bf16.msra.mxu1 %v1118_v24 }
  0x48   : > { %1036 = vmatprep.subr.bf16.mxu0 %v1119_v25  ;;  %1062 = vmatprep.subr.bf16.mxu1 %v1119_v25 }
  0x4b   : > { %1037 = vmatpush3.bf16.msra.mxu0 %v1119_v25  ;;  %1070 = vmatpush3.bf16.msra.mxu1 %v1119_v25  ;;  %v730_v25 = vld [vmem:[%s1420_s3 + $0x10] sm:$0xff] (!%p1002_p11) }
  0x4c   : > { %1038 = vmatprep.subr.bf16.mxu0 %v1120_v26  ;;  %1063 = vmatprep.subr.bf16.mxu1 %v1120_v26 }
  0x4f   : > { %1039 = vmatpush3.bf16.msra.mxu0 %v1120_v26  ;;  %1071 = vmatpush3.bf16.msra.mxu1 %v1120_v26 }
  0x52   : > { %1041 = vmatmul.mubr.bf16.vlgmr.msra.gmra.mrb[0].mxu0 %v1123_v27  ;;  %1049 = vmatmul.mubr.bf16.vlgmr.msra.gmra.mrb[0].mxu1 %v1124_v28  ;;  %v731_v28 = vld [vmem:[%s1420_s3 + $0x18] sm:$0xff] (!%p1002_p11) }
  0x53   : > { %1044 = vmatprep.mubr.bf16.mxu0 %v1125_v29  ;;  %1052 = vmatprep.mubr.bf16.mxu1 %v1126_v30 }
  0x5a   : > { %1045 = vmatmul.mubr.bf16.gmra.mrb[4].mxu0 %v1127_v31  ;;  %1053 = vmatmul.mubr.bf16.gmra.mrb[4].mxu1 %v1128_v32 }
 0x125   : > { %v1042_v37 = vpop.f32.mrb[0].mxu0  ;;  %v1050_v38 = vpop.f32.mrb[0].mxu1 }
 0x126   : > { %v677_v41 = vadd.f32 %v1042_v37, %v436_v33  ;;  %v685_v42 = vadd.f32 %v1050_v38, %v444_v34  ;;  %v612_v43 = vpop.f32.mrb[1].mxu0  ;;  %v644_v44 = vpop.f32.mrb[1].mxu1 }
 0x127   : > { %v675_v47 = vadd.f32 %v612_v43, %v434_v35  ;;  %v683_v48 = vadd.f32 %v644_v44, %v442_v36  ;;  %v1043_v49 = vpop.f32.mrb[2].mxu0  ;;  %v1051_v50 = vpop.f32.mrb[2].mxu1  ;;  %v732_v35 = vld [vmem:[%s1420_s3 + $0x20] sm:$0xff] (!%p1002_p11) }
 0x128   : > { %693 = vst [vmem:[#allocation2 + $0x10] sm:$0xff] %v677_v41  ;;  %701 = vst [vmem:[#allocation2 + $0x50] sm:$0xff] %v685_v42  ;;  %v678_v51 = vadd.f32 %v1043_v49, %v437_v39  ;;  %v686_v52 = vadd.f32 %v1051_v50, %v445_v40  ;;  %v615_v53 = vpop.f32.mrb[3].mxu0  ;;  %v647_v54 = vpop.f32.mrb[3].mxu1  ;;  %v733_v41 = vld [vmem:[%s1420_s3 + $0x28] sm:$0xff] (!%p1002_p11)  ;;  %v734_v42 = vld [vmem:[%s1420_s3 + $0x30] sm:$0xff] (!%p1002_p11) }
 0x129   : > { %691 = vst [vmem:[#allocation2] sm:$0xff] %v675_v47  ;;  %699 = vst [vmem:[#allocation2 + $0x40] sm:$0xff] %v683_v48  ;;  %v676_v55 = vadd.f32 %v615_v53, %v435_v45  ;;  %v684_v56 = vadd.f32 %v647_v54, %v443_v46  ;;  %v735_v50 = vld [vmem:[%s1420_s3 + $0x38] sm:$0xff] (!%p1002_p11) }
 0x12a   : > { %694 = vst [vmem:[#allocation2 + $0x18] sm:$0xff] %v678_v51  ;;  %702 = vst [vmem:[#allocation2 + $0x58] sm:$0xff] %v686_v52 }
 0x12b   : > { %692 = vst [vmem:[#allocation2 + $0x8] sm:$0xff] %v676_v55  ;;  %700 = vst [vmem:[#allocation2 + $0x48] sm:$0xff] %v684_v56  ;;  %v736_v56 = vld [vmem:[%s1420_s3 + $0x40] sm:$0xff] (!%p1002_p11) }
 0x12d   : > { %v1046_v61 = vpop.f32.mrb[4].mxu0  ;;  %v1054_v62 = vpop.f32.mrb[4].mxu1  ;;  %710 = sbr.rel (%p1002_p11) target bundleno = 330 (0x14a), region = 85 }
 0x12e   : > { %v681_v1 = vadd.f32 %v1046_v61, %v440_v57  ;;  %v689_v2 = vadd.f32 %v1054_v62, %v448_v58  ;;  %v628_v3 = vpop.f32.mrb[5].mxu0  ;;  %v660_v4 = vpop.f32.mrb[5].mxu1  ;;  %v737_v58 = vld [vmem:[%s1420_s3 + $0x48] sm:$0xff] (!%p1002_p11) }
 0x12f   : > { %v679_v7 = vadd.f32 %v628_v3, %v438_v59  ;;  %v687_v8 = vadd.f32 %v660_v4, %v446_v60  ;;  %v1047_v9 = vpop.f32.mrb[6].mxu0  ;;  %v1055_v10 = vpop.f32.mrb[6].mxu1  ;;  %v713_v23 = vld [vmem:[#allocation2 + $0x10] sm:$0xff] (!%p1002_p11) }
 0x130   : > { %697 = vst [vmem:[#allocation2 + $0x30] sm:$0xff] %v681_v1  ;;  %705 = vst [vmem:[#allocation2 + $0x70] sm:$0xff] %v689_v2  ;;  %v682_v11 = vadd.f32 %v1047_v9, %v441_v63  ;;  %v690_v12 = vadd.f32 %v1055_v10, %v449_v0  ;;  %v631_v13 = vpop.f32.mrb[7].mxu0  ;;  %v663_v14 = vpop.f32.mrb[7].mxu1  ;;  %v711_v17 = vld [vmem:[#allocation2] sm:$0xff] (!%p1002_p11)  ;;  %v752_v26 = vadd.f32 (!%p1002_p11), %v1288_v18, %v713_v23  ;;  %v721_v62 = vld [vmem:[#allocation2 + $0x50] sm:$0xff] (!%p1002_p11) }
 0x131   : > { %695 = vst [vmem:[#allocation2 + $0x20] sm:$0xff] %v679_v7  ;;  %703 = vst [vmem:[#allocation2 + $0x60] sm:$0xff] %v687_v8  ;;  %v680_v15 = vadd.f32 %v631_v13, %v439_v5  ;;  %v688_v16 = vadd.f32 %v663_v14, %v447_v6  ;;  %v750_v20 = vadd.f32 (!%p1002_p11), %v1288_v18, %v711_v17  ;;  %v714_v27 = vld [vmem:[#allocation2 + $0x18] sm:$0xff] (!%p1002_p11)  ;;  %v719_v51 = vld [vmem:[#allocation2 + $0x40] sm:$0xff] (!%p1002_p11) }
 0x132   : > { %698 = vst [vmem:[#allocation2 + $0x38] sm:$0xff] %v682_v11  ;;  %706 = vst [vmem:[#allocation2 + $0x78] sm:$0xff] %v690_v12  ;;  %v712_v21 = vld [vmem:[#allocation2 + $0x8] sm:$0xff] (!%p1002_p11)  ;;  %v753_v30 = vadd.f32 (!%p1002_p11), %v1288_v18, %v714_v27  ;;  %v768_v34 = vadd.f32 (!%p1002_p11), %v752_v26, %v730_v25  ;;  %v738_v63 = vld [vmem:[%s1420_s3 + $0x50] sm:$0xff] (!%p1002_p11)  ;;  %v758_v5 = vadd.f32 (!%p1002_p11), %v1288_v18, %v719_v51 }
 0x133   : > { %696 = vst [vmem:[#allocation2 + $0x28] sm:$0xff] %v680_v15  ;;  %704 = vst [vmem:[#allocation2 + $0x68] sm:$0xff] %v688_v16  ;;  %v751_v24 = vadd.f32 (!%p1002_p11), %v1288_v18, %v712_v21  ;;  %v766_v29 = vadd.f32 (!%p1002_p11), %v750_v20, %v728_v19  ;;  %v720_v57 = vld [vmem:[#allocation2 + $0x48] sm:$0xff] (!%p1002_p11)  ;;  %v722_v0 = vld [vmem:[#allocation2 + $0x58] sm:$0xff] (!%p1002_p11)  ;;  %v760_v12 = vadd.f32 (!%p1002_p11), %v1288_v18, %v721_v62 }
 0x134   : > { %v769_v40 = vadd.f32 %v753_v30, %v731_v28  ;;  %vm784_vm2 = vcmp.ge.f32.partialorder %v768_v34, 0.0  ;;  %v800_v46 = vmul.f32 0.01, %v768_v34  ;;  %v759_v6 = vadd.f32 %v1288_v18, %v720_v57  ;;  %v739_v7 = vld [vmem:[%s1420_s3 + $0x58] sm:$0xff]  ;;  %v740_v20 = vld [vmem:[%s1420_s3 + $0x60] sm:$0xff] }
 0x135   : > { %v767_v33 = vadd.f32 %v751_v24, %v729_v22  ;;  %vm782_vm0 = vcmp.ge.f32.partialorder %v766_v29, 0.0  ;;  %v798_v39 = vmul.f32 0.01, %v766_v29  ;;  %v761_v13 = vadd.f32 %v1288_v18, %v722_v0  ;;  %v741_v22 = vld [vmem:[%s1420_s3 + $0x68] sm:$0xff] }
 0x136   : > { %vm785_vm3 = vcmp.ge.f32.partialorder %v769_v40, 0.0  ;;  %v801_v48 = vmul.f32 0.01, %v769_v40  ;;  %v816_v53 = vsel %vm784_vm2, %v768_v34, %v800_v46  ;;  %v774_v15 = vadd.f32 %v758_v5, %v736_v56  ;;  %v742_v34 = vld [vmem:[%s1420_s3 + $0x70] sm:$0xff] }
 0x137   : > { %v717_v38 = vld [vmem:[#allocation2 + $0x30] sm:$0xff]  ;;  %vm783_vm1 = vcmp.ge.f32.partialorder %v767_v33, 0.0  ;;  %v799_v45 = vmul.f32 0.01, %v767_v33  ;;  %v814_v47 = vsel %vm782_vm0, %v766_v29, %v798_v39  ;;  %832 = vst [vmem:[%s1421_s4 + $0x10] sm:$0xff] %v816_v53  ;;  %v775_v16 = vadd.f32 %v759_v6, %v737_v58 }
 0x138   : > { %v715_v31 = vld [vmem:[#allocation2 + $0x20] sm:$0xff]  ;;  %v756_v43 = vadd.f32 %v1288_v18, %v717_v38  ;;  %830 = vst [vmem:[%s1421_s4] sm:$0xff] %v814_v47  ;;  %v817_v59 = vsel %vm785_vm3, %v769_v40, %v801_v48  ;;  %v776_v17 = vadd.f32 %v760_v12, %v738_v63  ;;  %v777_v19 = vadd.f32 %v761_v13, %v739_v7  ;;  %v725_v26 = vld [vmem:[#allocation2 + $0x70] sm:$0xff] }
 0x139   : > { %v754_v36 = vadd.f32 %v1288_v18, %v715_v31  ;;  %v718_v44 = vld [vmem:[#allocation2 + $0x38] sm:$0xff]  ;;  %v815_v52 = vsel %vm783_vm1, %v767_v33, %v799_v45  ;;  %833 = vst [vmem:[%s1421_s4 + $0x18] sm:$0xff] %v817_v59  ;;  %v723_v8 = vld [vmem:[#allocation2 + $0x60] sm:$0xff]  ;;  %vm790_vm8 = vcmp.ge.f32.partialorder %v774_v15, 0.0  ;;  %v806_v25 = vmul.f32 0.01, %v774_v15 }
 0x13a   : > { %v716_v32 = vld [vmem:[#allocation2 + $0x28] sm:$0xff]  ;;  %v772_v55 = vadd.f32 %v756_v43, %v734_v42  ;;  %831 = vst [vmem:[%s1421_s4 + $0x8] sm:$0xff] %v815_v52  ;;  %v757_v61 = vadd.f32 %v1288_v18, %v718_v44  ;;  %v762_v21 = vadd.f32 %v1288_v18, %v723_v8  ;;  %vm791_vm9 = vcmp.ge.f32.partialorder %v775_v16, 0.0  ;;  %v726_v27 = vld [vmem:[#allocation2 + $0x78] sm:$0xff] }
 0x13b   : > { %v755_v37 = vadd.f32 %v1288_v18, %v716_v32  ;;  %v770_v49 = vadd.f32 %v754_v36, %v732_v35  ;;  %v724_v9 = vld [vmem:[#allocation2 + $0x68] sm:$0xff]  ;;  %v807_v28 = vmul.f32 0.01, %v775_v16  ;;  %vm792_vm10 = vcmp.ge.f32.partialorder %v776_v17, 0.0  ;;  %v743_v35 = vld [vmem:[%s1420_s3 + $0x78] sm:$0xff] }
 0x13c   : > { %vm788_vm6 = vcmp.ge.f32.partialorder %v772_v55, 0.0  ;;  %v804_v2 = vmul.f32 0.01, %v772_v55  ;;  %v773_v4 = vadd.f32 %v757_v61, %v735_v50  ;;  %v763_v23 = vadd.f32 %v1288_v18, %v724_v9 }
 0x13d   : > { %v771_v54 = vadd.f32 %v755_v37, %v733_v41  ;;  %vm786_vm4 = vcmp.ge.f32.partialorder %v770_v49, 0.0  ;;  %v802_v60 = vmul.f32 0.01, %v770_v49  ;;  %v808_v29 = vmul.f32 0.01, %v776_v17 }
 0x13e   : > { %v820_v11 = vsel %vm788_vm6, %v772_v55, %v804_v2  ;;  %vm789_vm7 = vcmp.ge.f32.partialorder %v773_v4, 0.0  ;;  %v805_v14 = vmul.f32 0.01, %v773_v4  ;;  %vm793_vm11 = vcmp.ge.f32.partialorder %v777_v19, 0.0 }
 0x13f   : > { %vm787_vm5 = vcmp.ge.f32.partialorder %v771_v54, 0.0  ;;  %v803_v1 = vmul.f32 0.01, %v771_v54  ;;  %v818_v3 = vsel %vm786_vm4, %v770_v49, %v802_v60  ;;  %836 = vst [vmem:[%s1421_s4 + $0x30] sm:$0xff] %v820_v11  ;;  %v822_v30 = vsel %vm790_vm8, %v774_v15, %v806_v25 }
 0x140   : > { %834 = vst [vmem:[%s1421_s4 + $0x20] sm:$0xff] %v818_v3  ;;  %v821_v24 = vsel %vm789_vm7, %v773_v4, %v805_v14  ;;  %v809_v31 = vmul.f32 0.01, %v777_v19  ;;  %v778_v32 = vadd.f32 %v762_v21, %v740_v20  ;;  %v779_v33 = vadd.f32 %v763_v23, %v741_v22  ;;  %838 = vst [vmem:[%s1421_s4 + $0x40] sm:$0xff] %v822_v30 }
 0x141   : > { %v819_v10 = vsel %vm787_vm5, %v771_v54, %v803_v1  ;;  %837 = vst [vmem:[%s1421_s4 + $0x38] sm:$0xff] %v821_v24  ;;  %v823_v36 = vsel %vm791_vm9, %v775_v16, %v807_v28  ;;  %v824_v37 = vsel %vm792_vm10, %v776_v17, %v808_v29  ;;  %v764_v38 = vadd.f32 %v1288_v18, %v725_v26 }
 0x142   : > { %835 = vst [vmem:[%s1421_s4 + $0x28] sm:$0xff] %v819_v10  ;;  %v765_v39 = vadd.f32 %v1288_v18, %v726_v27  ;;  %839 = vst [vmem:[%s1421_s4 + $0x48] sm:$0xff] %v823_v36  ;;  %v825_v40 = vsel %vm793_vm11, %v777_v19, %v809_v31  ;;  %vm794_vm12 = vcmp.ge.f32.partialorder %v778_v32, 0.0  ;;  %v810_v41 = vmul.f32 0.01, %v778_v32 }
 0x143   : > { %840 = vst [vmem:[%s1421_s4 + $0x50] sm:$0xff] %v824_v37  ;;  %vm795_vm13 = vcmp.ge.f32.partialorder %v779_v33, 0.0  ;;  %841 = vst [vmem:[%s1421_s4 + $0x58] sm:$0xff] %v825_v40  ;;  %v811_v42 = vmul.f32 0.01, %v779_v33  ;;  %v780_v43 = vadd.f32 %v764_v38, %v742_v34 }
 0x144   : > { %v781_v44 = vadd.f32 %v765_v39, %v743_v35  ;;  %v826_v18 = vsel %vm794_vm12, %v778_v32, %v810_v41 }
 0x145   : > { %842 = vst [vmem:[%s1421_s4 + $0x60] sm:$0xff] %v826_v18  ;;  %v827_v45 = vsel %vm795_vm13, %v779_v33, %v811_v42  ;;  %vm796_vm14 = vcmp.ge.f32.partialorder %v780_v43, 0.0  ;;  %v812_v46 = vmul.f32 0.01, %v780_v43 }
 0x146   : > { %vm797_vm15 = vcmp.ge.f32.partialorder %v781_v44, 0.0  ;;  %843 = vst [vmem:[%s1421_s4 + $0x68] sm:$0xff] %v827_v45  ;;  %v813_v47 = vmul.f32 0.01, %v781_v44 }
 0x147   : > { %v828_v48 = vsel %vm796_vm14, %v780_v43, %v812_v46 }
 0x148   : > { %844 = vst [vmem:[%s1421_s4 + $0x70] sm:$0xff] %v828_v48  ;;  %v829_v49 = vsel %vm797_vm15, %v781_v44, %v813_v47 }
 0x149   : > { %845 = vst [vmem:[%s1421_s4 + $0x78] sm:$0xff] %v829_v49 }
 0x14a PF: > { %s14_s19 = sadd.s32 1, %s1167_s19   ;;  %s1422_s15 = smov %s1155_s16 }
 0x14b   : > { %p11_p12 = scmp.ge.s32.totalorder %s14_s19, 7   ;;  %s1423_s16 = smov %s1230_s23 }
 0x14c   : > { %s1424_s17 = smov %s1163_s18  ;;  %s1425_s18 = smov %s1427_s20 }
 0x14d   :  { %13 = sbr.rel (!%p11_p12) target bundleno = 3 (0x3), region = 129 }

// kernel: convswarm_forward.44
= control target key start
LH: loop header
LB: loop body
LE: loop exit
PB: predicated region body
PF: predicated region fallthrough
CT: control target
= control target key end

     0   :  { %s769_s12 = smov 0   ;;  %s771_s13 = smov 0   ;;  %s868_s0 = inlined_call_operand.vmem [shape: bf16[32,640], index: 0, kind: input, shape index: {}]   ;;  %s869_s1 = inlined_call_operand.vmem [shape: bf16[640,128], index: 1, kind: input, shape index: {}]   ;;  %s870_s2 = inlined_call_operand.vmem [shape: f32[1,128], index: 2, kind: input, shape index: {}]   ;;  %s871_s3 = inlined_call_operand.vmem [shape: f32[32,128], index: 3, kind: output, shape index: {}]  }
   0x1   :  { %s773_s14 = smov 0   ;;  %s775_s15 = smov 0  }
   0x2   :  { %s777_s16 = smov 0  }
   0x3 LB: > { %s25_s17 = sadd.s32 1, %s742_s15  ;;  %p48_p1 = scmp.ne.s32.totalorder %s734_s13, %s730_s12  ;;  %s746_s16 = sphi %s777_s16, %s13_s16   ;;  %s742_s15 = sphi %s775_s15, %s875_s15   ;;  %s738_s14 = sphi %s773_s14, %s874_s14   ;;  %s734_s13 = sphi %s771_s13, %s873_s13   ;;  %s730_s12 = sphi %s769_s12, %s872_s12  }
   0x4   : > { %p26_p0 = scmp.ge.s32.totalorder %s25_s17, 5  ;;  %p49_p2 = scmp.eq.s32.totalorder %s746_s16, 0 }
   0x5   : > { %s41_s19 = sadd.s32 1, %s734_s13  ;;  %p603_p5 = scmp.ge.s32.totalorder %s746_s16, 5 }
   0x6   : > { %s877_s17 = smov (%p26_p0, %s25_s17), 0  ;;  %p50_p3 = por %p49_p2, %p48_p1 }
   0x7   : > { %s37_s18 = ssub.s32 %s742_s15, %s877_s17  ;;  %162 = sbr.rel (%p603_p5) target bundleno = 21 (0x15), region = 20 }
   0x8   : > { %p39_p4 = scmp.eq.s32.totalorder %s37_s18, 0 }
   0xa   : > { %s804_s20 = scalar_select %p39_p4, %s734_s13, %s41_s19  }
   0xe   : > { %165 = sbr.rel (!%p50_p3) target bundleno = 21 (0x15), region = 24  ;;  %s167_s21 = sand.u32 (%p50_p3), 1, %s734_s13  }
   0xf   : > { %s605_s22 = sshll.u32 (%p50_p3), %s742_s15, 2  ;;  %s604_s23 = sshll.u32 (%p50_p3), %s167_s21, 4 }
  0x10   : > { %s174_s26 = scalar_lea.vmem (%p50_p3), %s868_s0, %s605_s22  ;;  %s169_s27 = scalar_lea.vmem (%p50_p3), [#allocation3], %s604_s23 }
  0x11   : > { %v190_v0 = vld [vmem:[%s174_s26] sm:$0xf] (%p50_p3)  ;;  %v192_v1 = vld [vmem:[%s174_s26 + $0x14] sm:$0xf] (%p50_p3)  ;;  %v194_v2 = vld [vmem:[%s174_s26 + $0x28] sm:$0xf] (%p50_p3) }
  0x12   : > { %191 = vst [vmem:[%s169_s27] sm:$0xf] (%p50_p3), %v190_v0  ;;  %193 = vst [vmem:[%s169_s27 + $0x4] sm:$0xf] (%p50_p3), %v192_v1  ;;  %v196_v3 = vld [vmem:[%s174_s26 + $0x3c] sm:$0xf] (%p50_p3) }
  0x13   : > { %195 = vst [vmem:[%s169_s27 + $0x8] sm:$0xf] (%p50_p3), %v194_v2  ;;  %197 = vst [vmem:[%s169_s27 + $0xc] sm:$0xf] (%p50_p3), %v196_v3 }
  0x15 PF: > { %p606_p6 = scmp.ge.s32.totalorder %s746_s16, 1  ;;  %p239_p7 = scmp.lt.s32.totalorder %s746_s16, 6 }
  0x17   : > { %p240_p8 = pnand %p606_p6, %p239_p7 }
  0x18   : > { %s246_s28 = sand.u32 (!%p240_p8), 1, %s730_s12   ;;  %s608_s29 = sshll.u32 (!%p240_p8), %s738_s14, 4 }
  0x19   : > { %243 = sbr.rel (%p240_p8) target bundleno = 303 (0x12f), region = 69  ;;  %s816_s30 = sshll.u32 (!%p240_p8), %s246_s28, 4 }
  0x1a   : > { %p285_p9 = scmp.lt.s32.totalorder (!%p240_p8), %s608_s29, 79  ;;  %s248_s8 = scalar_lea.vmem (!%p240_p8), [#allocation3], %s816_s30 }
  0x1b   : > { %p610_p10 = scmp.ne.s32.totalorder (!%p240_p8), %s738_s14, 0 }
  0x20   : > { %s879_s29 = smov (!%p285_p9, %s608_s29), 79  ;;  %309 = sbr.rel (%p610_p10) target bundleno = 39 (0x27), region = 77 }
  0x21   : > { %s609_s4 = sshll.u32 %s879_s29, 2  ;;  %v748_v4 = vmov (!%p610_p10), 0.0  }
  0x22   : > { %s821_s7 = scalar_lea.vmem %s869_s1, %s609_s4  ;;  %310 = vst [vmem:[#allocation2] sm:$0xff] (!%p610_p10), %v748_v4  ;;  %311 = vst [vmem:[#allocation2 + $0x8] sm:$0xff] (!%p610_p10), %v748_v4 }
  0x23   : > { %312 = vst [vmem:[#allocation2 + $0x10] sm:$0xff] (!%p610_p10), %v748_v4  ;;  %313 = vst [vmem:[#allocation2 + $0x18] sm:$0xff] (!%p610_p10), %v748_v4 }
  0x27 PF: > { %v698_v5 = vld [vmem:[%s821_s7] sm:$0xff]   ;;  %v699_v6 = vld [vmem:[%s821_s7 + $0x8] sm:$0xff]   ;;  %v700_v7 = vld [vmem:[%s821_s7 + $0x10] sm:$0xff]   ;;  %p621_p11 = scmp.ne.s32.totalorder %s738_s14, 4 }
  0x28   : > { %637 = vmatprep.subr.bf16.mxu0 %v698_v5  ;;  %v701_v8 = vld [vmem:[%s821_s7 + $0x18] sm:$0xff]   ;;  %v706_v9 = vld [vmem:[%s248_s8] sm:$0xff]   ;;  %v703_v11 = vld [vmem:[%s821_s7 + $0x28] sm:$0xff]  }
  0x29   : > { %638 = vmatpush3.bf16.msra.mxu0 %v698_v5  ;;  %653 = vmatprep.mubr.bf16.mxu0 %v706_v9  ;;  %v702_v10 = vld [vmem:[%s821_s7 + $0x20] sm:$0xff]   ;;  %v704_v12 = vld [vmem:[%s821_s7 + $0x30] sm:$0xff]   ;;  %v705_v13 = vld [vmem:[%s821_s7 + $0x38] sm:$0xff]  }
  0x2a   : > { %639 = vmatprep.subr.bf16.mxu0 %v699_v6  ;;  %v707_v14 = vld [vmem:[%s248_s8 + $0x8] sm:$0xff]   ;;  %v316_v15 = vld [vmem:[#allocation2 + $0x10] sm:$0xff]  ;;  %v314_v16 = vld [vmem:[#allocation2] sm:$0xff] }
  0x2b   : > { %v317_v18 = vld [vmem:[#allocation2 + $0x18] sm:$0xff]  ;;  %v315_v21 = vld [vmem:[#allocation2 + $0x8] sm:$0xff]  ;;  %v622_v28 = vld [vmem:[%s870_s2] ss:$0 sm:$0xff] (!%p621_p11) }
  0x2d   : > { %640 = vmatpush3.bf16.msra.mxu0 %v699_v6 }
  0x2e   : > { %641 = vmatprep.subr.bf16.mxu0 %v700_v7 }
  0x31   : > { %642 = vmatpush3.bf16.msra.mxu0 %v700_v7 }
  0x32   : > { %643 = vmatprep.subr.bf16.mxu0 %v701_v8 }
  0x35   : > { %644 = vmatpush3.bf16.msra.mxu0 %v701_v8 }
  0x36   : > { %645 = vmatprep.subr.bf16.mxu0 %v702_v10 }
  0x39   : > { %646 = vmatpush3.bf16.msra.mxu0 %v702_v10 }
  0x3a   : > { %647 = vmatprep.subr.bf16.mxu0 %v703_v11 }
  0x3d   : > { %648 = vmatpush3.bf16.msra.mxu0 %v703_v11 }
  0x3e   : > { %649 = vmatprep.subr.bf16.mxu0 %v704_v12 }
  0x41   : > { %650 = vmatpush3.bf16.msra.mxu0 %v704_v12 }
  0x42   : > { %651 = vmatprep.subr.bf16.mxu0 %v705_v13 }
  0x45   : > { %652 = vmatpush3.bf16.msra.mxu0 %v705_v13 }
  0x48   : > { %654 = vmatmul.mubr.bf16.vlgmr.msra.gmra.mrb[0].mxu0 %v707_v14 }
 0x11b   : > { %v655_v17 = vpop.f32.mrb[0].mxu0  ;;  %458 = sbr.rel (%p621_p11) target bundleno = 303 (0x12f), region = 81 }
 0x11c   : > { %v449_v19 = vadd.f32 %v655_v17, %v316_v15  ;;  %v432_v20 = vpop.f32.mrb[1].mxu0 }
 0x11d   : > { %v447_v22 = vadd.f32 %v432_v20, %v314_v16  ;;  %v656_v23 = vpop.f32.mrb[2].mxu0 }
 0x11e   : > { %453 = vst [vmem:[#allocation2 + $0x10] sm:$0xff] %v449_v19  ;;  %v450_v24 = vadd.f32 %v656_v23, %v317_v18  ;;  %v435_v25 = vpop.f32.mrb[3].mxu0 }
 0x11f   : > { %451 = vst [vmem:[#allocation2] sm:$0xff] %v447_v22  ;;  %v448_v26 = vadd.f32 %v435_v25, %v315_v21 }
 0x120   : > { %454 = vst [vmem:[#allocation2 + $0x18] sm:$0xff] %v450_v24 }
 0x121   : > { %452 = vst [vmem:[#allocation2 + $0x8] sm:$0xff] %v448_v26 }
 0x125   : > { %v461_v32 = vld [vmem:[#allocation2 + $0x10] sm:$0xff] }
 0x126   : > { %v459_v27 = vld [vmem:[#allocation2] sm:$0xff]  ;;  %v472_v34 = vadd.f32 %v622_v28, %v461_v32 }
 0x127   : > { %v470_v30 = vadd.f32 %v622_v28, %v459_v27  ;;  %v462_v33 = vld [vmem:[#allocation2 + $0x18] sm:$0xff] }
 0x128   : > { %v460_v29 = vld [vmem:[#allocation2 + $0x8] sm:$0xff]  ;;  %v473_v35 = vadd.f32 %v622_v28, %v462_v33  ;;  %vm476_vm2 = vcmp.ge.f32.partialorder %v472_v34, 0.0  ;;  %v480_v38 = vmul.f32 0.01, %v472_v34 }
 0x129   : > { %v471_v31 = vadd.f32 %v622_v28, %v460_v29  ;;  %vm474_vm0 = vcmp.ge.f32.partialorder %v470_v30, 0.0  ;;  %v478_v36 = vmul.f32 0.01, %v470_v30 }
 0x12a   : > { %vm477_vm3 = vcmp.ge.f32.partialorder %v473_v35, 0.0  ;;  %v481_v39 = vmul.f32 0.01, %v473_v35  ;;  %v484_v42 = vsel %vm476_vm2, %v472_v34, %v480_v38 }
 0x12b   : > { %vm475_vm1 = vcmp.ge.f32.partialorder %v471_v31, 0.0  ;;  %v479_v37 = vmul.f32 0.01, %v471_v31  ;;  %v482_v40 = vsel %vm474_vm0, %v470_v30, %v478_v36  ;;  %488 = vst [vmem:[%s871_s3 + $0x10] sm:$0xff] %v484_v42 }
 0x12c   : > { %486 = vst [vmem:[%s871_s3] sm:$0xff] %v482_v40  ;;  %v485_v43 = vsel %vm477_vm3, %v473_v35, %v481_v39 }
 0x12d   : > { %v483_v41 = vsel %vm475_vm1, %v471_v31, %v479_v37  ;;  %489 = vst [vmem:[%s871_s3 + $0x18] sm:$0xff] %v485_v43 }
 0x12e   : > { %487 = vst [vmem:[%s871_s3 + $0x8] sm:$0xff] %v483_v41 }
 0x12f PF: > { %s13_s16 = sadd.s32 1, %s746_s16   ;;  %s872_s12 = smov %s734_s13 }
 0x130   : > { %p10_p12 = scmp.ge.s32.totalorder %s13_s16, 7   ;;  %s873_s13 = smov %s804_s20 }
 0x131   : > { %s874_s14 = smov %s742_s15  ;;  %s875_s15 = smov %s877_s17 }
 0x132   :  { %12 = sbr.rel (!%p10_p12) target bundleno = 3 (0x3), region = 122 }

// kernel: convswarm_forward.45
= control target key start
LH: loop header
LB: loop body
LE: loop exit
PB: predicated region body
PF: predicated region fallthrough
CT: control target
= control target key end

     0   :  { %s306_s1 = inlined_call_operand.vmem [shape: bf16[128,128], index: 1, kind: input, shape index: {}]   ;;  %s307_s0 = inlined_call_operand.vmem [shape: bf16[32,128], index: 0, kind: input, shape index: {}]   ;;  %s308_s2 = inlined_call_operand.vmem [shape: f32[1,128], index: 2, kind: input, shape index: {}]   ;;  %s309_s3 = inlined_call_operand.vmem [shape: f32[32,128], index: 3, kind: output, shape index: {}]  }
   0x1   :  { %v231_v0 = vld [vmem:[%s306_s1] sm:$0xff]   ;;  %v232_v1 = vld [vmem:[%s306_s1 + $0x8] sm:$0xff]   ;;  %v233_v2 = vld [vmem:[%s306_s1 + $0x10] sm:$0xff]  }
   0x2   :  { %211 = vmatprep.subr.bf16.mxu0 %v231_v0  ;;  %v234_v3 = vld [vmem:[%s306_s1 + $0x18] sm:$0xff]   ;;  %v239_v4 = vld [vmem:[%s307_s0] sm:$0xff]   ;;  %v236_v6 = vld [vmem:[%s306_s1 + $0x28] sm:$0xff]  }
   0x3   :  { %212 = vmatpush3.bf16.msra.mxu0 %v231_v0  ;;  %227 = vmatprep.mubr.bf16.mxu0 %v239_v4  ;;  %v235_v5 = vld [vmem:[%s306_s1 + $0x20] sm:$0xff]   ;;  %v237_v7 = vld [vmem:[%s306_s1 + $0x30] sm:$0xff]   ;;  %v238_v8 = vld [vmem:[%s306_s1 + $0x38] sm:$0xff]  }
   0x4   :  { %213 = vmatprep.subr.bf16.mxu0 %v232_v1  ;;  %v240_v9 = vld [vmem:[%s307_s0 + $0x8] sm:$0xff]   ;;  %v200_v10 = vld [vmem:[%s308_s2] ss:$0 sm:$0xff] }
   0x7   :  { %214 = vmatpush3.bf16.msra.mxu0 %v232_v1 }
   0x8   :  { %215 = vmatprep.subr.bf16.mxu0 %v233_v2 }
   0xb   :  { %216 = vmatpush3.bf16.msra.mxu0 %v233_v2 }
   0xc   :  { %217 = vmatprep.subr.bf16.mxu0 %v234_v3 }
   0xf   :  { %218 = vmatpush3.bf16.msra.mxu0 %v234_v3 }
  0x10   :  { %219 = vmatprep.subr.bf16.mxu0 %v235_v5 }
  0x13   :  { %220 = vmatpush3.bf16.msra.mxu0 %v235_v5 }
  0x14   :  { %221 = vmatprep.subr.bf16.mxu0 %v236_v6 }
  0x17   :  { %222 = vmatpush3.bf16.msra.mxu0 %v236_v6 }
  0x18   :  { %223 = vmatprep.subr.bf16.mxu0 %v237_v7 }
  0x1b   :  { %224 = vmatpush3.bf16.msra.mxu0 %v237_v7 }
  0x1c   :  { %225 = vmatprep.subr.bf16.mxu0 %v238_v8 }
  0x1f   :  { %226 = vmatpush3.bf16.msra.mxu0 %v238_v8 }
  0x22   :  { %228 = vmatmul.mubr.bf16.vlgmr.msra.gmra.mrb[0].mxu0 %v240_v9 }
  0xf5   :  { %v229_v11 = vpop.f32.mrb[0].mxu0 }
  0xf6   :  { %v180_v12 = vadd.f32 %v229_v11, %v200_v10  ;;  %v141_v13 = vpop.f32.mrb[1].mxu0 }
  0xf7   :  { %v178_v14 = vadd.f32 %v200_v10, %v141_v13  ;;  %v230_v15 = vpop.f32.mrb[2].mxu0 }
  0xf8   :  { %184 = vst [vmem:[%s309_s3 + $0x10] sm:$0xff] %v180_v12  ;;  %v181_v16 = vadd.f32 %v230_v15, %v200_v10  ;;  %v144_v17 = vpop.f32.mrb[3].mxu0 }
  0xf9   :  { %182 = vst [vmem:[%s309_s3] sm:$0xff] %v178_v14  ;;  %v179_v18 = vadd.f32 %v200_v10, %v144_v17 }
  0xfa   :  { %185 = vst [vmem:[%s309_s3 + $0x18] sm:$0xff] %v181_v16 }
  0xfb   :  { %183 = vst [vmem:[%s309_s3 + $0x8] sm:$0xff] %v179_v18 }

// kernel: convswarm_forward.46
= control target key start
LH: loop header
LB: loop body
LE: loop exit
PB: predicated region body
PF: predicated region fallthrough
CT: control target
= control target key end

     0   :  { %s861_s15 = smov 0   ;;  %s863_s16 = smov 0   ;;  %s972_s0 = inlined_call_operand.vmem [shape: bf16[32,1152], index: 0, kind: input, shape index: {}]   ;;  %s973_s1 = inlined_call_operand.vmem [shape: bf16[1152,128], index: 1, kind: input, shape index: {}]   ;;  %s974_s2 = inlined_call_operand.vmem [shape: f32[1,128], index: 2, kind: input, shape index: {}]   ;;  %s975_s3 = inlined_call_operand.vmem [shape: f32[32,128], index: 3, kind: input, shape index: {}]   ;;  %s976_s4 = inlined_call_operand.vmem [shape: f32[32,128], index: 4, kind: output, shape index: {}]  }
   0x1   :  { %s865_s17 = smov 0   ;;  %s867_s18 = smov 0  }
   0x2   :  { %s869_s19 = smov 0  }
   0x3 LB: > { %s26_s20 = sadd.s32 1, %s829_s18  ;;  %p49_p1 = scmp.ne.s32.totalorder %s821_s16, %s817_s15  ;;  %s833_s19 = sphi %s869_s19, %s14_s19   ;;  %s829_s18 = sphi %s867_s18, %s980_s18   ;;  %s825_s17 = sphi %s865_s17, %s979_s17   ;;  %s821_s16 = sphi %s863_s16, %s978_s16   ;;  %s817_s15 = sphi %s861_s15, %s977_s15  }
   0x4   : > { %p27_p0 = scmp.ge.s32.totalorder %s26_s20, 9  ;;  %p50_p2 = scmp.eq.s32.totalorder %s833_s19, 0 }
   0x5   : > { %s42_s22 = sadd.s32 1, %s821_s16  ;;  %p690_p5 = scmp.ge.s32.totalorder %s833_s19, 9 }
   0x6   : > { %s982_s20 = smov (%p27_p0, %s26_s20), 0  ;;  %p51_p3 = por %p50_p2, %p49_p1 }
   0x7   : > { %s38_s21 = ssub.s32 %s829_s18, %s982_s20  ;;  %203 = sbr.rel (%p690_p5) target bundleno = 21 (0x15), region = 24 }
   0x8   : > { %p40_p4 = scmp.eq.s32.totalorder %s38_s21, 0 }
   0xa   : > { %s896_s23 = scalar_select %p40_p4, %s821_s16, %s42_s22  }
   0xe   : > { %206 = sbr.rel (!%p51_p3) target bundleno = 21 (0x15), region = 28  ;;  %s208_s24 = sand.u32 (%p51_p3), 1, %s821_s16  }
   0xf   : > { %s692_s25 = sshll.u32 (%p51_p3), %s829_s18, 2  ;;  %s691_s26 = sshll.u32 (%p51_p3), %s208_s24, 4 }
  0x10   : > { %s215_s29 = scalar_lea.vmem (%p51_p3), %s972_s0, %s692_s25  ;;  %s210_s30 = scalar_lea.vmem (%p51_p3), [#allocation3], %s691_s26 }
  0x11   : > { %v231_v0 = vld [vmem:[%s215_s29] sm:$0xf] (%p51_p3)  ;;  %v233_v1 = vld [vmem:[%s215_s29 + $0x24] sm:$0xf] (%p51_p3)  ;;  %v235_v2 = vld [vmem:[%s215_s29 + $0x48] sm:$0xf] (%p51_p3) }
  0x12   : > { %232 = vst [vmem:[%s210_s30] sm:$0xf] (%p51_p3), %v231_v0  ;;  %234 = vst [vmem:[%s210_s30 + $0x4] sm:$0xf] (%p51_p3), %v233_v1  ;;  %v237_v3 = vld [vmem:[%s215_s29 + $0x6c] sm:$0xf] (%p51_p3) }
  0x13   : > { %236 = vst [vmem:[%s210_s30 + $0x8] sm:$0xf] (%p51_p3), %v235_v2  ;;  %238 = vst [vmem:[%s210_s30 + $0xc] sm:$0xf] (%p51_p3), %v237_v3 }
  0x15 PF: > { %p693_p6 = scmp.ge.s32.totalorder %s833_s19, 1  ;;  %p280_p7 = scmp.lt.s32.totalorder %s833_s19, 10 }
  0x17   : > { %p281_p8 = pnand %p693_p6, %p280_p7 }
  0x18   : > { %s287_s5 = sand.u32 (!%p281_p8), 1, %s817_s15   ;;  %s695_s6 = sshll.u32 (!%p281_p8), %s825_s17, 4 }
  0x19   : > { %284 = sbr.rel (%p281_p8) target bundleno = 305 (0x131), region = 73  ;;  %s908_s7 = sshll.u32 (!%p281_p8), %s287_s5, 4 }
  0x1a   : > { %p336_p9 = scmp.lt.s32.totalorder (!%p281_p8), %s695_s6, 143  ;;  %s289_s12 = scalar_lea.vmem (!%p281_p8), [#allocation3], %s908_s7 }
  0x1b   : > { %p697_p10 = scmp.ne.s32.totalorder (!%p281_p8), %s825_s17, 0 }
  0x20   : > { %s984_s6 = smov (!%p336_p9, %s695_s6), 143  ;;  %369 = sbr.rel (%p697_p10) target bundleno = 39 (0x27), region = 81 }
  0x21   : > { %s696_s8 = sshll.u32 %s984_s6, 2  ;;  %v835_v4 = vmov (!%p697_p10), 0.0  }
  0x22   : > { %s913_s11 = scalar_lea.vmem %s973_s1, %s696_s8  ;;  %370 = vst [vmem:[#allocation2] sm:$0xff] (!%p697_p10), %v835_v4  ;;  %371 = vst [vmem:[#allocation2 + $0x8] sm:$0xff] (!%p697_p10), %v835_v4 }
  0x23   : > { %372 = vst [vmem:[#allocation2 + $0x10] sm:$0xff] (!%p697_p10), %v835_v4  ;;  %373 = vst [vmem:[#allocation2 + $0x18] sm:$0xff] (!%p697_p10), %v835_v4 }
  0x27 PF: > { %v785_v5 = vld [vmem:[%s913_s11] sm:$0xff]   ;;  %v786_v6 = vld [vmem:[%s913_s11 + $0x8] sm:$0xff]   ;;  %v787_v7 = vld [vmem:[%s913_s11 + $0x10] sm:$0xff]   ;;  %p708_p11 = scmp.ne.s32.totalorder %s825_s17, 8 }
  0x28   : > { %724 = vmatprep.subr.bf16.mxu0 %v785_v5  ;;  %v788_v8 = vld [vmem:[%s913_s11 + $0x18] sm:$0xff]   ;;  %v793_v9 = vld [vmem:[%s289_s12] sm:$0xff]   ;;  %v790_v11 = vld [vmem:[%s913_s11 + $0x28] sm:$0xff]  }
  0x29   : > { %725 = vmatpush3.bf16.msra.mxu0 %v785_v5  ;;  %740 = vmatprep.mubr.bf16.mxu0 %v793_v9  ;;  %v789_v10 = vld [vmem:[%s913_s11 + $0x20] sm:$0xff]   ;;  %v791_v12 = vld [vmem:[%s913_s11 + $0x30] sm:$0xff]   ;;  %v792_v13 = vld [vmem:[%s913_s11 + $0x38] sm:$0xff]  }
  0x2a   : > { %726 = vmatprep.subr.bf16.mxu0 %v786_v6  ;;  %v794_v14 = vld [vmem:[%s289_s12 + $0x8] sm:$0xff]   ;;  %v376_v15 = vld [vmem:[#allocation2 + $0x10] sm:$0xff]  ;;  %v374_v16 = vld [vmem:[#allocation2] sm:$0xff] }
  0x2b   : > { %v377_v18 = vld [vmem:[#allocation2 + $0x18] sm:$0xff]  ;;  %v375_v21 = vld [vmem:[#allocation2 + $0x8] sm:$0xff]  ;;  %v709_v28 = vld [vmem:[%s974_s2] ss:$0 sm:$0xff] (!%p708_p11) }
  0x2c   : > { %v524_v29 = vld [vmem:[%s975_s3] sm:$0xff] (!%p708_p11)  ;;  %v525_v32 = vld [vmem:[%s975_s3 + $0x8] sm:$0xff] (!%p708_p11)  ;;  %v526_v35 = vld [vmem:[%s975_s3 + $0x10] sm:$0xff] (!%p708_p11) }
  0x2d   : > { %727 = vmatpush3.bf16.msra.mxu0 %v786_v6  ;;  %v527_v38 = vld [vmem:[%s975_s3 + $0x18] sm:$0xff] (!%p708_p11) }
  0x2e   : > { %728 = vmatprep.subr.bf16.mxu0 %v787_v7 }
  0x31   : > { %729 = vmatpush3.bf16.msra.mxu0 %v787_v7 }
  0x32   : > { %730 = vmatprep.subr.bf16.mxu0 %v788_v8 }
  0x35   : > { %731 = vmatpush3.bf16.msra.mxu0 %v788_v8 }
  0x36   : > { %732 = vmatprep.subr.bf16.mxu0 %v789_v10 }
  0x39   : > { %733 = vmatpush3.bf16.msra.mxu0 %v789_v10 }
  0x3a   : > { %734 = vmatprep.subr.bf16.mxu0 %v790_v11 }
  0x3d   : > { %735 = vmatpush3.bf16.msra.mxu0 %v790_v11 }
  0x3e   : > { %736 = vmatprep.subr.bf16.mxu0 %v791_v12 }
  0x41   : > { %737 = vmatpush3.bf16.msra.mxu0 %v791_v12 }
  0x42   : > { %738 = vmatprep.subr.bf16.mxu0 %v792_v13 }
  0x45   : > { %739 = vmatpush3.bf16.msra.mxu0 %v792_v13 }
  0x48   : > { %741 = vmatmul.mubr.bf16.vlgmr.msra.gmra.mrb[0].mxu0 %v794_v14 }
 0x11b   : > { %v742_v17 = vpop.f32.mrb[0].mxu0  ;;  %518 = sbr.rel (%p708_p11) target bundleno = 305 (0x131), region = 85 }
 0x11c   : > { %v509_v19 = vadd.f32 %v742_v17, %v376_v15  ;;  %v492_v20 = vpop.f32.mrb[1].mxu0 }
 0x11d   : > { %v507_v22 = vadd.f32 %v492_v20, %v374_v16  ;;  %v743_v23 = vpop.f32.mrb[2].mxu0 }
 0x11e   : > { %513 = vst [vmem:[#allocation2 + $0x10] sm:$0xff] %v509_v19  ;;  %v510_v24 = vadd.f32 %v743_v23, %v377_v18  ;;  %v495_v25 = vpop.f32.mrb[3].mxu0 }
 0x11f   : > { %511 = vst [vmem:[#allocation2] sm:$0xff] %v507_v22  ;;  %v508_v26 = vadd.f32 %v495_v25, %v375_v21 }
 0x120   : > { %514 = vst [vmem:[#allocation2 + $0x18] sm:$0xff] %v510_v24 }
 0x121   : > { %512 = vst [vmem:[#allocation2 + $0x8] sm:$0xff] %v508_v26 }
 0x125   : > { %v521_v33 = vld [vmem:[#allocation2 + $0x10] sm:$0xff] }
 0x126   : > { %v519_v27 = vld [vmem:[#allocation2] sm:$0xff]  ;;  %v536_v36 = vadd.f32 %v709_v28, %v521_v33 }
 0x127   : > { %v534_v30 = vadd.f32 %v709_v28, %v519_v27  ;;  %v522_v37 = vld [vmem:[#allocation2 + $0x18] sm:$0xff] }
 0x128   : > { %v520_v31 = vld [vmem:[#allocation2 + $0x8] sm:$0xff]  ;;  %v537_v40 = vadd.f32 %v709_v28, %v522_v37  ;;  %v540_v42 = vadd.f32 %v536_v36, %v526_v35 }
 0x129   : > { %v535_v34 = vadd.f32 %v709_v28, %v520_v31  ;;  %v538_v39 = vadd.f32 %v534_v30, %v524_v29 }
 0x12a   : > { %v541_v44 = vadd.f32 %v537_v40, %v527_v38  ;;  %vm544_vm2 = vcmp.ge.f32.partialorder %v540_v42, 0.0  ;;  %v548_v46 = vmul.f32 0.01, %v540_v42 }
 0x12b   : > { %v539_v41 = vadd.f32 %v535_v34, %v525_v32  ;;  %vm542_vm0 = vcmp.ge.f32.partialorder %v538_v39, 0.0  ;;  %v546_v43 = vmul.f32 0.01, %v538_v39 }
 0x12c   : > { %vm545_vm3 = vcmp.ge.f32.partialorder %v541_v44, 0.0  ;;  %v549_v48 = vmul.f32 0.01, %v541_v44  ;;  %v552_v50 = vsel %vm544_vm2, %v540_v42, %v548_v46 }
 0x12d   : > { %vm543_vm1 = vcmp.ge.f32.partialorder %v539_v41, 0.0  ;;  %v547_v45 = vmul.f32 0.01, %v539_v41  ;;  %v550_v47 = vsel %vm542_vm0, %v538_v39, %v546_v43  ;;  %556 = vst [vmem:[%s976_s4 + $0x10] sm:$0xff] %v552_v50 }
 0x12e   : > { %554 = vst [vmem:[%s976_s4] sm:$0xff] %v550_v47  ;;  %v553_v51 = vsel %vm545_vm3, %v541_v44, %v549_v48 }
 0x12f   : > { %v551_v49 = vsel %vm543_vm1, %v539_v41, %v547_v45  ;;  %557 = vst [vmem:[%s976_s4 + $0x18] sm:$0xff] %v553_v51 }
 0x130   : > { %555 = vst [vmem:[%s976_s4 + $0x8] sm:$0xff] %v551_v49 }
 0x131 PF: > { %s14_s19 = sadd.s32 1, %s833_s19   ;;  %s977_s15 = smov %s821_s16 }
 0x132   : > { %p11_p12 = scmp.ge.s32.totalorder %s14_s19, 11   ;;  %s978_s16 = smov %s896_s23 }
 0x133   : > { %s979_s17 = smov %s829_s18  ;;  %s980_s18 = smov %s982_s20 }
 0x134   :  { %13 = sbr.rel (!%p11_p12) target bundleno = 3 (0x3), region = 129 }

// kernel: convswarm_forward.47
= control target key start
LH: loop header
LB: loop body
LE: loop exit
PB: predicated region body
PF: predicated region fallthrough
CT: control target
= control target key end

     0   :  { %s769_s12 = smov 0   ;;  %s771_s13 = smov 0   ;;  %s868_s0 = inlined_call_operand.vmem [shape: bf16[32,1152], index: 0, kind: input, shape index: {}]   ;;  %s869_s1 = inlined_call_operand.vmem [shape: bf16[1152,128], index: 1, kind: input, shape index: {}]   ;;  %s870_s2 = inlined_call_operand.vmem [shape: f32[1,128], index: 2, kind: input, shape index: {}]   ;;  %s871_s3 = inlined_call_operand.vmem [shape: f32[32,128], index: 3, kind: output, shape index: {}]  }
   0x1   :  { %s773_s14 = smov 0   ;;  %s775_s15 = smov 0  }
   0x2   :  { %s777_s16 = smov 0  }
   0x3 LB: > { %s25_s17 = sadd.s32 1, %s742_s15  ;;  %p48_p1 = scmp.ne.s32.totalorder %s734_s13, %s730_s12  ;;  %s746_s16 = sphi %s777_s16, %s13_s16   ;;  %s742_s15 = sphi %s775_s15, %s875_s15   ;;  %s738_s14 = sphi %s773_s14, %s874_s14   ;;  %s734_s13 = sphi %s771_s13, %s873_s13   ;;  %s730_s12 = sphi %s769_s12, %s872_s12  }
   0x4   : > { %p26_p0 = scmp.ge.s32.totalorder %s25_s17, 9  ;;  %p49_p2 = scmp.eq.s32.totalorder %s746_s16, 0 }
   0x5   : > { %s41_s19 = sadd.s32 1, %s734_s13  ;;  %p603_p5 = scmp.ge.s32.totalorder %s746_s16, 9 }
   0x6   : > { %s877_s17 = smov (%p26_p0, %s25_s17), 0  ;;  %p50_p3 = por %p49_p2, %p48_p1 }
   0x7   : > { %s37_s18 = ssub.s32 %s742_s15, %s877_s17  ;;  %162 = sbr.rel (%p603_p5) target bundleno = 21 (0x15), region = 20 }
   0x8   : > { %p39_p4 = scmp.eq.s32.totalorder %s37_s18, 0 }
   0xa   : > { %s804_s20 = scalar_select %p39_p4, %s734_s13, %s41_s19  }
   0xe   : > { %165 = sbr.rel (!%p50_p3) target bundleno = 21 (0x15), region = 24  ;;  %s167_s21 = sand.u32 (%p50_p3), 1, %s734_s13  }
   0xf   : > { %s605_s22 = sshll.u32 (%p50_p3), %s742_s15, 2  ;;  %s604_s23 = sshll.u32 (%p50_p3), %s167_s21, 4 }
  0x10   : > { %s174_s26 = scalar_lea.vmem (%p50_p3), %s868_s0, %s605_s22  ;;  %s169_s27 = scalar_lea.vmem (%p50_p3), [#allocation3], %s604_s23 }
  0x11   : > { %v190_v0 = vld [vmem:[%s174_s26] sm:$0xf] (%p50_p3)  ;;  %v192_v1 = vld [vmem:[%s174_s26 + $0x24] sm:$0xf] (%p50_p3)  ;;  %v194_v2 = vld [vmem:[%s174_s26 + $0x48] sm:$0xf] (%p50_p3) }
  0x12   : > { %191 = vst [vmem:[%s169_s27] sm:$0xf] (%p50_p3), %v190_v0  ;;  %193 = vst [vmem:[%s169_s27 + $0x4] sm:$0xf] (%p50_p3), %v192_v1  ;;  %v196_v3 = vld [vmem:[%s174_s26 + $0x6c] sm:$0xf] (%p50_p3) }
  0x13   : > { %195 = vst [vmem:[%s169_s27 + $0x8] sm:$0xf] (%p50_p3), %v194_v2  ;;  %197 = vst [vmem:[%s169_s27 + $0xc] sm:$0xf] (%p50_p3), %v196_v3 }
  0x15 PF: > { %p606_p6 = scmp.ge.s32.totalorder %s746_s16, 1  ;;  %p239_p7 = scmp.lt.s32.totalorder %s746_s16, 10 }
  0x17   : > { %p240_p8 = pnand %p606_p6, %p239_p7 }
  0x18   : > { %s246_s28 = sand.u32 (!%p240_p8), 1, %s730_s12   ;;  %s608_s29 = sshll.u32 (!%p240_p8), %s738_s14, 4 }
  0x19   : > { %243 = sbr.rel (%p240_p8) target bundleno = 303 (0x12f), region = 69  ;;  %s816_s30 = sshll.u32 (!%p240_p8), %s246_s28, 4 }
  0x1a   : > { %p285_p9 = scmp.lt.s32.totalorder (!%p240_p8), %s608_s29, 143  ;;  %s248_s8 = scalar_lea.vmem (!%p240_p8), [#allocation3], %s816_s30 }
  0x1b   : > { %p610_p10 = scmp.ne.s32.totalorder (!%p240_p8), %s738_s14, 0 }
  0x20   : > { %s879_s29 = smov (!%p285_p9, %s608_s29), 143  ;;  %309 = sbr.rel (%p610_p10) target bundleno = 39 (0x27), region = 77 }
  0x21   : > { %s609_s4 = sshll.u32 %s879_s29, 2  ;;  %v748_v4 = vmov (!%p610_p10), 0.0  }
  0x22   : > { %s821_s7 = scalar_lea.vmem %s869_s1, %s609_s4  ;;  %310 = vst [vmem:[#allocation2] sm:$0xff] (!%p610_p10), %v748_v4  ;;  %311 = vst [vmem:[#allocation2 + $0x8] sm:$0xff] (!%p610_p10), %v748_v4 }
  0x23   : > { %312 = vst [vmem:[#allocation2 + $0x10] sm:$0xff] (!%p610_p10), %v748_v4  ;;  %313 = vst [vmem:[#allocation2 + $0x18] sm:$0xff] (!%p610_p10), %v748_v4 }
  0x27 PF: > { %v698_v5 = vld [vmem:[%s821_s7] sm:$0xff]   ;;  %v699_v6 = vld [vmem:[%s821_s7 + $0x8] sm:$0xff]   ;;  %v700_v7 = vld [vmem:[%s821_s7 + $0x10] sm:$0xff]   ;;  %p621_p11 = scmp.ne.s32.totalorder %s738_s14, 8 }
  0x28   : > { %637 = vmatprep.subr.bf16.mxu0 %v698_v5  ;;  %v701_v8 = vld [vmem:[%s821_s7 + $0x18] sm:$0xff]   ;;  %v706_v9 = vld [vmem:[%s248_s8] sm:$0xff]   ;;  %v703_v11 = vld [vmem:[%s821_s7 + $0x28] sm:$0xff]  }
  0x29   : > { %638 = vmatpush3.bf16.msra.mxu0 %v698_v5  ;;  %653 = vmatprep.mubr.bf16.mxu0 %v706_v9  ;;  %v702_v10 = vld [vmem:[%s821_s7 + $0x20] sm:$0xff]   ;;  %v704_v12 = vld [vmem:[%s821_s7 + $0x30] sm:$0xff]   ;;  %v705_v13 = vld [vmem:[%s821_s7 + $0x38] sm:$0xff]  }
  0x2a   : > { %639 = vmatprep.subr.bf16.mxu0 %v699_v6  ;;  %v707_v14 = vld [vmem:[%s248_s8 + $0x8] sm:$0xff]   ;;  %v316_v15 = vld [vmem:[#allocation2 + $0x10] sm:$0xff]  ;;  %v314_v16 = vld [vmem:[#allocation2] sm:$0xff] }
  0x2b   : > { %v317_v18 = vld [vmem:[#allocation2 + $0x18] sm:$0xff]  ;;  %v315_v21 = vld [vmem:[#allocation2 + $0x8] sm:$0xff]  ;;  %v622_v28 = vld [vmem:[%s870_s2] ss:$0 sm:$0xff] (!%p621_p11) }
  0x2d   : > { %640 = vmatpush3.bf16.msra.mxu0 %v699_v6 }
  0x2e   : > { %641 = vmatprep.subr.bf16.mxu0 %v700_v7 }
  0x31   : > { %642 = vmatpush3.bf16.msra.mxu0 %v700_v7 }
  0x32   : > { %643 = vmatprep.subr.bf16.mxu0 %v701_v8 }
  0x35   : > { %644 = vmatpush3.bf16.msra.mxu0 %v701_v8 }
  0x36   : > { %645 = vmatprep.subr.bf16.mxu0 %v702_v10 }
  0x39   : > { %646 = vmatpush3.bf16.msra.mxu0 %v702_v10 }
  0x3a   : > { %647 = vmatprep.subr.bf16.mxu0 %v703_v11 }
  0x3d   : > { %648 = vmatpush3.bf16.msra.mxu0 %v703_v11 }
  0x3e   : > { %649 = vmatprep.subr.bf16.mxu0 %v704_v12 }
  0x41   : > { %650 = vmatpush3.bf16.msra.mxu0 %v704_v12 }
  0x42   : > { %651 = vmatprep.subr.bf16.mxu0 %v705_v13 }
  0x45   : > { %652 = vmatpush3.bf16.msra.mxu0 %v705_v13 }
  0x48   : > { %654 = vmatmul.mubr.bf16.vlgmr.msra.gmra.mrb[0].mxu0 %v707_v14 }
 0x11b   : > { %v655_v17 = vpop.f32.mrb[0].mxu0  ;;  %458 = sbr.rel (%p621_p11) target bundleno = 303 (0x12f), region = 81 }
 0x11c   : > { %v449_v19 = vadd.f32 %v655_v17, %v316_v15  ;;  %v432_v20 = vpop.f32.mrb[1].mxu0 }
 0x11d   : > { %v447_v22 = vadd.f32 %v432_v20, %v314_v16  ;;  %v656_v23 = vpop.f32.mrb[2].mxu0 }
 0x11e   : > { %453 = vst [vmem:[#allocation2 + $0x10] sm:$0xff] %v449_v19  ;;  %v450_v24 = vadd.f32 %v656_v23, %v317_v18  ;;  %v435_v25 = vpop.f32.mrb[3].mxu0 }
 0x11f   : > { %451 = vst [vmem:[#allocation2] sm:$0xff] %v447_v22  ;;  %v448_v26 = vadd.f32 %v435_v25, %v315_v21 }
 0x120   : > { %454 = vst [vmem:[#allocation2 + $0x18] sm:$0xff] %v450_v24 }
 0x121   : > { %452 = vst [vmem:[#allocation2 + $0x8] sm:$0xff] %v448_v26 }
 0x125   : > { %v461_v32 = vld [vmem:[#allocation2 + $0x10] sm:$0xff] }
 0x126   : > { %v459_v27 = vld [vmem:[#allocation2] sm:$0xff]  ;;  %v472_v34 = vadd.f32 %v622_v28, %v461_v32 }
 0x127   : > { %v470_v30 = vadd.f32 %v622_v28, %v459_v27  ;;  %v462_v33 = vld [vmem:[#allocation2 + $0x18] sm:$0xff] }
 0x128   : > { %v460_v29 = vld [vmem:[#allocation2 + $0x8] sm:$0xff]  ;;  %v473_v35 = vadd.f32 %v622_v28, %v462_v33  ;;  %vm476_vm2 = vcmp.ge.f32.partialorder %v472_v34, 0.0  ;;  %v480_v38 = vmul.f32 0.01, %v472_v34 }
 0x129   : > { %v471_v31 = vadd.f32 %v622_v28, %v460_v29  ;;  %vm474_vm0 = vcmp.ge.f32.partialorder %v470_v30, 0.0  ;;  %v478_v36 = vmul.f32 0.01, %v470_v30 }
 0x12a   : > { %vm477_vm3 = vcmp.ge.f32.partialorder %v473_v35, 0.0  ;;  %v481_v39 = vmul.f32 0.01, %v473_v35  ;;  %v484_v42 = vsel %vm476_vm2, %v472_v34, %v480_v38 }
 0x12b   : > { %vm475_vm1 = vcmp.ge.f32.partialorder %v471_v31, 0.0  ;;  %v479_v37 = vmul.f32 0.01, %v471_v31  ;;  %v482_v40 = vsel %vm474_vm0, %v470_v30, %v478_v36  ;;  %488 = vst [vmem:[%s871_s3 + $0x10] sm:$0xff] %v484_v42 }
 0x12c   : > { %486 = vst [vmem:[%s871_s3] sm:$0xff] %v482_v40  ;;  %v485_v43 = vsel %vm477_vm3, %v473_v35, %v481_v39 }
 0x12d   : > { %v483_v41 = vsel %vm475_vm1, %v471_v31, %v479_v37  ;;  %489 = vst [vmem:[%s871_s3 + $0x18] sm:$0xff] %v485_v43 }
 0x12e   : > { %487 = vst [vmem:[%s871_s3 + $0x8] sm:$0xff] %v483_v41 }
 0x12f PF: > { %s13_s16 = sadd.s32 1, %s746_s16   ;;  %s872_s12 = smov %s734_s13 }
 0x130   : > { %p10_p12 = scmp.ge.s32.totalorder %s13_s16, 11   ;;  %s873_s13 = smov %s804_s20 }
 0x131   : > { %s874_s14 = smov %s742_s15  ;;  %s875_s15 = smov %s877_s17 }
 0x132   :  { %12 = sbr.rel (!%p10_p12) target bundleno = 3 (0x3), region = 122 }

// kernel: convswarm_forward.53
= control target key start
LH: loop header
LB: loop body
LE: loop exit
PB: predicated region body
PF: predicated region fallthrough
CT: control target
= control target key end

     0   :  { %s951_s12 = smov 0   ;;  %s953_s13 = smov 0   ;;  %s1163_s0 = inlined_call_operand.vmem [shape: bf16[16,1152], index: 0, kind: input, shape index: {}]   ;;  %s1164_s1 = inlined_call_operand.vmem [shape: bf16[1152,256], index: 1, kind: input, shape index: {}]   ;;  %s1165_s2 = inlined_call_operand.vmem [shape: f32[1,256], index: 2, kind: input, shape index: {}]   ;;  %s1166_s3 = inlined_call_operand.vmem [shape: f32[16,256], index: 3, kind: output, shape index: {}]  }
   0x1   :  { %s955_s14 = smov 0   ;;  %s957_s15 = smov 0  }
   0x2   :  { %s959_s16 = smov 0   ;;  %s961_s17 = smov 0  }
   0x3   :  { %s963_s18 = smov 0   ;;  %s965_s19 = smov 0  }
   0x4   :  { %s967_s20 = smov 0   ;;  %s969_s21 = smov 0  }
   0x5   :  { %s971_s22 = smov 0  }
   0x6 LB: > { %s680_s23 = sadd.s32 4294967295, %s926_s22   ;;  %s25_s24 = sadd.s32 1, %s918_s20  ;;  %s926_s22 = sphi %s971_s22, %s13_s22   ;;  %s922_s21 = sphi %s969_s21, %s1187_s21   ;;  %s918_s20 = sphi %s967_s20, %s1186_s20   ;;  %s914_s19 = sphi %s965_s19, %s1185_s19   ;;  %s910_s18 = sphi %s963_s18, %s1184_s18   ;;  %s906_s17 = sphi %s961_s17, %s1183_s17   ;;  %s902_s16 = sphi %s959_s16, %s1182_s16   ;;  %s898_s15 = sphi %s957_s15, %s1181_s15   ;;  %s894_s14 = sphi %s955_s14, %s1180_s14   ;;  %s890_s13 = sphi %s953_s13, %s1179_s13   ;;  %s886_s12 = sphi %s951_s12, %s1178_s12  }
   0x7   : > { %p26_p0 = scmp.ge.s32.totalorder %s25_s24, 9  ;;  %s28_s25 = sadd.s32 1, %s922_s21 }
   0x8   : > { %s41_s26 = sadd.s32 1, %s906_s17  ;;  %p48_p1 = scmp.ne.s32.totalorder %s906_s17, %s902_s16 }
   0x9   : > { %s1189_s24 = smov (%p26_p0, %s25_s24), 0  ;;  %s1191_s25 = smov (!%p26_p0, %s28_s25), %s922_s21 }
   0xa   : > { %1169 = sst [smem:[#allocation6_spill]] %s1189_s24  ;;  %s37_s27 = ssub.s32 %s918_s20, %s1189_s24 }
   0xb   : > { %p49_p2 = scmp.eq.s32.totalorder %s926_s22, 0  ;;  %p30_p3 = scmp.ge.s32.totalorder %s1191_s25, 2 }
   0xc   : > { %p39_p4 = scmp.eq.s32.totalorder %s37_s27, 0  ;;  %s69_s29 = sadd.s32 1, %s898_s15 }
   0xd   : > { %p1018_p5 = por %p49_p2, %p48_p1  ;;  %s1193_s25 = smov (%p30_p3, %s1191_s25), 0 }
   0xe   : > { %1171 = sst [smem:[#allocation7_spill]] %s1193_s25  ;;  %s65_s4 = ssub.s32 %s922_s21, %s1193_s25 }
   0xf   : > { %s1026_s30 = scalar_select %p39_p4, %s906_s17, %s41_s26  }
  0x10   : > { %p76_p6 = scmp.ne.s32.totalorder %s898_s15, %s894_s14  ;;  %s66_s5 = sor.u32 %s65_s4, %s37_s27 }
  0x11   : > { %1172 = sst [smem:[#allocation8_spill]] %s1026_s30  ;;  %p121_p7 = scmp.eq.s32.totalorder %s65_s4, 0 }
  0x12   : > { %p67_p8 = scmp.eq.s32.totalorder %s66_s5, 0  ;;  %p1032_p9 = por %p76_p6, %p49_p2 }
  0x13   : > { %s123_s7 = sadd.s32 1, %s890_s13  ;;  %p133_p10 = scmp.ne.s32.totalorder %s890_s13, %s886_s12 }
  0x14   : > { %s1040_s8 = scalar_select %p67_p8, %s898_s15, %s69_s29  }
  0x15   : > { %s1043_s9 = scalar_select %p121_p7, %s890_s13, %s123_s7  }
  0x16   : > { %p134_p11 = scmp.eq.s32.totalorder %s680_s23, 17  ;;  %p683_p13 = scmp.ge.s32.totalorder %s926_s22, 18 }
  0x18   : > { %p1045_p12 = por %p134_p11, %p133_p10  ;;  %156 = sbr.rel (%p683_p13) target bundleno = 54 (0x36), region = 16 }
  0x1f   : > { %159 = sbr.rel (!%p1018_p5) target bundleno = 38 (0x26), region = 20  ;;  %s161_s11 = sand.u32 (%p1018_p5), 1, %s906_s17  }
  0x20   : > { %s685_s26 = sshll.u32 (%p1018_p5), %s918_s20, 2  ;;  %s684_s27 = sshll.u32 (%p1018_p5), %s161_s11, 3 }
  0x21   : > { %s168_s5 = scalar_lea.vmem (%p1018_p5), %s1163_s0, %s685_s26  ;;  %s163_s23 = scalar_lea.vmem (%p1018_p5), [#allocation3], %s684_s27 }
  0x22   : > { %v184_v0 = vld [vmem:[%s168_s5] sm:$0xf] (%p1018_p5)  ;;  %v186_v1 = vld [vmem:[%s168_s5 + $0x24] sm:$0xf] (%p1018_p5) }
  0x23   : > { %185 = vst [vmem:[%s163_s23] sm:$0xf] (%p1018_p5), %v184_v0  ;;  %187 = vst [vmem:[%s163_s23 + $0x4] sm:$0xf] (%p1018_p5), %v186_v1 }
  0x26 PF: > { %214 = sbr.rel (!%p1032_p9) target bundleno = 54 (0x36), region = 61  ;;  %s216_s28 = sand.u32 (%p1032_p9), 1, %s898_s15  }
  0x27   : > { %s710_s7 = sshll.u32 (%p1032_p9), %s918_s20, 5  ;;  %s686_s25 = sshll.u32 (%p1032_p9), %s216_s28, 6 }
  0x28   : > { %s221_s11 = sadd.s32 (%p1032_p9), %s922_s21, %s710_s7  ;;  %s218_s6 = scalar_lea.vmem (%p1032_p9), [#allocation4], %s686_s25 }
  0x29   : > { %s689_s24 = sshll.u32 (%p1032_p9), %s221_s11, 2 }
  0x2a   : > { %s1065_s26 = scalar_lea.vmem (%p1032_p9), %s1164_s1, %s689_s24 }
  0x2b   : > { %v239_v2 = vld [vmem:[%s1065_s26] sm:$0xf] (%p1032_p9)  ;;  %v241_v3 = vld [vmem:[%s1065_s26 + $0x8] sm:$0xf] (%p1032_p9)  ;;  %v243_v4 = vld [vmem:[%s1065_s26 + $0x10] sm:$0xf] (%p1032_p9) }
  0x2c   : > { %240 = vst [vmem:[%s218_s6] sm:$0xf] (%p1032_p9), %v239_v2  ;;  %242 = vst [vmem:[%s218_s6 + $0x4] sm:$0xf] (%p1032_p9), %v241_v3  ;;  %v245_v5 = vld [vmem:[%s1065_s26 + $0x18] sm:$0xf] (%p1032_p9) }
  0x2d   : > { %244 = vst [vmem:[%s218_s6 + $0x8] sm:$0xf] %v243_v4  ;;  %v247_v6 = vld [vmem:[%s1065_s26 + $0x20] sm:$0xf]  ;;  %v249_v7 = vld [vmem:[%s1065_s26 + $0x28] sm:$0xf] }
  0x2e   : > { %246 = vst [vmem:[%s218_s6 + $0xc] sm:$0xf] %v245_v5  ;;  %248 = vst [vmem:[%s218_s6 + $0x10] sm:$0xf] %v247_v6  ;;  %v251_v8 = vld [vmem:[%s1065_s26 + $0x30] sm:$0xf] }
  0x2f   : > { %250 = vst [vmem:[%s218_s6 + $0x14] sm:$0xf] %v249_v7  ;;  %v253_v9 = vld [vmem:[%s1065_s26 + $0x38] sm:$0xf]  ;;  %v255_v10 = vld [vmem:[%s1065_s26 + $0x40] sm:$0xf] }
  0x30   : > { %252 = vst [vmem:[%s218_s6 + $0x18] sm:$0xf] %v251_v8  ;;  %254 = vst [vmem:[%s218_s6 + $0x1c] sm:$0xf] %v253_v9  ;;  %v257_v11 = vld [vmem:[%s1065_s26 + $0x48] sm:$0xf] }
  0x31   : > { %256 = vst [vmem:[%s218_s6 + $0x20] sm:$0xf] %v255_v10  ;;  %v259_v12 = vld [vmem:[%s1065_s26 + $0x50] sm:$0xf]  ;;  %v261_v13 = vld [vmem:[%s1065_s26 + $0x58] sm:$0xf] }
  0x32   : > { %258 = vst [vmem:[%s218_s6 + $0x24] sm:$0xf] %v257_v11  ;;  %260 = vst [vmem:[%s218_s6 + $0x28] sm:$0xf] %v259_v12  ;;  %v263_v14 = vld [vmem:[%s1065_s26 + $0x60] sm:$0xf] }
  0x33   : > { %262 = vst [vmem:[%s218_s6 + $0x2c] sm:$0xf] %v261_v13  ;;  %v265_v15 = vld [vmem:[%s1065_s26 + $0x68] sm:$0xf]  ;;  %v267_v16 = vld [vmem:[%s1065_s26 + $0x70] sm:$0xf] }
  0x34   : > { %264 = vst [vmem:[%s218_s6 + $0x30] sm:$0xf] %v263_v14  ;;  %266 = vst [vmem:[%s218_s6 + $0x34] sm:$0xf] %v265_v15  ;;  %v269_v17 = vld [vmem:[%s1065_s26 + $0x78] sm:$0xf] }
  0x35   : > { %268 = vst [vmem:[%s218_s6 + $0x38] sm:$0xf] %v267_v16  ;;  %270 = vst [vmem:[%s218_s6 + $0x3c] sm:$0xf] %v269_v17 }
  0x36 PF: > { %p690_p0 = scmp.ge.s32.totalorder %s926_s22, 1  ;;  %p330_p1 = scmp.lt.s32.totalorder %s926_s22, 19 }
  0x38   : > { %p331_p2 = pnand %p690_p0, %p330_p1 }
  0x39   : > { %s337_s24 = sand.u32 (!%p331_p2), 1, %s902_s16   ;;  %s344_s25 = sand.u32 (!%p331_p2), 1, %s894_s14  }
  0x3a   : > { %334 = sbr.rel (%p331_p2) target bundleno = 344 (0x158), region = 106  ;;  %s1087_s30 = sshll.u32 (!%p331_p2), %s337_s24, 3 }
  0x3b   : > { %s692_s27 = sshll.u32 (!%p331_p2), %s344_s25, 6  ;;  %s370_s4 = sand.u32 (!%p331_p2), 1, %s886_s12  }
  0x3c   : > { %p375_p3 = scmp.lt.s32.totalorder (!%p331_p2), %s914_s19, 1  ;;  %s693_s5 = sshll.u32 (!%p331_p2), %s370_s4, 4 }
  0x3d   : > { %s339_s29 = scalar_lea.vmem (!%p331_p2), [#allocation3], %s1087_s30  ;;  %s1099_s26 = scalar_lea.vmem (!%p331_p2), [#allocation4], %s692_s27 }
  0x3e   : > { %s1101_s6 = scalar_lea.vmem (!%p331_p2), [#allocation5], %s693_s5  ;;  %p694_p4 = scmp.ne.s32.totalorder (!%p331_p2), %s910_s18, 0 }
  0x41   : > { %s1092_s23 = scalar_select %p375_p3, %s914_s19, 1 }
  0x42   : > { %383 = sbr.rel (%p694_p4) target bundleno = 73 (0x49), region = 118  ;;  %v928_v18 = vmov (!%p694_p4), 0.0  }
  0x43   : > { %s377_s11 = scalar_lea.vmem %s1165_s2, %s1092_s23  ;;  %384 = vst [vmem:[#allocation2] sm:$0xff] (!%p694_p4), %v928_v18  ;;  %385 = vst [vmem:[#allocation2 + $0x8] sm:$0xff] (!%p694_p4), %v928_v18 }
  0x49 PF: > { %v831_v19 = vld [vmem:[%s1099_s26] sm:$0xff]   ;;  %v929_v20 = vmov 0.0   ;;  %v832_v21 = vld [vmem:[%s1099_s26 + $0x8] sm:$0xff]   ;;  %vm930_vm0 = vmmov 0   ;;  %v833_v22 = vld [vmem:[%s1099_s26 + $0x10] sm:$0xff]   ;;  %p704_p5 = scmp.ne.s32.totalorder %s910_s18, 8 }
  0x4a   : > { %720 = vmatprep.subr.bf16.mxu0 %v929_v20  ;;  %736 = vmatprep.mubr.msk.bf16.mxu0 %vm930_vm0, %v929_v20  ;;  %v834_v23 = vld [vmem:[%s1099_s26 + $0x18] sm:$0xff]   ;;  %v835_v24 = vld [vmem:[%s1099_s26 + $0x20] sm:$0xff]   ;;  %v836_v25 = vld [vmem:[%s1099_s26 + $0x28] sm:$0xff]  }
  0x4b   : > { %721 = vmatpush3.bf16.msra.mxu0 %v831_v19  ;;  %v837_v26 = vld [vmem:[%s1099_s26 + $0x30] sm:$0xff]   ;;  %v838_v27 = vld [vmem:[%s1099_s26 + $0x38] sm:$0xff]   ;;  %v386_v29 = vld [vmem:[#allocation2] sm:$0xff] }
  0x4c   : > { %722 = vmatprep.subr.bf16.mxu0 %v929_v20  ;;  %v839_v28 = vld [vmem:[%s339_s29] sm:$0xff]   ;;  %v387_v31 = vld [vmem:[#allocation2 + $0x8] sm:$0xff]  ;;  %v705_v38 = vld [vmem:[%s377_s11] ss:$0 sm:$0xff] (!%p704_p5) }
  0x4f   : > { %723 = vmatpush3.bf16.msra.mxu0 %v832_v21 }
  0x50   : > { %724 = vmatprep.subr.bf16.mxu0 %v929_v20 }
  0x53   : > { %725 = vmatpush3.bf16.msra.mxu0 %v833_v22 }
  0x54   : > { %726 = vmatprep.subr.bf16.mxu0 %v929_v20 }
  0x57   : > { %727 = vmatpush3.bf16.msra.mxu0 %v834_v23 }
  0x58   : > { %728 = vmatprep.subr.bf16.mxu0 %v929_v20 }
  0x5b   : > { %729 = vmatpush3.bf16.msra.mxu0 %v835_v24 }
  0x5c   : > { %730 = vmatprep.subr.bf16.mxu0 %v929_v20 }
  0x5f   : > { %731 = vmatpush3.bf16.msra.mxu0 %v836_v25 }
  0x60   : > { %732 = vmatprep.subr.bf16.mxu0 %v929_v20 }
  0x63   : > { %733 = vmatpush3.bf16.msra.mxu0 %v837_v26 }
  0x64   : > { %734 = vmatprep.subr.bf16.mxu0 %v929_v20 }
  0x67   : > { %735 = vmatpush3.bf16.msra.mxu0 %v838_v27 }
  0x6a   : > { %737 = vmatmul.mubr.bf16.vlgmr.msra.gmra.mrb[0].mxu0 %v839_v28 }
 0x13c   : > { %508 = sbr.rel (%p704_p5) target bundleno = 336 (0x150), region = 122 }
 0x13d   : > { %v494_v30 = vpop.f32.mrb[0].mxu0 }
 0x13e   : > { %v501_v32 = vadd.f32 %v494_v30, %v386_v29  ;;  %v738_v33 = vpop.f32.mrb[1].mxu0 }
 0x13f   : > { %v497_v34 = vpop.f32.mrb[2].mxu0 }
 0x140   : > { %503 = vst [vmem:[#allocation2] sm:$0xff] %v501_v32  ;;  %v502_v35 = vadd.f32 %v497_v34, %v387_v31  ;;  %v739_v36 = vpop.f32.mrb[3].mxu0 }
 0x142   : > { %504 = vst [vmem:[#allocation2 + $0x8] sm:$0xff] %v502_v35 }
 0x147   : > { %v509_v37 = vld [vmem:[#allocation2] sm:$0xff] }
 0x148   : > { %v518_v40 = vadd.f32 %v705_v38, %v509_v37 }
 0x149   : > { %v510_v39 = vld [vmem:[#allocation2 + $0x8] sm:$0xff] }
 0x14a   : > { %v519_v41 = vadd.f32 %v705_v38, %v510_v39  ;;  %vm520_vm1 = vcmp.ge.f32.partialorder %v518_v40, 0.0  ;;  %v522_v42 = vmul.f32 0.01, %v518_v40 }
 0x14c   : > { %vm521_vm2 = vcmp.ge.f32.partialorder %v519_v41, 0.0  ;;  %v523_v43 = vmul.f32 0.01, %v519_v41  ;;  %v524_v44 = vsel %vm520_vm1, %v518_v40, %v522_v42 }
 0x14d   : > { %526 = vst [vmem:[%s1101_s6] sm:$0xff] %v524_v44 }
 0x14e   : > { %v525_v45 = vsel %vm521_vm2, %v519_v41, %v523_v43 }
 0x14f   : > { %527 = vst [vmem:[%s1101_s6 + $0x8] sm:$0xff] %v525_v45 }
 0x150 PF: > { %534 = sbr.rel (!%p1045_p12) target bundleno = 344 (0x158), region = 126  ;;  %s707_s16 = sshll.u32 (%p1045_p12), %s914_s19, 3 }
 0x151   : > { %s539_s25 = scalar_lea.vmem (%p1045_p12), %s1166_s3, %s707_s16 }
 0x154   : > { %v569_v46 = vld [vmem:[%s1101_s6] sm:$0xff] (%p1045_p12) }
 0x155   : > { %570 = vst [vmem:[%s539_s25] sm:$0xff] (%p1045_p12), %v569_v46 }
 0x156   : > { %v571_v47 = vld [vmem:[%s1101_s6 + $0x8] sm:$0xff] (%p1045_p12) }
 0x157   : > { %572 = vst [vmem:[%s539_s25 + $0x10] sm:$0xff] %v571_v47 }
 0x158 PF: > { %s13_s22 = sadd.s32 1, %s926_s22   ;;  %s1175_s10 = sld [smem:[#allocation8_spill]] }
 0x159   : > { %p10_p6 = scmp.ge.s32.totalorder %s13_s22, 20   ;;  %s1176_s30 = sld [smem:[#allocation6_spill]] }
 0x15a   : > { %s1177_s27 = sld [smem:[#allocation7_spill]]  ;;  %s1178_s12 = smov %s890_s13 }
 0x15b   : > { %s1179_s13 = smov %s1043_s9  ;;  %s1180_s14 = smov %s898_s15 }
 0x15c   : > { %s1181_s15 = smov %s1040_s8  ;;  %s1182_s16 = smov %s906_s17 }
 0x15d   : > { %s1184_s18 = smov %s918_s20  ;;  %s1185_s19 = smov %s922_s21 }
 0x15e   : > { %s1183_s17 = smov %s1175_s10  ;;  %12 = sbr.rel (!%p10_p6) target bundleno = 6 (0x6), region = 206 }
 0x15f   : > { %s1186_s20 = smov %s1176_s30 }
 0x160   : > { %s1187_s21 = smov %s1177_s27 }

// kernel: convswarm_forward.54
= control target key start
LH: loop header
LB: loop body
LE: loop exit
PB: predicated region body
PF: predicated region fallthrough
CT: control target
= control target key end

     0   :  { %s796_s12 = smov 0   ;;  %s798_s13 = smov 0   ;;  %s898_s0 = inlined_call_operand.vmem [shape: bf16[16,128], index: 0, kind: input, shape index: {}]   ;;  %s899_s1 = inlined_call_operand.vmem [shape: bf16[128,256], index: 1, kind: input, shape index: {}]   ;;  %s900_s2 = inlined_call_operand.vmem [shape: f32[1,256], index: 2, kind: input, shape index: {}]   ;;  %s901_s3 = inlined_call_operand.vmem [shape: f32[16,256], index: 3, kind: output, shape index: {}]  }
   0x1   :  { %s800_s14 = smov 0   ;;  %s802_s15 = smov 0  }
   0x2   :  { %s804_s16 = smov 0  }
   0x3 LB: > { %s28_s17 = sadd.s32 1, %s768_s15  ;;  %s630_s18 = sadd.s32 4294967295, %s772_s16   ;;  %s772_s16 = sphi %s804_s16, %s13_s16   ;;  %s768_s15 = sphi %s802_s15, %s906_s15   ;;  %s764_s14 = sphi %s800_s14, %s905_s14   ;;  %s760_s13 = sphi %s798_s13, %s904_s13   ;;  %s756_s12 = sphi %s796_s12, %s903_s12  }
   0x4   : > { %p30_p0 = scmp.ge.s32.totalorder %s28_s17, 2  ;;  %p76_p1 = scmp.ne.s32.totalorder %s760_s13, %s756_s12 }
   0x5   : > { %p77_p2 = scmp.eq.s32.totalorder %s772_s16, 0  ;;  %p134_p4 = scmp.eq.s32.totalorder %s630_s18, 1 }
   0x6   : > { %s908_s17 = smov (%p30_p0, %s28_s17), 0  ;;  %s69_s20 = sadd.s32 1, %s760_s13 }
   0x7   : > { %p78_p3 = por %p77_p2, %p76_p1  ;;  %s65_s19 = ssub.s32 %s768_s15, %s908_s17 }
   0x8   : > { %p67_p5 = scmp.eq.s32.totalorder %s65_s19, 0  ;;  %p831_p6 = por %p134_p4, %p76_p1 }
   0x9   : > { %p634_p7 = scmp.ge.s32.totalorder %s772_s16, 2 }
   0xa   : > { %s836_s22 = scalar_select %p67_p5, %s760_s13, %s69_s20  }
   0xb   : > { %168 = sbr.rel (%p634_p7) target bundleno = 32 (0x20), region = 20 }
  0x12   : > { %171 = sbr.rel (!%p78_p3) target bundleno = 32 (0x20), region = 24  ;;  %s173_s23 = sand.u32 (%p78_p3), 1, %s760_s13  }
  0x13   : > { %s636_s24 = sshll.u32 (%p78_p3), %s768_s15, 2  ;;  %s635_s25 = sshll.u32 (%p78_p3), %s173_s23, 6 }
  0x14   : > { %s844_s28 = scalar_lea.vmem (%p78_p3), %s899_s1, %s636_s24  ;;  %s175_s29 = scalar_lea.vmem (%p78_p3), [#allocation3], %s635_s25 }
  0x15   : > { %v196_v0 = vld [vmem:[%s844_s28] sm:$0xf] (%p78_p3)  ;;  %v198_v1 = vld [vmem:[%s844_s28 + $0x8] sm:$0xf] (%p78_p3)  ;;  %v200_v2 = vld [vmem:[%s844_s28 + $0x10] sm:$0xf] (%p78_p3) }
  0x16   : > { %197 = vst [vmem:[%s175_s29] sm:$0xf] (%p78_p3), %v196_v0  ;;  %199 = vst [vmem:[%s175_s29 + $0x4] sm:$0xf] (%p78_p3), %v198_v1  ;;  %v202_v3 = vld [vmem:[%s844_s28 + $0x18] sm:$0xf] (%p78_p3) }
  0x17   : > { %v204_v4 = vld [vmem:[%s844_s28 + $0x20] sm:$0xf] (%p78_p3)  ;;  %201 = vst [vmem:[%s175_s29 + $0x8] sm:$0xf] (%p78_p3), %v200_v2  ;;  %203 = vst [vmem:[%s175_s29 + $0xc] sm:$0xf] (%p78_p3), %v202_v3 }
  0x18   : > { %205 = vst [vmem:[%s175_s29 + $0x10] sm:$0xf] (%p78_p3), %v204_v4  ;;  %v206_v5 = vld [vmem:[%s844_s28 + $0x28] sm:$0xf] (%p78_p3)  ;;  %v208_v6 = vld [vmem:[%s844_s28 + $0x30] sm:$0xf] (%p78_p3) }
  0x19   : > { %v210_v7 = vld [vmem:[%s844_s28 + $0x38] sm:$0xf]  ;;  %207 = vst [vmem:[%s175_s29 + $0x14] sm:$0xf] %v206_v5  ;;  %209 = vst [vmem:[%s175_s29 + $0x18] sm:$0xf] %v208_v6 }
  0x1a   : > { %211 = vst [vmem:[%s175_s29 + $0x1c] sm:$0xf] %v210_v7  ;;  %v212_v8 = vld [vmem:[%s844_s28 + $0x40] sm:$0xf]  ;;  %v214_v9 = vld [vmem:[%s844_s28 + $0x48] sm:$0xf] }
  0x1b   : > { %v216_v10 = vld [vmem:[%s844_s28 + $0x50] sm:$0xf]  ;;  %213 = vst [vmem:[%s175_s29 + $0x20] sm:$0xf] %v212_v8  ;;  %215 = vst [vmem:[%s175_s29 + $0x24] sm:$0xf] %v214_v9 }
  0x1c   : > { %217 = vst [vmem:[%s175_s29 + $0x28] sm:$0xf] %v216_v10  ;;  %v218_v11 = vld [vmem:[%s844_s28 + $0x58] sm:$0xf]  ;;  %v220_v12 = vld [vmem:[%s844_s28 + $0x60] sm:$0xf] }
  0x1d   : > { %v222_v13 = vld [vmem:[%s844_s28 + $0x68] sm:$0xf]  ;;  %219 = vst [vmem:[%s175_s29 + $0x2c] sm:$0xf] %v218_v11  ;;  %221 = vst [vmem:[%s175_s29 + $0x30] sm:$0xf] %v220_v12 }
  0x1e   : > { %223 = vst [vmem:[%s175_s29 + $0x34] sm:$0xf] %v222_v13  ;;  %v224_v14 = vld [vmem:[%s844_s28 + $0x70] sm:$0xf]  ;;  %v226_v15 = vld [vmem:[%s844_s28 + $0x78] sm:$0xf] }
  0x1f   : > { %225 = vst [vmem:[%s175_s29 + $0x38] sm:$0xf] %v224_v14  ;;  %227 = vst [vmem:[%s175_s29 + $0x3c] sm:$0xf] %v226_v15 }
  0x20 PF: > { %p637_p8 = scmp.ge.s32.totalorder %s772_s16, 1  ;;  %p287_p9 = scmp.lt.s32.totalorder %s772_s16, 3 }
  0x22   : > { %p288_p10 = pnand %p637_p8, %p287_p9 }
  0x23   : > { %s294_s30 = sand.u32 (!%p288_p10), 1, %s756_s12   ;;  %v774_v16 = vmov (!%p288_p10), 0.0   ;;  %vm775_vm0 = vmmov (!%p288_p10), 0   ;;  %v733_v25 = vld [vmem:[%s898_s0] sm:$0xff] (!%p288_p10)   ;;  %p337_p11 = scmp.lt.s32.totalorder (!%p288_p10), %s764_s14, 1 }
  0x24   : > { %291 = sbr.rel (%p288_p10) target bundleno = 295 (0x127), region = 69  ;;  %663 = vmatprep.subr.bf16.mxu0 (!%p288_p10), %v774_v16  ;;  %s638_s4 = sshll.u32 (!%p288_p10), %s294_s30, 6  ;;  %679 = vmatprep.mubr.msk.bf16.mxu0 (!%p288_p10), %vm775_vm0, %v774_v16 }
  0x25   : > { %s296_s5 = scalar_lea.vmem (!%p288_p10), [#allocation3], %s638_s4  ;;  %s639_s18 = sshll.u32 (!%p288_p10), %s294_s30, 4 }
  0x26   : > { %v725_v17 = vld [vmem:[%s296_s5] sm:$0xff] (!%p288_p10)   ;;  %v726_v18 = vld [vmem:[%s296_s5 + $0x8] sm:$0xff] (!%p288_p10)   ;;  %v727_v19 = vld [vmem:[%s296_s5 + $0x10] sm:$0xff] (!%p288_p10)   ;;  %s326_s19 = scalar_lea.vmem (!%p288_p10), [#allocation4], %s639_s18 }
  0x27   : > { %664 = vmatpush3.bf16.msra.mxu0 (!%p288_p10), %v725_v17  ;;  %v728_v20 = vld [vmem:[%s296_s5 + $0x18] sm:$0xff] (!%p288_p10)   ;;  %v729_v21 = vld [vmem:[%s296_s5 + $0x20] sm:$0xff] (!%p288_p10)   ;;  %v730_v22 = vld [vmem:[%s296_s5 + $0x28] sm:$0xff] (!%p288_p10)  }
  0x28   : > { %665 = vmatprep.subr.bf16.mxu0 (!%p288_p10), %v774_v16  ;;  %v731_v23 = vld [vmem:[%s296_s5 + $0x30] sm:$0xff] (!%p288_p10)   ;;  %v732_v24 = vld [vmem:[%s296_s5 + $0x38] sm:$0xff] (!%p288_p10)  }
  0x2b   : > { %666 = vmatpush3.bf16.msra.mxu0 %v726_v18  ;;  %s338_s8 = scalar_select %p337_p11, %s764_s14, 1 }
  0x2c   : > { %667 = vmatprep.subr.bf16.mxu0 %v774_v16  ;;  %s651_s20 = sshll.u32 (%p831_p6), %s764_s14, 3 }
  0x2d   : > { %s339_s11 = scalar_lea.vmem %s900_s2, %s338_s8  ;;  %s494_s24 = scalar_lea.vmem (%p831_p6), %s901_s3, %s651_s20 }
  0x2e   : > { %v649_v26 = vld [vmem:[%s339_s11] ss:$0 sm:$0xff] }
  0x2f   : > { %668 = vmatpush3.bf16.msra.mxu0 %v727_v19 }
  0x30   : > { %669 = vmatprep.subr.bf16.mxu0 %v774_v16 }
  0x33   : > { %670 = vmatpush3.bf16.msra.mxu0 %v728_v20 }
  0x34   : > { %671 = vmatprep.subr.bf16.mxu0 %v774_v16 }
  0x37   : > { %672 = vmatpush3.bf16.msra.mxu0 %v729_v21 }
  0x38   : > { %673 = vmatprep.subr.bf16.mxu0 %v774_v16 }
  0x3b   : > { %674 = vmatpush3.bf16.msra.mxu0 %v730_v22 }
  0x3c   : > { %675 = vmatprep.subr.bf16.mxu0 %v774_v16 }
  0x3f   : > { %676 = vmatpush3.bf16.msra.mxu0 %v731_v23 }
  0x40   : > { %677 = vmatprep.subr.bf16.mxu0 %v774_v16 }
  0x43   : > { %678 = vmatpush3.bf16.msra.mxu0 %v732_v24 }
  0x46   : > { %680 = vmatmul.mubr.bf16.vlgmr.msra.gmra.mrb[0].mxu0 %v733_v25 }
 0x118   : > { %489 = sbr.rel (!%p831_p6) target bundleno = 295 (0x127), region = 85 }
 0x119   : > { %v456_v27 = vpop.f32.mrb[0].mxu0 }
 0x11a   : > { %v479_v28 = vadd.f32 %v649_v26, %v456_v27  ;;  %v681_v29 = vpop.f32.mrb[1].mxu0 }
 0x11b   : > { %v459_v30 = vpop.f32.mrb[2].mxu0 }
 0x11c   : > { %481 = vst [vmem:[%s326_s19] sm:$0xff] %v479_v28  ;;  %v480_v31 = vadd.f32 %v649_v26, %v459_v30  ;;  %v682_v32 = vpop.f32.mrb[3].mxu0 }
 0x11e   : > { %482 = vst [vmem:[%s326_s19 + $0x8] sm:$0xff] %v480_v31 }
 0x123   : > { %v524_v33 = vld [vmem:[%s326_s19] sm:$0xff] }
 0x124   : > { %525 = vst [vmem:[%s494_s24] sm:$0xff] %v524_v33 }
 0x125   : > { %v526_v34 = vld [vmem:[%s326_s19 + $0x8] sm:$0xff] }
 0x126   : > { %527 = vst [vmem:[%s494_s24 + $0x10] sm:$0xff] %v526_v34 }
 0x127 PF: > { %s13_s16 = sadd.s32 1, %s772_s16   ;;  %s903_s12 = smov %s760_s13 }
 0x128   : > { %p10_p12 = scmp.ge.s32.totalorder %s13_s16, 4   ;;  %s904_s13 = smov %s836_s22 }
 0x129   : > { %s905_s14 = smov %s768_s15  ;;  %s906_s15 = smov %s908_s17 }
 0x12a   :  { %12 = sbr.rel (!%p10_p12) target bundleno = 3 (0x3), region = 160 }

// kernel: convswarm_forward.56
= control target key start
LH: loop header
LB: loop body
LE: loop exit
PB: predicated region body
PF: predicated region fallthrough
CT: control target
= control target key end

     0   :  { %s951_s12 = smov 0   ;;  %s953_s13 = smov 0   ;;  %s1163_s0 = inlined_call_operand.vmem [shape: bf16[16,2304], index: 0, kind: input, shape index: {}]   ;;  %s1164_s1 = inlined_call_operand.vmem [shape: bf16[2304,256], index: 1, kind: input, shape index: {}]   ;;  %s1165_s2 = inlined_call_operand.vmem [shape: f32[1,256], index: 2, kind: input, shape index: {}]   ;;  %s1166_s3 = inlined_call_operand.vmem [shape: f32[16,256], index: 3, kind: output, shape index: {}]  }
   0x1   :  { %s955_s14 = smov 0   ;;  %s957_s15 = smov 0  }
   0x2   :  { %s959_s16 = smov 0   ;;  %s961_s17 = smov 0  }
   0x3   :  { %s963_s18 = smov 0   ;;  %s965_s19 = smov 0  }
   0x4   :  { %s967_s20 = smov 0   ;;  %s969_s21 = smov 0  }
   0x5   :  { %s971_s22 = smov 0  }
   0x6 LB: > { %s680_s23 = sadd.s32 4294967295, %s926_s22   ;;  %s25_s24 = sadd.s32 1, %s918_s20  ;;  %s926_s22 = sphi %s971_s22, %s13_s22   ;;  %s922_s21 = sphi %s969_s21, %s1187_s21   ;;  %s918_s20 = sphi %s967_s20, %s1186_s20   ;;  %s914_s19 = sphi %s965_s19, %s1185_s19   ;;  %s910_s18 = sphi %s963_s18, %s1184_s18   ;;  %s906_s17 = sphi %s961_s17, %s1183_s17   ;;  %s902_s16 = sphi %s959_s16, %s1182_s16   ;;  %s898_s15 = sphi %s957_s15, %s1181_s15   ;;  %s894_s14 = sphi %s955_s14, %s1180_s14   ;;  %s890_s13 = sphi %s953_s13, %s1179_s13   ;;  %s886_s12 = sphi %s951_s12, %s1178_s12  }
   0x7   : > { %p26_p0 = scmp.ge.s32.totalorder %s25_s24, 18  ;;  %s28_s25 = sadd.s32 1, %s922_s21 }
   0x8   : > { %s41_s26 = sadd.s32 1, %s906_s17  ;;  %p48_p1 = scmp.ne.s32.totalorder %s906_s17, %s902_s16 }
   0x9   : > { %s1189_s24 = smov (%p26_p0, %s25_s24), 0  ;;  %s1191_s25 = smov (!%p26_p0, %s28_s25), %s922_s21 }
   0xa   : > { %1169 = sst [smem:[#allocation6_spill]] %s1189_s24  ;;  %s37_s27 = ssub.s32 %s918_s20, %s1189_s24 }
   0xb   : > { %p49_p2 = scmp.eq.s32.totalorder %s926_s22, 0  ;;  %p30_p3 = scmp.ge.s32.totalorder %s1191_s25, 2 }
   0xc   : > { %p39_p4 = scmp.eq.s32.totalorder %s37_s27, 0  ;;  %s69_s29 = sadd.s32 1, %s898_s15 }
   0xd   : > { %p1018_p5 = por %p49_p2, %p48_p1  ;;  %s1193_s25 = smov (%p30_p3, %s1191_s25), 0 }
   0xe   : > { %1171 = sst [smem:[#allocation7_spill]] %s1193_s25  ;;  %s65_s4 = ssub.s32 %s922_s21, %s1193_s25 }
   0xf   : > { %s1026_s30 = scalar_select %p39_p4, %s906_s17, %s41_s26  }
  0x10   : > { %p76_p6 = scmp.ne.s32.totalorder %s898_s15, %s894_s14  ;;  %s66_s5 = sor.u32 %s65_s4, %s37_s27 }
  0x11   : > { %1172 = sst [smem:[#allocation8_spill]] %s1026_s30  ;;  %p121_p7 = scmp.eq.s32.totalorder %s65_s4, 0 }
  0x12   : > { %p67_p8 = scmp.eq.s32.totalorder %s66_s5, 0  ;;  %p1032_p9 = por %p76_p6, %p49_p2 }
  0x13   : > { %s123_s7 = sadd.s32 1, %s890_s13  ;;  %p133_p10 = scmp.ne.s32.totalorder %s890_s13, %s886_s12 }
  0x14   : > { %s1040_s8 = scalar_select %p67_p8, %s898_s15, %s69_s29  }
  0x15   : > { %s1043_s9 = scalar_select %p121_p7, %s890_s13, %s123_s7  }
  0x16   : > { %p134_p11 = scmp.eq.s32.totalorder %s680_s23, 35  ;;  %p683_p13 = scmp.ge.s32.totalorder %s926_s22, 36 }
  0x18   : > { %p1045_p12 = por %p134_p11, %p133_p10  ;;  %156 = sbr.rel (%p683_p13) target bundleno = 54 (0x36), region = 16 }
  0x1f   : > { %159 = sbr.rel (!%p1018_p5) target bundleno = 38 (0x26), region = 20  ;;  %s161_s11 = sand.u32 (%p1018_p5), 1, %s906_s17  }
  0x20   : > { %s685_s26 = sshll.u32 (%p1018_p5), %s918_s20, 2  ;;  %s684_s27 = sshll.u32 (%p1018_p5), %s161_s11, 3 }
  0x21   : > { %s168_s5 = scalar_lea.vmem (%p1018_p5), %s1163_s0, %s685_s26  ;;  %s163_s23 = scalar_lea.vmem (%p1018_p5), [#allocation3], %s684_s27 }
  0x22   : > { %v184_v0 = vld [vmem:[%s168_s5] sm:$0xf] (%p1018_p5)  ;;  %v186_v1 = vld [vmem:[%s168_s5 + $0x48] sm:$0xf] (%p1018_p5) }
  0x23   : > { %185 = vst [vmem:[%s163_s23] sm:$0xf] (%p1018_p5), %v184_v0  ;;  %187 = vst [vmem:[%s163_s23 + $0x4] sm:$0xf] (%p1018_p5), %v186_v1 }
  0x26 PF: > { %214 = sbr.rel (!%p1032_p9) target bundleno = 54 (0x36), region = 61  ;;  %s216_s28 = sand.u32 (%p1032_p9), 1, %s898_s15  }
  0x27   : > { %s710_s7 = sshll.u32 (%p1032_p9), %s918_s20, 5  ;;  %s686_s25 = sshll.u32 (%p1032_p9), %s216_s28, 6 }
  0x28   : > { %s221_s11 = sadd.s32 (%p1032_p9), %s922_s21, %s710_s7  ;;  %s218_s6 = scalar_lea.vmem (%p1032_p9), [#allocation4], %s686_s25 }
  0x29   : > { %s689_s24 = sshll.u32 (%p1032_p9), %s221_s11, 2 }
  0x2a   : > { %s1065_s26 = scalar_lea.vmem (%p1032_p9), %s1164_s1, %s689_s24 }
  0x2b   : > { %v239_v2 = vld [vmem:[%s1065_s26] sm:$0xf] (%p1032_p9)  ;;  %v241_v3 = vld [vmem:[%s1065_s26 + $0x8] sm:$0xf] (%p1032_p9)  ;;  %v243_v4 = vld [vmem:[%s1065_s26 + $0x10] sm:$0xf] (%p1032_p9) }
  0x2c   : > { %240 = vst [vmem:[%s218_s6] sm:$0xf] (%p1032_p9), %v239_v2  ;;  %242 = vst [vmem:[%s218_s6 + $0x4] sm:$0xf] (%p1032_p9), %v241_v3  ;;  %v245_v5 = vld [vmem:[%s1065_s26 + $0x18] sm:$0xf] (%p1032_p9) }
  0x2d   : > { %244 = vst [vmem:[%s218_s6 + $0x8] sm:$0xf] %v243_v4  ;;  %v247_v6 = vld [vmem:[%s1065_s26 + $0x20] sm:$0xf]  ;;  %v249_v7 = vld [vmem:[%s1065_s26 + $0x28] sm:$0xf] }
  0x2e   : > { %246 = vst [vmem:[%s218_s6 + $0xc] sm:$0xf] %v245_v5  ;;  %248 = vst [vmem:[%s218_s6 + $0x10] sm:$0xf] %v247_v6  ;;  %v251_v8 = vld [vmem:[%s1065_s26 + $0x30] sm:$0xf] }
  0x2f   : > { %250 = vst [vmem:[%s218_s6 + $0x14] sm:$0xf] %v249_v7  ;;  %v253_v9 = vld [vmem:[%s1065_s26 + $0x38] sm:$0xf]  ;;  %v255_v10 = vld [vmem:[%s1065_s26 + $0x40] sm:$0xf] }
  0x30   : > { %252 = vst [vmem:[%s218_s6 + $0x18] sm:$0xf] %v251_v8  ;;  %254 = vst [vmem:[%s218_s6 + $0x1c] sm:$0xf] %v253_v9  ;;  %v257_v11 = vld [vmem:[%s1065_s26 + $0x48] sm:$0xf] }
  0x31   : > { %256 = vst [vmem:[%s218_s6 + $0x20] sm:$0xf] %v255_v10  ;;  %v259_v12 = vld [vmem:[%s1065_s26 + $0x50] sm:$0xf]  ;;  %v261_v13 = vld [vmem:[%s1065_s26 + $0x58] sm:$0xf] }
  0x32   : > { %258 = vst [vmem:[%s218_s6 + $0x24] sm:$0xf] %v257_v11  ;;  %260 = vst [vmem:[%s218_s6 + $0x28] sm:$0xf] %v259_v12  ;;  %v263_v14 = vld [vmem:[%s1065_s26 + $0x60] sm:$0xf] }
  0x33   : > { %262 = vst [vmem:[%s218_s6 + $0x2c] sm:$0xf] %v261_v13  ;;  %v265_v15 = vld [vmem:[%s1065_s26 + $0x68] sm:$0xf]  ;;  %v267_v16 = vld [vmem:[%s1065_s26 + $0x70] sm:$0xf] }
  0x34   : > { %264 = vst [vmem:[%s218_s6 + $0x30] sm:$0xf] %v263_v14  ;;  %266 = vst [vmem:[%s218_s6 + $0x34] sm:$0xf] %v265_v15  ;;  %v269_v17 = vld [vmem:[%s1065_s26 + $0x78] sm:$0xf] }
  0x35   : > { %268 = vst [vmem:[%s218_s6 + $0x38] sm:$0xf] %v267_v16  ;;  %270 = vst [vmem:[%s218_s6 + $0x3c] sm:$0xf] %v269_v17 }
  0x36 PF: > { %p690_p0 = scmp.ge.s32.totalorder %s926_s22, 1  ;;  %p330_p1 = scmp.lt.s32.totalorder %s926_s22, 37 }
  0x38   : > { %p331_p2 = pnand %p690_p0, %p330_p1 }
  0x39   : > { %s337_s24 = sand.u32 (!%p331_p2), 1, %s902_s16   ;;  %s344_s25 = sand.u32 (!%p331_p2), 1, %s894_s14  }
  0x3a   : > { %334 = sbr.rel (%p331_p2) target bundleno = 344 (0x158), region = 106  ;;  %s1087_s30 = sshll.u32 (!%p331_p2), %s337_s24, 3 }
  0x3b   : > { %s692_s27 = sshll.u32 (!%p331_p2), %s344_s25, 6  ;;  %s370_s4 = sand.u32 (!%p331_p2), 1, %s886_s12  }
  0x3c   : > { %p375_p3 = scmp.lt.s32.totalorder (!%p331_p2), %s914_s19, 1  ;;  %s693_s5 = sshll.u32 (!%p331_p2), %s370_s4, 4 }
  0x3d   : > { %s339_s29 = scalar_lea.vmem (!%p331_p2), [#allocation3], %s1087_s30  ;;  %s1099_s26 = scalar_lea.vmem (!%p331_p2), [#allocation4], %s692_s27 }
  0x3e   : > { %s1101_s6 = scalar_lea.vmem (!%p331_p2), [#allocation5], %s693_s5  ;;  %p694_p4 = scmp.ne.s32.totalorder (!%p331_p2), %s910_s18, 0 }
  0x41   : > { %s1092_s23 = scalar_select %p375_p3, %s914_s19, 1 }
  0x42   : > { %383 = sbr.rel (%p694_p4) target bundleno = 73 (0x49), region = 118  ;;  %v928_v18 = vmov (!%p694_p4), 0.0  }
  0x43   : > { %s377_s11 = scalar_lea.vmem %s1165_s2, %s1092_s23  ;;  %384 = vst [vmem:[#allocation2] sm:$0xff] (!%p694_p4), %v928_v18  ;;  %385 = vst [vmem:[#allocation2 + $0x8] sm:$0xff] (!%p694_p4), %v928_v18 }
  0x49 PF: > { %v831_v19 = vld [vmem:[%s1099_s26] sm:$0xff]   ;;  %v929_v20 = vmov 0.0   ;;  %v832_v21 = vld [vmem:[%s1099_s26 + $0x8] sm:$0xff]   ;;  %vm930_vm0 = vmmov 0   ;;  %v833_v22 = vld [vmem:[%s1099_s26 + $0x10] sm:$0xff]   ;;  %p704_p5 = scmp.ne.s32.totalorder %s910_s18, 17 }
  0x4a   : > { %720 = vmatprep.subr.bf16.mxu0 %v929_v20  ;;  %736 = vmatprep.mubr.msk.bf16.mxu0 %vm930_vm0, %v929_v20  ;;  %v834_v23 = vld [vmem:[%s1099_s26 + $0x18] sm:$0xff]   ;;  %v835_v24 = vld [vmem:[%s1099_s26 + $0x20] sm:$0xff]   ;;  %v836_v25 = vld [vmem:[%s1099_s26 + $0x28] sm:$0xff]  }
  0x4b   : > { %721 = vmatpush3.bf16.msra.mxu0 %v831_v19  ;;  %v837_v26 = vld [vmem:[%s1099_s26 + $0x30] sm:$0xff]   ;;  %v838_v27 = vld [vmem:[%s1099_s26 + $0x38] sm:$0xff]   ;;  %v386_v29 = vld [vmem:[#allocation2] sm:$0xff] }
  0x4c   : > { %722 = vmatprep.subr.bf16.mxu0 %v929_v20  ;;  %v839_v28 = vld [vmem:[%s339_s29] sm:$0xff]   ;;  %v387_v31 = vld [vmem:[#allocation2 + $0x8] sm:$0xff]  ;;  %v705_v38 = vld [vmem:[%s377_s11] ss:$0 sm:$0xff] (!%p704_p5) }
  0x4f   : > { %723 = vmatpush3.bf16.msra.mxu0 %v832_v21 }
  0x50   : > { %724 = vmatprep.subr.bf16.mxu0 %v929_v20 }
  0x53   : > { %725 = vmatpush3.bf16.msra.mxu0 %v833_v22 }
  0x54   : > { %726 = vmatprep.subr.bf16.mxu0 %v929_v20 }
  0x57   : > { %727 = vmatpush3.bf16.msra.mxu0 %v834_v23 }
  0x58   : > { %728 = vmatprep.subr.bf16.mxu0 %v929_v20 }
  0x5b   : > { %729 = vmatpush3.bf16.msra.mxu0 %v835_v24 }
  0x5c   : > { %730 = vmatprep.subr.bf16.mxu0 %v929_v20 }
  0x5f   : > { %731 = vmatpush3.bf16.msra.mxu0 %v836_v25 }
  0x60   : > { %732 = vmatprep.subr.bf16.mxu0 %v929_v20 }
  0x63   : > { %733 = vmatpush3.bf16.msra.mxu0 %v837_v26 }
  0x64   : > { %734 = vmatprep.subr.bf16.mxu0 %v929_v20 }
  0x67   : > { %735 = vmatpush3.bf16.msra.mxu0 %v838_v27 }
  0x6a   : > { %737 = vmatmul.mubr.bf16.vlgmr.msra.gmra.mrb[0].mxu0 %v839_v28 }
 0x13c   : > { %508 = sbr.rel (%p704_p5) target bundleno = 336 (0x150), region = 122 }
 0x13d   : > { %v494_v30 = vpop.f32.mrb[0].mxu0 }
 0x13e   : > { %v501_v32 = vadd.f32 %v494_v30, %v386_v29  ;;  %v738_v33 = vpop.f32.mrb[1].mxu0 }
 0x13f   : > { %v497_v34 = vpop.f32.mrb[2].mxu0 }
 0x140   : > { %503 = vst [vmem:[#allocation2] sm:$0xff] %v501_v32  ;;  %v502_v35 = vadd.f32 %v497_v34, %v387_v31  ;;  %v739_v36 = vpop.f32.mrb[3].mxu0 }
 0x142   : > { %504 = vst [vmem:[#allocation2 + $0x8] sm:$0xff] %v502_v35 }
 0x147   : > { %v509_v37 = vld [vmem:[#allocation2] sm:$0xff] }
 0x148   : > { %v518_v40 = vadd.f32 %v705_v38, %v509_v37 }
 0x149   : > { %v510_v39 = vld [vmem:[#allocation2 + $0x8] sm:$0xff] }
 0x14a   : > { %v519_v41 = vadd.f32 %v705_v38, %v510_v39  ;;  %vm520_vm1 = vcmp.ge.f32.partialorder %v518_v40, 0.0  ;;  %v522_v42 = vmul.f32 0.01, %v518_v40 }
 0x14c   : > { %vm521_vm2 = vcmp.ge.f32.partialorder %v519_v41, 0.0  ;;  %v523_v43 = vmul.f32 0.01, %v519_v41  ;;  %v524_v44 = vsel %vm520_vm1, %v518_v40, %v522_v42 }
 0x14d   : > { %526 = vst [vmem:[%s1101_s6] sm:$0xff] %v524_v44 }
 0x14e   : > { %v525_v45 = vsel %vm521_vm2, %v519_v41, %v523_v43 }
 0x14f   : > { %527 = vst [vmem:[%s1101_s6 + $0x8] sm:$0xff] %v525_v45 }
 0x150 PF: > { %534 = sbr.rel (!%p1045_p12) target bundleno = 344 (0x158), region = 126  ;;  %s707_s16 = sshll.u32 (%p1045_p12), %s914_s19, 3 }
 0x151   : > { %s539_s25 = scalar_lea.vmem (%p1045_p12), %s1166_s3, %s707_s16 }
 0x154   : > { %v569_v46 = vld [vmem:[%s1101_s6] sm:$0xff] (%p1045_p12) }
 0x155   : > { %570 = vst [vmem:[%s539_s25] sm:$0xff] (%p1045_p12), %v569_v46 }
 0x156   : > { %v571_v47 = vld [vmem:[%s1101_s6 + $0x8] sm:$0xff] (%p1045_p12) }
 0x157   : > { %572 = vst [vmem:[%s539_s25 + $0x10] sm:$0xff] %v571_v47 }
 0x158 PF: > { %s13_s22 = sadd.s32 1, %s926_s22   ;;  %s1175_s10 = sld [smem:[#allocation8_spill]] }
 0x159   : > { %p10_p6 = scmp.ge.s32.totalorder %s13_s22, 38   ;;  %s1176_s30 = sld [smem:[#allocation6_spill]] }
 0x15a   : > { %s1177_s27 = sld [smem:[#allocation7_spill]]  ;;  %s1178_s12 = smov %s890_s13 }
 0x15b   : > { %s1179_s13 = smov %s1043_s9  ;;  %s1180_s14 = smov %s898_s15 }
 0x15c   : > { %s1181_s15 = smov %s1040_s8  ;;  %s1182_s16 = smov %s906_s17 }
 0x15d   : > { %s1184_s18 = smov %s918_s20  ;;  %s1185_s19 = smov %s922_s21 }
 0x15e   : > { %s1183_s17 = smov %s1175_s10  ;;  %12 = sbr.rel (!%p10_p6) target bundleno = 6 (0x6), region = 206 }
 0x15f   : > { %s1186_s20 = smov %s1176_s30 }
 0x160   : > { %s1187_s21 = smov %s1177_s27 }

// kernel: convswarm_forward.55
= control target key start
LH: loop header
LB: loop body
LE: loop exit
PB: predicated region body
PF: predicated region fallthrough
CT: control target
= control target key end

     0   :  { %s1074_s15 = smov 0   ;;  %s1076_s16 = smov 0   ;;  %s1311_s0 = inlined_call_operand.vmem [shape: bf16[16,2304], index: 0, kind: input, shape index: {}]   ;;  %s1312_s1 = inlined_call_operand.vmem [shape: bf16[2304,256], index: 1, kind: input, shape index: {}]   ;;  %s1313_s2 = inlined_call_operand.vmem [shape: f32[1,256], index: 2, kind: input, shape index: {}]   ;;  %s1314_s3 = inlined_call_operand.vmem [shape: f32[16,256], index: 3, kind: input, shape index: {}]   ;;  %s1315_s4 = inlined_call_operand.vmem [shape: f32[16,256], index: 4, kind: output, shape index: {}]  }
   0x1   :  { %s1078_s17 = smov 0   ;;  %s1080_s18 = smov 0  }
   0x2   :  { %s1082_s19 = smov 0   ;;  %s1084_s20 = smov 0  }
   0x3   :  { %s1086_s21 = smov 0   ;;  %s1088_s22 = smov 0  }
   0x4   :  { %s1090_s23 = smov 0   ;;  %s1092_s24 = smov 0  }
   0x5   :  { %s1094_s25 = smov 0  }
   0x6 LB: > { %1319 = sst [smem:[#allocation7_spill]] %s1024_s20  ;;  %s795_s26 = sadd.s32 4294967295, %s1044_s25   ;;  %s1044_s25 = sphi %s1094_s25, %s14_s25   ;;  %s1040_s24 = sphi %s1092_s24, %s1340_s24   ;;  %s1036_s23 = sphi %s1090_s23, %s1339_s23   ;;  %s1032_s22 = sphi %s1088_s22, %s1338_s22   ;;  %s1028_s21 = sphi %s1086_s21, %s1337_s21   ;;  %s1024_s20 = sphi %s1084_s20, %s1330_s20   ;;  %s1020_s19 = sphi %s1082_s19, %s1329_s19   ;;  %s1016_s18 = sphi %s1080_s18, %s1336_s18   ;;  %s1012_s17 = sphi %s1078_s17, %s1335_s17   ;;  %s1008_s16 = sphi %s1076_s16, %s1334_s16   ;;  %s1004_s15 = sphi %s1074_s15, %s1333_s15  }
   0x7   : > { %s26_s27 = sadd.s32 1, %s1036_s23  ;;  %s29_s28 = sadd.s32 1, %s1040_s24 }
   0x8   : > { %p27_p0 = scmp.ge.s32.totalorder %s26_s27, 18  ;;  %s42_s29 = sadd.s32 1, %s1024_s20 }
   0x9   : > { %p49_p1 = scmp.ne.s32.totalorder %s1024_s20, %s1020_s19  ;;  %p50_p2 = scmp.eq.s32.totalorder %s1044_s25, 0 }
   0xa   : > { %s1342_s27 = smov (%p27_p0, %s26_s27), 0  ;;  %s1344_s28 = smov (!%p27_p0, %s29_s28), %s1040_s24 }
   0xb   : > { %1320 = sst [smem:[#allocation8_spill]] %s1342_s27  ;;  %s38_s30 = ssub.s32 %s1036_s23, %s1342_s27 }
   0xc   : > { %p31_p3 = scmp.ge.s32.totalorder %s1344_s28, 2  ;;  %p40_p4 = scmp.eq.s32.totalorder %s38_s30, 0 }
   0xd   : > { %p1143_p5 = por %p50_p2, %p49_p1  ;;  %s70_s6 = sadd.s32 1, %s1016_s18 }
   0xe   : > { %s1346_s28 = smov (%p31_p3, %s1344_s28), 0  ;;  %p77_p6 = scmp.ne.s32.totalorder %s1016_s18, %s1012_s17 }
   0xf   : > { %1322 = sst [smem:[#allocation9_spill]] %s1346_s28  ;;  %s66_s8 = ssub.s32 %s1040_s24, %s1346_s28 }
  0x10   : > { %s1151_s7 = scalar_select %p40_p4, %s1024_s20, %s42_s29  }
  0x11   : > { %s67_s9 = sor.u32 %s66_s8, %s38_s30  ;;  %p122_p7 = scmp.eq.s32.totalorder %s66_s8, 0 }
  0x12   : > { %1323 = sst [smem:[#allocation10_spill]] %s1151_s7  ;;  %p68_p8 = scmp.eq.s32.totalorder %s67_s9, 0 }
  0x13   : > { %p1159_p9 = por %p77_p6, %p50_p2  ;;  %s124_s11 = sadd.s32 1, %s1008_s16 }
  0x14   : > { %p131_p10 = scmp.ne.s32.totalorder %s1008_s16, %s1004_s15  ;;  %p163_p12 = scmp.eq.s32.totalorder %s795_s26, 35 }
  0x15   : > { %s1167_s12 = scalar_select %p68_p8, %s1016_s18, %s70_s6  }
  0x16   : > { %s1170_s13 = scalar_select %p122_p7, %s1008_s16, %s124_s11  }
  0x17   : > { %1325 = sst [smem:[#allocation11_spill]] %s1167_s12  ;;  %p1174_p11 = por %p131_p10, %p50_p2 }
  0x18   : > { %p1178_p13 = por %p163_p12, %p131_p10  ;;  %p798_p0 = scmp.ge.s32.totalorder %s1044_s25, 36 }
  0x1a   : > { %185 = sbr.rel (%p798_p0) target bundleno = 63 (0x3f), region = 16 }
  0x21   : > { %188 = sbr.rel (!%p1143_p5) target bundleno = 40 (0x28), region = 20  ;;  %s190_s30 = sand.u32 (%p1143_p5), 1, %s1024_s20  }
  0x22   : > { %s800_s6 = sshll.u32 (%p1143_p5), %s1036_s23, 2  ;;  %s799_s8 = sshll.u32 (%p1143_p5), %s190_s30, 3 }
  0x23   : > { %s197_s28 = scalar_lea.vmem (%p1143_p5), %s1311_s0, %s800_s6  ;;  %s192_s26 = scalar_lea.vmem (%p1143_p5), [#allocation3], %s799_s8 }
  0x24   : > { %v213_v0 = vld [vmem:[%s197_s28] sm:$0xf] (%p1143_p5)  ;;  %v215_v1 = vld [vmem:[%s197_s28 + $0x48] sm:$0xf] (%p1143_p5) }
  0x25   : > { %214 = vst [vmem:[%s192_s26] sm:$0xf] (%p1143_p5), %v213_v0  ;;  %216 = vst [vmem:[%s192_s26 + $0x4] sm:$0xf] (%p1143_p5), %v215_v1 }
  0x28 PF: > { %243 = sbr.rel (!%p1159_p9) target bundleno = 56 (0x38), region = 61  ;;  %s245_s5 = sand.u32 (%p1159_p9), 1, %s1016_s18  }
  0x29   : > { %s828_s27 = sshll.u32 (%p1159_p9), %s1036_s23, 5  ;;  %s801_s7 = sshll.u32 (%p1159_p9), %s245_s5, 6 }
  0x2a   : > { %s250_s30 = sadd.s32 (%p1159_p9), %s1040_s24, %s828_s27  ;;  %s247_s28 = scalar_lea.vmem (%p1159_p9), [#allocation4], %s801_s7 }
  0x2b   : > { %s804_s20 = sshll.u32 (%p1159_p9), %s250_s30, 2 }
  0x2c   : > { %s1198_s6 = scalar_lea.vmem (%p1159_p9), %s1312_s1, %s804_s20 }
  0x2d   : > { %v268_v2 = vld [vmem:[%s1198_s6] sm:$0xf] (%p1159_p9)  ;;  %v270_v3 = vld [vmem:[%s1198_s6 + $0x8] sm:$0xf] (%p1159_p9)  ;;  %v272_v4 = vld [vmem:[%s1198_s6 + $0x10] sm:$0xf] (%p1159_p9) }
  0x2e   : > { %269 = vst [vmem:[%s247_s28] sm:$0xf] (%p1159_p9), %v268_v2  ;;  %271 = vst [vmem:[%s247_s28 + $0x4] sm:$0xf] (%p1159_p9), %v270_v3  ;;  %v274_v5 = vld [vmem:[%s1198_s6 + $0x18] sm:$0xf] (%p1159_p9) }
  0x2f   : > { %273 = vst [vmem:[%s247_s28 + $0x8] sm:$0xf] %v272_v4  ;;  %v276_v6 = vld [vmem:[%s1198_s6 + $0x20] sm:$0xf]  ;;  %v278_v7 = vld [vmem:[%s1198_s6 + $0x28] sm:$0xf] }
  0x30   : > { %275 = vst [vmem:[%s247_s28 + $0xc] sm:$0xf] %v274_v5  ;;  %277 = vst [vmem:[%s247_s28 + $0x10] sm:$0xf] %v276_v6  ;;  %v280_v8 = vld [vmem:[%s1198_s6 + $0x30] sm:$0xf] }
  0x31   : > { %279 = vst [vmem:[%s247_s28 + $0x14] sm:$0xf] %v278_v7  ;;  %v282_v9 = vld [vmem:[%s1198_s6 + $0x38] sm:$0xf]  ;;  %v284_v10 = vld [vmem:[%s1198_s6 + $0x40] sm:$0xf] }
  0x32   : > { %281 = vst [vmem:[%s247_s28 + $0x18] sm:$0xf] %v280_v8  ;;  %283 = vst [vmem:[%s247_s28 + $0x1c] sm:$0xf] %v282_v9  ;;  %v286_v11 = vld [vmem:[%s1198_s6 + $0x48] sm:$0xf] }
  0x33   : > { %285 = vst [vmem:[%s247_s28 + $0x20] sm:$0xf] %v284_v10  ;;  %v288_v12 = vld [vmem:[%s1198_s6 + $0x50] sm:$0xf]  ;;  %v290_v13 = vld [vmem:[%s1198_s6 + $0x58] sm:$0xf] }
  0x34   : > { %287 = vst [vmem:[%s247_s28 + $0x24] sm:$0xf] %v286_v11  ;;  %289 = vst [vmem:[%s247_s28 + $0x28] sm:$0xf] %v288_v12  ;;  %v292_v14 = vld [vmem:[%s1198_s6 + $0x60] sm:$0xf] }
  0x35   : > { %291 = vst [vmem:[%s247_s28 + $0x2c] sm:$0xf] %v290_v13  ;;  %v294_v15 = vld [vmem:[%s1198_s6 + $0x68] sm:$0xf]  ;;  %v296_v16 = vld [vmem:[%s1198_s6 + $0x70] sm:$0xf] }
  0x36   : > { %293 = vst [vmem:[%s247_s28 + $0x30] sm:$0xf] %v292_v14  ;;  %295 = vst [vmem:[%s247_s28 + $0x34] sm:$0xf] %v294_v15  ;;  %v298_v17 = vld [vmem:[%s1198_s6 + $0x78] sm:$0xf] }
  0x37   : > { %297 = vst [vmem:[%s247_s28 + $0x38] sm:$0xf] %v296_v16  ;;  %299 = vst [vmem:[%s247_s28 + $0x3c] sm:$0xf] %v298_v17 }
  0x38 PF: > { %360 = sbr.rel (!%p1174_p11) target bundleno = 63 (0x3f), region = 106  ;;  %s362_s20 = sand.u32 (%p1174_p11), 1, %s1008_s16  }
  0x39   : > { %s806_s27 = sshll.u32 (%p1174_p11), %s1040_s24, 3  ;;  %s805_s7 = sshll.u32 (%p1174_p11), %s362_s20, 4 }
  0x3a   : > { %s369_s8 = scalar_lea.vmem (%p1174_p11), %s1314_s3, %s806_s27  ;;  %s364_s11 = scalar_lea.vmem (%p1174_p11), [#allocation5], %s805_s7 }
  0x3b   : > { %v399_v18 = vld [vmem:[%s369_s8] sm:$0xff] (%p1174_p11)  ;;  %v401_v19 = vld [vmem:[%s369_s8 + $0x10] sm:$0xff] (%p1174_p11) }
  0x3c   : > { %400 = vst [vmem:[%s364_s11] sm:$0xff] (%p1174_p11), %v399_v18  ;;  %402 = vst [vmem:[%s364_s11 + $0x8] sm:$0xff] (%p1174_p11), %v401_v19 }
  0x3f PF: > { %p807_p1 = scmp.ge.s32.totalorder %s1044_s25, 1  ;;  %p407_p2 = scmp.lt.s32.totalorder %s1044_s25, 37 }
  0x41   : > { %p408_p3 = pnand %p807_p1, %p407_p2 }
  0x42   : > { %s414_s14 = sand.u32 (!%p408_p3), 1, %s1020_s19   ;;  %s421_s26 = sand.u32 (!%p408_p3), 1, %s1012_s17  }
  0x43   : > { %411 = sbr.rel (%p408_p3) target bundleno = 355 (0x163), region = 144  ;;  %s1227_s5 = sshll.u32 (!%p408_p3), %s414_s14, 3 }
  0x44   : > { %s809_s30 = sshll.u32 (!%p408_p3), %s421_s26, 6  ;;  %s428_s9 = sand.u32 (!%p408_p3), 1, %s1004_s15  }
  0x45   : > { %p465_p4 = scmp.lt.s32.totalorder (!%p408_p3), %s1032_s22, 1  ;;  %s1231_s6 = sshll.u32 (!%p408_p3), %s428_s9, 4 }
  0x46   : > { %s416_s10 = scalar_lea.vmem (!%p408_p3), [#allocation3], %s1227_s5  ;;  %s1241_s19 = scalar_lea.vmem (!%p408_p3), [#allocation4], %s809_s30 }
  0x47   : > { %s430_s17 = scalar_lea.vmem (!%p408_p3), [#allocation5], %s1231_s6  ;;  %s1245_s12 = scalar_lea.vmem (!%p408_p3), [#allocation6], %s1231_s6 }
  0x48   : > { %p812_p5 = scmp.ne.s32.totalorder (!%p408_p3), %s1028_s21, 0 }
  0x4a   : > { %s1234_s28 = scalar_select %p465_p4, %s1032_s22, 1 }
  0x4b   : > { %474 = sbr.rel (%p812_p5) target bundleno = 82 (0x52), region = 160  ;;  %v1046_v20 = vmov (!%p812_p5), 0.0  }
  0x4c   : > { %s467_s7 = scalar_lea.vmem %s1313_s2, %s1234_s28  ;;  %475 = vst [vmem:[#allocation2] sm:$0xff] (!%p812_p5), %v1046_v20  ;;  %476 = vst [vmem:[#allocation2 + $0x8] sm:$0xff] (!%p812_p5), %v1046_v20 }
  0x52 PF: > { %v949_v21 = vld [vmem:[%s1241_s19] sm:$0xff]   ;;  %v1047_v22 = vmov 0.0   ;;  %v950_v23 = vld [vmem:[%s1241_s19 + $0x8] sm:$0xff]   ;;  %vm1048_vm0 = vmmov 0   ;;  %v951_v24 = vld [vmem:[%s1241_s19 + $0x10] sm:$0xff]   ;;  %p822_p6 = scmp.ne.s32.totalorder %s1028_s21, 17 }
  0x53   : > { %838 = vmatprep.subr.bf16.mxu0 %v1047_v22  ;;  %854 = vmatprep.mubr.msk.bf16.mxu0 %vm1048_vm0, %v1047_v22  ;;  %v952_v25 = vld [vmem:[%s1241_s19 + $0x18] sm:$0xff]   ;;  %v953_v26 = vld [vmem:[%s1241_s19 + $0x20] sm:$0xff]   ;;  %v954_v27 = vld [vmem:[%s1241_s19 + $0x28] sm:$0xff]  }
  0x54   : > { %839 = vmatpush3.bf16.msra.mxu0 %v949_v21  ;;  %v955_v28 = vld [vmem:[%s1241_s19 + $0x30] sm:$0xff]   ;;  %v956_v29 = vld [vmem:[%s1241_s19 + $0x38] sm:$0xff]   ;;  %v477_v31 = vld [vmem:[#allocation2] sm:$0xff] }
  0x55   : > { %840 = vmatprep.subr.bf16.mxu0 %v1047_v22  ;;  %v957_v30 = vld [vmem:[%s416_s10] sm:$0xff]   ;;  %v478_v33 = vld [vmem:[#allocation2 + $0x8] sm:$0xff]  ;;  %v823_v40 = vld [vmem:[%s467_s7] ss:$0 sm:$0xff] (!%p822_p6) }
  0x56   : > { %v603_v41 = vld [vmem:[%s430_s17] sm:$0xff] (!%p822_p6)  ;;  %v604_v44 = vld [vmem:[%s430_s17 + $0x8] sm:$0xff] (!%p822_p6) }
  0x58   : > { %841 = vmatpush3.bf16.msra.mxu0 %v950_v23 }
  0x59   : > { %842 = vmatprep.subr.bf16.mxu0 %v1047_v22 }
  0x5c   : > { %843 = vmatpush3.bf16.msra.mxu0 %v951_v24 }
  0x5d   : > { %844 = vmatprep.subr.bf16.mxu0 %v1047_v22 }
  0x60   : > { %845 = vmatpush3.bf16.msra.mxu0 %v952_v25 }
  0x61   : > { %846 = vmatprep.subr.bf16.mxu0 %v1047_v22 }
  0x64   : > { %847 = vmatpush3.bf16.msra.mxu0 %v953_v26 }
  0x65   : > { %848 = vmatprep.subr.bf16.mxu0 %v1047_v22 }
  0x68   : > { %849 = vmatpush3.bf16.msra.mxu0 %v954_v27 }
  0x69   : > { %850 = vmatprep.subr.bf16.mxu0 %v1047_v22 }
  0x6c   : > { %851 = vmatpush3.bf16.msra.mxu0 %v955_v28 }
  0x6d   : > { %852 = vmatprep.subr.bf16.mxu0 %v1047_v22 }
  0x70   : > { %853 = vmatpush3.bf16.msra.mxu0 %v956_v29 }
  0x73   : > { %855 = vmatmul.mubr.bf16.vlgmr.msra.gmra.mrb[0].mxu0 %v957_v30 }
 0x145   : > { %599 = sbr.rel (%p822_p6) target bundleno = 347 (0x15b), region = 164 }
 0x146   : > { %v585_v32 = vpop.f32.mrb[0].mxu0 }
 0x147   : > { %v592_v34 = vadd.f32 %v585_v32, %v477_v31  ;;  %v856_v35 = vpop.f32.mrb[1].mxu0 }
 0x148   : > { %v588_v36 = vpop.f32.mrb[2].mxu0 }
 0x149   : > { %594 = vst [vmem:[#allocation2] sm:$0xff] %v592_v34  ;;  %v593_v37 = vadd.f32 %v588_v36, %v478_v33  ;;  %v857_v38 = vpop.f32.mrb[3].mxu0 }
 0x14b   : > { %595 = vst [vmem:[#allocation2 + $0x8] sm:$0xff] %v593_v37 }
 0x150   : > { %v600_v39 = vld [vmem:[#allocation2] sm:$0xff] }
 0x151   : > { %v611_v42 = vadd.f32 %v823_v40, %v600_v39 }
 0x152   : > { %v601_v43 = vld [vmem:[#allocation2 + $0x8] sm:$0xff] }
 0x153   : > { %v612_v45 = vadd.f32 %v823_v40, %v601_v43  ;;  %v613_v46 = vadd.f32 %v611_v42, %v603_v41 }
 0x155   : > { %v614_v47 = vadd.f32 %v612_v45, %v604_v44  ;;  %vm615_vm1 = vcmp.ge.f32.partialorder %v613_v46, 0.0  ;;  %v617_v48 = vmul.f32 0.01, %v613_v46 }
 0x157   : > { %vm616_vm2 = vcmp.ge.f32.partialorder %v614_v47, 0.0  ;;  %v618_v49 = vmul.f32 0.01, %v614_v47  ;;  %v619_v50 = vsel %vm615_vm1, %v613_v46, %v617_v48 }
 0x158   : > { %621 = vst [vmem:[%s1245_s12] sm:$0xff] %v619_v50 }
 0x159   : > { %v620_v51 = vsel %vm616_vm2, %v614_v47, %v618_v49 }
 0x15a   : > { %622 = vst [vmem:[%s1245_s12 + $0x8] sm:$0xff] %v620_v51 }
 0x15b PF: > { %629 = sbr.rel (!%p1178_p13) target bundleno = 355 (0x163), region = 168  ;;  %s825_s21 = sshll.u32 (%p1178_p13), %s1032_s22, 3 }
 0x15c   : > { %s634_s26 = scalar_lea.vmem (%p1178_p13), %s1315_s4, %s825_s21 }
 0x15f   : > { %v664_v52 = vld [vmem:[%s1245_s12] sm:$0xff] (%p1178_p13) }
 0x160   : > { %665 = vst [vmem:[%s634_s26] sm:$0xff] (%p1178_p13), %v664_v52 }
 0x161   : > { %v666_v53 = vld [vmem:[%s1245_s12 + $0x8] sm:$0xff] (%p1178_p13) }
 0x162   : > { %667 = vst [vmem:[%s634_s26 + $0x10] sm:$0xff] %v666_v53 }
 0x163 PF: > { %s14_s25 = sadd.s32 1, %s1044_s25   ;;  %s1328_s29 = sld [smem:[#allocation11_spill]] }
 0x164   : > { %p11_p7 = scmp.ge.s32.totalorder %s14_s25, 38   ;;  %s1329_s19 = sld [smem:[#allocation7_spill]] }
 0x165   : > { %s1330_s20 = sld [smem:[#allocation10_spill]]  ;;  %s1331_s5 = sld [smem:[#allocation8_spill]] }
 0x166   : > { %s1332_s30 = sld [smem:[#allocation9_spill]]  ;;  %s1333_s15 = smov %s1008_s16 }
 0x167   : > { %s1334_s16 = smov %s1170_s13  ;;  %s1335_s17 = smov %s1016_s18 }
 0x168   : > { %s1337_s21 = smov %s1036_s23  ;;  %s1338_s22 = smov %s1040_s24 }
 0x169   : > { %s1336_s18 = smov %s1328_s29  ;;  %13 = sbr.rel (!%p11_p7) target bundleno = 6 (0x6), region = 256 }
 0x16b   : > { %s1339_s23 = smov %s1331_s5 }
 0x16c   : > { %s1340_s24 = smov %s1332_s30 }

// kernel: convswarm_forward.66
= control target key start
LH: loop header
LB: loop body
LE: loop exit
PB: predicated region body
PF: predicated region fallthrough
CT: control target
= control target key end

     0   :  { %s951_s12 = smov 0   ;;  %s953_s13 = smov 0   ;;  %s1163_s0 = inlined_call_operand.vmem [shape: bf16[16,2304], index: 0, kind: input, shape index: {}]   ;;  %s1164_s1 = inlined_call_operand.vmem [shape: bf16[2304,512], index: 1, kind: input, shape index: {}]   ;;  %s1165_s2 = inlined_call_operand.vmem [shape: f32[1,512], index: 2, kind: input, shape index: {}]   ;;  %s1166_s3 = inlined_call_operand.vmem [shape: f32[16,512], index: 3, kind: output, shape index: {}]  }
   0x1   :  { %s955_s14 = smov 0   ;;  %s957_s15 = smov 0  }
   0x2   :  { %s959_s16 = smov 0   ;;  %s961_s17 = smov 0  }
   0x3   :  { %s963_s18 = smov 0   ;;  %s965_s19 = smov 0  }
   0x4   :  { %s967_s20 = smov 0   ;;  %s969_s21 = smov 0  }
   0x5   :  { %s971_s22 = smov 0  }
   0x6 LB: > { %s680_s23 = sadd.s32 4294967295, %s926_s22   ;;  %s25_s24 = sadd.s32 1, %s918_s20  ;;  %s926_s22 = sphi %s971_s22, %s13_s22   ;;  %s922_s21 = sphi %s969_s21, %s1187_s21   ;;  %s918_s20 = sphi %s967_s20, %s1186_s20   ;;  %s914_s19 = sphi %s965_s19, %s1185_s19   ;;  %s910_s18 = sphi %s963_s18, %s1184_s18   ;;  %s906_s17 = sphi %s961_s17, %s1183_s17   ;;  %s902_s16 = sphi %s959_s16, %s1182_s16   ;;  %s898_s15 = sphi %s957_s15, %s1181_s15   ;;  %s894_s14 = sphi %s955_s14, %s1180_s14   ;;  %s890_s13 = sphi %s953_s13, %s1179_s13   ;;  %s886_s12 = sphi %s951_s12, %s1178_s12  }
   0x7   : > { %p26_p0 = scmp.ge.s32.totalorder %s25_s24, 18  ;;  %s28_s25 = sadd.s32 1, %s922_s21 }
   0x8   : > { %s41_s26 = sadd.s32 1, %s906_s17  ;;  %p48_p1 = scmp.ne.s32.totalorder %s906_s17, %s902_s16 }
   0x9   : > { %s1189_s24 = smov (%p26_p0, %s25_s24), 0  ;;  %s1191_s25 = smov (!%p26_p0, %s28_s25), %s922_s21 }
   0xa   : > { %1169 = sst [smem:[#allocation6_spill]] %s1189_s24  ;;  %s37_s27 = ssub.s32 %s918_s20, %s1189_s24 }
   0xb   : > { %p49_p2 = scmp.eq.s32.totalorder %s926_s22, 0  ;;  %p30_p3 = scmp.ge.s32.totalorder %s1191_s25, 4 }
   0xc   : > { %p39_p4 = scmp.eq.s32.totalorder %s37_s27, 0  ;;  %s69_s29 = sadd.s32 1, %s898_s15 }
   0xd   : > { %p1018_p5 = por %p49_p2, %p48_p1  ;;  %s1193_s25 = smov (%p30_p3, %s1191_s25), 0 }
   0xe   : > { %1171 = sst [smem:[#allocation7_spill]] %s1193_s25  ;;  %s65_s4 = ssub.s32 %s922_s21, %s1193_s25 }
   0xf   : > { %s1026_s30 = scalar_select %p39_p4, %s906_s17, %s41_s26  }
  0x10   : > { %p76_p6 = scmp.ne.s32.totalorder %s898_s15, %s894_s14  ;;  %s66_s5 = sor.u32 %s65_s4, %s37_s27 }
  0x11   : > { %1172 = sst [smem:[#allocation8_spill]] %s1026_s30  ;;  %p121_p7 = scmp.eq.s32.totalorder %s65_s4, 0 }
  0x12   : > { %p67_p8 = scmp.eq.s32.totalorder %s66_s5, 0  ;;  %p1032_p9 = por %p76_p6, %p49_p2 }
  0x13   : > { %s123_s7 = sadd.s32 1, %s890_s13  ;;  %p133_p10 = scmp.ne.s32.totalorder %s890_s13, %s886_s12 }
  0x14   : > { %s1040_s8 = scalar_select %p67_p8, %s898_s15, %s69_s29  }
  0x15   : > { %s1043_s9 = scalar_select %p121_p7, %s890_s13, %s123_s7  }
  0x16   : > { %p134_p11 = scmp.eq.s32.totalorder %s680_s23, 71  ;;  %p683_p13 = scmp.ge.s32.totalorder %s926_s22, 72 }
  0x18   : > { %p1045_p12 = por %p134_p11, %p133_p10  ;;  %156 = sbr.rel (%p683_p13) target bundleno = 55 (0x37), region = 16 }
  0x1f   : > { %159 = sbr.rel (!%p1018_p5) target bundleno = 38 (0x26), region = 20  ;;  %s161_s11 = sand.u32 (%p1018_p5), 1, %s906_s17  }
  0x20   : > { %s685_s26 = sshll.u32 (%p1018_p5), %s918_s20, 2  ;;  %s684_s27 = sshll.u32 (%p1018_p5), %s161_s11, 3 }
  0x21   : > { %s168_s5 = scalar_lea.vmem (%p1018_p5), %s1163_s0, %s685_s26  ;;  %s163_s23 = scalar_lea.vmem (%p1018_p5), [#allocation3], %s684_s27 }
  0x22   : > { %v184_v0 = vld [vmem:[%s168_s5] sm:$0xf] (%p1018_p5)  ;;  %v186_v1 = vld [vmem:[%s168_s5 + $0x48] sm:$0xf] (%p1018_p5) }
  0x23   : > { %185 = vst [vmem:[%s163_s23] sm:$0xf] (%p1018_p5), %v184_v0  ;;  %187 = vst [vmem:[%s163_s23 + $0x4] sm:$0xf] (%p1018_p5), %v186_v1 }
  0x26 PF: > { %214 = sbr.rel (!%p1032_p9) target bundleno = 55 (0x37), region = 61  ;;  %s216_s28 = sand.u32 (%p1032_p9), 1, %s898_s15  }
  0x27   : > { %s710_s7 = sshll.u32 (%p1032_p9), %s918_s20, 6  ;;  %s686_s25 = sshll.u32 (%p1032_p9), %s216_s28, 6 }
  0x28   : > { %s221_s11 = sadd.s32 (%p1032_p9), %s922_s21, %s710_s7  ;;  %s218_s6 = scalar_lea.vmem (%p1032_p9), [#allocation4], %s686_s25 }
  0x29   : > { %s689_s24 = sshll.u32 (%p1032_p9), %s221_s11, 2 }
  0x2a   : > { %s1065_s26 = scalar_lea.vmem (%p1032_p9), %s1164_s1, %s689_s24 }
  0x2b   : > { %v239_v2 = vld [vmem:[%s1065_s26] sm:$0xf] (%p1032_p9)  ;;  %v241_v3 = vld [vmem:[%s1065_s26 + $0x10] sm:$0xf] (%p1032_p9) }
  0x2c   : > { %v243_v4 = vld [vmem:[%s1065_s26 + $0x20] sm:$0xf] (%p1032_p9)  ;;  %240 = vst [vmem:[%s218_s6] sm:$0xf] (%p1032_p9), %v239_v2  ;;  %242 = vst [vmem:[%s218_s6 + $0x4] sm:$0xf] (%p1032_p9), %v241_v3 }
  0x2d   : > { %244 = vst [vmem:[%s218_s6 + $0x8] sm:$0xf] %v243_v4  ;;  %v245_v5 = vld [vmem:[%s1065_s26 + $0x30] sm:$0xf]  ;;  %v247_v6 = vld [vmem:[%s1065_s26 + $0x40] sm:$0xf] }
  0x2e   : > { %v249_v7 = vld [vmem:[%s1065_s26 + $0x50] sm:$0xf]  ;;  %246 = vst [vmem:[%s218_s6 + $0xc] sm:$0xf] %v245_v5  ;;  %248 = vst [vmem:[%s218_s6 + $0x10] sm:$0xf] %v247_v6 }
  0x2f   : > { %250 = vst [vmem:[%s218_s6 + $0x14] sm:$0xf] %v249_v7  ;;  %v251_v8 = vld [vmem:[%s1065_s26 + $0x60] sm:$0xf]  ;;  %v253_v9 = vld [vmem:[%s1065_s26 + $0x70] sm:$0xf] }
  0x30   : > { %v255_v10 = vld [vmem:[%s1065_s26 + $0x80] sm:$0xf]  ;;  %252 = vst [vmem:[%s218_s6 + $0x18] sm:$0xf] %v251_v8  ;;  %254 = vst [vmem:[%s218_s6 + $0x1c] sm:$0xf] %v253_v9 }
  0x31   : > { %256 = vst [vmem:[%s218_s6 + $0x20] sm:$0xf] %v255_v10  ;;  %v257_v11 = vld [vmem:[%s1065_s26 + $0x90] sm:$0xf]  ;;  %v259_v12 = vld [vmem:[%s1065_s26 + $0xa0] sm:$0xf] }
  0x32   : > { %v261_v13 = vld [vmem:[%s1065_s26 + $0xb0] sm:$0xf]  ;;  %258 = vst [vmem:[%s218_s6 + $0x24] sm:$0xf] %v257_v11  ;;  %260 = vst [vmem:[%s218_s6 + $0x28] sm:$0xf] %v259_v12 }
  0x33   : > { %262 = vst [vmem:[%s218_s6 + $0x2c] sm:$0xf] %v261_v13  ;;  %v263_v14 = vld [vmem:[%s1065_s26 + $0xc0] sm:$0xf]  ;;  %v265_v15 = vld [vmem:[%s1065_s26 + $0xd0] sm:$0xf] }
  0x34   : > { %v267_v16 = vld [vmem:[%s1065_s26 + $0xe0] sm:$0xf]  ;;  %264 = vst [vmem:[%s218_s6 + $0x30] sm:$0xf] %v263_v14  ;;  %266 = vst [vmem:[%s218_s6 + $0x34] sm:$0xf] %v265_v15 }
  0x35   : > { %268 = vst [vmem:[%s218_s6 + $0x38] sm:$0xf] %v267_v16  ;;  %v269_v17 = vld [vmem:[%s1065_s26 + $0xf0] sm:$0xf] }
  0x36   : > { %270 = vst [vmem:[%s218_s6 + $0x3c] sm:$0xf] %v269_v17 }
  0x37 PF: > { %p690_p0 = scmp.ge.s32.totalorder %s926_s22, 1  ;;  %p330_p1 = scmp.lt.s32.totalorder %s926_s22, 73 }
  0x39   : > { %p331_p2 = pnand %p690_p0, %p330_p1 }
  0x3a   : > { %s337_s24 = sand.u32 (!%p331_p2), 1, %s902_s16   ;;  %s344_s25 = sand.u32 (!%p331_p2), 1, %s894_s14  }
  0x3b   : > { %334 = sbr.rel (%p331_p2) target bundleno = 345 (0x159), region = 106  ;;  %s1087_s30 = sshll.u32 (!%p331_p2), %s337_s24, 3 }
  0x3c   : > { %s692_s27 = sshll.u32 (!%p331_p2), %s344_s25, 6  ;;  %s370_s4 = sand.u32 (!%p331_p2), 1, %s886_s12  }
  0x3d   : > { %p375_p3 = scmp.lt.s32.totalorder (!%p331_p2), %s914_s19, 3  ;;  %s693_s5 = sshll.u32 (!%p331_p2), %s370_s4, 4 }
  0x3e   : > { %s339_s29 = scalar_lea.vmem (!%p331_p2), [#allocation3], %s1087_s30  ;;  %s1099_s26 = scalar_lea.vmem (!%p331_p2), [#allocation4], %s692_s27 }
  0x3f   : > { %s1101_s6 = scalar_lea.vmem (!%p331_p2), [#allocation5], %s693_s5  ;;  %p694_p4 = scmp.ne.s32.totalorder (!%p331_p2), %s910_s18, 0 }
  0x42   : > { %s1092_s23 = scalar_select %p375_p3, %s914_s19, 3 }
  0x43   : > { %383 = sbr.rel (%p694_p4) target bundleno = 74 (0x4a), region = 118  ;;  %v928_v18 = vmov (!%p694_p4), 0.0  }
  0x44   : > { %s377_s11 = scalar_lea.vmem %s1165_s2, %s1092_s23  ;;  %384 = vst [vmem:[#allocation2] sm:$0xff] (!%p694_p4), %v928_v18  ;;  %385 = vst [vmem:[#allocation2 + $0x8] sm:$0xff] (!%p694_p4), %v928_v18 }
  0x4a PF: > { %v831_v19 = vld [vmem:[%s1099_s26] sm:$0xff]   ;;  %v929_v20 = vmov 0.0   ;;  %v832_v21 = vld [vmem:[%s1099_s26 + $0x8] sm:$0xff]   ;;  %vm930_vm0 = vmmov 0   ;;  %v833_v22 = vld [vmem:[%s1099_s26 + $0x10] sm:$0xff]   ;;  %p704_p5 = scmp.ne.s32.totalorder %s910_s18, 17 }
  0x4b   : > { %720 = vmatprep.subr.bf16.mxu0 %v929_v20  ;;  %736 = vmatprep.mubr.msk.bf16.mxu0 %vm930_vm0, %v929_v20  ;;  %v834_v23 = vld [vmem:[%s1099_s26 + $0x18] sm:$0xff]   ;;  %v835_v24 = vld [vmem:[%s1099_s26 + $0x20] sm:$0xff]   ;;  %v836_v25 = vld [vmem:[%s1099_s26 + $0x28] sm:$0xff]  }
  0x4c   : > { %721 = vmatpush3.bf16.msra.mxu0 %v831_v19  ;;  %v837_v26 = vld [vmem:[%s1099_s26 + $0x30] sm:$0xff]   ;;  %v838_v27 = vld [vmem:[%s1099_s26 + $0x38] sm:$0xff]   ;;  %v386_v29 = vld [vmem:[#allocation2] sm:$0xff] }
  0x4d   : > { %722 = vmatprep.subr.bf16.mxu0 %v929_v20  ;;  %v839_v28 = vld [vmem:[%s339_s29] sm:$0xff]   ;;  %v387_v31 = vld [vmem:[#allocation2 + $0x8] sm:$0xff]  ;;  %v705_v38 = vld [vmem:[%s377_s11] ss:$0 sm:$0xff] (!%p704_p5) }
  0x50   : > { %723 = vmatpush3.bf16.msra.mxu0 %v832_v21 }
  0x51   : > { %724 = vmatprep.subr.bf16.mxu0 %v929_v20 }
  0x54   : > { %725 = vmatpush3.bf16.msra.mxu0 %v833_v22 }
  0x55   : > { %726 = vmatprep.subr.bf16.mxu0 %v929_v20 }
  0x58   : > { %727 = vmatpush3.bf16.msra.mxu0 %v834_v23 }
  0x59   : > { %728 = vmatprep.subr.bf16.mxu0 %v929_v20 }
  0x5c   : > { %729 = vmatpush3.bf16.msra.mxu0 %v835_v24 }
  0x5d   : > { %730 = vmatprep.subr.bf16.mxu0 %v929_v20 }
  0x60   : > { %731 = vmatpush3.bf16.msra.mxu0 %v836_v25 }
  0x61   : > { %732 = vmatprep.subr.bf16.mxu0 %v929_v20 }
  0x64   : > { %733 = vmatpush3.bf16.msra.mxu0 %v837_v26 }
  0x65   : > { %734 = vmatprep.subr.bf16.mxu0 %v929_v20 }
  0x68   : > { %735 = vmatpush3.bf16.msra.mxu0 %v838_v27 }
  0x6b   : > { %737 = vmatmul.mubr.bf16.vlgmr.msra.gmra.mrb[0].mxu0 %v839_v28 }
 0x13d   : > { %508 = sbr.rel (%p704_p5) target bundleno = 337 (0x151), region = 122 }
 0x13e   : > { %v494_v30 = vpop.f32.mrb[0].mxu0 }
 0x13f   : > { %v501_v32 = vadd.f32 %v494_v30, %v386_v29  ;;  %v738_v33 = vpop.f32.mrb[1].mxu0 }
 0x140   : > { %v497_v34 = vpop.f32.mrb[2].mxu0 }
 0x141   : > { %503 = vst [vmem:[#allocation2] sm:$0xff] %v501_v32  ;;  %v502_v35 = vadd.f32 %v497_v34, %v387_v31  ;;  %v739_v36 = vpop.f32.mrb[3].mxu0 }
 0x143   : > { %504 = vst [vmem:[#allocation2 + $0x8] sm:$0xff] %v502_v35 }
 0x148   : > { %v509_v37 = vld [vmem:[#allocation2] sm:$0xff] }
 0x149   : > { %v518_v40 = vadd.f32 %v705_v38, %v509_v37 }
 0x14a   : > { %v510_v39 = vld [vmem:[#allocation2 + $0x8] sm:$0xff] }
 0x14b   : > { %v519_v41 = vadd.f32 %v705_v38, %v510_v39  ;;  %vm520_vm1 = vcmp.ge.f32.partialorder %v518_v40, 0.0  ;;  %v522_v42 = vmul.f32 0.01, %v518_v40 }
 0x14d   : > { %vm521_vm2 = vcmp.ge.f32.partialorder %v519_v41, 0.0  ;;  %v523_v43 = vmul.f32 0.01, %v519_v41  ;;  %v524_v44 = vsel %vm520_vm1, %v518_v40, %v522_v42 }
 0x14e   : > { %526 = vst [vmem:[%s1101_s6] sm:$0xff] %v524_v44 }
 0x14f   : > { %v525_v45 = vsel %vm521_vm2, %v519_v41, %v523_v43 }
 0x150   : > { %527 = vst [vmem:[%s1101_s6 + $0x8] sm:$0xff] %v525_v45 }
 0x151 PF: > { %534 = sbr.rel (!%p1045_p12) target bundleno = 345 (0x159), region = 126  ;;  %s707_s16 = sshll.u32 (%p1045_p12), %s914_s19, 3 }
 0x152   : > { %s539_s25 = scalar_lea.vmem (%p1045_p12), %s1166_s3, %s707_s16 }
 0x155   : > { %v569_v46 = vld [vmem:[%s1101_s6] sm:$0xff] (%p1045_p12) }
 0x156   : > { %570 = vst [vmem:[%s539_s25] sm:$0xff] (%p1045_p12), %v569_v46 }
 0x157   : > { %v571_v47 = vld [vmem:[%s1101_s6 + $0x8] sm:$0xff] (%p1045_p12) }
 0x158   : > { %572 = vst [vmem:[%s539_s25 + $0x20] sm:$0xff] %v571_v47 }
 0x159 PF: > { %s13_s22 = sadd.s32 1, %s926_s22   ;;  %s1175_s10 = sld [smem:[#allocation8_spill]] }
 0x15a   : > { %p10_p6 = scmp.ge.s32.totalorder %s13_s22, 74   ;;  %s1176_s30 = sld [smem:[#allocation6_spill]] }
 0x15b   : > { %s1177_s27 = sld [smem:[#allocation7_spill]]  ;;  %s1178_s12 = smov %s890_s13 }
 0x15c   : > { %s1179_s13 = smov %s1043_s9  ;;  %s1180_s14 = smov %s898_s15 }
 0x15d   : > { %s1181_s15 = smov %s1040_s8  ;;  %s1182_s16 = smov %s906_s17 }
 0x15e   : > { %s1184_s18 = smov %s918_s20  ;;  %s1185_s19 = smov %s922_s21 }
 0x15f   : > { %s1183_s17 = smov %s1175_s10  ;;  %12 = sbr.rel (!%p10_p6) target bundleno = 6 (0x6), region = 206 }
 0x160   : > { %s1186_s20 = smov %s1176_s30 }
 0x161   : > { %s1187_s21 = smov %s1177_s27 }

// kernel: convswarm_forward.67
= control target key start
LH: loop header
LB: loop body
LE: loop exit
PB: predicated region body
PF: predicated region fallthrough
CT: control target
= control target key end

     0   :  { %s945_s12 = smov 0   ;;  %s947_s13 = smov 0   ;;  %s1157_s0 = inlined_call_operand.vmem [shape: bf16[16,256], index: 0, kind: input, shape index: {}]   ;;  %s1158_s1 = inlined_call_operand.vmem [shape: bf16[256,512], index: 1, kind: input, shape index: {}]   ;;  %s1159_s2 = inlined_call_operand.vmem [shape: f32[1,512], index: 2, kind: input, shape index: {}]   ;;  %s1160_s3 = inlined_call_operand.vmem [shape: f32[16,512], index: 3, kind: output, shape index: {}]  }
   0x1   :  { %s949_s14 = smov 0   ;;  %s951_s15 = smov 0  }
   0x2   :  { %s953_s16 = smov 0   ;;  %s955_s17 = smov 0  }
   0x3   :  { %s957_s18 = smov 0   ;;  %s959_s19 = smov 0  }
   0x4   :  { %s961_s20 = smov 0   ;;  %s963_s21 = smov 0  }
   0x5   :  { %s965_s22 = smov 0  }
   0x6 LB: > { %s674_s23 = sadd.s32 4294967295, %s920_s22   ;;  %s25_s24 = sadd.s32 1, %s912_s20  ;;  %s920_s22 = sphi %s965_s22, %s13_s22   ;;  %s916_s21 = sphi %s963_s21, %s1181_s21   ;;  %s912_s20 = sphi %s961_s20, %s1180_s20   ;;  %s908_s19 = sphi %s959_s19, %s1179_s19   ;;  %s904_s18 = sphi %s957_s18, %s1178_s18   ;;  %s900_s17 = sphi %s955_s17, %s1177_s17   ;;  %s896_s16 = sphi %s953_s16, %s1176_s16   ;;  %s892_s15 = sphi %s951_s15, %s1175_s15   ;;  %s888_s14 = sphi %s949_s14, %s1174_s14   ;;  %s884_s13 = sphi %s947_s13, %s1173_s13   ;;  %s880_s12 = sphi %s945_s12, %s1172_s12  }
   0x7   : > { %p26_p0 = scmp.ge.s32.totalorder %s25_s24, 2  ;;  %s28_s25 = sadd.s32 1, %s916_s21 }
   0x8   : > { %s41_s26 = sadd.s32 1, %s900_s17  ;;  %p48_p1 = scmp.ne.s32.totalorder %s900_s17, %s896_s16 }
   0x9   : > { %s1183_s24 = smov (%p26_p0, %s25_s24), 0  ;;  %s1185_s25 = smov (!%p26_p0, %s28_s25), %s916_s21 }
   0xa   : > { %1163 = sst [smem:[#allocation6_spill]] %s1183_s24  ;;  %s37_s27 = ssub.s32 %s912_s20, %s1183_s24 }
   0xb   : > { %p49_p2 = scmp.eq.s32.totalorder %s920_s22, 0  ;;  %p30_p3 = scmp.ge.s32.totalorder %s1185_s25, 4 }
   0xc   : > { %p39_p4 = scmp.eq.s32.totalorder %s37_s27, 0  ;;  %s69_s29 = sadd.s32 1, %s892_s15 }
   0xd   : > { %p1012_p5 = por %p49_p2, %p48_p1  ;;  %s1187_s25 = smov (%p30_p3, %s1185_s25), 0 }
   0xe   : > { %1165 = sst [smem:[#allocation7_spill]] %s1187_s25  ;;  %s65_s4 = ssub.s32 %s916_s21, %s1187_s25 }
   0xf   : > { %s1020_s30 = scalar_select %p39_p4, %s900_s17, %s41_s26  }
  0x10   : > { %p76_p6 = scmp.ne.s32.totalorder %s892_s15, %s888_s14  ;;  %s66_s5 = sor.u32 %s65_s4, %s37_s27 }
  0x11   : > { %1166 = sst [smem:[#allocation8_spill]] %s1020_s30  ;;  %p121_p7 = scmp.eq.s32.totalorder %s65_s4, 0 }
  0x12   : > { %p67_p8 = scmp.eq.s32.totalorder %s66_s5, 0  ;;  %p1026_p9 = por %p76_p6, %p49_p2 }
  0x13   : > { %s123_s7 = sadd.s32 1, %s884_s13  ;;  %p133_p10 = scmp.ne.s32.totalorder %s884_s13, %s880_s12 }
  0x14   : > { %s1034_s8 = scalar_select %p67_p8, %s892_s15, %s69_s29  }
  0x15   : > { %s1037_s9 = scalar_select %p121_p7, %s884_s13, %s123_s7  }
  0x16   : > { %p134_p11 = scmp.eq.s32.totalorder %s674_s23, 7  ;;  %p677_p13 = scmp.ge.s32.totalorder %s920_s22, 8 }
  0x18   : > { %p1039_p12 = por %p134_p11, %p133_p10  ;;  %156 = sbr.rel (%p677_p13) target bundleno = 55 (0x37), region = 16 }
  0x1f   : > { %159 = sbr.rel (!%p1012_p5) target bundleno = 38 (0x26), region = 20  ;;  %s161_s11 = sand.u32 (%p1012_p5), 1, %s900_s17  }
  0x20   : > { %s679_s26 = sshll.u32 (%p1012_p5), %s912_s20, 2  ;;  %s678_s27 = sshll.u32 (%p1012_p5), %s161_s11, 3 }
  0x21   : > { %s168_s5 = scalar_lea.vmem (%p1012_p5), %s1157_s0, %s679_s26  ;;  %s163_s23 = scalar_lea.vmem (%p1012_p5), [#allocation3], %s678_s27 }
  0x22   : > { %v184_v0 = vld [vmem:[%s168_s5] sm:$0xf] (%p1012_p5)  ;;  %v186_v1 = vld [vmem:[%s168_s5 + $0x8] sm:$0xf] (%p1012_p5) }
  0x23   : > { %185 = vst [vmem:[%s163_s23] sm:$0xf] (%p1012_p5), %v184_v0  ;;  %187 = vst [vmem:[%s163_s23 + $0x4] sm:$0xf] (%p1012_p5), %v186_v1 }
  0x26 PF: > { %214 = sbr.rel (!%p1026_p9) target bundleno = 55 (0x37), region = 61  ;;  %s216_s28 = sand.u32 (%p1026_p9), 1, %s892_s15  }
  0x27   : > { %s704_s7 = sshll.u32 (%p1026_p9), %s912_s20, 6  ;;  %s680_s25 = sshll.u32 (%p1026_p9), %s216_s28, 6 }
  0x28   : > { %s221_s11 = sadd.s32 (%p1026_p9), %s916_s21, %s704_s7  ;;  %s218_s6 = scalar_lea.vmem (%p1026_p9), [#allocation4], %s680_s25 }
  0x29   : > { %s683_s24 = sshll.u32 (%p1026_p9), %s221_s11, 2 }
  0x2a   : > { %s1059_s26 = scalar_lea.vmem (%p1026_p9), %s1158_s1, %s683_s24 }
  0x2b   : > { %v239_v2 = vld [vmem:[%s1059_s26] sm:$0xf] (%p1026_p9)  ;;  %v241_v3 = vld [vmem:[%s1059_s26 + $0x10] sm:$0xf] (%p1026_p9) }
  0x2c   : > { %v243_v4 = vld [vmem:[%s1059_s26 + $0x20] sm:$0xf] (%p1026_p9)  ;;  %240 = vst [vmem:[%s218_s6] sm:$0xf] (%p1026_p9), %v239_v2  ;;  %242 = vst [vmem:[%s218_s6 + $0x4] sm:$0xf] (%p1026_p9), %v241_v3 }
  0x2d   : > { %244 = vst [vmem:[%s218_s6 + $0x8] sm:$0xf] %v243_v4  ;;  %v245_v5 = vld [vmem:[%s1059_s26 + $0x30] sm:$0xf]  ;;  %v247_v6 = vld [vmem:[%s1059_s26 + $0x40] sm:$0xf] }
  0x2e   : > { %v249_v7 = vld [vmem:[%s1059_s26 + $0x50] sm:$0xf]  ;;  %246 = vst [vmem:[%s218_s6 + $0xc] sm:$0xf] %v245_v5  ;;  %248 = vst [vmem:[%s218_s6 + $0x10] sm:$0xf] %v247_v6 }
  0x2f   : > { %250 = vst [vmem:[%s218_s6 + $0x14] sm:$0xf] %v249_v7  ;;  %v251_v8 = vld [vmem:[%s1059_s26 + $0x60] sm:$0xf]  ;;  %v253_v9 = vld [vmem:[%s1059_s26 + $0x70] sm:$0xf] }
  0x30   : > { %v255_v10 = vld [vmem:[%s1059_s26 + $0x80] sm:$0xf]  ;;  %252 = vst [vmem:[%s218_s6 + $0x18] sm:$0xf] %v251_v8  ;;  %254 = vst [vmem:[%s218_s6 + $0x1c] sm:$0xf] %v253_v9 }
  0x31   : > { %256 = vst [vmem:[%s218_s6 + $0x20] sm:$0xf] %v255_v10  ;;  %v257_v11 = vld [vmem:[%s1059_s26 + $0x90] sm:$0xf]  ;;  %v259_v12 = vld [vmem:[%s1059_s26 + $0xa0] sm:$0xf] }
  0x32   : > { %v261_v13 = vld [vmem:[%s1059_s26 + $0xb0] sm:$0xf]  ;;  %258 = vst [vmem:[%s218_s6 + $0x24] sm:$0xf] %v257_v11  ;;  %260 = vst [vmem:[%s218_s6 + $0x28] sm:$0xf] %v259_v12 }
  0x33   : > { %262 = vst [vmem:[%s218_s6 + $0x2c] sm:$0xf] %v261_v13  ;;  %v263_v14 = vld [vmem:[%s1059_s26 + $0xc0] sm:$0xf]  ;;  %v265_v15 = vld [vmem:[%s1059_s26 + $0xd0] sm:$0xf] }
  0x34   : > { %v267_v16 = vld [vmem:[%s1059_s26 + $0xe0] sm:$0xf]  ;;  %264 = vst [vmem:[%s218_s6 + $0x30] sm:$0xf] %v263_v14  ;;  %266 = vst [vmem:[%s218_s6 + $0x34] sm:$0xf] %v265_v15 }
  0x35   : > { %268 = vst [vmem:[%s218_s6 + $0x38] sm:$0xf] %v267_v16  ;;  %v269_v17 = vld [vmem:[%s1059_s26 + $0xf0] sm:$0xf] }
  0x36   : > { %270 = vst [vmem:[%s218_s6 + $0x3c] sm:$0xf] %v269_v17 }
  0x37 PF: > { %p684_p0 = scmp.ge.s32.totalorder %s920_s22, 1  ;;  %p330_p1 = scmp.lt.s32.totalorder %s920_s22, 9 }
  0x39   : > { %p331_p2 = pnand %p684_p0, %p330_p1 }
  0x3a   : > { %s337_s24 = sand.u32 (!%p331_p2), 1, %s896_s16   ;;  %s344_s25 = sand.u32 (!%p331_p2), 1, %s888_s14  }
  0x3b   : > { %334 = sbr.rel (%p331_p2) target bundleno = 342 (0x156), region = 106  ;;  %s1081_s30 = sshll.u32 (!%p331_p2), %s337_s24, 3 }
  0x3c   : > { %s686_s27 = sshll.u32 (!%p331_p2), %s344_s25, 6  ;;  %s370_s4 = sand.u32 (!%p331_p2), 1, %s880_s12  }
  0x3d   : > { %p375_p3 = scmp.lt.s32.totalorder (!%p331_p2), %s908_s19, 3  ;;  %s687_s5 = sshll.u32 (!%p331_p2), %s370_s4, 4 }
  0x3e   : > { %s339_s29 = scalar_lea.vmem (!%p331_p2), [#allocation3], %s1081_s30  ;;  %s1093_s26 = scalar_lea.vmem (!%p331_p2), [#allocation4], %s686_s27 }
  0x3f   : > { %s1095_s6 = scalar_lea.vmem (!%p331_p2), [#allocation5], %s687_s5  ;;  %p688_p4 = scmp.ne.s32.totalorder (!%p331_p2), %s904_s18, 0 }
  0x42   : > { %s1086_s23 = scalar_select %p375_p3, %s908_s19, 3 }
  0x43   : > { %383 = sbr.rel (%p688_p4) target bundleno = 74 (0x4a), region = 118  ;;  %v922_v18 = vmov (!%p688_p4), 0.0  }
  0x44   : > { %s377_s11 = scalar_lea.vmem %s1159_s2, %s1086_s23  ;;  %384 = vst [vmem:[#allocation2] sm:$0xff] (!%p688_p4), %v922_v18  ;;  %385 = vst [vmem:[#allocation2 + $0x8] sm:$0xff] (!%p688_p4), %v922_v18 }
  0x4a PF: > { %v825_v19 = vld [vmem:[%s1093_s26] sm:$0xff]   ;;  %v923_v20 = vmov 0.0   ;;  %v826_v21 = vld [vmem:[%s1093_s26 + $0x8] sm:$0xff]   ;;  %vm924_vm0 = vmmov 0   ;;  %v827_v22 = vld [vmem:[%s1093_s26 + $0x10] sm:$0xff]   ;;  %p698_p5 = scmp.ne.s32.totalorder %s904_s18, 1 }
  0x4b   : > { %714 = vmatprep.subr.bf16.mxu0 %v923_v20  ;;  %730 = vmatprep.mubr.msk.bf16.mxu0 %vm924_vm0, %v923_v20  ;;  %v828_v23 = vld [vmem:[%s1093_s26 + $0x18] sm:$0xff]   ;;  %v829_v24 = vld [vmem:[%s1093_s26 + $0x20] sm:$0xff]   ;;  %v830_v25 = vld [vmem:[%s1093_s26 + $0x28] sm:$0xff]  }
  0x4c   : > { %715 = vmatpush3.bf16.msra.mxu0 %v825_v19  ;;  %v831_v26 = vld [vmem:[%s1093_s26 + $0x30] sm:$0xff]   ;;  %v832_v27 = vld [vmem:[%s1093_s26 + $0x38] sm:$0xff]   ;;  %v386_v29 = vld [vmem:[#allocation2] sm:$0xff] }
  0x4d   : > { %716 = vmatprep.subr.bf16.mxu0 %v923_v20  ;;  %v833_v28 = vld [vmem:[%s339_s29] sm:$0xff]   ;;  %v387_v31 = vld [vmem:[#allocation2 + $0x8] sm:$0xff]  ;;  %v699_v38 = vld [vmem:[%s377_s11] ss:$0 sm:$0xff] (!%p698_p5) }
  0x50   : > { %717 = vmatpush3.bf16.msra.mxu0 %v826_v21 }
  0x51   : > { %718 = vmatprep.subr.bf16.mxu0 %v923_v20 }
  0x54   : > { %719 = vmatpush3.bf16.msra.mxu0 %v827_v22 }
  0x55   : > { %720 = vmatprep.subr.bf16.mxu0 %v923_v20 }
  0x58   : > { %721 = vmatpush3.bf16.msra.mxu0 %v828_v23 }
  0x59   : > { %722 = vmatprep.subr.bf16.mxu0 %v923_v20 }
  0x5c   : > { %723 = vmatpush3.bf16.msra.mxu0 %v829_v24 }
  0x5d   : > { %724 = vmatprep.subr.bf16.mxu0 %v923_v20 }
  0x60   : > { %725 = vmatpush3.bf16.msra.mxu0 %v830_v25 }
  0x61   : > { %726 = vmatprep.subr.bf16.mxu0 %v923_v20 }
  0x64   : > { %727 = vmatpush3.bf16.msra.mxu0 %v831_v26 }
  0x65   : > { %728 = vmatprep.subr.bf16.mxu0 %v923_v20 }
  0x68   : > { %729 = vmatpush3.bf16.msra.mxu0 %v832_v27 }
  0x6b   : > { %731 = vmatmul.mubr.bf16.vlgmr.msra.gmra.mrb[0].mxu0 %v833_v28 }
 0x13d   : > { %508 = sbr.rel (%p698_p5) target bundleno = 334 (0x14e), region = 122 }
 0x13e   : > { %v494_v30 = vpop.f32.mrb[0].mxu0 }
 0x13f   : > { %v501_v32 = vadd.f32 %v494_v30, %v386_v29  ;;  %v732_v33 = vpop.f32.mrb[1].mxu0 }
 0x140   : > { %v497_v34 = vpop.f32.mrb[2].mxu0 }
 0x141   : > { %503 = vst [vmem:[#allocation2] sm:$0xff] %v501_v32  ;;  %v502_v35 = vadd.f32 %v497_v34, %v387_v31  ;;  %v733_v36 = vpop.f32.mrb[3].mxu0 }
 0x143   : > { %504 = vst [vmem:[#allocation2 + $0x8] sm:$0xff] %v502_v35 }
 0x148   : > { %v509_v37 = vld [vmem:[#allocation2] sm:$0xff] }
 0x149   : > { %v518_v40 = vadd.f32 %v699_v38, %v509_v37 }
 0x14a   : > { %v510_v39 = vld [vmem:[#allocation2 + $0x8] sm:$0xff] }
 0x14b   : > { %v519_v41 = vadd.f32 %v699_v38, %v510_v39  ;;  %520 = vst [vmem:[%s1095_s6] sm:$0xff] %v518_v40 }
 0x14d   : > { %521 = vst [vmem:[%s1095_s6 + $0x8] sm:$0xff] %v519_v41 }
 0x14e PF: > { %528 = sbr.rel (!%p1039_p12) target bundleno = 342 (0x156), region = 126  ;;  %s701_s16 = sshll.u32 (%p1039_p12), %s908_s19, 3 }
 0x14f   : > { %s533_s25 = scalar_lea.vmem (%p1039_p12), %s1160_s3, %s701_s16 }
 0x152   : > { %v563_v42 = vld [vmem:[%s1095_s6] sm:$0xff] (%p1039_p12) }
 0x153   : > { %564 = vst [vmem:[%s533_s25] sm:$0xff] (%p1039_p12), %v563_v42 }
 0x154   : > { %v565_v43 = vld [vmem:[%s1095_s6 + $0x8] sm:$0xff] (%p1039_p12) }
 0x155   : > { %566 = vst [vmem:[%s533_s25 + $0x20] sm:$0xff] %v565_v43 }
 0x156 PF: > { %s13_s22 = sadd.s32 1, %s920_s22   ;;  %s1169_s10 = sld [smem:[#allocation8_spill]] }
 0x157   : > { %p10_p6 = scmp.ge.s32.totalorder %s13_s22, 10   ;;  %s1170_s30 = sld [smem:[#allocation6_spill]] }
 0x158   : > { %s1171_s27 = sld [smem:[#allocation7_spill]]  ;;  %s1172_s12 = smov %s884_s13 }
 0x159   : > { %s1173_s13 = smov %s1037_s9  ;;  %s1174_s14 = smov %s892_s15 }
 0x15a   : > { %s1175_s15 = smov %s1034_s8  ;;  %s1176_s16 = smov %s900_s17 }
 0x15b   : > { %s1178_s18 = smov %s912_s20  ;;  %s1179_s19 = smov %s916_s21 }
 0x15c   : > { %s1177_s17 = smov %s1169_s10  ;;  %12 = sbr.rel (!%p10_p6) target bundleno = 6 (0x6), region = 206 }
 0x15d   : > { %s1180_s20 = smov %s1170_s30 }
 0x15e   : > { %s1181_s21 = smov %s1171_s27 }

// kernel: convswarm_forward.69
= control target key start
LH: loop header
LB: loop body
LE: loop exit
PB: predicated region body
PF: predicated region fallthrough
CT: control target
= control target key end

     0   :  { %s951_s12 = smov 0   ;;  %s953_s13 = smov 0   ;;  %s1163_s0 = inlined_call_operand.vmem [shape: bf16[16,4608], index: 0, kind: input, shape index: {}]   ;;  %s1164_s1 = inlined_call_operand.vmem [shape: bf16[4608,512], index: 1, kind: input, shape index: {}]   ;;  %s1165_s2 = inlined_call_operand.vmem [shape: f32[1,512], index: 2, kind: input, shape index: {}]   ;;  %s1166_s3 = inlined_call_operand.vmem [shape: f32[16,512], index: 3, kind: output, shape index: {}]  }
   0x1   :  { %s955_s14 = smov 0   ;;  %s957_s15 = smov 0  }
   0x2   :  { %s959_s16 = smov 0   ;;  %s961_s17 = smov 0  }
   0x3   :  { %s963_s18 = smov 0   ;;  %s965_s19 = smov 0  }
   0x4   :  { %s967_s20 = smov 0   ;;  %s969_s21 = smov 0  }
   0x5   :  { %s971_s22 = smov 0  }
   0x6 LB: > { %s680_s23 = sadd.s32 4294967295, %s926_s22   ;;  %s25_s24 = sadd.s32 1, %s918_s20  ;;  %s926_s22 = sphi %s971_s22, %s13_s22   ;;  %s922_s21 = sphi %s969_s21, %s1187_s21   ;;  %s918_s20 = sphi %s967_s20, %s1186_s20   ;;  %s914_s19 = sphi %s965_s19, %s1185_s19   ;;  %s910_s18 = sphi %s963_s18, %s1184_s18   ;;  %s906_s17 = sphi %s961_s17, %s1183_s17   ;;  %s902_s16 = sphi %s959_s16, %s1182_s16   ;;  %s898_s15 = sphi %s957_s15, %s1181_s15   ;;  %s894_s14 = sphi %s955_s14, %s1180_s14   ;;  %s890_s13 = sphi %s953_s13, %s1179_s13   ;;  %s886_s12 = sphi %s951_s12, %s1178_s12  }
   0x7   : > { %p26_p0 = scmp.ge.s32.totalorder %s25_s24, 36  ;;  %s28_s25 = sadd.s32 1, %s922_s21 }
   0x8   : > { %s41_s26 = sadd.s32 1, %s906_s17  ;;  %p48_p1 = scmp.ne.s32.totalorder %s906_s17, %s902_s16 }
   0x9   : > { %s1189_s24 = smov (%p26_p0, %s25_s24), 0  ;;  %s1191_s25 = smov (!%p26_p0, %s28_s25), %s922_s21 }
   0xa   : > { %1169 = sst [smem:[#allocation6_spill]] %s1189_s24  ;;  %s37_s27 = ssub.s32 %s918_s20, %s1189_s24 }
   0xb   : > { %p49_p2 = scmp.eq.s32.totalorder %s926_s22, 0  ;;  %p30_p3 = scmp.ge.s32.totalorder %s1191_s25, 4 }
   0xc   : > { %p39_p4 = scmp.eq.s32.totalorder %s37_s27, 0  ;;  %s69_s29 = sadd.s32 1, %s898_s15 }
   0xd   : > { %p1018_p5 = por %p49_p2, %p48_p1  ;;  %s1193_s25 = smov (%p30_p3, %s1191_s25), 0 }
   0xe   : > { %1171 = sst [smem:[#allocation7_spill]] %s1193_s25  ;;  %s65_s4 = ssub.s32 %s922_s21, %s1193_s25 }
   0xf   : > { %s1026_s30 = scalar_select %p39_p4, %s906_s17, %s41_s26  }
  0x10   : > { %p76_p6 = scmp.ne.s32.totalorder %s898_s15, %s894_s14  ;;  %s66_s5 = sor.u32 %s65_s4, %s37_s27 }
  0x11   : > { %1172 = sst [smem:[#allocation8_spill]] %s1026_s30  ;;  %p121_p7 = scmp.eq.s32.totalorder %s65_s4, 0 }
  0x12   : > { %p67_p8 = scmp.eq.s32.totalorder %s66_s5, 0  ;;  %p1032_p9 = por %p76_p6, %p49_p2 }
  0x13   : > { %s123_s7 = sadd.s32 1, %s890_s13  ;;  %p133_p10 = scmp.ne.s32.totalorder %s890_s13, %s886_s12 }
  0x14   : > { %s1040_s8 = scalar_select %p67_p8, %s898_s15, %s69_s29  }
  0x15   : > { %s1043_s9 = scalar_select %p121_p7, %s890_s13, %s123_s7  }
  0x16   : > { %p134_p11 = scmp.eq.s32.totalorder %s680_s23, 143  ;;  %p683_p13 = scmp.ge.s32.totalorder %s926_s22, 144 }
  0x18   : > { %p1045_p12 = por %p134_p11, %p133_p10  ;;  %156 = sbr.rel (%p683_p13) target bundleno = 55 (0x37), region = 16 }
  0x1f   : > { %159 = sbr.rel (!%p1018_p5) target bundleno = 38 (0x26), region = 20  ;;  %s161_s11 = sand.u32 (%p1018_p5), 1, %s906_s17  }
  0x20   : > { %s685_s26 = sshll.u32 (%p1018_p5), %s918_s20, 2  ;;  %s684_s27 = sshll.u32 (%p1018_p5), %s161_s11, 3 }
  0x21   : > { %s168_s5 = scalar_lea.vmem (%p1018_p5), %s1163_s0, %s685_s26  ;;  %s163_s23 = scalar_lea.vmem (%p1018_p5), [#allocation3], %s684_s27 }
  0x22   : > { %v184_v0 = vld [vmem:[%s168_s5] sm:$0xf] (%p1018_p5)  ;;  %v186_v1 = vld [vmem:[%s168_s5 + $0x90] sm:$0xf] (%p1018_p5) }
  0x23   : > { %185 = vst [vmem:[%s163_s23] sm:$0xf] (%p1018_p5), %v184_v0  ;;  %187 = vst [vmem:[%s163_s23 + $0x4] sm:$0xf] (%p1018_p5), %v186_v1 }
  0x26 PF: > { %214 = sbr.rel (!%p1032_p9) target bundleno = 55 (0x37), region = 61  ;;  %s216_s28 = sand.u32 (%p1032_p9), 1, %s898_s15  }
  0x27   : > { %s710_s7 = sshll.u32 (%p1032_p9), %s918_s20, 6  ;;  %s686_s25 = sshll.u32 (%p1032_p9), %s216_s28, 6 }
  0x28   : > { %s221_s11 = sadd.s32 (%p1032_p9), %s922_s21, %s710_s7  ;;  %s218_s6 = scalar_lea.vmem (%p1032_p9), [#allocation4], %s686_s25 }
  0x29   : > { %s689_s24 = sshll.u32 (%p1032_p9), %s221_s11, 2 }
  0x2a   : > { %s1065_s26 = scalar_lea.vmem (%p1032_p9), %s1164_s1, %s689_s24 }
  0x2b   : > { %v239_v2 = vld [vmem:[%s1065_s26] sm:$0xf] (%p1032_p9)  ;;  %v241_v3 = vld [vmem:[%s1065_s26 + $0x10] sm:$0xf] (%p1032_p9) }
  0x2c   : > { %v243_v4 = vld [vmem:[%s1065_s26 + $0x20] sm:$0xf] (%p1032_p9)  ;;  %240 = vst [vmem:[%s218_s6] sm:$0xf] (%p1032_p9), %v239_v2  ;;  %242 = vst [vmem:[%s218_s6 + $0x4] sm:$0xf] (%p1032_p9), %v241_v3 }
  0x2d   : > { %244 = vst [vmem:[%s218_s6 + $0x8] sm:$0xf] %v243_v4  ;;  %v245_v5 = vld [vmem:[%s1065_s26 + $0x30] sm:$0xf]  ;;  %v247_v6 = vld [vmem:[%s1065_s26 + $0x40] sm:$0xf] }
  0x2e   : > { %v249_v7 = vld [vmem:[%s1065_s26 + $0x50] sm:$0xf]  ;;  %246 = vst [vmem:[%s218_s6 + $0xc] sm:$0xf] %v245_v5  ;;  %248 = vst [vmem:[%s218_s6 + $0x10] sm:$0xf] %v247_v6 }
  0x2f   : > { %250 = vst [vmem:[%s218_s6 + $0x14] sm:$0xf] %v249_v7  ;;  %v251_v8 = vld [vmem:[%s1065_s26 + $0x60] sm:$0xf]  ;;  %v253_v9 = vld [vmem:[%s1065_s26 + $0x70] sm:$0xf] }
  0x30   : > { %v255_v10 = vld [vmem:[%s1065_s26 + $0x80] sm:$0xf]  ;;  %252 = vst [vmem:[%s218_s6 + $0x18] sm:$0xf] %v251_v8  ;;  %254 = vst [vmem:[%s218_s6 + $0x1c] sm:$0xf] %v253_v9 }
  0x31   : > { %256 = vst [vmem:[%s218_s6 + $0x20] sm:$0xf] %v255_v10  ;;  %v257_v11 = vld [vmem:[%s1065_s26 + $0x90] sm:$0xf]  ;;  %v259_v12 = vld [vmem:[%s1065_s26 + $0xa0] sm:$0xf] }
  0x32   : > { %v261_v13 = vld [vmem:[%s1065_s26 + $0xb0] sm:$0xf]  ;;  %258 = vst [vmem:[%s218_s6 + $0x24] sm:$0xf] %v257_v11  ;;  %260 = vst [vmem:[%s218_s6 + $0x28] sm:$0xf] %v259_v12 }
  0x33   : > { %262 = vst [vmem:[%s218_s6 + $0x2c] sm:$0xf] %v261_v13  ;;  %v263_v14 = vld [vmem:[%s1065_s26 + $0xc0] sm:$0xf]  ;;  %v265_v15 = vld [vmem:[%s1065_s26 + $0xd0] sm:$0xf] }
  0x34   : > { %v267_v16 = vld [vmem:[%s1065_s26 + $0xe0] sm:$0xf]  ;;  %264 = vst [vmem:[%s218_s6 + $0x30] sm:$0xf] %v263_v14  ;;  %266 = vst [vmem:[%s218_s6 + $0x34] sm:$0xf] %v265_v15 }
  0x35   : > { %268 = vst [vmem:[%s218_s6 + $0x38] sm:$0xf] %v267_v16  ;;  %v269_v17 = vld [vmem:[%s1065_s26 + $0xf0] sm:$0xf] }
  0x36   : > { %270 = vst [vmem:[%s218_s6 + $0x3c] sm:$0xf] %v269_v17 }
  0x37 PF: > { %p690_p0 = scmp.ge.s32.totalorder %s926_s22, 1  ;;  %p330_p1 = scmp.lt.s32.totalorder %s926_s22, 145 }
  0x39   : > { %p331_p2 = pnand %p690_p0, %p330_p1 }
  0x3a   : > { %s337_s24 = sand.u32 (!%p331_p2), 1, %s902_s16   ;;  %s344_s25 = sand.u32 (!%p331_p2), 1, %s894_s14  }
  0x3b   : > { %334 = sbr.rel (%p331_p2) target bundleno = 345 (0x159), region = 106  ;;  %s1087_s30 = sshll.u32 (!%p331_p2), %s337_s24, 3 }
  0x3c   : > { %s692_s27 = sshll.u32 (!%p331_p2), %s344_s25, 6  ;;  %s370_s4 = sand.u32 (!%p331_p2), 1, %s886_s12  }
  0x3d   : > { %p375_p3 = scmp.lt.s32.totalorder (!%p331_p2), %s914_s19, 3  ;;  %s693_s5 = sshll.u32 (!%p331_p2), %s370_s4, 4 }
  0x3e   : > { %s339_s29 = scalar_lea.vmem (!%p331_p2), [#allocation3], %s1087_s30  ;;  %s1099_s26 = scalar_lea.vmem (!%p331_p2), [#allocation4], %s692_s27 }
  0x3f   : > { %s1101_s6 = scalar_lea.vmem (!%p331_p2), [#allocation5], %s693_s5  ;;  %p694_p4 = scmp.ne.s32.totalorder (!%p331_p2), %s910_s18, 0 }
  0x42   : > { %s1092_s23 = scalar_select %p375_p3, %s914_s19, 3 }
  0x43   : > { %383 = sbr.rel (%p694_p4) target bundleno = 74 (0x4a), region = 118  ;;  %v928_v18 = vmov (!%p694_p4), 0.0  }
  0x44   : > { %s377_s11 = scalar_lea.vmem %s1165_s2, %s1092_s23  ;;  %384 = vst [vmem:[#allocation2] sm:$0xff] (!%p694_p4), %v928_v18  ;;  %385 = vst [vmem:[#allocation2 + $0x8] sm:$0xff] (!%p694_p4), %v928_v18 }
  0x4a PF: > { %v831_v19 = vld [vmem:[%s1099_s26] sm:$0xff]   ;;  %v929_v20 = vmov 0.0   ;;  %v832_v21 = vld [vmem:[%s1099_s26 + $0x8] sm:$0xff]   ;;  %vm930_vm0 = vmmov 0   ;;  %v833_v22 = vld [vmem:[%s1099_s26 + $0x10] sm:$0xff]   ;;  %p704_p5 = scmp.ne.s32.totalorder %s910_s18, 35 }
  0x4b   : > { %720 = vmatprep.subr.bf16.mxu0 %v929_v20  ;;  %736 = vmatprep.mubr.msk.bf16.mxu0 %vm930_vm0, %v929_v20  ;;  %v834_v23 = vld [vmem:[%s1099_s26 + $0x18] sm:$0xff]   ;;  %v835_v24 = vld [vmem:[%s1099_s26 + $0x20] sm:$0xff]   ;;  %v836_v25 = vld [vmem:[%s1099_s26 + $0x28] sm:$0xff]  }
  0x4c   : > { %721 = vmatpush3.bf16.msra.mxu0 %v831_v19  ;;  %v837_v26 = vld [vmem:[%s1099_s26 + $0x30] sm:$0xff]   ;;  %v838_v27 = vld [vmem:[%s1099_s26 + $0x38] sm:$0xff]   ;;  %v386_v29 = vld [vmem:[#allocation2] sm:$0xff] }
  0x4d   : > { %722 = vmatprep.subr.bf16.mxu0 %v929_v20  ;;  %v839_v28 = vld [vmem:[%s339_s29] sm:$0xff]   ;;  %v387_v31 = vld [vmem:[#allocation2 + $0x8] sm:$0xff]  ;;  %v705_v38 = vld [vmem:[%s377_s11] ss:$0 sm:$0xff] (!%p704_p5) }
  0x50   : > { %723 = vmatpush3.bf16.msra.mxu0 %v832_v21 }
  0x51   : > { %724 = vmatprep.subr.bf16.mxu0 %v929_v20 }
  0x54   : > { %725 = vmatpush3.bf16.msra.mxu0 %v833_v22 }
  0x55   : > { %726 = vmatprep.subr.bf16.mxu0 %v929_v20 }
  0x58   : > { %727 = vmatpush3.bf16.msra.mxu0 %v834_v23 }
  0x59   : > { %728 = vmatprep.subr.bf16.mxu0 %v929_v20 }
  0x5c   : > { %729 = vmatpush3.bf16.msra.mxu0 %v835_v24 }
  0x5d   : > { %730 = vmatprep.subr.bf16.mxu0 %v929_v20 }
  0x60   : > { %731 = vmatpush3.bf16.msra.mxu0 %v836_v25 }
  0x61   : > { %732 = vmatprep.subr.bf16.mxu0 %v929_v20 }
  0x64   : > { %733 = vmatpush3.bf16.msra.mxu0 %v837_v26 }
  0x65   : > { %734 = vmatprep.subr.bf16.mxu0 %v929_v20 }
  0x68   : > { %735 = vmatpush3.bf16.msra.mxu0 %v838_v27 }
  0x6b   : > { %737 = vmatmul.mubr.bf16.vlgmr.msra.gmra.mrb[0].mxu0 %v839_v28 }
 0x13d   : > { %508 = sbr.rel (%p704_p5) target bundleno = 337 (0x151), region = 122 }
 0x13e   : > { %v494_v30 = vpop.f32.mrb[0].mxu0 }
 0x13f   : > { %v501_v32 = vadd.f32 %v494_v30, %v386_v29  ;;  %v738_v33 = vpop.f32.mrb[1].mxu0 }
 0x140   : > { %v497_v34 = vpop.f32.mrb[2].mxu0 }
 0x141   : > { %503 = vst [vmem:[#allocation2] sm:$0xff] %v501_v32  ;;  %v502_v35 = vadd.f32 %v497_v34, %v387_v31  ;;  %v739_v36 = vpop.f32.mrb[3].mxu0 }
 0x143   : > { %504 = vst [vmem:[#allocation2 + $0x8] sm:$0xff] %v502_v35 }
 0x148   : > { %v509_v37 = vld [vmem:[#allocation2] sm:$0xff] }
 0x149   : > { %v518_v40 = vadd.f32 %v705_v38, %v509_v37 }
 0x14a   : > { %v510_v39 = vld [vmem:[#allocation2 + $0x8] sm:$0xff] }
 0x14b   : > { %v519_v41 = vadd.f32 %v705_v38, %v510_v39  ;;  %vm520_vm1 = vcmp.ge.f32.partialorder %v518_v40, 0.0  ;;  %v522_v42 = vmul.f32 0.01, %v518_v40 }
 0x14d   : > { %vm521_vm2 = vcmp.ge.f32.partialorder %v519_v41, 0.0  ;;  %v523_v43 = vmul.f32 0.01, %v519_v41  ;;  %v524_v44 = vsel %vm520_vm1, %v518_v40, %v522_v42 }
 0x14e   : > { %526 = vst [vmem:[%s1101_s6] sm:$0xff] %v524_v44 }
 0x14f   : > { %v525_v45 = vsel %vm521_vm2, %v519_v41, %v523_v43 }
 0x150   : > { %527 = vst [vmem:[%s1101_s6 + $0x8] sm:$0xff] %v525_v45 }
 0x151 PF: > { %534 = sbr.rel (!%p1045_p12) target bundleno = 345 (0x159), region = 126  ;;  %s707_s16 = sshll.u32 (%p1045_p12), %s914_s19, 3 }
 0x152   : > { %s539_s25 = scalar_lea.vmem (%p1045_p12), %s1166_s3, %s707_s16 }
 0x155   : > { %v569_v46 = vld [vmem:[%s1101_s6] sm:$0xff] (%p1045_p12) }
 0x156   : > { %570 = vst [vmem:[%s539_s25] sm:$0xff] (%p1045_p12), %v569_v46 }
 0x157   : > { %v571_v47 = vld [vmem:[%s1101_s6 + $0x8] sm:$0xff] (%p1045_p12) }
 0x158   : > { %572 = vst [vmem:[%s539_s25 + $0x20] sm:$0xff] %v571_v47 }
 0x159 PF: > { %s13_s22 = sadd.s32 1, %s926_s22   ;;  %s1175_s10 = sld [smem:[#allocation8_spill]] }
 0x15a   : > { %p10_p6 = scmp.ge.s32.totalorder %s13_s22, 146   ;;  %s1176_s30 = sld [smem:[#allocation6_spill]] }
 0x15b   : > { %s1177_s27 = sld [smem:[#allocation7_spill]]  ;;  %s1178_s12 = smov %s890_s13 }
 0x15c   : > { %s1179_s13 = smov %s1043_s9  ;;  %s1180_s14 = smov %s898_s15 }
 0x15d   : > { %s1181_s15 = smov %s1040_s8  ;;  %s1182_s16 = smov %s906_s17 }
 0x15e   : > { %s1184_s18 = smov %s918_s20  ;;  %s1185_s19 = smov %s922_s21 }
 0x15f   : > { %s1183_s17 = smov %s1175_s10  ;;  %12 = sbr.rel (!%p10_p6) target bundleno = 6 (0x6), region = 206 }
 0x160   : > { %s1186_s20 = smov %s1176_s30 }
 0x161   : > { %s1187_s21 = smov %s1177_s27 }

// kernel: convswarm_forward.68
= control target key start
LH: loop header
LB: loop body
LE: loop exit
PB: predicated region body
PF: predicated region fallthrough
CT: control target
= control target key end

     0   :  { %s1074_s15 = smov 0   ;;  %s1076_s16 = smov 0   ;;  %s1311_s0 = inlined_call_operand.vmem [shape: bf16[16,4608], index: 0, kind: input, shape index: {}]   ;;  %s1312_s1 = inlined_call_operand.vmem [shape: bf16[4608,512], index: 1, kind: input, shape index: {}]   ;;  %s1313_s2 = inlined_call_operand.vmem [shape: f32[1,512], index: 2, kind: input, shape index: {}]   ;;  %s1314_s3 = inlined_call_operand.vmem [shape: f32[16,512], index: 3, kind: input, shape index: {}]   ;;  %s1315_s4 = inlined_call_operand.vmem [shape: f32[16,512], index: 4, kind: output, shape index: {}]  }
   0x1   :  { %s1078_s17 = smov 0   ;;  %s1080_s18 = smov 0  }
   0x2   :  { %s1082_s19 = smov 0   ;;  %s1084_s20 = smov 0  }
   0x3   :  { %s1086_s21 = smov 0   ;;  %s1088_s22 = smov 0  }
   0x4   :  { %s1090_s23 = smov 0   ;;  %s1092_s24 = smov 0  }
   0x5   :  { %s1094_s25 = smov 0  }
   0x6 LB: > { %1319 = sst [smem:[#allocation7_spill]] %s1024_s20  ;;  %s795_s26 = sadd.s32 4294967295, %s1044_s25   ;;  %s1044_s25 = sphi %s1094_s25, %s14_s25   ;;  %s1040_s24 = sphi %s1092_s24, %s1340_s24   ;;  %s1036_s23 = sphi %s1090_s23, %s1339_s23   ;;  %s1032_s22 = sphi %s1088_s22, %s1338_s22   ;;  %s1028_s21 = sphi %s1086_s21, %s1337_s21   ;;  %s1024_s20 = sphi %s1084_s20, %s1330_s20   ;;  %s1020_s19 = sphi %s1082_s19, %s1329_s19   ;;  %s1016_s18 = sphi %s1080_s18, %s1336_s18   ;;  %s1012_s17 = sphi %s1078_s17, %s1335_s17   ;;  %s1008_s16 = sphi %s1076_s16, %s1334_s16   ;;  %s1004_s15 = sphi %s1074_s15, %s1333_s15  }
   0x7   : > { %s26_s27 = sadd.s32 1, %s1036_s23  ;;  %s29_s28 = sadd.s32 1, %s1040_s24 }
   0x8   : > { %p27_p0 = scmp.ge.s32.totalorder %s26_s27, 36  ;;  %s42_s29 = sadd.s32 1, %s1024_s20 }
   0x9   : > { %p49_p1 = scmp.ne.s32.totalorder %s1024_s20, %s1020_s19  ;;  %p50_p2 = scmp.eq.s32.totalorder %s1044_s25, 0 }
   0xa   : > { %s1342_s27 = smov (%p27_p0, %s26_s27), 0  ;;  %s1344_s28 = smov (!%p27_p0, %s29_s28), %s1040_s24 }
   0xb   : > { %1320 = sst [smem:[#allocation8_spill]] %s1342_s27  ;;  %s38_s30 = ssub.s32 %s1036_s23, %s1342_s27 }
   0xc   : > { %p31_p3 = scmp.ge.s32.totalorder %s1344_s28, 4  ;;  %p40_p4 = scmp.eq.s32.totalorder %s38_s30, 0 }
   0xd   : > { %p1143_p5 = por %p50_p2, %p49_p1  ;;  %s70_s6 = sadd.s32 1, %s1016_s18 }
   0xe   : > { %s1346_s28 = smov (%p31_p3, %s1344_s28), 0  ;;  %p77_p6 = scmp.ne.s32.totalorder %s1016_s18, %s1012_s17 }
   0xf   : > { %1322 = sst [smem:[#allocation9_spill]] %s1346_s28  ;;  %s66_s8 = ssub.s32 %s1040_s24, %s1346_s28 }
  0x10   : > { %s1151_s7 = scalar_select %p40_p4, %s1024_s20, %s42_s29  }
  0x11   : > { %s67_s9 = sor.u32 %s66_s8, %s38_s30  ;;  %p122_p7 = scmp.eq.s32.totalorder %s66_s8, 0 }
  0x12   : > { %1323 = sst [smem:[#allocation10_spill]] %s1151_s7  ;;  %p68_p8 = scmp.eq.s32.totalorder %s67_s9, 0 }
  0x13   : > { %p1159_p9 = por %p77_p6, %p50_p2  ;;  %s124_s11 = sadd.s32 1, %s1008_s16 }
  0x14   : > { %p131_p10 = scmp.ne.s32.totalorder %s1008_s16, %s1004_s15  ;;  %p163_p12 = scmp.eq.s32.totalorder %s795_s26, 143 }
  0x15   : > { %s1167_s12 = scalar_select %p68_p8, %s1016_s18, %s70_s6  }
  0x16   : > { %s1170_s13 = scalar_select %p122_p7, %s1008_s16, %s124_s11  }
  0x17   : > { %1325 = sst [smem:[#allocation11_spill]] %s1167_s12  ;;  %p1174_p11 = por %p131_p10, %p50_p2 }
  0x18   : > { %p1178_p13 = por %p163_p12, %p131_p10  ;;  %p798_p0 = scmp.ge.s32.totalorder %s1044_s25, 144 }
  0x1a   : > { %185 = sbr.rel (%p798_p0) target bundleno = 64 (0x40), region = 16 }
  0x21   : > { %188 = sbr.rel (!%p1143_p5) target bundleno = 40 (0x28), region = 20  ;;  %s190_s30 = sand.u32 (%p1143_p5), 1, %s1024_s20  }
  0x22   : > { %s800_s6 = sshll.u32 (%p1143_p5), %s1036_s23, 2  ;;  %s799_s8 = sshll.u32 (%p1143_p5), %s190_s30, 3 }
  0x23   : > { %s197_s28 = scalar_lea.vmem (%p1143_p5), %s1311_s0, %s800_s6  ;;  %s192_s26 = scalar_lea.vmem (%p1143_p5), [#allocation3], %s799_s8 }
  0x24   : > { %v213_v0 = vld [vmem:[%s197_s28] sm:$0xf] (%p1143_p5)  ;;  %v215_v1 = vld [vmem:[%s197_s28 + $0x90] sm:$0xf] (%p1143_p5) }
  0x25   : > { %214 = vst [vmem:[%s192_s26] sm:$0xf] (%p1143_p5), %v213_v0  ;;  %216 = vst [vmem:[%s192_s26 + $0x4] sm:$0xf] (%p1143_p5), %v215_v1 }
  0x28 PF: > { %243 = sbr.rel (!%p1159_p9) target bundleno = 57 (0x39), region = 61  ;;  %s245_s5 = sand.u32 (%p1159_p9), 1, %s1016_s18  }
  0x29   : > { %s828_s27 = sshll.u32 (%p1159_p9), %s1036_s23, 6  ;;  %s801_s7 = sshll.u32 (%p1159_p9), %s245_s5, 6 }
  0x2a   : > { %s250_s30 = sadd.s32 (%p1159_p9), %s1040_s24, %s828_s27  ;;  %s247_s28 = scalar_lea.vmem (%p1159_p9), [#allocation4], %s801_s7 }
  0x2b   : > { %s804_s20 = sshll.u32 (%p1159_p9), %s250_s30, 2 }
  0x2c   : > { %s1198_s6 = scalar_lea.vmem (%p1159_p9), %s1312_s1, %s804_s20 }
  0x2d   : > { %v268_v2 = vld [vmem:[%s1198_s6] sm:$0xf] (%p1159_p9)  ;;  %v270_v3 = vld [vmem:[%s1198_s6 + $0x10] sm:$0xf] (%p1159_p9) }
  0x2e   : > { %v272_v4 = vld [vmem:[%s1198_s6 + $0x20] sm:$0xf] (%p1159_p9)  ;;  %269 = vst [vmem:[%s247_s28] sm:$0xf] (%p1159_p9), %v268_v2  ;;  %271 = vst [vmem:[%s247_s28 + $0x4] sm:$0xf] (%p1159_p9), %v270_v3 }
  0x2f   : > { %273 = vst [vmem:[%s247_s28 + $0x8] sm:$0xf] %v272_v4  ;;  %v274_v5 = vld [vmem:[%s1198_s6 + $0x30] sm:$0xf]  ;;  %v276_v6 = vld [vmem:[%s1198_s6 + $0x40] sm:$0xf] }
  0x30   : > { %v278_v7 = vld [vmem:[%s1198_s6 + $0x50] sm:$0xf]  ;;  %275 = vst [vmem:[%s247_s28 + $0xc] sm:$0xf] %v274_v5  ;;  %277 = vst [vmem:[%s247_s28 + $0x10] sm:$0xf] %v276_v6 }
  0x31   : > { %279 = vst [vmem:[%s247_s28 + $0x14] sm:$0xf] %v278_v7  ;;  %v280_v8 = vld [vmem:[%s1198_s6 + $0x60] sm:$0xf]  ;;  %v282_v9 = vld [vmem:[%s1198_s6 + $0x70] sm:$0xf] }
  0x32   : > { %v284_v10 = vld [vmem:[%s1198_s6 + $0x80] sm:$0xf]  ;;  %281 = vst [vmem:[%s247_s28 + $0x18] sm:$0xf] %v280_v8  ;;  %283 = vst [vmem:[%s247_s28 + $0x1c] sm:$0xf] %v282_v9 }
  0x33   : > { %285 = vst [vmem:[%s247_s28 + $0x20] sm:$0xf] %v284_v10  ;;  %v286_v11 = vld [vmem:[%s1198_s6 + $0x90] sm:$0xf]  ;;  %v288_v12 = vld [vmem:[%s1198_s6 + $0xa0] sm:$0xf] }
  0x34   : > { %v290_v13 = vld [vmem:[%s1198_s6 + $0xb0] sm:$0xf]  ;;  %287 = vst [vmem:[%s247_s28 + $0x24] sm:$0xf] %v286_v11  ;;  %289 = vst [vmem:[%s247_s28 + $0x28] sm:$0xf] %v288_v12 }
  0x35   : > { %291 = vst [vmem:[%s247_s28 + $0x2c] sm:$0xf] %v290_v13  ;;  %v292_v14 = vld [vmem:[%s1198_s6 + $0xc0] sm:$0xf]  ;;  %v294_v15 = vld [vmem:[%s1198_s6 + $0xd0] sm:$0xf] }
  0x36   : > { %v296_v16 = vld [vmem:[%s1198_s6 + $0xe0] sm:$0xf]  ;;  %293 = vst [vmem:[%s247_s28 + $0x30] sm:$0xf] %v292_v14  ;;  %295 = vst [vmem:[%s247_s28 + $0x34] sm:$0xf] %v294_v15 }
  0x37   : > { %297 = vst [vmem:[%s247_s28 + $0x38] sm:$0xf] %v296_v16  ;;  %v298_v17 = vld [vmem:[%s1198_s6 + $0xf0] sm:$0xf] }
  0x38   : > { %299 = vst [vmem:[%s247_s28 + $0x3c] sm:$0xf] %v298_v17 }
  0x39 PF: > { %360 = sbr.rel (!%p1174_p11) target bundleno = 64 (0x40), region = 106  ;;  %s362_s20 = sand.u32 (%p1174_p11), 1, %s1008_s16  }
  0x3a   : > { %s806_s27 = sshll.u32 (%p1174_p11), %s1040_s24, 3  ;;  %s805_s7 = sshll.u32 (%p1174_p11), %s362_s20, 4 }
  0x3b   : > { %s369_s8 = scalar_lea.vmem (%p1174_p11), %s1314_s3, %s806_s27  ;;  %s364_s11 = scalar_lea.vmem (%p1174_p11), [#allocation5], %s805_s7 }
  0x3c   : > { %v399_v18 = vld [vmem:[%s369_s8] sm:$0xff] (%p1174_p11) }
  0x3d   : > { %v401_v19 = vld [vmem:[%s369_s8 + $0x20] sm:$0xff] (%p1174_p11)  ;;  %400 = vst [vmem:[%s364_s11] sm:$0xff] (%p1174_p11), %v399_v18 }
  0x3e   : > { %402 = vst [vmem:[%s364_s11 + $0x8] sm:$0xff] (%p1174_p11), %v401_v19 }
  0x40 PF: > { %p807_p1 = scmp.ge.s32.totalorder %s1044_s25, 1  ;;  %p407_p2 = scmp.lt.s32.totalorder %s1044_s25, 145 }
  0x42   : > { %p408_p3 = pnand %p807_p1, %p407_p2 }
  0x43   : > { %s414_s14 = sand.u32 (!%p408_p3), 1, %s1020_s19   ;;  %s421_s26 = sand.u32 (!%p408_p3), 1, %s1012_s17  }
  0x44   : > { %411 = sbr.rel (%p408_p3) target bundleno = 356 (0x164), region = 144  ;;  %s1227_s5 = sshll.u32 (!%p408_p3), %s414_s14, 3 }
  0x45   : > { %s809_s30 = sshll.u32 (!%p408_p3), %s421_s26, 6  ;;  %s428_s9 = sand.u32 (!%p408_p3), 1, %s1004_s15  }
  0x46   : > { %p465_p4 = scmp.lt.s32.totalorder (!%p408_p3), %s1032_s22, 3  ;;  %s1231_s6 = sshll.u32 (!%p408_p3), %s428_s9, 4 }
  0x47   : > { %s416_s10 = scalar_lea.vmem (!%p408_p3), [#allocation3], %s1227_s5  ;;  %s1241_s19 = scalar_lea.vmem (!%p408_p3), [#allocation4], %s809_s30 }
  0x48   : > { %s430_s17 = scalar_lea.vmem (!%p408_p3), [#allocation5], %s1231_s6  ;;  %s1245_s12 = scalar_lea.vmem (!%p408_p3), [#allocation6], %s1231_s6 }
  0x49   : > { %p812_p5 = scmp.ne.s32.totalorder (!%p408_p3), %s1028_s21, 0 }
  0x4b   : > { %s1234_s28 = scalar_select %p465_p4, %s1032_s22, 3 }
  0x4c   : > { %474 = sbr.rel (%p812_p5) target bundleno = 83 (0x53), region = 160  ;;  %v1046_v20 = vmov (!%p812_p5), 0.0  }
  0x4d   : > { %s467_s7 = scalar_lea.vmem %s1313_s2, %s1234_s28  ;;  %475 = vst [vmem:[#allocation2] sm:$0xff] (!%p812_p5), %v1046_v20  ;;  %476 = vst [vmem:[#allocation2 + $0x8] sm:$0xff] (!%p812_p5), %v1046_v20 }
  0x53 PF: > { %v949_v21 = vld [vmem:[%s1241_s19] sm:$0xff]   ;;  %v1047_v22 = vmov 0.0   ;;  %v950_v23 = vld [vmem:[%s1241_s19 + $0x8] sm:$0xff]   ;;  %vm1048_vm0 = vmmov 0   ;;  %v951_v24 = vld [vmem:[%s1241_s19 + $0x10] sm:$0xff]   ;;  %p822_p6 = scmp.ne.s32.totalorder %s1028_s21, 35 }
  0x54   : > { %838 = vmatprep.subr.bf16.mxu0 %v1047_v22  ;;  %854 = vmatprep.mubr.msk.bf16.mxu0 %vm1048_vm0, %v1047_v22  ;;  %v952_v25 = vld [vmem:[%s1241_s19 + $0x18] sm:$0xff]   ;;  %v953_v26 = vld [vmem:[%s1241_s19 + $0x20] sm:$0xff]   ;;  %v954_v27 = vld [vmem:[%s1241_s19 + $0x28] sm:$0xff]  }
  0x55   : > { %839 = vmatpush3.bf16.msra.mxu0 %v949_v21  ;;  %v955_v28 = vld [vmem:[%s1241_s19 + $0x30] sm:$0xff]   ;;  %v956_v29 = vld [vmem:[%s1241_s19 + $0x38] sm:$0xff]   ;;  %v477_v31 = vld [vmem:[#allocation2] sm:$0xff] }
  0x56   : > { %840 = vmatprep.subr.bf16.mxu0 %v1047_v22  ;;  %v957_v30 = vld [vmem:[%s416_s10] sm:$0xff]   ;;  %v478_v33 = vld [vmem:[#allocation2 + $0x8] sm:$0xff]  ;;  %v823_v40 = vld [vmem:[%s467_s7] ss:$0 sm:$0xff] (!%p822_p6) }
  0x57   : > { %v603_v41 = vld [vmem:[%s430_s17] sm:$0xff] (!%p822_p6)  ;;  %v604_v44 = vld [vmem:[%s430_s17 + $0x8] sm:$0xff] (!%p822_p6) }
  0x59   : > { %841 = vmatpush3.bf16.msra.mxu0 %v950_v23 }
  0x5a   : > { %842 = vmatprep.subr.bf16.mxu0 %v1047_v22 }
  0x5d   : > { %843 = vmatpush3.bf16.msra.mxu0 %v951_v24 }
  0x5e   : > { %844 = vmatprep.subr.bf16.mxu0 %v1047_v22 }
  0x61   : > { %845 = vmatpush3.bf16.msra.mxu0 %v952_v25 }
  0x62   : > { %846 = vmatprep.subr.bf16.mxu0 %v1047_v22 }
  0x65   : > { %847 = vmatpush3.bf16.msra.mxu0 %v953_v26 }
  0x66   : > { %848 = vmatprep.subr.bf16.mxu0 %v1047_v22 }
  0x69   : > { %849 = vmatpush3.bf16.msra.mxu0 %v954_v27 }
  0x6a   : > { %850 = vmatprep.subr.bf16.mxu0 %v1047_v22 }
  0x6d   : > { %851 = vmatpush3.bf16.msra.mxu0 %v955_v28 }
  0x6e   : > { %852 = vmatprep.subr.bf16.mxu0 %v1047_v22 }
  0x71   : > { %853 = vmatpush3.bf16.msra.mxu0 %v956_v29 }
  0x74   : > { %855 = vmatmul.mubr.bf16.vlgmr.msra.gmra.mrb[0].mxu0 %v957_v30 }
 0x146   : > { %599 = sbr.rel (%p822_p6) target bundleno = 348 (0x15c), region = 164 }
 0x147   : > { %v585_v32 = vpop.f32.mrb[0].mxu0 }
 0x148   : > { %v592_v34 = vadd.f32 %v585_v32, %v477_v31  ;;  %v856_v35 = vpop.f32.mrb[1].mxu0 }
 0x149   : > { %v588_v36 = vpop.f32.mrb[2].mxu0 }
 0x14a   : > { %594 = vst [vmem:[#allocation2] sm:$0xff] %v592_v34  ;;  %v593_v37 = vadd.f32 %v588_v36, %v478_v33  ;;  %v857_v38 = vpop.f32.mrb[3].mxu0 }
 0x14c   : > { %595 = vst [vmem:[#allocation2 + $0x8] sm:$0xff] %v593_v37 }
 0x151   : > { %v600_v39 = vld [vmem:[#allocation2] sm:$0xff] }
 0x152   : > { %v611_v42 = vadd.f32 %v823_v40, %v600_v39 }
 0x153   : > { %v601_v43 = vld [vmem:[#allocation2 + $0x8] sm:$0xff] }
 0x154   : > { %v612_v45 = vadd.f32 %v823_v40, %v601_v43  ;;  %v613_v46 = vadd.f32 %v611_v42, %v603_v41 }
 0x156   : > { %v614_v47 = vadd.f32 %v612_v45, %v604_v44  ;;  %vm615_vm1 = vcmp.ge.f32.partialorder %v613_v46, 0.0  ;;  %v617_v48 = vmul.f32 0.01, %v613_v46 }
 0x158   : > { %vm616_vm2 = vcmp.ge.f32.partialorder %v614_v47, 0.0  ;;  %v618_v49 = vmul.f32 0.01, %v614_v47  ;;  %v619_v50 = vsel %vm615_vm1, %v613_v46, %v617_v48 }
 0x159   : > { %621 = vst [vmem:[%s1245_s12] sm:$0xff] %v619_v50 }
 0x15a   : > { %v620_v51 = vsel %vm616_vm2, %v614_v47, %v618_v49 }
 0x15b   : > { %622 = vst [vmem:[%s1245_s12 + $0x8] sm:$0xff] %v620_v51 }
 0x15c PF: > { %629 = sbr.rel (!%p1178_p13) target bundleno = 356 (0x164), region = 168  ;;  %s825_s21 = sshll.u32 (%p1178_p13), %s1032_s22, 3 }
 0x15d   : > { %s634_s26 = scalar_lea.vmem (%p1178_p13), %s1315_s4, %s825_s21 }
 0x160   : > { %v664_v52 = vld [vmem:[%s1245_s12] sm:$0xff] (%p1178_p13) }
 0x161   : > { %665 = vst [vmem:[%s634_s26] sm:$0xff] (%p1178_p13), %v664_v52 }
 0x162   : > { %v666_v53 = vld [vmem:[%s1245_s12 + $0x8] sm:$0xff] (%p1178_p13) }
 0x163   : > { %667 = vst [vmem:[%s634_s26 + $0x20] sm:$0xff] %v666_v53 }
 0x164 PF: > { %s14_s25 = sadd.s32 1, %s1044_s25   ;;  %s1328_s29 = sld [smem:[#allocation11_spill]] }
 0x165   : > { %p11_p7 = scmp.ge.s32.totalorder %s14_s25, 146   ;;  %s1329_s19 = sld [smem:[#allocation7_spill]] }
 0x166   : > { %s1330_s20 = sld [smem:[#allocation10_spill]]  ;;  %s1331_s5 = sld [smem:[#allocation8_spill]] }
 0x167   : > { %s1332_s30 = sld [smem:[#allocation9_spill]]  ;;  %s1333_s15 = smov %s1008_s16 }
 0x168   : > { %s1334_s16 = smov %s1170_s13  ;;  %s1335_s17 = smov %s1016_s18 }
 0x169   : > { %s1337_s21 = smov %s1036_s23  ;;  %s1338_s22 = smov %s1040_s24 }
 0x16a   : > { %s1336_s18 = smov %s1328_s29  ;;  %13 = sbr.rel (!%p11_p7) target bundleno = 6 (0x6), region = 256 }
 0x16c   : > { %s1339_s23 = smov %s1331_s5 }
 0x16d   : > { %s1340_s24 = smov %s1332_s30 }

// kernel: convswarm_forward.73
= control target key start
LH: loop header
LB: loop body
LE: loop exit
PB: predicated region body
PF: predicated region fallthrough
CT: control target
= control target key end

     0   :  { %v522_v51 = vmov 1966171168   ;;  %v101_v53 = vlaneseq  ;;  %vm524_vm0 = vmmov 0   ;;  %vm277_vm1 = vcmask 261120   ;;  %s772_s1 = inlined_call_operand.vmem [shape: f32[512,32], index: 1, kind: input, shape index: {}]   ;;  %s773_s0 = inlined_call_operand.vmem [shape: f32[2,1,512], index: 0, kind: input, shape index: {}]   ;;  %s774_s3 = inlined_call_operand.vmem [shape: f32[32,10], index: 3, kind: input, shape index: {}]   ;;  %s775_s2 = inlined_call_operand.vmem [shape: f32[1,32], index: 2, kind: input, shape index: {}]   ;;  %s776_s4 = inlined_call_operand.vmem [shape: f32[1,10], index: 4, kind: input, shape index: {}]   ;;  %s777_s5 = inlined_call_operand.vmem [shape: f32[2,10], index: 5, kind: output, shape index: {}]  }
   0x1   :  { %v40_v0 = vld [vmem:[%s772_s1 + $0x80] sm:$0xff]  ;;  %v41_v1 = vld [vmem:[%s772_s1 + $0x88] sm:$0xff]  ;;  %v42_v11 = vld [vmem:[%s772_s1 + $0x90] sm:$0xff]  ;;  %v99_v52 = vunpack.c.l.s4 %v522_v51  ;;  %v525_v51 = vmov 0.0   ;;  %vm351_vm2 = vcmask 74752  }
   0x2   :  { %v24_v2 = vld [vmem:[%s772_s1] sm:$0xff]  ;;  %v446_v3 = vpack.c.bf16 %v41_v1, %v40_v0  ;;  %v25_v4 = vld [vmem:[%s772_s1 + $0x8] sm:$0xff]  ;;  %v43_v13 = vld [vmem:[%s772_s1 + $0x98] sm:$0xff] }
   0x3   :  { %v72_v5 = vld [vmem:[%s772_s1 + $0x180] sm:$0xff]  ;;  %v73_v6 = vld [vmem:[%s772_s1 + $0x188] sm:$0xff]  ;;  %v448_v7 = vpack.c.bf16 %v25_v4, %v24_v2  ;;  %v26_v14 = vld [vmem:[%s772_s1 + $0x10] sm:$0xff]  ;;  %v450_v16 = vpack.c.bf16 %v43_v13, %v42_v11  ;;  %v100_v2 = vunpack.c.0.s8 %v99_v52 }
   0x4   :  { %v478_v8 = vpack.c.bf16 %v73_v6, %v72_v5  ;;  %v56_v9 = vld [vmem:[%s772_s1 + $0x100] sm:$0xff]  ;;  %v57_v10 = vld [vmem:[%s772_s1 + $0x108] sm:$0xff]  ;;  %447 = vmatprep.subr.bf16.mxu0 %v446_v3  ;;  %v27_v15 = vld [vmem:[%s772_s1 + $0x18] sm:$0xff]  ;;  %v102_v3 = vshrl.u32 %v101_v53, 7 }
   0x5   :  { %v480_v12 = vpack.c.bf16 %v57_v10, %v56_v9  ;;  %449 = vmatpush3.bf16.msra.mxu0 %v448_v7  ;;  %v452_v17 = vpack.c.bf16 %v27_v15, %v26_v14  ;;  %v74_v18 = vld [vmem:[%s772_s1 + $0x190] sm:$0xff]  ;;  %v75_v19 = vld [vmem:[%s772_s1 + $0x198] sm:$0xff]  ;;  %v44_v23 = vld [vmem:[%s772_s1 + $0xa0] sm:$0xff] }
   0x6   :  { %479 = vmatprep.subr.bf16.mxu1 %v478_v8  ;;  %v58_v20 = vld [vmem:[%s772_s1 + $0x110] sm:$0xff]  ;;  %v482_v21 = vpack.c.bf16 %v75_v19, %v74_v18  ;;  %v59_v22 = vld [vmem:[%s772_s1 + $0x118] sm:$0xff]  ;;  %v45_v24 = vld [vmem:[%s772_s1 + $0xa8] sm:$0xff]  ;;  %451 = vmatprep.subr.bf16.mxu0 %v450_v16  ;;  %v103_v19 = vsub.s32 %v100_v2, %v102_v3 }
   0x7   :  { %481 = vmatpush3.bf16.msra.mxu1 %v480_v12  ;;  %v484_v25 = vpack.c.bf16 %v59_v22, %v58_v20  ;;  %v454_v26 = vpack.c.bf16 %v45_v24, %v44_v23  ;;  %v28_v27 = vld [vmem:[%s772_s1 + $0x20] sm:$0xff]  ;;  %v29_v28 = vld [vmem:[%s772_s1 + $0x28] sm:$0xff]  ;;  %v46_v35 = vld [vmem:[%s772_s1 + $0xb0] sm:$0xff] }
   0x8   :  { %v76_v29 = vld [vmem:[%s772_s1 + $0x1a0] sm:$0xff]  ;;  %483 = vmatprep.subr.bf16.mxu1 %v482_v21  ;;  %v77_v30 = vld [vmem:[%s772_s1 + $0x1a8] sm:$0xff]  ;;  %v456_v33 = vpack.c.bf16 %v29_v28, %v28_v27  ;;  %v47_v36 = vld [vmem:[%s772_s1 + $0xb8] sm:$0xff] }
   0x9   :  { %v60_v31 = vld [vmem:[%s772_s1 + $0x120] sm:$0xff]  ;;  %v61_v32 = vld [vmem:[%s772_s1 + $0x128] sm:$0xff]  ;;  %453 = vmatpush3.bf16.msra.mxu0 %v452_v17  ;;  %v486_v34 = vpack.c.bf16 %v77_v30, %v76_v29  ;;  %v30_v37 = vld [vmem:[%s772_s1 + $0x30] sm:$0xff]  ;;  %v458_v39 = vpack.c.bf16 %v47_v36, %v46_v35 }
   0xa   :  { %455 = vmatprep.subr.bf16.mxu0 %v454_v26  ;;  %v488_v38 = vpack.c.bf16 %v61_v32, %v60_v31  ;;  %v31_v40 = vld [vmem:[%s772_s1 + $0x38] sm:$0xff]  ;;  %v78_v41 = vld [vmem:[%s772_s1 + $0x1b0] sm:$0xff]  ;;  %v48_v46 = vld [vmem:[%s772_s1 + $0xc0] sm:$0xff] }
   0xb   :  { %485 = vmatpush3.bf16.msra.mxu1 %v484_v25  ;;  %v79_v42 = vld [vmem:[%s772_s1 + $0x1b8] sm:$0xff]  ;;  %v62_v44 = vld [vmem:[%s772_s1 + $0x130] sm:$0xff]  ;;  %v49_v47 = vld [vmem:[%s772_s1 + $0xc8] sm:$0xff]  ;;  %v460_v48 = vpack.c.bf16 %v31_v40, %v30_v37 }
   0xc   :  { %487 = vmatprep.subr.bf16.mxu1 %v486_v34  ;;  %v490_v43 = vpack.c.bf16 %v79_v42, %v78_v41  ;;  %v63_v45 = vld [vmem:[%s772_s1 + $0x138] sm:$0xff]  ;;  %v80_v49 = vld [vmem:[%s772_s1 + $0x1c0] sm:$0xff]  ;;  %v81_v50 = vld [vmem:[%s772_s1 + $0x1c8] sm:$0xff]  ;;  %v462_v55 = vpack.c.bf16 %v49_v47, %v48_v46  ;;  %v523_v47 = vmov 0.0|0.0  }
   0xd   :  { %457 = vmatpush3.bf16.msra.mxu0 %v456_v33  ;;  %v492_v54 = vpack.c.bf16 %v63_v45, %v62_v44  ;;  %v32_v56 = vld [vmem:[%s772_s1 + $0x40] sm:$0xff]  ;;  %v33_v57 = vld [vmem:[%s772_s1 + $0x48] sm:$0xff]  ;;  %v494_v59 = vpack.c.bf16 %v81_v50, %v80_v49  ;;  %v50_v61 = vld [vmem:[%s772_s1 + $0xd0] sm:$0xff] }
   0xe   :  { %459 = vmatprep.subr.bf16.mxu0 %v458_v39  ;;  %v64_v58 = vld [vmem:[%s772_s1 + $0x140] sm:$0xff]  ;;  %v65_v60 = vld [vmem:[%s772_s1 + $0x148] sm:$0xff]  ;;  %v51_v62 = vld [vmem:[%s772_s1 + $0xd8] sm:$0xff]  ;;  %v464_v1 = vpack.c.bf16 %v33_v57, %v32_v56 }
   0xf   :  { %489 = vmatpush3.bf16.msra.mxu1 %v488_v38  ;;  %v82_v63 = vld [vmem:[%s772_s1 + $0x1d0] sm:$0xff]  ;;  %v83_v0 = vld [vmem:[%s772_s1 + $0x1d8] sm:$0xff]  ;;  %v496_v4 = vpack.c.bf16 %v65_v60, %v64_v58  ;;  %v466_v5 = vpack.c.bf16 %v51_v62, %v50_v61  ;;  %v52_v11 = vld [vmem:[%s772_s1 + $0xe0] sm:$0xff] }
  0x10   :  { %491 = vmatprep.subr.bf16.mxu1 %v490_v43  ;;  %v34_v6 = vld [vmem:[%s772_s1 + $0x50] sm:$0xff]  ;;  %v35_v7 = vld [vmem:[%s772_s1 + $0x58] sm:$0xff]  ;;  %v498_v9 = vpack.c.bf16 %v83_v0, %v82_v63  ;;  %v53_v12 = vld [vmem:[%s772_s1 + $0xe8] sm:$0xff] }
  0x11   :  { %461 = vmatpush3.bf16.msra.mxu0 %v460_v48  ;;  %v66_v8 = vld [vmem:[%s772_s1 + $0x150] sm:$0xff]  ;;  %v67_v10 = vld [vmem:[%s772_s1 + $0x158] sm:$0xff]  ;;  %v84_v13 = vld [vmem:[%s772_s1 + $0x1e0] sm:$0xff]  ;;  %v468_v15 = vpack.c.bf16 %v35_v7, %v34_v6  ;;  %v470_v21 = vpack.c.bf16 %v53_v12, %v52_v11 }
  0x12   :  { %463 = vmatprep.subr.bf16.mxu0 %v462_v55  ;;  %v85_v14 = vld [vmem:[%s772_s1 + $0x1e8] sm:$0xff]  ;;  %v36_v16 = vld [vmem:[%s772_s1 + $0x60] sm:$0xff]  ;;  %v500_v20 = vpack.c.bf16 %v67_v10, %v66_v8  ;;  %v54_v24 = vld [vmem:[%s772_s1 + $0xf0] sm:$0xff] }
  0x13   :  { %493 = vmatpush3.bf16.msra.mxu1 %v492_v54  ;;  %v37_v17 = vld [vmem:[%s772_s1 + $0x68] sm:$0xff]  ;;  %v68_v18 = vld [vmem:[%s772_s1 + $0x160] sm:$0xff]  ;;  %v502_v23 = vpack.c.bf16 %v85_v14, %v84_v13  ;;  %v55_v25 = vld [vmem:[%s772_s1 + $0xf8] sm:$0xff] }
  0x14   :  { %495 = vmatprep.subr.bf16.mxu1 %v494_v59  ;;  %v69_v22 = vld [vmem:[%s772_s1 + $0x168] sm:$0xff]  ;;  %v521_v26 = vld.sshfl [vmem:[%s773_s0] sm:$0xff pattern:$0x75316420]  ;;  %v86_v27 = vld [vmem:[%s772_s1 + $0x1f0] sm:$0xff]  ;;  %v472_v29 = vpack.c.bf16 %v37_v17, %v36_v16  ;;  %v474_v31 = vpack.c.bf16 %v55_v25, %v54_v24 }
  0x15   :  { %465 = vmatpush3.bf16.msra.mxu0 %v464_v1  ;;  %v87_v28 = vld [vmem:[%s772_s1 + $0x1f8] sm:$0xff]  ;;  %v504_v30 = vpack.c.bf16 %v69_v22, %v68_v18  ;;  %v38_v32 = vld [vmem:[%s772_s1 + $0x70] sm:$0xff]  ;;  %v105_v37 = vcombine.high %v521_v26, %v521_v26  ;;  %v112_v40 = vrot.slane %v521_v26, %v103_v19  ;;  %v266_v44 = vld [vmem:[%s774_s3] sm:$0xff] }
  0x16   :  { %467 = vmatprep.subr.bf16.mxu0 %v466_v5  ;;  %v39_v33 = vld [vmem:[%s772_s1 + $0x78] sm:$0xff]  ;;  %v506_v34 = vpack.c.bf16 %v87_v28, %v86_v27  ;;  %v70_v35 = vld [vmem:[%s772_s1 + $0x170] sm:$0xff]  ;;  %v267_v45 = vld [vmem:[%s774_s3 + $0x8] sm:$0xff] }
  0x17   :  { %497 = vmatpush3.bf16.msra.mxu1 %v496_v4  ;;  %v71_v36 = vld [vmem:[%s772_s1 + $0x178] sm:$0xff]  ;;  %v476_v38 = vpack.c.bf16 %v39_v33, %v38_v32  ;;  %v119_v39 = vrot.slane %v105_v37, %v103_v19  ;;  %v120_v43 = vcombine.high %v112_v40, %v112_v40  ;;  %v511_v46 = vpack.c.bf16 %v267_v45, %v266_v44  ;;  %v268_v48 = vld [vmem:[%s774_s3 + $0x10] sm:$0xff]  ;;  %v357_v53 = vld [vmem:[%s775_s2] ss:$0 sm:$0xff] }
  0x18   :  { %499 = vmatprep.subr.bf16.mxu1 %v498_v9  ;;  %v508_v41 = vpack.c.bf16 %v71_v36, %v70_v35  ;;  %v269_v49 = vld [vmem:[%s774_s3 + $0x18] sm:$0xff]  ;;  %v358_v61 = vld [vmem:[%s776_s4] ss:$0 sm:$0xff] }
  0x19   :  { %469 = vmatpush3.bf16.msra.mxu0 %v468_v15  ;;  %190 = vmatprep.mubr.f32.mxu0 %v119_v39  ;;  %v121_v42 = vcombine.high %v119_v39, %v119_v39  ;;  %v514_v50 = vpack.c.bf16 %v269_v49, %v268_v48 }
  0x1a   :  { %471 = vmatprep.subr.bf16.mxu0 %v470_v21 }
  0x1b   :  { %501 = vmatpush3.bf16.msra.mxu1 %v500_v20  ;;  %260 = vmatprep.mubr.f32.mxu1 %v121_v42 }
  0x1c   :  { %503 = vmatprep.subr.bf16.mxu1 %v502_v23 }
  0x1d   :  { %473 = vmatpush3.bf16.msra.mxu0 %v472_v29 }
  0x1e   :  { %475 = vmatprep.subr.bf16.mxu0 %v474_v31 }
  0x1f   :  { %505 = vmatpush3.bf16.msra.mxu1 %v504_v30 }
  0x20   :  { %507 = vmatprep.subr.bf16.mxu1 %v506_v34 }
  0x21   :  { %477 = vmatpush3.bf16.msra.mxu0 %v476_v38 }
  0x22   :  { %510 = vmatprep.subr.bf16.mxu0 %v523_v47 }
  0x23   :  { %509 = vmatpush3.bf16.msra.mxu1 %v508_v41 }
  0x24   :  { %191 = vmatmul.mubr.f32.vlgmr.msra.gmra.mrb[0].mxu0 %v112_v40 }
  0x25   :  { %512 = vmatpush3.bf16.msra.mxu0 %v511_v46  ;;  %443 = vmatprep.mubr.msk.f32.mxu0 %vm524_vm0, %v525_v51 }
  0x26   :  { %261 = vmatmul.mubr.f32.vlgmr.msra.gmra.mrb[0].mxu1 %v120_v43  ;;  %513 = vmatprep.subr.bf16.mxu0 %v523_v47 }
  0x29   :  { %515 = vmatpush3.bf16.msra.mxu0 %v514_v50 }
  0xf7   :  { %v392_v52 = vpop.f32.mrb[0].mxu0 }
  0xf8   :  { %v393_v54 = vpop.f32.mrb[1].mxu0 }
  0xf9   :  { %v427_v55 = vpop.f32.mrb[0].mxu1  ;;  %v394_v56 = vadd.f32 %v393_v54, %v392_v52 }
  0xfa   :  { %v428_v57 = vpop.f32.mrb[1].mxu1 }
  0xfb   :  { %v429_v58 = vadd.f32 %v428_v57, %v427_v55  ;;  %v193_v59 = vadd.f32 %v394_v56, %v357_v53 }
  0xfd   :  { %v263_v60 = vadd.f32 %v429_v58, %v193_v59 }
  0xff   :  { %444 = vmatmul.mubr.msk.f32.vlgmr.msra.gmra.mrb[2].mxu0 %vm277_vm1, %v263_v60 }
 0x1d2   :  { %v347_v62 = vpop.f32.mrb[2].mxu0 }
 0x1d3   :  { %v348_v63 = vadd.f32 %v358_v61, %v347_v62  ;;  %v445_v0 = vpop.f32.mrb[3].mxu0 }
 0x1d5   :  { %352 = vst.msk [vmem:[%s777_s5] sm:$0x3] %vm351_vm2, %v348_v63 }

</bundles_post_ra>
